<compile_context>
chip_gen: v7x
topology: tpu7x:2x2x1
jax: 0.10.0
libtpu: 0.0.40
codegen_flags: <defaults>
</compile_context>

<pallas_src>
import math
from functools import partial

import numpy as np
import jax
import jax.numpy as jnp
from jax import lax
from jax.experimental import pallas as pl
from jax.experimental.pallas import tpu as pltpu


ROW_CHUNK = 512                          # in-kernel sub-chunk (rows): bounds f32 temps
_VMEM_CEILING_CAP = 40 * 1024 * 1024     # never plan more than this for tile buffers


def _round_up(x, m):
    return ((x + m - 1) // m) * m


def _cdiv(a, b):
    return -(-a // b)


def _is_multi_core_chip():
    """Best effort: does this chip have >1 TensorCore (v7x)? v5e/v6e have 1."""
    try:
        kind = jax.devices()[0].device_kind.lower()
    except Exception:
        return False
    return ("v7" in kind) or ("7x" in kind)


def _vmem_capacity_bytes():
    try:
        cap = int(pltpu.get_tpu_info().vmem_capacity_bytes)
        if cap > 0:
            return cap
    except Exception:
        pass
    return 64 * 1024 * 1024  # conservative default: v7x per-TC physical VMEM


# ----------------------------- kernels ------------------------------------- #

def _time_encoder_kernel(ts_ref, fp_ref, w_ref, out_ref, *, chunk, mxu_dtype):
    # ts_ref:  (te, 1)     f32   (lane-padded in VMEM; budgeted in vmem_limit)
    # fp_ref:  (2, D)      f32   row 0 = basis_freq, row 1 = phase (grid-constant)
    # w_ref:   (Dout, D)   mxu_dtype  (nn.Linear weight [out, in], NOT transposed)
    # out_ref: (te, Dout)
    freq = fp_ref[0:1, :]
    phase = fp_ref[1:2, :]
    n_chunks = ts_ref.shape[0] // chunk

    def body(j, carry):
        r0 = pl.multiple_of(j * chunk, chunk)
        ts = ts_ref[pl.ds(r0, chunk), :]                # (chunk, 1) f32
        map_ts = ts * freq + phase                      # VPU broadcast, f32
        harmonic = jnp.cos(map_ts)                      # EUP, f32
        # harmonic @ W.T without materializing a transpose: contract harmonic
        # dim 1 against the weight's "in" dim (dim 1) on the MXU.
        out = lax.dot_general(
            harmonic.astype(mxu_dtype), w_ref[...],
            dimension_numbers=(((1,), (1,)), ((), ())),
            preferred_element_type=jnp.float32)
        out_ref[pl.ds(r0, chunk), :] = out.astype(out_ref.dtype)
        return carry

    lax.fori_loop(0, n_chunks, body, 0)


def _time_encoder_kernel_no_linear(ts_ref, fp_ref, out_ref, *, chunk):
    freq = fp_ref[0:1, :]
    phase = fp_ref[1:2, :]
    n_chunks = ts_ref.shape[0] // chunk

    def body(j, carry):
        r0 = pl.multiple_of(j * chunk, chunk)
        ts = ts_ref[pl.ds(r0, chunk), :]
        out_ref[pl.ds(r0, chunk), :] = jnp.cos(ts * freq + phase).astype(out_ref.dtype)
        return carry

    lax.fori_loop(0, n_chunks, body, 0)


# --------------------------- tile planning --------------------------------- #

def _plan_tile_rows(E, tile_e_max, multi_core, bytes_per_row, fixed_bytes, ceiling):
    E8 = _round_up(max(int(E), 1), 8)
    cap = max(ROW_CHUNK, (int(tile_e_max) // ROW_CHUNK) * ROW_CHUNK)
    if E8 <= cap:
        if multi_core and E8 >= 2 * ROW_CHUNK:
            te = _round_up(_cdiv(E8, 2), ROW_CHUNK)      # 2 steps -> both v7x TCs busy
        elif E8 <= ROW_CHUNK:
            te = E8                                      # one small exact step
        else:
            te = _round_up(E8, ROW_CHUNK)                # one big step (single-TC chips)
    else:
        te = cap
        if multi_core:
            steps = _cdiv(E8, te)
            if steps % 2:                                # prefer even step count on v7x
                te = _round_up(_cdiv(E8, steps + 1), ROW_CHUNK)
    # Shrink until the double-buffered tile footprint fits the VMEM ceiling.
    while te > ROW_CHUNK and fixed_bytes + te * bytes_per_row > ceiling:
        te = _round_up(te // 2, ROW_CHUNK)
    return max(8, te)


# ------------------------------ wrapper ------------------------------------ #

def time_encoder(ts, basis_freq, phase, dense_weight=None, *,
                 tile_e=8192, out_dtype=jnp.float32, mxu_dtype=jnp.bfloat16,
                 core_parallel=False):
    """
    ts:           [E] or [E, 1] float32 time values
    basis_freq:   [D] float32
    phase:        [D] float32
    dense_weight: [Dout, D] nn.Linear weight ([out, in]) or None.
                  Pre-cast it to `mxu_dtype` once outside hot loops to skip a
                  per-call f32->bf16 HBM round trip.
    out_dtype:    f32 matches the PyTorch module; bf16 roughly halves the
                  dominant HBM writeback if downstream tolerates it.
    mxu_dtype:    dtype of the MXU operands (bf16 default; pass jnp.float32 for
                  bit-closer-to-torch matmul at lower MXU throughput).
    core_parallel: on v7x, use pltpu.CORE_PARALLEL for the edge axis (verify
                  both TCs busy in xprof before enabling in production).
    Note: like the f32 torch reference, cos() of huge raw timestamps
    (|ts*freq| >~ 1e7) loses precision; pre-subtract a reference time upstream.
    """
    if ts.ndim == 1:
        ts = ts.reshape(-1, 1)
    E = ts.shape[0]
    D = basis_freq.shape[0]
    ts = ts.astype(jnp.float32)

    # Pack freq + phase into one grid-constant (2, D) block: a single tiny DMA.
    fp = jnp.concatenate(
        [basis_freq.reshape(1, D), phase.reshape(1, D)], axis=0).astype(jnp.float32)

    Dp = _round_up(D, 128)
    out_itemsize = jnp.dtype(out_dtype).itemsize
    multi_core = _is_multi_core_chip()
    ceiling = min(_VMEM_CEILING_CAP,
                  max(12 * 1024 * 1024, int(0.6 * _vmem_capacity_bytes())))

    use_linear = dense_weight is not None
    if use_linear:
        Dout, Din = dense_weight.shape
        assert Din == D, "dense_weight must be [expand_dim, time_dim]"
        if dense_weight.dtype != mxu_dtype:
            # Callers should pre-cast once; this is the fallback.
            dense_weight = dense_weight.astype(mxu_dtype)
        Doutp = _round_up(Dout, 128)
        w_vmem = _round_up(Dout, 16) * Dp * jnp.dtype(mxu_dtype).itemsize
        # Resident, single-buffered weight must stay a small share of VMEM.
        # TODO(synk): add a K/N-tiled accumulator path (grid over D + pl.when
        # init/finalize) for time_dim large enough that the weight stops fitting.
        assert w_vmem <= 8 * 1024 * 1024, "weight too large for resident-VMEM path"
    else:
        Dout, Doutp, w_vmem = D, Dp, 0

    # Per-row VMEM cost: lane-padded (te,1) ts block (128x raw!) + output tile,
    # both double-buffered.  Fixed cost: (2,D) consts + weight + chunk temps.
    bytes_per_row = 128 * 4 * 2 + Doutp * out_itemsize * 2
    fixed_bytes = 8 * Dp * 4 + w_vmem + ROW_CHUNK * max(Dp, Doutp) * 16

    te = _plan_tile_rows(E, tile_e, multi_core, bytes_per_row, fixed_bytes, ceiling)
    chunk = min(ROW_CHUNK, te)          # te is either < ROW_CHUNK or a multiple of it

    E_pad = _round_up(E, te)
    if E_pad != E:
        # Cheap (E*4 B) pad so every ts block read is in bounds; the final
        # *output* block stays partial and Pallas masks its HBM writeback —
        # no post-call out[:E] copy on this writeback-bound kernel.
        ts = jnp.pad(ts, ((0, E_pad - E), (0, 0)))
    grid = (E_pad // te,)

    vmem_limit = max(int((fixed_bytes + te * bytes_per_row) * 1.25) + (2 << 20),
                     16 * 1024 * 1024)

    ts_spec = pl.BlockSpec((te, 1), lambda i: (i, 0))
    const_buf = pl.Buffered(1)          # grid-constant blocks: single buffer, one DMA
    fp_spec = pl.BlockSpec((2, D), lambda i: (0, 0), pipeline_mode=const_buf)
    out_spec = pl.BlockSpec((te, Dout), lambda i: (i, 0))

    semantics = (pltpu.CORE_PARALLEL,) if core_parallel else ("parallel",)
    compiler_params = pltpu.CompilerParams(
        dimension_semantics=semantics, vmem_limit_bytes=vmem_limit)

    out_shape = jax.ShapeDtypeStruct((E, Dout), out_dtype)

    if use_linear:
        w_spec = pl.BlockSpec((Dout, D), lambda i: (0, 0), pipeline_mode=const_buf)
        cost = pl.CostEstimate(
            flops=int(2 * E * D * Dout + 2 * E * D),
            transcendentals=int(E * D),
            bytes_accessed=int(E * 4 + 2 * D * 4
                               + Dout * D * jnp.dtype(mxu_dtype).itemsize
                               + E * Dout * out_itemsize))
        return pl.pallas_call(
            partial(_time_encoder_kernel, chunk=chunk, mxu_dtype=mxu_dtype),
            out_shape=out_shape,
            grid_spec=pltpu.PrefetchScalarGridSpec(
                num_scalar_prefetch=0, grid=grid,
                in_specs=[ts_spec, fp_spec, w_spec],
                out_specs=out_spec),
            compiler_params=compiler_params,
            cost_estimate=cost,
        )(ts, fp, dense_weight)
    else:
        cost = pl.CostEstimate(
            flops=int(2 * E * D),
            transcendentals=int(E * D),
            bytes_accessed=int(E * 4 + 2 * D * 4 + E * D * out_itemsize))
        return pl.pallas_call(
            partial(_time_encoder_kernel_no_linear, chunk=chunk),
            out_shape=out_shape,
            grid_spec=pltpu.PrefetchScalarGridSpec(
                num_scalar_prefetch=0, grid=grid,
                in_specs=[ts_spec, fp_spec],
                out_specs=out_spec),
            compiler_params=compiler_params,
            cost_estimate=cost,
        )(ts, fp)


# ------------------------------ reference ---------------------------------- #

def _reference(ts, basis_freq, phase, dense_weight=None):
    if ts.ndim == 1:
        ts = ts.reshape(-1, 1)
    map_ts = ts * basis_freq.reshape(1, -1) + phase.reshape(1, -1)
    harmonic = jnp.cos(map_ts)
    if dense_weight is not None:
        harmonic = harmonic @ dense_weight.T
    return harmonic


if __name__ == "__main__":
    key = jax.random.PRNGKey(0)
    k_ts1, k_ts2, k_ts3, k_w = jax.random.split(key, 4)

    D = 128  # time_dim == expand_dim (embedding_dim)

    # ----- deterministic parameter init (mirrors TimeEncoder.__init__) -----
    basis_freq = jnp.asarray(1.0 / 10.0 ** np.linspace(0.0, 9.0, D), dtype=jnp.float32)
    phase = jnp.zeros((D,), dtype=jnp.float32)
    std = math.sqrt(2.0 / (D + D))  # xavier_normal_ for a (D, D) Linear weight
    dense_weight = std * jax.random.normal(k_w, (D, D), dtype=jnp.float32)
    # Hoisted one-time bf16 cast of the weight (no per-call HBM round trip).
    dense_weight_bf16 = dense_weight.astype(jnp.bfloat16)

    # case 1: use_linear_trans=True, E divisible by 8 -> single big tile.
    E1 = 1024
    ts1 = jax.random.uniform(k_ts1, (E1, 1), dtype=jnp.float32, minval=0.0, maxval=100.0)
    out1 = jax.block_until_ready(time_encoder(ts1, basis_freq, phase, dense_weight_bf16))
    ref1 = _reference(ts1, basis_freq, phase, dense_weight)
    # bf16 MXU operands (f32 accumulation) -> loosened tolerance vs pure-f32 ref.
    np.testing.assert_allclose(np.asarray(out1), np.asarray(ref1), rtol=2e-2, atol=2e-2)

    # case 2: no linear transform, ragged E -> partial output block masked writeback.
    E2 = 300
    ts2 = jax.random.uniform(k_ts2, (E2,), dtype=jnp.float32, minval=0.0, maxval=100.0)
    out2 = jax.block_until_ready(time_encoder(ts2, basis_freq, phase, None))
    ref2 = _reference(ts2, basis_freq, phase, None)
    np.testing.assert_allclose(np.asarray(out2), np.asarray(ref2), rtol=1e-5, atol=1e-5)

    # case 3: linear trans, multi-step grid with a partial final block (tile_e=512).
    E3 = 1300
    ts3 = jax.random.uniform(k_ts3, (E3, 1), dtype=jnp.float32, minval=0.0, maxval=100.0)
    out3 = jax.block_until_ready(
        time_encoder(ts3, basis_freq, phase, dense_weight_bf16, tile_e=512))
    ref3 = _reference(ts3, basis_freq, phase, dense_weight)
    np.testing.assert_allclose(np.asarray(out3), np.asarray(ref3), rtol=2e-2, atol=2e-2)

    print("KERNEL_OK")
</pallas_src>

<mosaic_0001>
module attributes {stable_mosaic.version = 11 : i64} {
  func.func @_time_encoder_kernel(%arg0: i32, %arg1: memref<1024x1xf32, #tpu.memory_space<vmem>>, %arg2: memref<2x128xf32, #tpu.memory_space<vmem>>, %arg3: memref<128x128xbf16, #tpu.memory_space<vmem>>, %arg4: memref<1024x128xf32, #tpu.memory_space<vmem>>) attributes {dimension_semantics = [#tpu.dimension_semantics<parallel>], iteration_bounds = array<i64: 1>, scalar_prefetch = 0 : i64, scratch_operands = 0 : i64, tpu.core_type = #tpu.core_type<tc>, window_params = [{transform_indices = @transform_0, window_bounds = array<i64: 1024, 1>}, {pipeline_mode = #tpu.pipeline_mode<synchronous>, transform_indices = @transform_1, window_bounds = array<i64: 2, 128>}, {pipeline_mode = #tpu.pipeline_mode<synchronous>, transform_indices = @transform_2, window_bounds = array<i64: 128, 128>}, {transform_indices = @transform_3, window_bounds = array<i64: 1024, 128>}]} {
    %c0 = arith.constant 0 : index
    %c0_0 = arith.constant 0 : index
    %0 = vector.load %arg2[%c0, %c0_0] : memref<2x128xf32, #tpu.memory_space<vmem>>, vector<1x128xf32>
    %c1 = arith.constant 1 : index
    %c0_1 = arith.constant 0 : index
    %1 = vector.load %arg2[%c1, %c0_1] : memref<2x128xf32, #tpu.memory_space<vmem>>, vector<1x128xf32>
    %c0_i32 = arith.constant 0 : i32
    %c2_i32 = arith.constant 2 : i32
    %2 = arith.addi %c0_i32, %c2_i32 : i32
    %c1_i32 = arith.constant 1 : i32
    scf.for %arg5 = %c0_i32 to %2 step %c1_i32  : i32 {
      %c512_i32 = arith.constant 512 : i32
      %3 = arith.muli %arg5, %c512_i32 : i32
      %4 = tpu.assume_multiple %3, 512 : i32
      %5 = arith.index_cast %4 : i32 to index
      %c0_3 = arith.constant 0 : index
      %6 = vector.load %arg1[%5, %c0_3] : memref<1024x1xf32, #tpu.memory_space<vmem>>, vector<512x1xf32>
      %7 = vector.broadcast %6 : vector<512x1xf32> to vector<512x128xf32>
      %8 = vector.broadcast %0 : vector<1x128xf32> to vector<512x128xf32>
      %9 = arith.mulf %7, %8 : vector<512x128xf32>
      %10 = vector.broadcast %1 : vector<1x128xf32> to vector<512x128xf32>
      %11 = arith.addf %9, %10 : vector<512x128xf32>
      %12 = math.cos %11 : vector<512x128xf32>
      %13 = arith.truncf %12 : vector<512x128xf32> to vector<512x128xbf16>
      %c0_4 = arith.constant 0 : index
      %c0_5 = arith.constant 0 : index
      %14 = vector.load %arg3[%c0_4, %c0_5] : memref<128x128xbf16, #tpu.memory_space<vmem>>, vector<128x128xbf16>
      %cst = arith.constant dense<0.000000e+00> : vector<512x128xf32>
      %15 = tpu.matmul %13, %14, %cst {dimension_numbers = #tpu.dot_dimension_numbers<[1], [1], [0], [0], [0, 0, 1, 0], [], []>} : vector<512x128xbf16>, vector<128x128xbf16>, vector<512x128xf32> -> vector<512x128xf32>
      %16 = arith.index_cast %4 : i32 to index
      %c0_6 = arith.constant 0 : index
      %17 = vector.load %arg4[%16, %c0_6] : memref<1024x128xf32, #tpu.memory_space<vmem>>, vector<512x128xf32>
      tpu.vector_store %arg4[%16, %c0_6], %15 {strides = array<i32>} : memref<1024x128xf32, #tpu.memory_space<vmem>>, vector<512x128xf32>,
    }
    %c2_i32_2 = arith.constant 2 : i32
    return
  }
  func.func @transform_0(%arg0: i32) -> (i32, i32) {
    %c0_i32 = arith.constant 0 : i32
    %c0_i32_0 = arith.constant 0 : i32
    return %arg0, %c0_i32 : i32, i32
  }
  func.func @transform_1(%arg0: i32) -> (i32, i32) {
    %c0_i32 = arith.constant 0 : i32
    %c0_i32_0 = arith.constant 0 : i32
    %c0_i32_1 = arith.constant 0 : i32
    return %c0_i32, %c0_i32_0 : i32, i32
  }
  func.func @transform_2(%arg0: i32) -> (i32, i32) {
    %c0_i32 = arith.constant 0 : i32
    %c0_i32_0 = arith.constant 0 : i32
    %c0_i32_1 = arith.constant 0 : i32
    return %c0_i32, %c0_i32_0 : i32, i32
  }
  func.func @transform_3(%arg0: i32) -> (i32, i32) {
    %c0_i32 = arith.constant 0 : i32
    %c0_i32_0 = arith.constant 0 : i32
    return %arg0, %c0_i32 : i32, i32
  }
}

</mosaic_0001>

<bundles_post_ra>
// kernel: tpu_custom_call.1
= control target key start
LH: loop header
LB: loop body
LE: loop exit
PB: predicated region body
PF: predicated region fallthrough
CT: control target
= control target key end

     0   :  { %8 = vsyncpa [#allocation3], 0  ;;  %s8628_s16 = smov 0   ;;  %s15926_s0 = inlined_call_operand.vmem [shape: f32[1024,1], index: 0, kind: input, shape index: {}]   ;;  %s15927_s1 = inlined_call_operand.vmem [shape: f32[2,128], index: 1, kind: input, shape index: {}]   ;;  %s15928_s2 = inlined_call_operand.vmem [shape: bf16[128,128], index: 2, kind: input, shape index: {}]   ;;  %s15929_s3 = inlined_call_operand.hbm [shape: f32[1024,128], index: 3, kind: output, shape index: {}]  }
   0x1   :  { %v8621_v0 = vld [vmem:[%s15927_s1] ss:$0 sm:$0xff]  ;;  %v8626_v1 = vld [vmem:[%s15927_s1 + $0x1] ss:$0 sm:$0xff] }
   0x2   :  { %16535 = vst [vmem:[#allocation5_spill] sm:$0xff] %v8621_v0  ;;  %16536 = vst [vmem:[#allocation6_spill] sm:$0xff] %v8626_v1 }
   0x3 LB: > { %v8588_v2 = vmov 0   ;;  %s7613_s17 = sshll.u32 %s8586_s16, 9  ;;  %s23_s16 = sadd.s32 1, %s8586_s16   ;;  %s8586_s16 = sphi %s8628_s16, %s23_s16  }
   0x4   : > { %8291 = vset.pattern.permute.xlu1 %v8588_v2  ;;  %8290 = vset.pattern.permute.xlu0 %v8588_v2  ;;  %s8639_s20 = scalar_lea.vmem %s15926_s0, %s7613_s17  ;;  %s15443_s9 = scalar_lea.vmem [#allocation2], %s7613_s17 }
   0x5   : > { %v58_v3 = vld [vmem:[%s8639_s20 + $0x100] sm:$0xff]  ;;  %v59_v5 = vld [vmem:[%s8639_s20 + $0x108] sm:$0xff]  ;;  %v29_v7 = vld [vmem:[%s8639_s20 + $0x18] sm:$0xff]  ;;  %p20_p0 = scmp.ge.s32.totalorder %s23_s16, 2  }
   0x6   : > { %v26_v4 = vld [vmem:[%s8639_s20] sm:$0xff]  ;;  %252 = vperm.xlu1 %8291, %v58_v3   ;;  %v27_v6 = vld [vmem:[%s8639_s20 + $0x8] sm:$0xff]  ;;  %v28_v8 = vld [vmem:[%s8639_s20 + $0x10] sm:$0xff]  ;;  %s8595_s10 = smov (%p20_p0), [#allocation2]  }
   0x7   : > { %92 = vperm.xlu0 %8290, %v26_v4   ;;  %v61_v9 = vld [vmem:[%s8639_s20 + $0x118] sm:$0xff]  ;;  %v60_v10 = vld [vmem:[%s8639_s20 + $0x110] sm:$0xff]  ;;  %v31_v11 = vld [vmem:[%s8639_s20 + $0x28] sm:$0xff]  ;;  %s7593_s11 = sshll.u32 (%p20_p0), %s8595_s10, 4  ;;  %s7594_s11 = int_to_ptr.vmem [resolvable:$true] %s7593_s11 }
   0x8   : > { %v30_v12 = vld [vmem:[%s8639_s20 + $0x20] sm:$0xff]  ;;  %v63_v13 = vld [vmem:[%s8639_s20 + $0x128] sm:$0xff]  ;;  %v33_v15 = vld [vmem:[%s8639_s20 + $0x38] sm:$0xff]  ;;  %s8556_s12 = scalar_lea.vmem (%p20_p0), %s7594_s11, 16384  ;;  %p8561_p2 = scmp.lt.s32.totalorder (%p20_p0), %s7594_s11, %s7594_s11 }
   0x9   : > { %v16537_v1 = vld [vmem:[#allocation6_spill] sm:$0xff]  ;;  %v16538_v0 = vld [vmem:[#allocation5_spill] sm:$0xff]  ;;  %v32_v16 = vld [vmem:[%s8639_s20 + $0x30] sm:$0xff]  ;;  %p8557_p1 = scmp.ne.s32.totalorder (%p20_p0), %s7594_s11, %s8556_s12  ;;  %p8562_p3 = scmp.lt.s32.totalorder (%p20_p0), %s8556_s12, %s8556_s12 }
   0xa   : > { %257 = vperm.xlu1 %8291, %v59_v5   ;;  %v62_v14 = vld [vmem:[%s8639_s20 + $0x120] sm:$0xff]  ;;  %v65_v17 = vld [vmem:[%s8639_s20 + $0x138] sm:$0xff]  ;;  %v64_v18 = vld [vmem:[%s8639_s20 + $0x130] sm:$0xff] }
   0xb   : > { %97 = vperm.xlu0 %8290, %v27_v6   ;;  %v35_v19 = vld [vmem:[%s8639_s20 + $0x48] sm:$0xff]  ;;  %v34_v20 = vld [vmem:[%s8639_s20 + $0x40] sm:$0xff]  ;;  %v37_v23 = vld [vmem:[%s8639_s20 + $0x58] sm:$0xff]  ;;  %p8563_p4 = por (%p20_p0), %p8562_p3, %p8561_p2 }
   0xc   : > { %v67_v21 = vld [vmem:[%s8639_s20 + $0x148] sm:$0xff]  ;;  %v66_v22 = vld [vmem:[%s8639_s20 + $0x140] sm:$0xff]  ;;  %v36_v24 = vld [vmem:[%s8639_s20 + $0x50] sm:$0xff] }
   0xd   : > { %v69_v25 = vld [vmem:[%s8639_s20 + $0x158] sm:$0xff]  ;;  %v68_v26 = vld [vmem:[%s8639_s20 + $0x150] sm:$0xff]  ;;  %v39_v27 = vld [vmem:[%s8639_s20 + $0x68] sm:$0xff]  ;;  %p8564_p5 = pnand (%p20_p0), %p8563_p4, %p8557_p1 }
   0xe   : > { %107 = vperm.xlu1 %8291, %v29_v7   ;;  %v38_v28 = vld [vmem:[%s8639_s20 + $0x60] sm:$0xff]  ;;  %v71_v29 = vld [vmem:[%s8639_s20 + $0x168] sm:$0xff]  ;;  %v41_v31 = vld [vmem:[%s8639_s20 + $0x78] sm:$0xff] }
   0xf   : > { %102 = vperm.xlu0 %8290, %v28_v8   ;;  %v70_v30 = vld [vmem:[%s8639_s20 + $0x160] sm:$0xff]  ;;  %v40_v32 = vld [vmem:[%s8639_s20 + $0x70] sm:$0xff]  ;;  %v73_v33 = vld [vmem:[%s8639_s20 + $0x178] sm:$0xff] }
  0x10   : > { %v72_v34 = vld [vmem:[%s8639_s20 + $0x170] sm:$0xff]  ;;  %v43_v35 = vld [vmem:[%s8639_s20 + $0x88] sm:$0xff]  ;;  %v42_v36 = vld [vmem:[%s8639_s20 + $0x80] sm:$0xff] }
  0x11   : > { %v75_v37 = vld [vmem:[%s8639_s20 + $0x188] sm:$0xff]  ;;  %v74_v38 = vld [vmem:[%s8639_s20 + $0x180] sm:$0xff]  ;;  %v45_v39 = vld [vmem:[%s8639_s20 + $0x98] sm:$0xff] }
  0x12   : > { %267 = vperm.xlu1 %8291, %v61_v9   ;;  %v44_v40 = vld [vmem:[%s8639_s20 + $0x90] sm:$0xff]  ;;  %v77_v41 = vld [vmem:[%s8639_s20 + $0x198] sm:$0xff]  ;;  %v47_v43 = vld [vmem:[%s8639_s20 + $0xa8] sm:$0xff] }
  0x13   : > { %262 = vperm.xlu0 %8290, %v60_v10   ;;  %v76_v42 = vld [vmem:[%s8639_s20 + $0x190] sm:$0xff]  ;;  %v46_v44 = vld [vmem:[%s8639_s20 + $0xa0] sm:$0xff]  ;;  %v79_v45 = vld [vmem:[%s8639_s20 + $0x1a8] sm:$0xff] }
  0x14   : > { %v78_v46 = vld [vmem:[%s8639_s20 + $0x1a0] sm:$0xff]  ;;  %v49_v47 = vld [vmem:[%s8639_s20 + $0xb8] sm:$0xff]  ;;  %v48_v48 = vld [vmem:[%s8639_s20 + $0xb0] sm:$0xff] }
  0x15   : > { %v81_v49 = vld [vmem:[%s8639_s20 + $0x1b8] sm:$0xff]  ;;  %v80_v50 = vld [vmem:[%s8639_s20 + $0x1b0] sm:$0xff]  ;;  %v51_v51 = vld [vmem:[%s8639_s20 + $0xc8] sm:$0xff] }
  0x16   : > { %117 = vperm.xlu1 %8291, %v31_v11   ;;  %v50_v52 = vld [vmem:[%s8639_s20 + $0xc0] sm:$0xff]  ;;  %v83_v53 = vld [vmem:[%s8639_s20 + $0x1c8] sm:$0xff]  ;;  %v53_v55 = vld [vmem:[%s8639_s20 + $0xd8] sm:$0xff] }
  0x17   : > { %112 = vperm.xlu0 %8290, %v30_v12   ;;  %v82_v54 = vld [vmem:[%s8639_s20 + $0x1c0] sm:$0xff]  ;;  %v52_v56 = vld [vmem:[%s8639_s20 + $0xd0] sm:$0xff]  ;;  %v85_v57 = vld [vmem:[%s8639_s20 + $0x1d8] sm:$0xff] }
  0x18   : > { %v84_v58 = vld [vmem:[%s8639_s20 + $0x1d0] sm:$0xff]  ;;  %v55_v59 = vld [vmem:[%s8639_s20 + $0xe8] sm:$0xff]  ;;  %v54_v60 = vld [vmem:[%s8639_s20 + $0xe0] sm:$0xff] }
  0x19   : > { %v87_v61 = vld [vmem:[%s8639_s20 + $0x1e8] sm:$0xff]  ;;  %v86_v62 = vld [vmem:[%s8639_s20 + $0x1e0] sm:$0xff]  ;;  %v57_v63 = vld [vmem:[%s8639_s20 + $0xf8] sm:$0xff] }
  0x1a   : > { %277 = vperm.xlu1 %8291, %v63_v13   ;;  %v56_v2 = vld [vmem:[%s8639_s20 + $0xf0] sm:$0xff]  ;;  %v89_v3 = vld [vmem:[%s8639_s20 + $0x1f8] sm:$0xff] }
  0x1b   : > { %272 = vperm.xlu0 %8290, %v62_v14   ;;  %v88_v4 = vld [vmem:[%s8639_s20 + $0x1f0] sm:$0xff] }
  0x1e   : > { %127 = vperm.xlu1 %8291, %v33_v15  }
  0x1f   : > { %122 = vperm.xlu0 %8290, %v32_v16  }
  0x22   : > { %287 = vperm.xlu1 %8291, %v65_v17  }
  0x23   : > { %282 = vperm.xlu0 %8290, %v64_v18  }
  0x26   : > { %137 = vperm.xlu1 %8291, %v35_v19  }
  0x27   : > { %132 = vperm.xlu0 %8290, %v34_v20  }
  0x2a   : > { %297 = vperm.xlu1 %8291, %v67_v21  }
  0x2b   : > { %292 = vperm.xlu0 %8290, %v66_v22  }
  0x2e   : > { %147 = vperm.xlu1 %8291, %v37_v23  }
  0x2f   : > { %142 = vperm.xlu0 %8290, %v36_v24  }
  0x32   : > { %307 = vperm.xlu1 %8291, %v69_v25  }
  0x33   : > { %302 = vperm.xlu0 %8290, %v68_v26  }
  0x36   : > { %157 = vperm.xlu1 %8291, %v39_v27  }
  0x37   : > { %152 = vperm.xlu0 %8290, %v38_v28  }
  0x3a   : > { %317 = vperm.xlu1 %8291, %v71_v29  }
  0x3b   : > { %312 = vperm.xlu0 %8290, %v70_v30  }
  0x3e   : > { %167 = vperm.xlu1 %8291, %v41_v31  }
  0x3f   : > { %162 = vperm.xlu0 %8290, %v40_v32  }
  0x42   : > { %327 = vperm.xlu1 %8291, %v73_v33  }
  0x43   : > { %322 = vperm.xlu0 %8290, %v72_v34   ;;  %v15941_v34 = vmov 2475754826  }
  0x46   : > { %177 = vperm.xlu1 %8291, %v43_v35  }
  0x47   : > { %172 = vperm.xlu0 %8290, %v42_v36   ;;  %v15937_v36 = vmov 2102212464  }
  0x4a   : > { %337 = vperm.xlu1 %8291, %v75_v37  }
  0x4b   : > { %332 = vperm.xlu0 %8290, %v74_v38   ;;  %v15935_v38 = vmov 920167782  }
  0x4e   : > { %187 = vperm.xlu1 %8291, %v45_v39  }
  0x4f   : > { %182 = vperm.xlu0 %8290, %v44_v40   ;;  %v15943_v40 = vmov 2131351028  }
  0x52   : > { %347 = vperm.xlu1 %8291, %v77_v41  }
  0x53   : > { %342 = vperm.xlu0 %8290, %v76_v42  }
  0x56   : > { %197 = vperm.xlu1 %8291, %v47_v43  }
  0x57   : > { %192 = vperm.xlu0 %8290, %v46_v44   ;;  %v15933_v44 = vmov 1326507024  }
  0x5a   : > { %357 = vperm.xlu1 %8291, %v79_v45  }
  0x5b   : > { %352 = vperm.xlu0 %8290, %v78_v46  }
  0x5e   : > { %207 = vperm.xlu1 %8291, %v49_v47   ;;  %v15953_v47 = vmov 683565275  }
  0x5f   : > { %202 = vperm.xlu0 %8290, %v48_v48  }
  0x62   : > { %367 = vperm.xlu1 %8291, %v81_v49  }
  0x63   : > { %362 = vperm.xlu0 %8290, %v80_v50  }
  0x66   : > { %217 = vperm.xlu1 %8291, %v51_v51  }
  0x67   : > { %212 = vperm.xlu0 %8290, %v50_v52  }
  0x6a   : > { %377 = vperm.xlu1 %8291, %v83_v53  }
  0x6b   : > { %372 = vperm.xlu0 %8290, %v82_v54  }
  0x6e   : > { %227 = vperm.xlu1 %8291, %v53_v55  }
  0x6f   : > { %222 = vperm.xlu0 %8290, %v52_v56  }
  0x72   : > { %387 = vperm.xlu1 %8291, %v85_v57  }
  0x73   : > { %382 = vperm.xlu0 %8290, %v84_v58  }
  0x76   : > { %237 = vperm.xlu1 %8291, %v55_v59  }
  0x77   : > { %232 = vperm.xlu0 %8290, %v54_v60  }
  0x7a   : > { %397 = vperm.xlu1 %8291, %v87_v61  }
  0x7b   : > { %392 = vperm.xlu0 %8290, %v86_v62  }
  0x7e   : > { %247 = vperm.xlu1 %8291, %v57_v63  }
  0x7f   : > { %242 = vperm.xlu0 %8290, %v56_v2  }
  0x82   : > { %407 = vperm.xlu1 %8291, %v89_v3  }
  0x83   : > { %402 = vperm.xlu0 %8290, %v88_v4  }
  0x85   : > { %v253_v5 = vpop.permute.xlu1 %252 }
  0x86   : > { %v93_v7 = vpop.permute.xlu0 %92  ;;  %v446_v21 = vmul.f32 %v16538_v0, %v253_v5 }
  0x87   : > { %v414_v23 = vmul.f32 %v16538_v0, %v93_v7 }
  0x88   : > { %v8719_v27 = vadd.f32 %v16537_v1, %v446_v21 }
  0x89   : > { %v258_v6 = vpop.permute.xlu1 %257  ;;  %v8724_v30 = vadd.f32 %v16537_v1, %v414_v23 }
  0x8a   : > { %v98_v9 = vpop.permute.xlu0 %97  ;;  %16541 = vst [vmem:[#allocation9_spill] sm:$0xff] %v8719_v27  ;;  %v3845_v46 = vand.u32 2139095040, %v8719_v27  ;;  %v447_v60 = vmul.f32 %v16538_v0, %v258_v6 }
  0x8b   : > { %16542 = vst [vmem:[#allocation10_spill] sm:$0xff] %v8724_v30  ;;  %v549_v54 = vand.u32 2139095040, %v8724_v30  ;;  %v415_v61 = vmul.f32 %v16538_v0, %v98_v9 }
  0x8c   : > { %v3846_v2 = vshrl.u32 %v3845_v46, 23 }
  0x8d   : > { %v108_v8 = vpop.permute.xlu1 %107  ;;  %v550_v4 = vshrl.u32 %v549_v54, 23 }
  0x8e   : > { %v417_v10 = vmul.f32 %v16538_v0, %v108_v8  ;;  %v103_v12 = vpop.permute.xlu0 %102 }
  0x8f   : > { %v416_v14 = vmul.f32 %v16538_v0, %v103_v12  ;;  %v8775_v12 = vadd.f32 %v16537_v1, %v415_v61 }
  0x90   : > { %v8707_v11 = vadd.f32 %v16537_v1, %v417_v10  ;;  %v8772_v10 = vadd.f32 %v16537_v1, %v447_v60 }
  0x91   : > { %v8712_v16 = vadd.f32 %v16537_v1, %v416_v14  ;;  %v268_v20 = vpop.permute.xlu1 %267  ;;  %16545 = vst [vmem:[#allocation13_spill] sm:$0xff] %v8775_v12 }
  0x92   : > { %16539 = vst [vmem:[#allocation7_spill] sm:$0xff] %v8707_v11  ;;  %v858_v13 = vand.u32 2139095040, %v8707_v11  ;;  %v449_v25 = vmul.f32 %v16538_v0, %v268_v20  ;;  %v15932_v31 = vand.u32 2147483647, %v8707_v11  ;;  %16544 = vst [vmem:[#allocation12_spill] sm:$0xff] %v8772_v10  ;;  %v7616_v20 = vadd.s32 4294967169, %v550_v4 }
  0x93   : > { %16540 = vst [vmem:[#allocation8_spill] sm:$0xff] %v8712_v16  ;;  %v755_v19 = vand.u32 2139095040, %v8712_v16  ;;  %v3948_v23 = vand.u32 2139095040, %v8772_v10 }
  0x94   : > { %v859_v15 = vshrl.u32 %v858_v13, 23  ;;  %v8728_v32 = vadd.f32 %v16537_v1, %v449_v25  ;;  %v862_v55 = vand.u32 8388607, %v15932_v31  ;;  %v15931_v25 = vand.u32 2147483647, %v8712_v16 }
  0x95   : > { %v756_v22 = vshrl.u32 %v755_v19, 23  ;;  %v7744_v19 = vadd.s32 4294967169, %v3846_v2 }
  0x96   : > { %v7628_v17 = vadd.s32 4294967169, %v859_v15  ;;  %16543 = vst [vmem:[#allocation11_spill] sm:$0xff] %v8728_v32  ;;  %v4154_v56 = vand.u32 2139095040, %v8728_v32  ;;  %v863_v7 = vor.u32 8388608, %v862_v55 }
  0x97   : > { %v7624_v29 = vadd.s32 4294967169, %v756_v22 }
  0x98   : > { %v865_v18 = vadd.s32 1, %v7628_v17  ;;  %v4155_v5 = vshrl.u32 %v4154_v56, 23  ;;  %v8789_v22 = vshll.u32 %v863_v7, 8 }
  0x99   : > { %v762_v49 = vadd.s32 1, %v7624_v29 }
  0x9a   : > { %vm866_vm0 = vcmp.gt.s32.totalorder %v865_v18, 0 }
  0x9b   : > { %v867_v24 = vsel %vm866_vm0, %v865_v18, 0  ;;  %vm763_vm2 = vcmp.gt.s32.totalorder %v762_v49, 0  ;;  %v7756_v18 = vadd.s32 4294967169, %v4155_v5 }
  0x9c   : > { %v869_v26 = vand.u32 31, %v867_v24  ;;  %v8730_v33 = vshrl.u32 %v867_v24, 5  ;;  %v764_v63 = vsel %vm763_vm2, %v762_v49, 0  ;;  %v652_v24 = vand.u32 2139095040, %v8775_v12 }
  0x9d   : > { %v766_v9 = vand.u32 31, %v764_v63  ;;  %v16574_v12 = vmov 683565275  }
  0x9e   : > { %v8721_v28 = vsub.s32 32, %v869_v26  ;;  %v881_v37 = vshll.u32 %v15937_v36, %v869_v26  ;;  %v884_v39 = vshll.u32 %v15935_v38, %v869_v26  ;;  %v872_v48 = vshll.u32 %v15953_v47, %v869_v26 }
  0x9f   : > { %v875_v50 = vshll.u32 %v15941_v34, %v869_v26  ;;  %v878_v51 = vshll.u32 %v15943_v40, %v869_v26  ;;  %vm890_vm1 = vcmp.lt.s32.totalorder %v8730_v33, 4  ;;  %vm887_vm3 = vcmp.lt.s32.totalorder %v8730_v33, 1 }
  0xa0   : > { %v873_v35 = vshrl.u32 %v15941_v34, %v8721_v28  ;;  %v876_v41 = vshrl.u32 %v15943_v40, %v8721_v28  ;;  %v879_v42 = vshrl.u32 %v15937_v36, %v8721_v28  ;;  %v882_v43 = vshrl.u32 %v15935_v38, %v8721_v28 }
  0xa1   : > { %v885_v45 = vshrl.u32 %v15933_v44, %v8721_v28  ;;  %vm889_vm4 = vcmp.lt.s32.totalorder %v8730_v33, 3  ;;  %vm888_vm5 = vcmp.lt.s32.totalorder %v8730_v33, 2  ;;  %v8783_v15 = vsub.s32 32, %v766_v9 }
  0xa2   : > { %v883_v52 = vor.u32 %v882_v43, %v881_v37  ;;  %v8753_v57 = vor.u32 %v873_v35, %v872_v48  ;;  %v8755_v58 = vor.u32 %v876_v41, %v875_v50  ;;  %v880_v59 = vor.u32 %v879_v42, %v878_v51 }
  0xa3   : > { %v886_v53 = vor.u32 %v885_v45, %v884_v39  ;;  %v779_v26 = vshrl.u32 %v15935_v38, %v8783_v15  ;;  %v8801_v37 = vshrl.u32 %v764_v63, 5  ;;  %v782_v39 = vshrl.u32 %v15933_v44, %v8783_v15 }
  0xa4   : > { %v896_v62 = vsel %vm890_vm1, %v883_v52, 920167782  ;;  %v895_v6 = vsel %vm887_vm3, %v8753_v57, %v8755_v58  ;;  %v899_v13 = vsel %vm887_vm3, %v8755_v58, %v880_v59  ;;  %v778_v43 = vshll.u32 %v15937_v36, %v766_v9 }
  0xa5   : > { %v900_v3 = vsel %vm890_vm1, %v886_v53, 1326507024  ;;  %v897_v8 = vsel %vm889_vm4, %v880_v59, %v896_v62  ;;  %v4161_v45 = vadd.s32 1, %v7756_v18  ;;  %v770_v46 = vshrl.u32 %v15941_v34, %v8783_v15 }
  0xa6   : > { %v901_v14 = vsel %vm889_vm4, %v883_v52, %v900_v3  ;;  %v898_v17 = vsel %vm888_vm5, %v895_v6, %v897_v8  ;;  %v773_v48 = vshrl.u32 %v15943_v40, %v8783_v15  ;;  %v776_v49 = vshrl.u32 %v15937_v36, %v8783_v15 }
  0xa7   : > { %v902_v21 = vsel %vm888_vm5, %v899_v13, %v901_v14  ;;  %v8797_v29 = vmul.u32.u64.low %v8789_v22, %v898_v17  ;;  %v8798_v35 = vmul.u32.u64.high %v8789_v22, %v898_v17, %v8797_v29  ;;  %v781_v50 = vshll.u32 %v15935_v38, %v766_v9  ;;  %v263_v17 = vpop.permute.xlu0 %262 }
  0xa8   : > { %v8806_v41 = vmul.u32.u64.low %v8789_v22, %v902_v21  ;;  %v8807_v42 = vmul.u32.u64.high %v8789_v22, %v902_v21, %v8806_v41  ;;  %v3852_v51 = vadd.s32 1, %v7744_v19  ;;  %v556_v52 = vadd.s32 1, %v7616_v20 }
  0xa9   : > { %v892_v53 = vsel %vm890_vm1, %v880_v59, 2102212464  ;;  %v780_v54 = vor.u32 %v779_v26, %v778_v43  ;;  %v769_v55 = vshll.u32 %v15953_v47, %v766_v9  ;;  %v772_v56 = vshll.u32 %v15941_v34, %v766_v9 }
  0xaa   : > { %v775_v60 = vshll.u32 %v15943_v40, %v766_v9  ;;  %v783_v61 = vor.u32 %v782_v39, %v781_v50  ;;  %v871_v62 = vshrl.u32 %v15953_v47, %v8721_v28  ;;  %v759_v63 = vand.u32 8388607, %v15931_v25 }
  0xab   : > { %vm787_vm6 = vcmp.lt.s32.totalorder %v8801_v37, 4  ;;  %vm4162_vm7 = vcmp.gt.s32.totalorder %v4161_v45, 0  ;;  %v771_v2 = vor.u32 %v770_v46, %v769_v55  ;;  %v8827_v3 = vor.u32 %v773_v48, %v772_v56 }
  0xac   : > { %v777_v59 = vor.u32 %v776_v49, %v775_v60  ;;  %v4163_v4 = vsel %vm4162_vm7, %v4161_v45, 0  ;;  %v891_v5 = vsel %vm887_vm3, %v871_v62, %v8753_v57  ;;  %v893_v7 = vsel %vm889_vm4, %v8755_v58, %v892_v53 }
  0xad   : > { %v793_v28 = vsel %vm787_vm6, %v780_v54, 920167782  ;;  %v4165_v6 = vand.u32 31, %v4163_v4  ;;  %v3949_v8 = vshrl.u32 %v3948_v23, 23  ;;  %v653_v9 = vshrl.u32 %v652_v24, 23 }
  0xae   : > { %v913_v13 = vadd.s32 1, %v8798_v35  ;;  %v797_v14 = vsel %vm787_vm6, %v783_v61, 1326507024  ;;  %vm3853_vm8 = vcmp.gt.s32.totalorder %v3852_v51, 0  ;;  %vm912_vm9 = vc.u32 %v8807_v42, %v8797_v29 }
  0xaf   : > { %vm784_vm10 = vcmp.lt.s32.totalorder %v8801_v37, 1  ;;  %vm786_vm11 = vcmp.lt.s32.totalorder %v8801_v37, 3  ;;  %v894_v57 = vsel %vm888_vm5, %v891_v5, %v893_v7  ;;  %v760_v58 = vor.u32 8388608, %v759_v63 }
  0xb0   : > { %v792_v18 = vsel %vm784_vm10, %v771_v2, %v8827_v3  ;;  %v794_v19 = vsel %vm786_vm11, %v777_v59, %v793_v28  ;;  %v796_v20 = vsel %vm784_vm10, %v8827_v3, %v777_v59  ;;  %v798_v21 = vsel %vm786_vm11, %v780_v54, %v797_v14 }
  0xb1   : > { %v8856_v23 = vsub.s32 32, %v4165_v6  ;;  %v448_v33 = vmul.f32 %v16538_v0, %v263_v17  ;;  %vm557_vm12 = vcmp.gt.s32.totalorder %v556_v52, 0  ;;  %v914_v24 = vsel %vm912_vm9, %v913_v13, %v8798_v35 }
  0xb2   : > { %vm785_vm13 = vcmp.lt.s32.totalorder %v8801_v37, 2  ;;  %v7748_v26 = vadd.s32 4294967169, %v3949_v8  ;;  %v910_v39 = vmul.u32 %v8789_v22, %v894_v57  ;;  %v3854_v43 = vsel %vm3853_vm8, %v3852_v51, 0 }
  0xb3   : > { %v795_v41 = vsel %vm785_vm13, %v792_v18, %v794_v19  ;;  %v7620_v45 = vadd.s32 4294967169, %v653_v9  ;;  %v799_v46 = vsel %vm785_vm13, %v796_v20, %v798_v21  ;;  %v8867_v48 = vshll.u32 %v760_v58, 8 }
  0xb4   : > { %v558_v49 = vsel %vm557_vm12, %v556_v52, 0  ;;  %v8869_v50 = vadd.s32 %v914_v24, %v910_v39  ;;  %v4178_v35 = vshrl.u32 %v15935_v38, %v8856_v23  ;;  %v8874_v53 = vadd.f32 %v16537_v1, %v448_v33 }
  0xb5   : > { %v8877_v22 = vmul.u32.u64.low %v8867_v48, %v795_v41  ;;  %v8878_v54 = vmul.u32.u64.high %v8867_v48, %v795_v41, %v8877_v22  ;;  %v15930_v51 = vand.u32 2147483647, %v8728_v32  ;;  %v4181_v55 = vshrl.u32 %v15933_v44, %v8856_v23 }
  0xb6   : > { %16546 = vst [vmem:[#allocation14_spill] sm:$0xff] %v8874_v53  ;;  %v8885_v52 = vmul.u32.u64.low %v8867_v48, %v799_v46  ;;  %v8886_v56 = vmul.u32.u64.high %v8867_v48, %v799_v46, %v8885_v52  ;;  %v8888_v60 = vshrl.u32 %v4163_v4, 5  ;;  %v4177_v61 = vshll.u32 %v15937_v36, %v4165_v6 }
  0xb7   : > { %v4169_v62 = vshrl.u32 %v15941_v34, %v8856_v23  ;;  %v4172_v63 = vshrl.u32 %v15943_v40, %v8856_v23  ;;  %v4175_v5 = vshrl.u32 %v15937_v36, %v8856_v23  ;;  %v4180_v7 = vshll.u32 %v15935_v38, %v4165_v6 }
  0xb8   : > { %v916_v28 = vadd.s32 536870912, %v8869_v50  ;;  %v768_v8 = vshrl.u32 %v15953_v47, %v8783_v15  ;;  %v789_v4 = vsel %vm787_vm6, %v777_v59, 2102212464  ;;  %v4179_v9 = vor.u32 %v4178_v35, %v4177_v61 }
  0xb9   : > { %v4168_v13 = vshll.u32 %v15953_v47, %v4165_v6  ;;  %v4171_v14 = vshll.u32 %v15941_v34, %v4165_v6  ;;  %v4174_v17 = vshll.u32 %v15943_v40, %v4165_v6  ;;  %v4182_v57 = vor.u32 %v4181_v55, %v4180_v7 }
  0xba   : > { %v8906_v58 = vshrl.u32 %v3854_v43, 5  ;;  %v8908_v18 = vand.u32 31, %v3854_v43  ;;  %v788_v19 = vsel %vm784_vm10, %v768_v8, %v771_v2  ;;  %v4158_v15 = vand.u32 8388607, %v15930_v51 }
  0xbb   : > { %v4170_v20 = vor.u32 %v4169_v62, %v4168_v13  ;;  %v4173_v59 = vor.u32 %v4172_v63, %v4171_v14  ;;  %v4176_v21 = vor.u32 %v4175_v5, %v4174_v17  ;;  %vm4186_vm14 = vcmp.lt.s32.totalorder %v8888_v60, 4  ;;  %v118_v17 = vpop.permute.xlu1 %117 }
  0xbc   : > { %16547 = vst [vmem:[#allocation15_spill] sm:$0xff] %v8906_v58  ;;  %16548 = vst [vmem:[#allocation16_spill] sm:$0xff] %v8908_v18  ;;  %v8915_v33 = vshrl.u32 %v916_v28, 30  ;;  %v790_v6 = vsel %vm786_vm11, %v8827_v3, %v789_v4  ;;  %v4192_v24 = vsel %vm4186_vm14, %v4179_v9, 920167782  ;;  %v4051_v39 = vand.u32 2139095040, %v8874_v53 }
  0xbd   : > { %v8923_v2 = vand.u32 31, %v558_v49  ;;  %v3955_v41 = vadd.s32 1, %v7748_v26  ;;  %v810_v43 = vadd.s32 1, %v8878_v54  ;;  %v4196_v46 = vsel %vm4186_vm14, %v4182_v57, 1326507024 }
  0xbe   : > { %16549 = vst [vmem:[#allocation17_spill] sm:$0xff] %v8915_v33  ;;  %vm809_vm15 = vc.u32 %v8886_v56, %v8877_v22  ;;  %vm4183_vm0 = vcmp.lt.s32.totalorder %v8888_v60, 1  ;;  %vm4185_vm1 = vcmp.lt.s32.totalorder %v8888_v60, 3  ;;  %v4052_v3 = vshrl.u32 %v4051_v39, 23 }
  0xbf   : > { %16550 = vst [vmem:[#allocation18_spill] sm:$0xff] %v8923_v2  ;;  %v791_v35 = vsel %vm785_vm13, %v788_v19, %v790_v6  ;;  %v4159_v55 = vor.u32 8388608, %v4158_v15  ;;  %v4191_v26 = vsel %vm4183_vm0, %v4170_v20, %v4173_v59  ;;  %v4193_v52 = vsel %vm4185_vm1, %v4176_v21, %v4192_v24 }
  0xc0   : > { %v918_v61 = vshll.u32 %v8915_v33, 30  ;;  %v4195_v62 = vsel %vm4183_vm0, %v4173_v59, %v4176_v21  ;;  %v4197_v63 = vsel %vm4185_vm1, %v4179_v9, %v4196_v46  ;;  %v7752_v5 = vadd.s32 4294967169, %v4052_v3 }
  0xc1   : > { %v8943_v7 = vshrl.u32 %v558_v49, 5  ;;  %v659_v37 = vadd.s32 1, %v7620_v45  ;;  %v811_v28 = vsel %vm809_vm15, %v810_v43, %v8878_v54  ;;  %vm4184_vm2 = vcmp.lt.s32.totalorder %v8888_v60, 2 }
  0xc2   : > { %v8948_v8 = vsub.s32 32, %v8908_v18  ;;  %v807_v4 = vmul.u32 %v8867_v48, %v791_v35  ;;  %v4194_v13 = vsel %vm4184_vm2, %v4191_v26, %v4193_v52  ;;  %v4058_v14 = vadd.s32 1, %v7752_v5 }
  0xc3   : > { %16551 = vst [vmem:[#allocation19_spill] sm:$0xff] %v8943_v7  ;;  %v3868_v9 = vshll.u32 %v15937_v36, %v8908_v18  ;;  %v8956_v49 = vsub.s32 32, %v8923_v2  ;;  %v4198_v45 = vsel %vm4184_vm2, %v4195_v62, %v4197_v63  ;;  %v8960_v54 = vshll.u32 %v4159_v55, 8 }
  0xc4   : > { %16552 = vst [vmem:[#allocation20_spill] sm:$0xff] %v8948_v8  ;;  %vm3956_vm3 = vcmp.gt.s32.totalorder %v3955_v41, 0  ;;  %v8963_v57 = vsub.s32 %v8869_v50, %v918_v61  ;;  %v8965_v48 = vadd.s32 %v811_v28, %v807_v4  ;;  %vm4059_vm4 = vcmp.gt.s32.totalorder %v4058_v14, 0 }
  0xc5   : > { %16553 = vst [vmem:[#allocation21_spill] sm:$0xff] %v8956_v49  ;;  %v8968_v19 = vmul.u32.u64.low %v8960_v54, %v4194_v13  ;;  %v8969_v15 = vmul.u32.u64.high %v8960_v54, %v4194_v13, %v8968_v19  ;;  %v4060_v6 = vsel %vm4059_vm4, %v4058_v14, 0  ;;  %v419_v24 = vmul.f32 %v16538_v0, %v118_v17 }
  0xc6   : > { %v3869_v39 = vshrl.u32 %v15935_v38, %v8948_v8  ;;  %v8976_v43 = vmul.u32.u64.low %v8960_v54, %v4198_v45  ;;  %v8977_v46 = vmul.u32.u64.high %v8960_v54, %v4198_v45, %v8976_v43  ;;  %v4062_v50 = vand.u32 31, %v4060_v6 }
  0xc7   : > { %v8981_v3 = vshrl.u32 %v15933_v44, %v8948_v8  ;;  %v573_v35 = vshrl.u32 %v15935_v38, %v8956_v49  ;;  %vm660_vm5 = vcmp.gt.s32.totalorder %v659_v37, 0  ;;  %v4188_v55 = vsel %vm4186_vm14, %v4176_v21, 2102212464 }
  0xc8   : > { %v3957_v26 = vsel %vm3956_vm3, %v3955_v41, 0  ;;  %v921_v52 = vsub.s32 0, %v8963_v57  ;;  %v813_v61 = vadd.s32 536870912, %v8965_v48  ;;  %v4167_v62 = vshrl.u32 %v15953_v47, %v8856_v23 }
  0xc9   : > { %v8993_v63 = vshll.u32 %v15935_v38, %v8908_v18  ;;  %v572_v5 = vshll.u32 %v15937_v36, %v8923_v2  ;;  %v8997_v28 = vsub.s32 32, %v4062_v50  ;;  %v9000_v4 = vadd.f32 %v16537_v1, %v419_v24 }
  0xca   : > { %v9004_v21 = vshll.u32 %v15935_v38, %v8923_v2  ;;  %v9008_v41 = vshrl.u32 %v15933_v44, %v8956_v49  ;;  %v4187_v23 = vsel %vm4183_vm0, %v4167_v62, %v4170_v20  ;;  %v4189_v13 = vsel %vm4185_vm1, %v4173_v59, %v4188_v55 }
  0xcb   : > { %16554 = vst [vmem:[#allocation22_spill] sm:$0xff] %v9000_v4  ;;  %v9014_v14 = vor.u32 %v3869_v39, %v3868_v9  ;;  %v9018_v45 = vshrl.u32 %v3957_v26, 5  ;;  %v661_v24 = vsel %vm660_vm5, %v659_v37, 0  ;;  %v9021_v43 = vor.u32 %v573_v35, %v572_v5 }
  0xcc   : > { %v9023_v51 = vand.u32 31, %v3957_v26  ;;  %v7629_v25 = vmin.u32 %v921_v52, %v8963_v57  ;;  %v9026_v31 = vshrl.u32 %v813_v61, 30  ;;  %v4190_v20 = vsel %vm4184_vm2, %v4187_v23, %v4189_v13 }
  0xcd   : > { %16555 = vst [vmem:[#allocation23_spill] sm:$0xff] %v9014_v14  ;;  %16556 = vst [vmem:[#allocation24_spill] sm:$0xff] %v9018_v45  ;;  %v4075_v9 = vshrl.u32 %v15935_v38, %v8997_v28  ;;  %v1064_v39 = vand.u32 2139095040, %v9000_v4  ;;  %vm4208_vm6 = vc.u32 %v8977_v46, %v8968_v19  ;;  %v4209_v37 = vadd.s32 1, %v8969_v15 }
  0xce   : > { %16557 = vst [vmem:[#allocation25_spill] sm:$0xff] %v9021_v43  ;;  %16558 = vst [vmem:[#allocation26_spill] sm:$0xff] %v9023_v51  ;;  %v4077_v35 = vshll.u32 %v15935_v38, %v4062_v50  ;;  %v4078_v55 = vshrl.u32 %v15933_v44, %v8997_v28  ;;  %v9040_v26 = vshrl.u32 %v4060_v6, 5  ;;  %v4069_v60 = vshrl.u32 %v15943_v40, %v8997_v28 }
  0xcf   : > { %16559 = vst [vmem:[#allocation27_spill] sm:$0xff] %v9026_v31  ;;  %v4072_v52 = vshrl.u32 %v15937_v36, %v8997_v28  ;;  %v4074_v61 = vshll.u32 %v15937_v36, %v4062_v50  ;;  %v923_v62 = vclz %v7629_v25  ;;  %v815_v5 = vshll.u32 %v9026_v31, 30 }
  0xd0   : > { %v4066_v23 = vshrl.u32 %v15941_v34, %v8997_v28  ;;  %v4079_v13 = vor.u32 %v4078_v55, %v4077_v35  ;;  %vm16045_vm7 = vcmp.lt.s32.totalorder %v8906_v58, 4  ;;  %v4068_v6 = vshll.u32 %v15941_v34, %v4062_v50 }
  0xd1   : > { %v4071_v44 = vshll.u32 %v15943_v40, %v4062_v50  ;;  %v4076_v38 = vor.u32 %v4075_v9, %v4074_v61  ;;  %v1065_v17 = vshrl.u32 %v1064_v39, 23  ;;  %v4206_v36 = vmul.u32 %v8960_v54, %v4190_v20  ;;  %v113_v9 = vpop.permute.xlu0 %112 }
  0xd2   : > { %v4210_v25 = vsel %vm4208_vm6, %v4209_v37, %v8969_v15  ;;  %v4065_v35 = vshll.u32 %v15953_v47, %v4062_v50  ;;  %v16560_v55 = vand.u32 2147483647, %v8874_v53  ;;  %v9063_v34 = vor.u32 %v4069_v60, %v4068_v6 }
  0xd3   : > { %v9065_v40 = vor.u32 %v4072_v52, %v4071_v44  ;;  %vm4083_vm8 = vcmp.lt.s32.totalorder %v9040_v26, 4  ;;  %v9068_v39 = vshrl.u32 %v661_v24, 5  ;;  %v9071_v54 = vsub.s32 %v8965_v48, %v815_v5 }
  0xd4   : > { %v4055_v33 = vand.u32 8388607, %v16560_v55  ;;  %v9073_v20 = vor.u32 %v4066_v23, %v4065_v35  ;;  %v4093_v15 = vsel %vm4083_vm8, %v4079_v13, 1326507024  ;;  %v7630_v50 = vadd.s32 4294967294, %v923_v62 }
  0xd5   : > { %16561 = vst [vmem:[#allocation28_spill] sm:$0xff] %v9068_v39  ;;  %v9077_v37 = vadd.s32 %v4210_v25, %v4206_v36  ;;  %v4089_v44 = vsel %vm4083_vm8, %v4076_v38, 920167782  ;;  %v7636_v60 = vadd.s32 4294967169, %v1065_v17  ;;  %v9081_v52 = vand.u32 31, %v661_v24 }
  0xd6   : > { %vm4080_vm9 = vcmp.lt.s32.totalorder %v9040_v26, 1  ;;  %vm4082_vm10 = vcmp.lt.s32.totalorder %v9040_v26, 3  ;;  %v418_v48 = vmul.f32 %v16538_v0, %v113_v9  ;;  %v4056_v61 = vor.u32 8388608, %v4055_v33 }
  0xd7   : > { %16562 = vst [vmem:[#allocation29_spill] sm:$0xff] %v9081_v52  ;;  %v4092_v62 = vsel %vm4080_vm9, %v9063_v34, %v9065_v40  ;;  %v4094_v36 = vsel %vm4082_vm10, %v4076_v38, %v4093_v15  ;;  %v1071_v5 = vadd.s32 1, %v7636_v60  ;;  %v818_v17 = vsub.s32 0, %v9071_v54 }
  0xd8   : > { %v4088_v24 = vsel %vm4080_vm9, %v9073_v20, %v9063_v34  ;;  %v4090_v33 = vsel %vm4082_vm10, %v9065_v40, %v4089_v44  ;;  %v15945_v23 = vand.u32 2147483647, %v9000_v4  ;;  %vm7631_vm11 = vcmp.lt.s32.totalorder %v7630_v50, 0 }
  0xd9   : > { %v4212_v13 = vadd.s32 536870912, %v9077_v37  ;;  %vm4081_vm12 = vcmp.lt.s32.totalorder %v9040_v26, 2  ;;  %vm1072_vm13 = vcmp.gt.s32.totalorder %v1071_v5, 0  ;;  %v9106_v38 = vsel %vm16045_vm7, %v9014_v14, 920167782 }
  0xda   : > { %16563 = vst [vmem:[#allocation30_spill] sm:$0xff] %v9106_v38  ;;  %v4095_v6 = vsel %vm4081_vm12, %v4092_v62, %v4094_v36  ;;  %v1073_v25 = vsel %vm1072_vm13, %v1071_v5, 0  ;;  %v9111_v35 = vadd.f32 %v16537_v1, %v418_v48  ;;  %v16565_v55 = vor.u32 %v8981_v3, %v8993_v63 }
  0xdb   : > { %v4091_v15 = vsel %vm4081_vm12, %v4088_v24, %v4090_v33  ;;  %v9122_v44 = vshll.u32 %v4056_v61, 8  ;;  %v1075_v60 = vand.u32 31, %v1073_v25  ;;  %v9125_v59 = vsub.s32 32, %v9023_v51 }
  0xdc   : > { %16564 = vst [vmem:[#allocation31_spill] sm:$0xff] %v9111_v35  ;;  %v9118_v9 = vsel %vm16045_vm7, %v16565_v55, 1326507024  ;;  %v9127_v62 = vsel %vm7631_vm11, 0, %v7630_v50  ;;  %v7625_v48 = vmin.u32 %v818_v17, %v9071_v54  ;;  %v1068_v3 = vand.u32 8388607, %v15945_v23 }
  0xdd   : > { %16566 = vst [vmem:[#allocation32_spill] sm:$0xff] %v9118_v9  ;;  %16567 = vst [vmem:[#allocation33_spill] sm:$0xff] %v9125_v59  ;;  %v9132_v63 = vshrl.u32 %v4212_v13, 30  ;;  %v9135_v36 = vmul.u32.u64.low %v9122_v44, %v4095_v6  ;;  %v9136_v5 = vmul.u32.u64.high %v9122_v44, %v4095_v6, %v9135_v36  ;;  %v9138_v24 = vsub.s32 32, %v1075_v60 }
  0xde   : > { %v9141_v61 = vmul.u32.u64.low %v9122_v44, %v4091_v15  ;;  %v9142_v33 = vmul.u32.u64.high %v9122_v44, %v4091_v15, %v9141_v61  ;;  %v9145_v50 = vshrl.u32 %v1073_v25, 5  ;;  %v961_v17 = vand.u32 2139095040, %v9111_v35 }
  0xdf   : > { %16568 = vst [vmem:[#allocation34_spill] sm:$0xff] %v9132_v63  ;;  %v1078_v55 = vshll.u32 %v15953_v47, %v1075_v60  ;;  %v16569_v13 = vmov 2475754826   ;;  %v16570_v6 = vmov 2131351028   ;;  %v4064_v49 = vshrl.u32 %v16574_v12, %v8997_v28 }
  0xe0   : > { %v1079_v23 = vshrl.u32 %v16569_v13, %v9138_v24  ;;  %v1081_v31 = vshll.u32 %v16569_v13, %v1075_v60  ;;  %v1082_v36 = vshrl.u32 %v16570_v6, %v9138_v24  ;;  %v1084_v10 = vshll.u32 %v16570_v6, %v1075_v60 }
  0xe1   : > { %v16571_v15 = vmov 2102212464   ;;  %v16572_v9 = vmov 920167782   ;;  %v16573_v8 = vmov 1326507024   ;;  %v820_v4 = vclz %v7625_v48 }
  0xe2   : > { %v1085_v14 = vshrl.u32 %v16571_v15, %v9138_v24  ;;  %v1087_v25 = vshll.u32 %v16571_v15, %v1075_v60  ;;  %v1088_v38 = vshrl.u32 %v16572_v9, %v9138_v24  ;;  %v9160_v58 = vor.u32 %v1079_v23, %v1078_v55 }
  0xe3   : > { %v9162_v47 = vor.u32 %v1082_v36, %v1081_v31  ;;  %v1090_v18 = vshll.u32 %v16572_v9, %v1075_v60  ;;  %v1091_v27 = vshrl.u32 %v16573_v8, %v9138_v24  ;;  %v1069_v2 = vor.u32 8388608, %v1068_v3 }
  0xe4   : > { %v1086_v30 = vor.u32 %v1085_v14, %v1084_v10  ;;  %v1089_v39 = vor.u32 %v1088_v38, %v1087_v25  ;;  %vm16073_vm14 = vcmp.lt.s32.totalorder %v8943_v7, 4  ;;  %v927_v45 = vsub.s32 32, %v9127_v62 }
  0xe5   : > { %v4085_v31 = vsel %vm4083_vm8, %v9065_v40, 2102212464  ;;  %v1092_v23 = vor.u32 %v1091_v27, %v1090_v18  ;;  %v4214_v60 = vshll.u32 %v9132_v63, 30  ;;  %v4084_v55 = vsel %vm4080_vm9, %v4064_v49, %v9073_v20 }
  0xe6   : > { %vm1093_vm15 = vcmp.lt.s32.totalorder %v9145_v50, 1  ;;  %vm1096_vm0 = vcmp.lt.s32.totalorder %v9145_v50, 4  ;;  %vm1095_vm1 = vcmp.lt.s32.totalorder %v9145_v50, 3  ;;  %v962_v40 = vshrl.u32 %v961_v17, 23 }
  0xe7   : > { %v1101_v10 = vsel %vm1093_vm15, %v9160_v58, %v9162_v47  ;;  %v1102_v27 = vsel %vm1096_vm0, %v1089_v39, 920167782  ;;  %v4086_v18 = vsel %vm4082_vm10, %v9063_v34, %v4085_v31  ;;  %vm1094_vm2 = vcmp.lt.s32.totalorder %v9145_v50, 2 }
  0xe8   : > { %v1103_v49 = vsel %vm1095_vm1, %v1086_v30, %v1102_v27  ;;  %v9193_v28 = vshll.u32 %v1069_v2, 8  ;;  %v4106_v14 = vadd.s32 1, %v9142_v33  ;;  %v1105_v38 = vsel %vm1093_vm15, %v9162_v47, %v1086_v30 }
  0xe9   : > { %v1104_v20 = vsel %vm1094_vm2, %v1101_v10, %v1103_v49  ;;  %v1106_v48 = vsel %vm1096_vm0, %v1092_v23, 1326507024  ;;  %vm4105_vm3 = vc.u32 %v9136_v5, %v9141_v61  ;;  %v931_v17 = vsub.s32 4294967266, %v9127_v62 }
  0xea   : > { %v1107_v34 = vsel %vm1095_vm1, %v1089_v39, %v1106_v48  ;;  %v9208_v2 = vmul.u32.u64.low %v9193_v28, %v1104_v20  ;;  %v9209_v3 = vmul.u32.u64.high %v9193_v28, %v1104_v20, %v9208_v2  ;;  %v4087_v36 = vsel %vm4081_vm12, %v4084_v55, %v4086_v18 }
  0xeb   : > { %v1108_v25 = vsel %vm1094_vm2, %v1105_v38, %v1107_v34  ;;  %v7632_v31 = vadd.s32 4294967169, %v962_v40  ;;  %v911_v23 = vadd.s32 %v8797_v29, %v8807_v42  ;;  %v9220_v10 = vsub.s32 %v9077_v37, %v4214_v60  ;;  %v8292_v40 = vld [vmem:[%s15928_s2] sm:$0xff]   ;;  %v278_v60 = vpop.permute.xlu1 %277 }
  0xec   : > { %v9223_v39 = vmul.u32.u64.low %v9193_v28, %v1108_v25  ;;  %v9224_v27 = vmul.u32.u64.high %v9193_v28, %v1108_v25, %v9223_v39  ;;  %v9228_v49 = vshll.u32 %v16571_v15, %v9023_v51  ;;  %v7626_v26 = vadd.s32 4294967294, %v820_v4  ;;  %7920 = vmatprep.subr.bf16.mxu0 %v8292_v40  ;;  %8000 = vmatprep.subr.bf16.mxu1 %v8292_v40 }
  0xed   : > { %v4107_v55 = vsel %vm4105_vm3, %v4106_v14, %v9142_v33  ;;  %v968_v18 = vadd.s32 1, %v7632_v31  ;;  %v9237_v29 = vsel %vm16073_vm14, %v9021_v43, 920167782  ;;  %v16576_v42 = vor.u32 %v9008_v41, %v9004_v21  ;;  %7921 = vmatpush3.bf16.xpose.msra.mxu0 %v8292_v40  ;;  %8008 = vmatpush3.bf16.xpose.msra.mxu1 %v8292_v40 }
  0xee   : > { %16575 = vst [vmem:[#allocation35_spill] sm:$0xff] %v9237_v29  ;;  %v929_v4 = vshrl.u32 %v911_v23, %v927_v45  ;;  %v4103_v33 = vmul.u32 %v9122_v44, %v4087_v36  ;;  %v932_v14 = vadd.s32 127, %v931_v17  ;;  %v1098_v20 = vsel %vm1096_vm0, %v1086_v30, 2102212464 }
  0xef   : > { %v9244_v37 = vsel %vm16073_vm14, %v16576_v42, 1326507024  ;;  %v15973_v38 = vand.u32 2147483647, %v9111_v35  ;;  %vm969_vm4 = vcmp.gt.s32.totalorder %v968_v18, 0  ;;  %v4217_v48 = vsub.s32 0, %v9220_v10 }
  0xf0   : > { %16577 = vst [vmem:[#allocation36_spill] sm:$0xff] %v9244_v37  ;;  %v9251_v21 = vadd.s32 %v4107_v55, %v4103_v33  ;;  %v1077_v41 = vshrl.u32 %v16574_v12, %v9138_v24  ;;  %v970_v45 = vsel %vm969_vm4, %v968_v18, 0  ;;  %v928_v44 = vshll.u32 %v8963_v57, %v9127_v62 }
  0xf1   : > { %vm7627_vm5 = vcmp.lt.s32.totalorder %v7626_v26, 0  ;;  %v972_v30 = vand.u32 31, %v970_v45  ;;  %v451_v34 = vmul.f32 %v16538_v0, %v278_v60  ;;  %v9260_v17 = vadd.s32 %v8877_v22, %v8886_v56 }
  0xf2   : > { %v1097_v36 = vsel %vm1093_vm15, %v1077_v41, %v9160_v58  ;;  %v1099_v24 = vsel %vm1095_vm1, %v9162_v47, %v1098_v20  ;;  %v1119_v25 = vadd.s32 1, %v9209_v3  ;;  %v9269_v31 = vor.u32 %v929_v4, %v928_v44 }
  0xf3   : > { %v933_v57 = vshll.u32 %v932_v14, 23  ;;  %vm1118_vm6 = vc.u32 %v9224_v27, %v9208_v2  ;;  %v973_v62 = vsub.s32 32, %v972_v30  ;;  %v9273_v23 = vsel %vm7627_vm5, 0, %v7626_v26 }
  0xf4   : > { %v7757_v22 = vmin.u32 %v4217_v48, %v9220_v10  ;;  %v4109_v56 = vadd.s32 536870912, %v9251_v21  ;;  %v965_v58 = vand.u32 8388607, %v15973_v38  ;;  %v1100_v47 = vsel %vm1094_vm2, %v1097_v36, %v1099_v24 }
  0xf5   : > { %v976_v39 = vshrl.u32 %v16569_v13, %v973_v62  ;;  %v979_v55 = vshrl.u32 %v16570_v6, %v973_v62  ;;  %v9284_v18 = vadd.f32 %v16537_v1, %v451_v34  ;;  %v1120_v26 = vsel %vm1118_vm6, %v1119_v25, %v9209_v3 }
  0xf6   : > { %v9287_v40 = vshrl.u32 %v970_v45, 5  ;;  %v975_v42 = vshll.u32 %v16574_v12, %v972_v30  ;;  %v978_v4 = vshll.u32 %v16569_v13, %v972_v30  ;;  %v981_v33 = vshll.u32 %v16570_v6, %v972_v30 }
  0xf7   : > { %16578 = vst [vmem:[#allocation37_spill] sm:$0xff] %v9284_v18  ;;  %v982_v50 = vshrl.u32 %v16571_v15, %v973_v62  ;;  %v984_v60 = vshll.u32 %v16571_v15, %v972_v30  ;;  %v985_v14 = vshrl.u32 %v16572_v9, %v973_v62  ;;  %v987_v41 = vshll.u32 %v16572_v9, %v972_v30 }
  0xf8   : > { %v977_v20 = vor.u32 %v976_v39, %v975_v42  ;;  %v980_v48 = vor.u32 %v979_v55, %v978_v4  ;;  %v988_v3 = vshrl.u32 %v16573_v8, %v973_v62  ;;  %v934_v45 = vor.u32 4788187, %v933_v57 }
  0xf9   : > { %v1116_v44 = vmul.u32 %v9193_v28, %v1100_v47  ;;  %v983_v34 = vor.u32 %v982_v50, %v981_v33  ;;  %v986_v36 = vor.u32 %v985_v14, %v984_v60  ;;  %v937_v24 = vcvt.s32.f32 %v9269_v31 }
  0xfa   : > { %v4219_v25 = vclz %v7757_v22  ;;  %v9299_v38 = vshrl.u32 %v4109_v56, 30  ;;  %v989_v63 = vor.u32 %v988_v3, %v987_v41  ;;  %v824_v43 = vsub.s32 32, %v9273_v23  ;;  %v273_v41 = vpop.permute.xlu0 %272 }
  0xfb   : > { %v9302_v37 = vadd.s32 %v1120_v26, %v1116_v44  ;;  %v966_v39 = vor.u32 8388608, %v965_v58  ;;  %vm990_vm8 = vcmp.lt.s32.totalorder %v9287_v40, 1  ;;  %v828_v30 = vsub.s32 4294967266, %v9273_v23 }
  0xfc   : > { %16579 = vst [vmem:[#allocation38_spill] sm:$0xff] %v9299_v38  ;;  %vm993_vm9 = vcmp.lt.s32.totalorder %v9287_v40, 4  ;;  %v998_v28 = vsel %vm990_vm8, %v977_v20, %v980_v48  ;;  %v4360_v31 = vand.u32 2139095040, %v9284_v18  ;;  %vm992_vm10 = vcmp.lt.s32.totalorder %v9287_v40, 3 }
  0xfd   : > { %v999_v57 = vsel %vm993_vm9, %v986_v36, 920167782  ;;  %v1002_v22 = vsel %vm990_vm8, %v980_v48, %v983_v34  ;;  %v1003_v56 = vsel %vm993_vm9, %v989_v63, 1326507024  ;;  %v7758_v58 = vadd.s32 4294967294, %v4219_v25 }
  0xfe   : > { %v4111_v47 = vshll.u32 %v9299_v38, 30  ;;  %vm991_vm11 = vcmp.lt.s32.totalorder %v9287_v40, 2  ;;  %v1000_v55 = vsel %vm992_vm10, %v983_v34, %v999_v57  ;;  %v1122_v26 = vadd.s32 536870912, %v9302_v37 }
  0xff   : > { %v1001_v42 = vsel %vm991_vm11, %v998_v28, %v1000_v55  ;;  %v1004_v4 = vsel %vm992_vm10, %v986_v36, %v1003_v56  ;;  %v1006_v33 = vshll.u32 %v966_v39, 8  ;;  %v935_v50 = vand.u32 2147483647, %v934_v45 }
 0x100   : > { %v829_v60 = vadd.s32 127, %v828_v30  ;;  %v1005_v63 = vsel %vm991_vm11, %v1002_v22, %v1004_v4  ;;  %v4361_v14 = vshrl.u32 %v4360_v31, 23  ;;  %v826_v28 = vshrl.u32 %v9260_v17, %v824_v43 }
 0x101   : > { %v9328_v3 = vmul.u32.u64.low %v1006_v33, %v1005_v63  ;;  %v9329_v44 = vmul.u32.u64.high %v1006_v33, %v1005_v63, %v9328_v3  ;;  %v9331_v25 = vmul.u32.u64.low %v1006_v33, %v1001_v42  ;;  %v9332_v57 = vmul.u32.u64.high %v1006_v33, %v1001_v42, %v9331_v25 }
 0x102   : > { %v9337_v55 = vsub.s32 %v9251_v21, %v4111_v47  ;;  %v995_v45 = vsel %vm993_vm9, %v983_v34, 2102212464  ;;  %v7764_v36 = vadd.s32 4294967169, %v4361_v14  ;;  %vm7759_vm12 = vcmp.lt.s32.totalorder %v7758_v58, 0 }
 0x103   : > { %v9341_v39 = vshrl.u32 %v1122_v26, 30  ;;  %v974_v30 = vshrl.u32 %v16574_v12, %v973_v62  ;;  %v450_v31 = vmul.f32 %v16538_v0, %v273_v41  ;;  %v9347_v22 = vshrl.u32 %v16572_v9, %v9125_v59 }
 0x104   : > { %v9351_v43 = vshll.u32 %v16572_v9, %v9023_v51  ;;  %v825_v21 = vshll.u32 %v9071_v54, %v9273_v23  ;;  %v4367_v17 = vadd.s32 1, %v7764_v36  ;;  %v9355_v34 = vmul.f32 %v937_v24, %v935_v50 }
 0x105   : > { %16580 = vst [vmem:[#allocation39_spill] sm:$0xff] %v9341_v39  ;;  %v830_v56 = vshll.u32 %v829_v60, 23  ;;  %v994_v62 = vsel %vm990_vm8, %v974_v30, %v977_v20  ;;  %v996_v47 = vsel %vm992_vm10, %v980_v48, %v995_v45  ;;  %v9363_v26 = vshrl.u32 %v16573_v8, %v9125_v59 }
 0x106   : > { %16581 = vst [vmem:[#allocation40_spill] sm:$0xff] %v9351_v43  ;;  %v9365_v42 = vor.u32 %v826_v28, %v825_v21  ;;  %v9368_v4 = vsel %vm7759_vm12, 0, %v7758_v58  ;;  %v4114_v54 = vsub.s32 0, %v9337_v55  ;;  %v1124_v23 = vshll.u32 %v9341_v39, 30 }
 0x107   : > { %16582 = vst [vmem:[#allocation41_spill] sm:$0xff] %v9363_v26  ;;  %v1016_v24 = vadd.s32 1, %v9332_v57  ;;  %vm4368_vm13 = vcmp.gt.s32.totalorder %v4367_v17, 0  ;;  %v9374_v20 = vadd.f32 %v16537_v1, %v450_v31  ;;  %v997_v48 = vsel %vm991_vm11, %v994_v62, %v996_v47 }
 0x108   : > { %vm1015_vm15 = vc.u32 %v9329_v44, %v9331_v25  ;;  %v15977_v50 = vand.u32 2147483647, %v9284_v18  ;;  %v4369_v58 = vsel %vm4368_vm13, %v4367_v17, 0  ;;  %v831_v63 = vor.u32 4788187, %v830_v56 }
 0x109   : > { %16583 = vst [vmem:[#allocation42_spill] sm:$0xff] %v9374_v20  ;;  %v4207_v14 = vadd.s32 %v8968_v19, %v8977_v46  ;;  %v4371_v41 = vand.u32 31, %v4369_v58  ;;  %v834_v3 = vcvt.s32.f32 %v9365_v42  ;;  %v4223_v28 = vsub.s32 32, %v9368_v4 }
 0x10a   : > { %v4227_v40 = vsub.s32 4294967266, %v9368_v4  ;;  %v7753_v45 = vmin.u32 %v4114_v54, %v9337_v55  ;;  %v9389_v36 = vsub.s32 %v9302_v37, %v1124_v23  ;;  %v1013_v30 = vmul.u32 %v1006_v33, %v997_v48 }
 0x10b   : > { %v1017_v31 = vsel %vm1015_vm15, %v1016_v24, %v9332_v57  ;;  %v4372_v21 = vsub.s32 32, %v4371_v41  ;;  %v4364_v17 = vand.u32 8388607, %v15977_v50  ;;  %v9394_v19 = vshrl.u32 %v4369_v58, 5 }
 0x10c   : > { %v4374_v46 = vshll.u32 %v16574_v12, %v4371_v41  ;;  %v4257_v56 = vand.u32 2139095040, %v9374_v20  ;;  %v4377_v47 = vshll.u32 %v16569_v13, %v4371_v41  ;;  %v9402_v42 = vadd.s32 %v1017_v31, %v1013_v30 }
 0x10d   : > { %v4375_v62 = vshrl.u32 %v16569_v13, %v4372_v21  ;;  %v4378_v37 = vshrl.u32 %v16570_v6, %v4372_v21  ;;  %v4381_v33 = vshrl.u32 %v16571_v15, %v4372_v21  ;;  %v4380_v57 = vshll.u32 %v16570_v6, %v4371_v41 }
 0x10e   : > { %v4383_v54 = vshll.u32 %v16571_v15, %v4371_v41  ;;  %v4384_v23 = vshrl.u32 %v16572_v9, %v4372_v21  ;;  %v4386_v58 = vshll.u32 %v16572_v9, %v4371_v41  ;;  %v4387_v50 = vshrl.u32 %v16573_v8, %v4372_v21 }
 0x10f   : > { %v4376_v24 = vor.u32 %v4375_v62, %v4374_v46  ;;  %v4379_v48 = vor.u32 %v4378_v37, %v4377_v47  ;;  %v832_v60 = vand.u32 2147483647, %v831_v63  ;;  %v4116_v39 = vclz %v7753_v45 }
 0x110   : > { %v4382_v38 = vor.u32 %v4381_v33, %v4380_v57  ;;  %v4385_v59 = vor.u32 %v4384_v23, %v4383_v54  ;;  %v4225_v51 = vshrl.u32 %v4207_v14, %v4223_v28  ;;  %v4228_v29 = vadd.s32 127, %v4227_v40 }
 0x111   : > { %v4365_v30 = vor.u32 8388608, %v4364_v17  ;;  %v4388_v31 = vor.u32 %v4387_v50, %v4386_v58  ;;  %vm16030_vm0 = vcmp.lt.s32.totalorder %v8707_v11, 0  ;;  %v1019_v7 = vadd.s32 536870912, %v9402_v42 }
 0x112   : > { %vm4389_vm1 = vcmp.lt.s32.totalorder %v9394_v19, 1  ;;  %vm4392_vm2 = vcmp.lt.s32.totalorder %v9394_v19, 4  ;;  %v4258_v46 = vshrl.u32 %v4257_v56, 23  ;;  %v1127_v41 = vsub.s32 0, %v9389_v36 }
 0x113   : > { %vm4391_vm3 = vcmp.lt.s32.totalorder %v9394_v19, 3  ;;  %v4397_v63 = vsel %vm4389_vm1, %v4376_v24, %v4379_v48  ;;  %v4398_v14 = vsel %vm4392_vm2, %v4385_v59, 920167782  ;;  %v7754_v50 = vadd.s32 4294967294, %v4116_v39 }
 0x114   : > { %vm4390_vm4 = vcmp.lt.s32.totalorder %v9394_v19, 2  ;;  %v4399_v28 = vsel %vm4391_vm3, %v4382_v38, %v4398_v14  ;;  %v4401_v40 = vsel %vm4389_vm1, %v4379_v48, %v4382_v38  ;;  %v4229_v45 = vshll.u32 %v4228_v29, 23 }
 0x115   : > { %v4400_v17 = vsel %vm4390_vm4, %v4397_v63, %v4399_v28  ;;  %v4402_v56 = vsel %vm4392_vm2, %v4388_v31, 1326507024  ;;  %v4405_v62 = vshll.u32 %v4365_v30, 8  ;;  %v4224_v47 = vshll.u32 %v9220_v10, %v9368_v4 }
 0x116   : > { %v9430_v39 = vshrl.u32 %v1019_v7, 30  ;;  %v4403_v37 = vsel %vm4391_vm3, %v4385_v59, %v4402_v56  ;;  %v7760_v33 = vadd.s32 4294967169, %v4258_v46  ;;  %v16585_v57 = vand.u32 2147483647, %v8707_v11  ;;  %v128_v7 = vpop.permute.xlu1 %127 }
 0x117   : > { %v16586_v29 = vmov 0  ;;  %v7637_v54 = vmin.u32 %v1127_v41, %v9389_v36  ;;  %v4404_v23 = vsel %vm4390_vm4, %v4401_v40, %v4403_v37  ;;  %v835_v10 = vmul.f32 %v834_v3, %v832_v60 }
 0x118   : > { %16584 = vst [vmem:[#allocation43_spill] sm:$0xff] %v9430_v39  ;;  %vm9436_vm5 = vcmp.le.f32.partialorder %v16585_v57, 0.7853982  ;;  %v9443_v58 = vmul.u32.u64.low %v4405_v62, %v4400_v17  ;;  %v9444_v30 = vmul.u32.u64.high %v4405_v62, %v4400_v17, %v9443_v58  ;;  %vm7755_vm6 = vcmp.lt.s32.totalorder %v7754_v50, 0 }
 0x119   : > { %v16587_v29 = vsel %vm9436_vm5, 4294967295, %v16586_v29  ;;  %v9447_v59 = vmul.u32.u64.low %v4405_v62, %v4404_v23  ;;  %v9448_v4 = vmul.u32.u64.high %v4405_v62, %v4404_v23, %v9447_v59  ;;  %v4226_v31 = vor.u32 %v4225_v51, %v4224_v47 }
 0x11a   : > { %16588 = vst [vmem:[#allocation44_spill] sm:$0xff] %v16587_v29  ;;  %16589 = vst [vmem:[#allocation45_spill] sm:$0xff] %v9443_v58  ;;  %v4230_v46 = vor.u32 4788187, %v4229_v45  ;;  %v4394_v63 = vsel %vm4392_vm2, %v4382_v38, 2102212464  ;;  %v4373_v40 = vshrl.u32 %v16574_v12, %v4372_v21  ;;  %v421_v17 = vmul.f32 %v16538_v0, %v128_v7 }
 0x11b   : > { %v4264_v14 = vadd.s32 1, %v7760_v33  ;;  %v9453_v41 = vsub.s32 32, %v9081_v52  ;;  %v1021_v28 = vshll.u32 %v9430_v39, 30  ;;  %v16591_v60 = vxor.u32 2147483648, %v9355_v34 }
 0x11c   : > { %v9463_v3 = vsel %vm7755_vm6, 0, %v7754_v50  ;;  %v1129_v45 = vclz %v7637_v54  ;;  %v836_v38 = vxor.u32 2147483648, %v835_v10  ;;  %v4393_v56 = vsel %vm4389_vm1, %v4373_v40, %v4376_v24 }
 0x11d   : > { %16590 = vst [vmem:[#allocation46_spill] sm:$0xff] %v9453_v41  ;;  %v940_v51 = vsel %vm16030_vm0, %v16591_v60, %v9355_v34  ;;  %vm4265_vm8 = vcmp.gt.s32.totalorder %v4264_v14, 0  ;;  %v4395_v47 = vsel %vm4391_vm3, %v4379_v48, %v4394_v63  ;;  %v4231_v37 = vand.u32 2147483647, %v4230_v46 }
 0x11e   : > { %v4266_v21 = vsel %vm4265_vm8, %v4264_v14, 0  ;;  %v4233_v33 = vcvt.s32.f32 %v4226_v31  ;;  %v4415_v57 = vadd.s32 1, %v9444_v30  ;;  %v4120_v7 = vsub.s32 32, %v9463_v3 }
 0x11f   : > { %v4268_v23 = vand.u32 31, %v4266_v21  ;;  %v9472_v34 = vsub.s32 %v9402_v42, %v1021_v28  ;;  %vm4414_vm9 = vc.u32 %v9448_v4, %v9443_v58  ;;  %v9477_v50 = vadd.f32 %v16537_v1, %v421_v17 }
 0x120   : > { %v4124_v24 = vsub.s32 4294967266, %v9463_v3  ;;  %v7638_v48 = vadd.s32 4294967294, %v1129_v45  ;;  %v4396_v54 = vsel %vm4390_vm4, %v4393_v56, %v4395_v47  ;;  %v9486_v31 = vshll.u32 %v16571_v15, %v9081_v52 }
 0x121   : > { %16592 = vst [vmem:[#allocation47_spill] sm:$0xff] %v9477_v50  ;;  %v9482_v59 = vsub.s32 32, %v4268_v23  ;;  %v9490_v42 = vshll.u32 %v16572_v9, %v9081_v52  ;;  %v9495_v46 = vsel %vm9436_vm5, %v8707_v11, %v940_v51  ;;  %vm16044_vm10 = vcmp.lt.s32.totalorder %v8712_v16, 0 }
 0x122   : > { %16593 = vst [vmem:[#allocation48_spill] sm:$0xff] %v9486_v31  ;;  %v9500_v19 = vsel %vm16044_vm10, %v836_v38, %v835_v10  ;;  %v9502_v63 = vmul.f32 %v4233_v33, %v4231_v37  ;;  %v4104_v14 = vadd.s32 %v9141_v61, %v9136_v5  ;;  %v4416_v28 = vsel %vm4414_vm9, %v4415_v57, %v9444_v30  ;;  %v123_v10 = vpop.permute.xlu0 %122 }
 0x123   : > { %16594 = vst [vmem:[#allocation49_spill] sm:$0xff] %v9490_v42  ;;  %v1024_v40 = vsub.s32 0, %v9472_v34  ;;  %v4412_v17 = vmul.u32 %v4405_v62, %v4396_v54  ;;  %v4281_v60 = vshrl.u32 %v16572_v9, %v9482_v59  ;;  %v1270_v51 = vand.u32 2139095040, %v9477_v50 }
 0x124   : > { %v4122_v45 = vshrl.u32 %v4104_v14, %v4120_v7  ;;  %v4125_v56 = vadd.s32 127, %v4124_v24  ;;  %vm7639_vm11 = vcmp.lt.s32.totalorder %v7638_v48, 0  ;;  %v9514_v47 = vshrl.u32 %v4266_v21, 5 }
 0x125   : > { %v9512_v38 = vadd.s32 %v4416_v28, %v4412_v17  ;;  %v4272_v5 = vshrl.u32 %v16569_v13, %v9482_v59  ;;  %v4280_v61 = vshll.u32 %v16571_v15, %v4268_v23  ;;  %v4275_v62 = vshrl.u32 %v16570_v6, %v9482_v59 }
 0x126   : > { %v4278_v30 = vshrl.u32 %v16571_v15, %v9482_v59  ;;  %v4283_v37 = vshll.u32 %v16572_v9, %v4268_v23  ;;  %v4284_v33 = vshrl.u32 %v16573_v8, %v9482_v59  ;;  %v9526_v57 = vsel %vm7639_vm11, 0, %v7638_v48 }
 0x127   : > { %v7633_v21 = vmin.u32 %v1024_v40, %v9472_v34  ;;  %v4282_v7 = vor.u32 %v4281_v60, %v4280_v61  ;;  %v1271_v24 = vshrl.u32 %v1270_v51, 23  ;;  %v4271_v54 = vshll.u32 %v16574_v12, %v4268_v23 }
 0x128   : > { %v4274_v14 = vshll.u32 %v16569_v13, %v4268_v23  ;;  %v4277_v28 = vshll.u32 %v16570_v6, %v4268_v23  ;;  %v4285_v17 = vor.u32 %v4284_v33, %v4283_v37  ;;  %v4121_v39 = vshll.u32 %v9337_v55, %v9463_v3 }
 0x129   : > { %v4126_v29 = vshll.u32 %v4125_v56, 23  ;;  %v4418_v11 = vadd.s32 536870912, %v9512_v38  ;;  %v16595_v48 = vand.u32 2147483647, %v9374_v20  ;;  %v9537_v40 = vor.u32 %v4272_v5, %v4271_v54 }
 0x12a   : > { %v9539_v60 = vor.u32 %v4275_v62, %v4274_v14  ;;  %v4279_v51 = vor.u32 %v4278_v30, %v4277_v28  ;;  %vm4289_vm12 = vcmp.lt.s32.totalorder %v9514_v47, 4  ;;  %v9544_v23 = vadd.s32 %v9208_v2, %v9224_v27 }
 0x12b   : > { %v4261_v52 = vand.u32 8388607, %v16595_v48  ;;  %v1137_v61 = vsub.s32 4294967266, %v9526_v57  ;;  %v4295_v55 = vsel %vm4289_vm12, %v4282_v7, 920167782  ;;  %v420_v3 = vmul.f32 %v16538_v0, %v123_v10 }
 0x12c   : > { %v9550_v56 = vor.u32 %v4122_v45, %v4121_v39  ;;  %v1026_v5 = vclz %v7633_v21  ;;  %v4299_v62 = vsel %vm4289_vm12, %v4285_v17, 1326507024  ;;  %v7644_v30 = vadd.s32 4294967169, %v1271_v24 }
 0x12d   : > { %v9554_v37 = vor.u32 4788187, %v4126_v29  ;;  %v9556_v33 = vshrl.u32 %v4418_v11, 30  ;;  %vm4286_vm13 = vcmp.lt.s32.totalorder %v9514_v47, 1  ;;  %vm4288_vm15 = vcmp.lt.s32.totalorder %v9514_v47, 3 }
 0x12e   : > { %v4262_v2 = vor.u32 8388608, %v4261_v52  ;;  %v4294_v27 = vsel %vm4286_vm13, %v9537_v40, %v9539_v60  ;;  %v4296_v39 = vsel %vm4288_vm15, %v4279_v51, %v4295_v55  ;;  %v1277_v45 = vadd.s32 1, %v7644_v30 }
 0x12f   : > { %16596 = vst [vmem:[#allocation50_spill] sm:$0xff] %v9556_v33  ;;  %v9566_v10 = vadd.s32 127, %v1137_v61  ;;  %v4298_v11 = vsel %vm4286_vm13, %v9539_v60, %v4279_v51  ;;  %v4300_v29 = vsel %vm4288_vm15, %v4282_v7, %v4299_v62  ;;  %v15995_v52 = vand.u32 2147483647, %v9477_v50 }
 0x130   : > { %v7634_v24 = vadd.s32 4294967294, %v1026_v5  ;;  %vm4287_vm1 = vcmp.lt.s32.totalorder %v9514_v47, 2  ;;  %vm1278_vm2 = vcmp.gt.s32.totalorder %v1277_v45, 0  ;;  %v4420_v14 = vshll.u32 %v9556_v33, 30 }
 0x131   : > { %v4297_v28 = vsel %vm4287_vm1, %v4294_v27, %v4296_v39  ;;  %v1279_v17 = vsel %vm1278_vm2, %v1277_v45, 0  ;;  %v1133_v48 = vsub.s32 32, %v9526_v57  ;;  %v4301_v7 = vsel %vm4287_vm1, %v4298_v11, %v4300_v29 }
 0x132   : > { %v9583_v61 = vshll.u32 %v4262_v2, 8  ;;  %v1281_v55 = vand.u32 31, %v1279_v17  ;;  %v1139_v62 = vshll.u32 %v9566_v10, 23  ;;  %v1274_v30 = vand.u32 8388607, %v15995_v52 }
 0x133   : > { %v9591_v21 = vadd.f32 %v16537_v1, %v420_v3  ;;  %vm7635_vm3 = vcmp.lt.s32.totalorder %v7634_v24, 0  ;;  %v9601_v45 = vsub.s32 %v9512_v38, %v4420_v14  ;;  %v9615_v54 = vshrl.u32 %v1279_v17, 5 }
 0x134   : > { %v9594_v27 = vmul.u32.u64.low %v9583_v61, %v4297_v28  ;;  %v9595_v39 = vmul.u32.u64.high %v9583_v61, %v4297_v28, %v9594_v27  ;;  %v9598_v2 = vsub.s32 32, %v1281_v55  ;;  %v1284_v29 = vshll.u32 %v16574_v12, %v1281_v55 }
 0x135   : > { %16597 = vst [vmem:[#allocation51_spill] sm:$0xff] %v9591_v21  ;;  %v9604_v11 = vmul.u32.u64.low %v9583_v61, %v4301_v7  ;;  %v9605_v10 = vmul.u32.u64.high %v9583_v61, %v4301_v7, %v9604_v11  ;;  %v1287_v52 = vshll.u32 %v16569_v13, %v1281_v55  ;;  %v1290_v38 = vshll.u32 %v16570_v6, %v1281_v55 }
 0x136   : > { %v1285_v3 = vshrl.u32 %v16569_v13, %v9598_v2  ;;  %v1288_v28 = vshrl.u32 %v16570_v6, %v9598_v2  ;;  %v1291_v5 = vshrl.u32 %v16571_v15, %v9598_v2  ;;  %v1293_v14 = vshll.u32 %v16571_v15, %v1281_v55 }
 0x137   : > { %v1294_v7 = vshrl.u32 %v16572_v9, %v9598_v2  ;;  %v4270_v11 = vshrl.u32 %v16574_v12, %v9482_v59  ;;  %v4291_v33 = vsel %vm4289_vm12, %v4279_v51, 2102212464  ;;  %v9630_v17 = vsel %vm7635_vm3, 0, %v7634_v24 }
 0x138   : > { %v9625_v42 = vor.u32 %v1285_v3, %v1284_v29  ;;  %v9627_v31 = vor.u32 %v1288_v28, %v1287_v52  ;;  %v1275_v41 = vor.u32 8388608, %v1274_v30  ;;  %v1292_v50 = vor.u32 %v1291_v5, %v1290_v38 }
 0x139   : > { %v1295_v20 = vor.u32 %v1294_v7, %v1293_v14  ;;  %v4423_v18 = vsub.s32 0, %v9601_v45  ;;  %v4290_v58 = vsel %vm4286_vm13, %v4270_v11, %v9537_v40  ;;  %v1296_v59 = vshll.u32 %v16572_v9, %v1281_v55 }
 0x13a   : > { %v1297_v51 = vshrl.u32 %v16573_v8, %v9598_v2  ;;  %v4292_v52 = vsel %vm4288_vm15, %v9539_v60, %v4291_v33  ;;  %vm1299_vm4 = vcmp.lt.s32.totalorder %v9615_v54, 1  ;;  %vm1302_vm6 = vcmp.lt.s32.totalorder %v9615_v54, 4 }
 0x13b   : > { %v1167_v24 = vand.u32 2139095040, %v9591_v21  ;;  %vm1301_vm8 = vcmp.lt.s32.totalorder %v9615_v54, 3  ;;  %v1307_v40 = vsel %vm1299_vm4, %v9625_v42, %v9627_v31  ;;  %v1308_v55 = vsel %vm1302_vm6, %v1295_v20, 920167782 }
 0x13c   : > { %v1298_v5 = vor.u32 %v1297_v51, %v1296_v59  ;;  %v4312_v30 = vadd.s32 1, %v9595_v39  ;;  %vm1300_vm9 = vcmp.lt.s32.totalorder %v9615_v54, 2  ;;  %v1309_v60 = vsel %vm1301_vm8, %v1292_v50, %v1308_v55 }
 0x13d   : > { %v9656_v33 = vshll.u32 %v1275_v41, 8  ;;  %vm4311_vm11 = vc.u32 %v9605_v10, %v9594_v27  ;;  %v1310_v29 = vsel %vm1300_vm9, %v1307_v40, %v1309_v60  ;;  %v1311_v3 = vsel %vm1299_vm4, %v9627_v31, %v1292_v50 }
 0x13e   : > { %v1312_v28 = vsel %vm1302_vm6, %v1298_v5, 1326507024  ;;  %v1135_v38 = vshrl.u32 %v9544_v23, %v1133_v48  ;;  %v1140_v14 = vor.u32 4788187, %v1139_v62  ;;  %v4293_v41 = vsel %vm4287_vm1, %v4290_v58, %v4292_v52  ;;  %v288_v5 = vpop.permute.xlu1 %287  ;;  %v8293_v23 = vld [vmem:[%s15928_s2 + $0x8] sm:$0xff]  }
 0x13f   : > { %v1313_v7 = vsel %vm1301_vm8, %v1295_v20, %v1312_v28  ;;  %v1034_v11 = vsub.s32 4294967266, %v9630_v17  ;;  %v9676_v51 = vmul.u32.u64.low %v9656_v33, %v1310_v29  ;;  %v9677_v40 = vmul.u32.u64.high %v9656_v33, %v1310_v29, %v9676_v51  ;;  %7922 = vmatprep.subr.bf16.mxu0 %v8293_v23  ;;  %8001 = vmatprep.subr.bf16.mxu1 %v8293_v23 }
 0x140   : > { %v1314_v59 = vsel %vm1300_vm9, %v1311_v3, %v1313_v7  ;;  %vm16016_vm12 = vcmp.lt.s32.totalorder %v8728_v32, 0  ;;  %v7765_v58 = vmin.u32 %v4423_v18, %v9601_v45  ;;  %v4313_v20 = vsel %vm4311_vm11, %v4312_v30, %v9595_v39  ;;  %7923 = vmatpush3.bf16.xpose.msra.mxu0 %v8293_v23  ;;  %8009 = vmatpush3.bf16.xpose.msra.mxu1 %v8293_v23 }
 0x141   : > { %v9687_v47 = vmul.u32.u64.low %v9656_v33, %v1314_v59  ;;  %v9688_v48 = vmul.u32.u64.high %v9656_v33, %v1314_v59, %v9687_v47  ;;  %v16598_v62 = vand.u32 2147483647, %v8712_v16  ;;  %v16599_v52 = vmov 0 }
 0x142   : > { %v16602_v55 = vand.u32 2147483647, %v9554_v37  ;;  %v16603_v60 = vcvt.s32.f32 %v9550_v56  ;;  %v4309_v3 = vmul.u32 %v9583_v61, %v4293_v41  ;;  %v1304_v18 = vsel %vm1302_vm6, %v1292_v50, 2102212464 }
 0x143   : > { %vm9692_vm13 = vcmp.le.f32.partialorder %v16598_v62, 0.7853982  ;;  %v1168_v39 = vshrl.u32 %v1167_v24, 23  ;;  %vm16029_vm15 = vcmp.lt.s32.totalorder %v8874_v53, 0  ;;  %v16604_v30 = vshll.u32 %v9389_v36, %v9526_v57 }
 0x144   : > { %v16600_v52 = vsel %vm9692_vm13, 4294967295, %v16599_v52  ;;  %v4131_v29 = vmul.f32 %v16603_v60, %v16602_v55  ;;  %v1283_v37 = vshrl.u32 %v16574_v12, %v9598_v2  ;;  %v453_v56 = vmul.f32 %v16538_v0, %v288_v5 }
 0x145   : > { %16601 = vst [vmem:[#allocation52_spill] sm:$0xff] %v16600_v52  ;;  %v1136_v28 = vor.u32 %v1135_v38, %v16604_v30  ;;  %v16605_v61 = vand.u32 2147483647, %v8728_v32  ;;  %v16606_v50 = vmov 0  ;;  %v4235_v24 = vxor.u32 2147483648, %v9502_v63 }
 0x146   : > { %v1035_v41 = vadd.s32 127, %v1034_v11  ;;  %v9717_v7 = vadd.s32 %v4313_v20, %v4309_v3  ;;  %v7640_v36 = vadd.s32 4294967169, %v1168_v39  ;;  %v1141_v57 = vand.u32 2147483647, %v1140_v14 }
 0x147   : > { %vm9712_vm1 = vcmp.le.f32.partialorder %v16605_v61, 0.7853982  ;;  %v4425_v38 = vclz %v7765_v58  ;;  %v1303_v2 = vsel %vm1299_vm4, %v1283_v37, %v9625_v42  ;;  %v1305_v59 = vsel %vm1301_vm8, %v9627_v31, %v1304_v18 }
 0x148   : > { %v16607_v50 = vsel %vm9712_vm1, 4294967295, %v16606_v50  ;;  %v4132_v5 = vxor.u32 2147483648, %v4131_v29  ;;  %v1030_v23 = vsub.s32 32, %v9630_v17  ;;  %v1325_v47 = vadd.s32 1, %v9677_v40 }
 0x149   : > { %16608 = vst [vmem:[#allocation53_spill] sm:$0xff] %v16607_v50  ;;  %v1174_v62 = vadd.s32 1, %v7640_v36  ;;  %v1143_v11 = vcvt.s32.f32 %v1136_v28  ;;  %v1014_v20 = vadd.s32 %v9331_v25, %v9329_v44  ;;  %vm1324_vm2 = vc.u32 %v9688_v48, %v9676_v51 }
 0x14a   : > { %v9732_v14 = vadd.f32 %v16537_v1, %v453_v56  ;;  %v1036_v42 = vshll.u32 %v1035_v41, 23  ;;  %v4315_v58 = vadd.s32 536870912, %v9717_v7  ;;  %v1306_v31 = vsel %vm1300_vm9, %v1303_v2, %v1305_v59 }
 0x14b   : > { %vm1175_vm3 = vcmp.gt.s32.totalorder %v1174_v62, 0  ;;  %8300 = vcosq.f32 %v9495_v46  ;;  %v1144_v55 = vmul.f32 %v1143_v11, %v1141_v57  ;;  %v7766_v60 = vadd.s32 4294967294, %v4425_v38 }
 0x14c   : > { %16609 = vst [vmem:[#allocation54_spill] sm:$0xff] %v9732_v14  ;;  %v1176_v3 = vsel %vm1175_vm3, %v1174_v62, 0  ;;  %8302 = vsinq.f32 %v9495_v46  ;;  %v4236_v44 = vsel %vm16016_vm12, %v4235_v24, %v9502_v63  ;;  %v1032_v25 = vshrl.u32 %v1014_v20, %v1030_v23 }
 0x14d   : > { %v1326_v18 = vsel %vm1324_vm2, %v1325_v47, %v9677_v40  ;;  %v840_v54 = vsel %vm9692_vm13, %v8712_v16, %v9500_v19  ;;  %v1322_v39 = vmul.u32 %v9656_v33, %v1306_v31  ;;  %v1178_v30 = vand.u32 31, %v1176_v3 }
 0x14e   : > { %v4566_v28 = vand.u32 2139095040, %v9732_v14  ;;  %v4133_v46 = vsel %vm16029_vm15, %v4132_v5, %v4131_v29  ;;  %v1031_v37 = vshll.u32 %v9472_v34, %v9630_v17  ;;  %v1037_v63 = vor.u32 4788187, %v1036_v42  ;;  %v16615_v29 = vld [vmem:[#allocation22_spill] sm:$0xff] }
 0x14f   : > { %v9753_v56 = vshrl.u32 %v4315_v58, 30  ;;  %v4239_v40 = vsel %vm9712_vm1, %v8728_v32, %v4236_v44  ;;  %v1145_v61 = vxor.u32 2147483648, %v1144_v55  ;;  %vm7767_vm4 = vcmp.lt.s32.totalorder %v7766_v60, 0 }
 0x150   : > { %v9758_v19 = vadd.s32 %v1326_v18, %v1322_v39  ;;  %8304 = vcosq.f32 %v840_v54  ;;  %v16611_v33 = vand.u32 2147483647, %v8874_v53  ;;  %v16612_v24 = vmov 0 }
 0x151   : > { %16610 = vst [vmem:[#allocation55_spill] sm:$0xff] %v9753_v56  ;;  %vm16012_vm8 = vcmp.lt.s32.totalorder %v16615_v29, 0  ;;  %v1033_v34 = vor.u32 %v1032_v25, %v1031_v37  ;;  %8306 = vsinq.f32 %v840_v54  ;;  %v9770_v41 = vsub.s32 32, %v1178_v30 }
 0x152   : > { %vm9762_vm6 = vcmp.le.f32.partialorder %v16611_v33, 0.7853982  ;;  %v4567_v36 = vshrl.u32 %v4566_v28, 23  ;;  %8308 = vcosq.f32 %v4239_v40  ;;  %v1038_v57 = vand.u32 2147483647, %v1037_v63 }
 0x153   : > { %v16613_v24 = vsel %vm9762_vm6, 4294967295, %v16612_v24  ;;  %v4136_v17 = vsel %vm9762_vm6, %v8874_v53, %v4133_v46  ;;  %v9772_v38 = vsel %vm7767_vm4, 0, %v7766_v60  ;;  %v4317_v2 = vshll.u32 %v9753_v56, 30 }
 0x154   : > { %16614 = vst [vmem:[#allocation56_spill] sm:$0xff] %v16613_v24  ;;  %v9777_v59 = vor.u32 %v9347_v22, %v9228_v49  ;;  %8310 = vsinq.f32 %v4239_v40  ;;  %v1146_v5 = vsel %vm16012_vm8, %v1145_v61, %v1144_v55  ;;  %v1328_v23 = vadd.s32 536870912, %v9758_v19 }
 0x155   : > { %8312 = vcosq.f32 %v4136_v17  ;;  %v16617_v62 = vand.u32 2147483647, %v16615_v29  ;;  %v16618_v11 = vmov 0  ;;  %v1040_v20 = vcvt.s32.f32 %v1033_v34  ;;  %v9790_v42 = vpop.eup %8300 }
 0x156   : > { %16616 = vst [vmem:[#allocation57_spill] sm:$0xff] %v9777_v59  ;;  %16621 = vst [vmem:[#allocation59_spill] sm:$0xff] %v9790_v42  ;;  %8314 = vsinq.f32 %v4136_v17  ;;  %v4433_v49 = vsub.s32 4294967266, %v9772_v38  ;;  %v1191_v22 = vshrl.u32 %v16572_v9, %v9770_v41  ;;  %v7772_v58 = vadd.s32 4294967169, %v4567_v36  ;;  %v9795_v31 = vpop.eup %8302 }
 0x157   : > { %vm9786_vm9 = vcmp.le.f32.partialorder %v16617_v62, 0.7853982  ;;  %16622 = vst [vmem:[#allocation60_spill] sm:$0xff] %v9795_v31  ;;  %v1041_v60 = vmul.f32 %v1040_v20, %v1038_v57  ;;  %v9803_v44 = vsub.s32 %v9717_v7, %v4317_v2  ;;  %v1194_v25 = vshrl.u32 %v16573_v8, %v9770_v41 }
 0x158   : > { %v16619_v11 = vsel %vm9786_vm9, 4294967295, %v16618_v11  ;;  %v9800_v55 = vsel %vm9786_vm9, %v16615_v29, %v1146_v5  ;;  %v9807_v18 = vshrl.u32 %v1328_v23, 30  ;;  %v16009_v54 = vand.u32 2147483647, %v9591_v21 }
 0x159   : > { %16620 = vst [vmem:[#allocation58_spill] sm:$0xff] %v16619_v11  ;;  %v1182_v39 = vshrl.u32 %v16569_v13, %v9770_v41  ;;  %v1190_v28 = vshll.u32 %v16571_v15, %v1178_v30  ;;  %vm16027_vm11 = vcmp.lt.s32.totalorder %v9111_v35, 0  ;;  %v9814_v46 = vshrl.u32 %v1176_v3, 5 }
 0x15a   : > { %16623 = vst [vmem:[#allocation61_spill] sm:$0xff] %v9807_v18  ;;  %v1185_v7 = vshrl.u32 %v16570_v6, %v9770_v41  ;;  %v1188_v37 = vshrl.u32 %v16571_v15, %v9770_v41  ;;  %v1193_v63 = vshll.u32 %v16572_v9, %v1178_v30  ;;  %v4434_v40 = vadd.s32 127, %v4433_v49  ;;  %v9822_v17 = vpop.eup %8304 }
 0x15b   : > { %v1181_v61 = vshll.u32 %v16574_v12, %v1178_v30  ;;  %v1192_v33 = vor.u32 %v1191_v22, %v1190_v28  ;;  %v4573_v34 = vadd.s32 1, %v7772_v58  ;;  %16624 = vst [vmem:[#allocation62_spill] sm:$0xff] %v9822_v17  ;;  %v4320_v36 = vsub.s32 0, %v9803_v44  ;;  %v9827_v5 = vpop.eup %8306 }
 0x15c   : > { %v1184_v3 = vshll.u32 %v16569_v13, %v1178_v30  ;;  %v1187_v57 = vshll.u32 %v16570_v6, %v1178_v30  ;;  %v1195_v2 = vor.u32 %v1194_v25, %v1193_v63  ;;  %16625 = vst [vmem:[#allocation63_spill] sm:$0xff] %v9827_v5  ;;  %v1330_v23 = vshll.u32 %v9807_v18, 30  ;;  %v9834_v49 = vpop.eup %8308  ;;  %v16628_v63 = vld [vmem:[#allocation45_spill] sm:$0xff] }
 0x15d   : > { %v1171_v62 = vand.u32 8388607, %v16009_v54  ;;  %v9832_v20 = vor.u32 %v1182_v39, %v1181_v61  ;;  %vm4574_vm2 = vcmp.gt.s32.totalorder %v4573_v34, 0  ;;  %16626 = vst [vmem:[#allocation64_spill] sm:$0xff] %v9834_v49  ;;  %vm1199_vm3 = vcmp.lt.s32.totalorder %v9814_v46, 4 }
 0x15e   : > { %v9836_v22 = vor.u32 %v1185_v7, %v1184_v3  ;;  %v1189_v58 = vor.u32 %v1188_v37, %v1187_v57  ;;  %v4575_v28 = vsel %vm4574_vm2, %v4573_v34, 0  ;;  %v9839_v30 = vpop.eup %8310  ;;  %v1042_v25 = vxor.u32 2147483648, %v1041_v60 }
 0x15f   : > { %16627 = vst [vmem:[#allocation65_spill] sm:$0xff] %v9839_v30  ;;  %v4413_v47 = vadd.s32 %v16628_v63, %v9448_v4  ;;  %v4429_v18 = vsub.s32 32, %v9772_v38  ;;  %v1205_v39 = vsel %vm1199_vm3, %v1192_v33, 920167782  ;;  %v9846_v61 = vpop.eup %8312  ;;  %v4435_v54 = vshll.u32 %v4434_v40, 23 }
 0x160   : > { %16629 = vst [vmem:[#allocation45_spill] sm:$0xff] %v9846_v61  ;;  %v7761_v7 = vmin.u32 %v4320_v36, %v9803_v44  ;;  %v1209_v37 = vsel %vm1199_vm3, %v1195_v2, 1326507024  ;;  %v4577_v34 = vand.u32 31, %v4575_v28  ;;  %v9851_v3 = vpop.eup %8314  ;;  %v1172_v57 = vor.u32 8388608, %v1171_v62  ;;  %v283_v62 = vpop.permute.xlu0 %282 }
 0x161   : > { %16630 = vst [vmem:[#allocation66_spill] sm:$0xff] %v9851_v3  ;;  %vm1196_vm4 = vcmp.lt.s32.totalorder %v9814_v46, 1  ;;  %vm1198_vm2 = vcmp.lt.s32.totalorder %v9814_v46, 3  ;;  %v9857_v63 = vsub.s32 %v9758_v19, %v1330_v23  ;;  %8316 = vcosq.f32 %v9800_v55 }
 0x162   : > { %v1204_v40 = vsel %vm1196_vm4, %v9832_v20, %v9836_v22  ;;  %v1206_v36 = vsel %vm1198_vm2, %v1189_v58, %v1205_v39  ;;  %v9865_v2 = vsub.s32 32, %v4577_v34  ;;  %v1043_v56 = vsel %vm16027_vm11, %v1042_v25, %v1041_v60 }
 0x163   : > { %v1208_v19 = vsel %vm1196_vm4, %v9836_v22, %v1189_v58  ;;  %v1210_v23 = vsel %vm1198_vm2, %v1192_v33, %v1209_v37  ;;  %v16631_v4 = vand.u32 2147483647, %v9111_v35  ;;  %v16632_v11 = vmov 0 }
 0x164   : > { %v4431_v39 = vshrl.u32 %v4413_v47, %v4429_v18  ;;  %v9881_v29 = vor.u32 4788187, %v4435_v54  ;;  %v4322_v49 = vclz %v7761_v7  ;;  %vm1197_vm12 = vcmp.lt.s32.totalorder %v9814_v46, 2 }
 0x165   : > { %vm9877_vm8 = vcmp.le.f32.partialorder %v16631_v4, 0.7853982  ;;  %v1207_v60 = vsel %vm1197_vm12, %v1204_v40, %v1206_v36  ;;  %v9886_v25 = vshll.u32 %v1172_v57, 8  ;;  %v16635_v30 = vand.u32 2147483647, %v9732_v14 }
 0x166   : > { %v16633_v11 = vsel %vm9877_vm8, 4294967295, %v16632_v11  ;;  %v452_v37 = vmul.f32 %v16538_v0, %v283_v62  ;;  %v1333_v4 = vsub.s32 0, %v9857_v63  ;;  %v1211_v47 = vsel %vm1197_vm12, %v1208_v19, %v1210_v23 }
 0x167   : > { %16634 = vst [vmem:[#allocation67_spill] sm:$0xff] %v16633_v11  ;;  %v4570_v33 = vand.u32 8388607, %v16635_v30  ;;  %v4589_v18 = vshll.u32 %v16571_v15, %v4577_v34  ;;  %v4590_v54 = vshrl.u32 %v16572_v9, %v9865_v2  ;;  %v9897_v7 = vshrl.u32 %v4575_v28, 5 }
 0x168   : > { %v4581_v57 = vshrl.u32 %v16569_v13, %v9865_v2  ;;  %v4584_v30 = vshrl.u32 %v16570_v6, %v9865_v2  ;;  %v4587_v40 = vshrl.u32 %v16571_v15, %v9865_v2  ;;  %v4593_v23 = vshrl.u32 %v16573_v8, %v9865_v2 }
 0x169   : > { %v9906_v36 = vmul.u32.u64.low %v9886_v25, %v1207_v60  ;;  %v9907_v62 = vmul.u32.u64.high %v9886_v25, %v1207_v60, %v9906_v36  ;;  %v4591_v19 = vor.u32 %v4590_v54, %v4589_v18  ;;  %v4580_v28 = vshll.u32 %v16574_v12, %v4577_v34 }
 0x16a   : > { %v4583_v50 = vshll.u32 %v16569_v13, %v4577_v34  ;;  %v4586_v32 = vshll.u32 %v16570_v6, %v4577_v34  ;;  %v9916_v61 = vadd.f32 %v16537_v1, %v452_v37  ;;  %v7645_v3 = vmin.u32 %v1333_v4, %v9857_v63 }
 0x16b   : > { %v9920_v24 = vmul.u32.u64.low %v9886_v25, %v1211_v47  ;;  %v9921_v60 = vmul.u32.u64.high %v9886_v25, %v1211_v47, %v9920_v24  ;;  %v4592_v18 = vshll.u32 %v16572_v9, %v4577_v34  ;;  %v9924_v54 = vor.u32 %v4581_v57, %v4580_v28  ;;  %v138_v57 = vpop.permute.xlu1 %137 }
 0x16c   : > { %16636 = vst [vmem:[#allocation68_spill] sm:$0xff] %v9916_v61  ;;  %v9926_v53 = vor.u32 %v4584_v30, %v4583_v50  ;;  %v4588_v42 = vor.u32 %v4587_v40, %v4586_v32  ;;  %vm4598_vm11 = vcmp.lt.s32.totalorder %v9897_v7, 4  ;;  %v1180_v31 = vshrl.u32 %v16574_v12, %v9770_v41  ;;  %v9935_v24 = vpop.eup %8316 }
 0x16d   : > { %v1201_v37 = vsel %vm1199_vm3, %v1189_v58, 2102212464  ;;  %v4594_v4 = vor.u32 %v4593_v23, %v4592_v18  ;;  %v4604_v47 = vsel %vm4598_vm11, %v4591_v19, 920167782  ;;  %16637 = vst [vmem:[#allocation69_spill] sm:$0xff] %v9935_v24  ;;  %8318 = vsinq.f32 %v9800_v55 }
 0x16e   : > { %v9941_v32 = vsel %vm9877_vm8, %v9111_v35, %v1043_v56  ;;  %v4430_v50 = vshll.u32 %v9601_v45, %v9772_v38  ;;  %v7762_v41 = vadd.s32 4294967294, %v4322_v49  ;;  %v1200_v58 = vsel %vm1196_vm4, %v1180_v31, %v9832_v20 }
 0x16f   : > { %v4571_v34 = vor.u32 8388608, %v4570_v33  ;;  %vm4595_vm3 = vcmp.lt.s32.totalorder %v9897_v7, 1  ;;  %vm4597_vm15 = vcmp.lt.s32.totalorder %v9897_v7, 3  ;;  %v1335_v55 = vclz %v7645_v3 }
 0x170   : > { %v1202_v56 = vsel %vm1198_vm2, %v9836_v22, %v1201_v37  ;;  %v4603_v45 = vsel %vm4595_vm3, %v9924_v54, %v9926_v53  ;;  %v4605_v38 = vsel %vm4597_vm15, %v4588_v42, %v4604_v47  ;;  %v4432_v31 = vor.u32 %v4431_v39, %v4430_v50 }
 0x171   : > { %v4437_v20 = vand.u32 2147483647, %v9881_v29  ;;  %v4608_v49 = vsel %vm4598_vm11, %v4594_v4, 1326507024  ;;  %v4463_v3 = vand.u32 2139095040, %v9916_v61  ;;  %vm7763_vm4 = vcmp.lt.s32.totalorder %v7762_v41, 0 }
 0x172   : > { %v1222_v33 = vadd.s32 1, %v9907_v62  ;;  %vm4596_vm2 = vcmp.lt.s32.totalorder %v9897_v7, 2  ;;  %v423_v22 = vmul.f32 %v16538_v0, %v138_v57  ;;  %v1203_v30 = vsel %vm1197_vm12, %v1200_v58, %v1202_v56 }
 0x173   : > { %vm1221_vm0 = vc.u32 %v9921_v60, %v9906_v36  ;;  %v4606_v29 = vsel %vm4596_vm2, %v4603_v45, %v4605_v38  ;;  %v4464_v39 = vshrl.u32 %v4463_v3, 23  ;;  %v7646_v40 = vadd.s32 4294967294, %v1335_v55 }
 0x174   : > { %v4607_v23 = vsel %vm4595_vm3, %v9926_v53, %v4588_v42  ;;  %v4609_v28 = vsel %vm4597_vm15, %v4591_v19, %v4608_v49  ;;  %v9977_v18 = vshll.u32 %v4571_v34, 8  ;;  %8320 = vcosq.f32 %v9941_v32 }
 0x175   : > { %v4439_v46 = vcvt.s32.f32 %v4432_v31  ;;  %v9980_v37 = vsel %vm7763_vm4, 0, %v7762_v41  ;;  %v7768_v4 = vadd.s32 4294967169, %v4464_v39  ;;  %v1223_v47 = vsel %vm1221_vm0, %v1222_v33, %v9907_v62 }
 0x176   : > { %v9984_v50 = vmul.u32.u64.low %v9977_v18, %v4606_v29  ;;  %v9985_v58 = vmul.u32.u64.high %v9977_v18, %v4606_v29, %v9984_v50  ;;  %v9989_v57 = vadd.f32 %v16537_v1, %v423_v22  ;;  %v1219_v19 = vmul.u32 %v9886_v25, %v1203_v30 }
 0x177   : > { %v9991_v55 = vmul.f32 %v4439_v46, %v4437_v20  ;;  %v4610_v34 = vsel %vm4596_vm2, %v4607_v23, %v4609_v28  ;;  %v4470_v41 = vadd.s32 1, %v7768_v4  ;;  %v9996_v56 = vpop.eup %8318  ;;  %v4310_v62 = vadd.s32 %v9594_v27, %v9605_v10 }
 0x178   : > { %16638 = vst [vmem:[#allocation70_spill] sm:$0xff] %v9989_v57  ;;  %16639 = vst [vmem:[#allocation71_spill] sm:$0xff] %v9996_v56  ;;  %v4326_v45 = vsub.s32 32, %v9980_v37  ;;  %v4330_v38 = vsub.s32 4294967266, %v9980_v37  ;;  %vm7647_vm0 = vcmp.lt.s32.totalorder %v7646_v40, 0  ;;  %v10002_v31 = vadd.s32 %v1223_v47, %v1219_v19 }
 0x179   : > { %v4600_v20 = vsel %vm4598_vm11, %v4588_v42, 2102212464  ;;  %v16031_v25 = vand.u32 2147483647, %v9916_v61  ;;  %vm4471_vm12 = vcmp.gt.s32.totalorder %v4470_v41, 0  ;;  %v1476_v27 = vand.u32 2139095040, %v9989_v57 }
 0x17a   : > { %v10008_v49 = vmul.u32.u64.low %v9977_v18, %v4610_v34  ;;  %v10009_v3 = vmul.u32.u64.high %v9977_v18, %v4610_v34, %v10008_v49  ;;  %v4472_v33 = vsel %vm4471_vm12, %v4470_v41, 0  ;;  %v10015_v22 = vadd.s32 %v9676_v51, %v9688_v48 }
 0x17b   : > { %v4579_v30 = vshrl.u32 %v16574_v12, %v9865_v2  ;;  %v4474_v42 = vand.u32 31, %v4472_v33  ;;  %v4327_v29 = vshll.u32 %v9803_v44, %v9980_v37  ;;  %v4328_v39 = vshrl.u32 %v4310_v62, %v4326_v45 }
 0x17c   : > { %v4331_v23 = vadd.s32 127, %v4330_v38  ;;  %v10022_v28 = vsel %vm7647_vm0, 0, %v7646_v40  ;;  %v1225_v46 = vadd.s32 536870912, %v10002_v31  ;;  %v4601_v51 = vsel %vm4597_vm15, %v9926_v53, %v4600_v20 }
 0x17d   : > { %v4599_v4 = vsel %vm4595_vm3, %v4579_v30, %v9924_v54  ;;  %v4475_v48 = vsub.s32 32, %v4474_v42  ;;  %v4621_v2 = vadd.s32 1, %v9985_v58  ;;  %v4467_v44 = vand.u32 8388607, %v16031_v25 }
 0x17e   : > { %v4477_v37 = vshll.u32 %v16574_v12, %v4474_v42  ;;  %v1477_v40 = vshrl.u32 %v1476_v27, 23  ;;  %v10035_v47 = vpop.eup %8320  ;;  %v4480_v34 = vshll.u32 %v16569_v13, %v4474_v42  ;;  %v10041_v53 = vshrl.u32 %v4472_v33, 5 }
 0x17f   : > { %16640 = vst [vmem:[#allocation72_spill] sm:$0xff] %v10035_v47  ;;  %v4478_v19 = vshrl.u32 %v16569_v13, %v4475_v48  ;;  %v4481_v54 = vshrl.u32 %v16570_v6, %v4475_v48  ;;  %v4484_v41 = vshrl.u32 %v16571_v15, %v4475_v48  ;;  %v4483_v62 = vshll.u32 %v16570_v6, %v4474_v42 }
 0x180   : > { %v4486_v45 = vshll.u32 %v16571_v15, %v4474_v42  ;;  %v4487_v38 = vshrl.u32 %v16572_v9, %v4475_v48  ;;  %v4489_v27 = vshll.u32 %v16572_v9, %v4474_v42  ;;  %v4490_v30 = vshrl.u32 %v16573_v8, %v4475_v48 }
 0x181   : > { %v4479_v20 = vor.u32 %v4478_v19, %v4477_v37  ;;  %v4482_v49 = vor.u32 %v4481_v54, %v4480_v34  ;;  %v10048_v25 = vshrl.u32 %v1225_v46, 30  ;;  %vm4620_vm15 = vc.u32 %v10009_v3, %v9984_v50 }
 0x182   : > { %v4485_v10 = vor.u32 %v4484_v41, %v4483_v62  ;;  %v4488_v33 = vor.u32 %v4487_v38, %v4486_v45  ;;  %v4332_v24 = vshll.u32 %v4331_v23, 23  ;;  %v1343_v56 = vsub.s32 4294967266, %v10022_v28  ;;  %v133_v62 = vpop.permute.xlu0 %132 }
 0x183   : > { %16641 = vst [vmem:[#allocation73_spill] sm:$0xff] %v10048_v25  ;;  %v4602_v47 = vsel %vm4596_vm2, %v4599_v4, %v4601_v51  ;;  %v4491_v11 = vor.u32 %v4490_v30, %v4489_v27  ;;  %v4468_v37 = vor.u32 8388608, %v4467_v44  ;;  %vm4492_vm11 = vcmp.lt.s32.totalorder %v10041_v53, 1 }
 0x184   : > { %vm4495_vm3 = vcmp.lt.s32.totalorder %v10041_v53, 4  ;;  %v7652_v42 = vadd.s32 4294967169, %v1477_v40  ;;  %v4622_v46 = vsel %vm4620_vm15, %v4621_v2, %v9985_v58  ;;  %vm4494_vm4 = vcmp.lt.s32.totalorder %v10041_v53, 3 }
 0x185   : > { %v4500_v19 = vsel %vm4492_vm11, %v4479_v20, %v4482_v49  ;;  %v4501_v23 = vsel %vm4495_vm3, %v4488_v33, 920167782  ;;  %v1227_v7 = vshll.u32 %v10048_v25, 30  ;;  %v4618_v4 = vmul.u32 %v9977_v18, %v4602_v47 }
 0x186   : > { %v4502_v51 = vsel %vm4494_vm4, %v4485_v10, %v4501_v23  ;;  %v4504_v44 = vsel %vm4492_vm11, %v4482_v49, %v4485_v10  ;;  %v10069_v40 = vor.u32 %v4328_v39, %v4327_v29  ;;  %v10071_v58 = vor.u32 4788187, %v4332_v24 }
 0x187   : > { %vm4493_vm2 = vcmp.lt.s32.totalorder %v10041_v53, 2  ;;  %v4505_v2 = vsel %vm4495_vm3, %v4491_v11, 1326507024  ;;  %v10076_v34 = vadd.s32 %v4622_v46, %v4618_v4  ;;  %v1483_v54 = vadd.s32 1, %v7652_v42 }
 0x188   : > { %v4503_v18 = vsel %vm4493_vm2, %v4500_v19, %v4502_v51  ;;  %v4506_v47 = vsel %vm4494_vm4, %v4488_v33, %v4505_v2  ;;  %v1339_v41 = vsub.s32 32, %v10022_v28  ;;  %v1344_v29 = vadd.s32 127, %v1343_v56 }
 0x189   : > { %v4507_v24 = vsel %vm4493_vm2, %v4504_v44, %v4506_v47  ;;  %v4508_v39 = vshll.u32 %v4468_v37, 8  ;;  %v10086_v45 = vsub.s32 %v10002_v31, %v1227_v7  ;;  %v4476_v11 = vshrl.u32 %v16574_v12, %v4475_v48 }
 0x18a   : > { %v4497_v38 = vsel %vm4495_vm3, %v4485_v10, 2102212464  ;;  %vm1484_vm0 = vcmp.gt.s32.totalorder %v1483_v54, 0  ;;  %v4624_v56 = vadd.s32 536870912, %v10076_v34  ;;  %v16036_v37 = vand.u32 2147483647, %v9989_v57 }
 0x18b   : > { %v10091_v27 = vmul.u32.u64.low %v4508_v39, %v4507_v24  ;;  %v10092_v30 = vmul.u32.u64.high %v4508_v39, %v4507_v24, %v10091_v27  ;;  %v10094_v33 = vmul.u32.u64.low %v4508_v39, %v4503_v18  ;;  %v10095_v42 = vmul.u32.u64.high %v4508_v39, %v4503_v18, %v10094_v33 }
 0x18c   : > { %v1485_v46 = vsel %vm1484_vm0, %v1483_v54, 0  ;;  %v422_v31 = vmul.f32 %v16538_v0, %v133_v62  ;;  %v4496_v10 = vsel %vm4492_vm11, %v4476_v11, %v4479_v20  ;;  %v4498_v19 = vsel %vm4494_vm4, %v4482_v49, %v4497_v38 }
 0x18d   : > { %v1487_v23 = vand.u32 31, %v1485_v46  ;;  %v4334_v7 = vand.u32 2147483647, %v10071_v58  ;;  %v1340_v4 = vshll.u32 %v9857_v63, %v10022_v28  ;;  %v1341_v51 = vshrl.u32 %v10015_v22, %v1339_v41  ;;  %v16644_v28 = vld [vmem:[#allocation37_spill] sm:$0xff] }
 0x18e   : > { %v1345_v44 = vshll.u32 %v1344_v29, 23  ;;  %v1230_v2 = vsub.s32 0, %v10086_v45  ;;  %vm4517_vm12 = vc.u32 %v10092_v30, %v10094_v33  ;;  %v4518_v18 = vadd.s32 1, %v10095_v42 }
 0x18f   : > { %v10114_v20 = vsub.s32 32, %v1487_v23  ;;  %v10116_v47 = vshrl.u32 %v4624_v56, 30  ;;  %v4499_v49 = vsel %vm4493_vm2, %v4496_v10, %v4498_v19  ;;  %v1480_v63 = vand.u32 8388607, %v16036_v37 }
 0x190   : > { %v10123_v22 = vadd.f32 %v16537_v1, %v422_v31  ;;  %vm16043_vm15 = vcmp.lt.s32.totalorder %v16644_v28, 0  ;;  %v1490_v58 = vshll.u32 %v16574_v12, %v1487_v23  ;;  %v1493_v41 = vshll.u32 %v16569_v13, %v1487_v23 }
 0x191   : > { %16642 = vst [vmem:[#allocation74_spill] sm:$0xff] %v10116_v47  ;;  %v1491_v54 = vshrl.u32 %v16569_v13, %v10114_v20  ;;  %v1494_v29 = vshrl.u32 %v16570_v6, %v10114_v20  ;;  %v4519_v53 = vsel %vm4517_vm12, %v4518_v18, %v10095_v42  ;;  %v10133_v24 = vshrl.u32 %v1485_v46, 5 }
 0x192   : > { %16643 = vst [vmem:[#allocation75_spill] sm:$0xff] %v10123_v22  ;;  %v1496_v62 = vshll.u32 %v16570_v6, %v1487_v23  ;;  %v1497_v11 = vshrl.u32 %v16571_v15, %v10114_v20  ;;  %v1499_v56 = vshll.u32 %v16571_v15, %v1487_v23  ;;  %v1500_v31 = vshrl.u32 %v16572_v9, %v10114_v20 }
 0x193   : > { %v10138_v38 = vor.u32 %v1491_v54, %v1490_v58  ;;  %v10140_v27 = vor.u32 %v1494_v29, %v1493_v41  ;;  %v7641_v10 = vmin.u32 %v1230_v2, %v10086_v45  ;;  %v4626_v42 = vshll.u32 %v10116_v47, 30 }
 0x194   : > { %v4515_v46 = vmul.u32 %v4508_v39, %v4499_v49  ;;  %v1373_v19 = vand.u32 2139095040, %v10123_v22  ;;  %v1498_v18 = vor.u32 %v1497_v11, %v1496_v62  ;;  %v1501_v37 = vor.u32 %v1500_v31, %v1499_v56 }
 0x195   : > { %v1502_v48 = vshll.u32 %v16572_v9, %v1487_v23  ;;  %v1503_v58 = vshrl.u32 %v16573_v8, %v10114_v20  ;;  %v16645_v54 = vand.u32 2147483647, %v16644_v28  ;;  %v16646_v41 = vmov 0 }
 0x196   : > { %v1342_v29 = vor.u32 %v1341_v51, %v1340_v4  ;;  %v1346_v2 = vor.u32 4788187, %v1345_v44  ;;  %v10157_v25 = vadd.s32 %v4519_v53, %v4515_v46  ;;  %vm1505_vm3 = vcmp.lt.s32.totalorder %v10133_v24, 1  ;;  %v16650_v46 = vld [vmem:[#allocation42_spill] sm:$0xff] }
 0x197   : > { %vm10153_vm11 = vcmp.le.f32.partialorder %v16645_v54, 0.7853982  ;;  %v1481_v39 = vor.u32 8388608, %v1480_v63  ;;  %v1504_v49 = vor.u32 %v1503_v58, %v1502_v48  ;;  %vm1508_vm4 = vcmp.lt.s32.totalorder %v10133_v24, 4 }
 0x198   : > { %v16647_v41 = vsel %vm10153_vm11, 4294967295, %v16646_v41  ;;  %v1513_v23 = vsel %vm1505_vm3, %v10138_v38, %v10140_v27  ;;  %v1232_v62 = vclz %v7641_v10  ;;  %vm1507_vm2 = vcmp.lt.s32.totalorder %v10133_v24, 3  ;;  %v298_v10 = vpop.permute.xlu1 %297 }
 0x199   : > { %16648 = vst [vmem:[#allocation76_spill] sm:$0xff] %v16647_v41  ;;  %v1514_v4 = vsel %vm1508_vm4, %v1501_v37, 920167782  ;;  %v1374_v51 = vshrl.u32 %v1373_v19, 23  ;;  %v10169_v44 = vsub.s32 %v10076_v34, %v4626_v42  ;;  %vm1506_vm0 = vcmp.lt.s32.totalorder %v10133_v24, 2  ;;  %v8294_v42 = vld [vmem:[%s15928_s2 + $0x10] sm:$0xff]  }
 0x19a   : > { %v1515_v48 = vsel %vm1507_vm2, %v1498_v18, %v1514_v4  ;;  %v1517_v63 = vsel %vm1505_vm3, %v10140_v27, %v1498_v18  ;;  %v16649_v53 = vxor.u32 2147483648, %v9991_v55  ;;  %v4521_v56 = vadd.s32 536870912, %v10157_v25  ;;  %7924 = vmatprep.subr.bf16.mxu0 %v8294_v42  ;;  %8002 = vmatprep.subr.bf16.mxu1 %v8294_v42 }
 0x19b   : > { %v1516_v34 = vsel %vm1506_vm0, %v1513_v23, %v1515_v48  ;;  %v1518_v31 = vsel %vm1508_vm4, %v1504_v49, 1326507024  ;;  %vm16072_vm12 = vcmp.lt.s32.totalorder %v16650_v46, 0  ;;  %v16651_v19 = vcvt.s32.f32 %v10069_v40  ;;  %7925 = vmatpush3.bf16.xpose.msra.mxu0 %v8294_v42  ;;  %8010 = vmatpush3.bf16.xpose.msra.mxu1 %v8294_v42 }
 0x19c   : > { %v4442_v11 = vsel %vm16043_vm15, %v16649_v53, %v9991_v55  ;;  %v1347_v54 = vand.u32 2147483647, %v1346_v2  ;;  %v1519_v55 = vsel %vm1507_vm2, %v1501_v37, %v1518_v31  ;;  %v10195_v4 = vshll.u32 %v1481_v39, 8 }
 0x19d   : > { %v4337_v58 = vmul.f32 %v16651_v19, %v4334_v7  ;;  %v1349_v23 = vcvt.s32.f32 %v1342_v29  ;;  %v7642_v48 = vadd.s32 4294967294, %v1232_v62  ;;  %v1520_v49 = vsel %vm1506_vm0, %v1517_v63, %v1519_v55  ;;  %v16658_v55 = vld [vmem:[#allocation47_spill] sm:$0xff] }
 0x19e   : > { %v7648_v53 = vadd.s32 4294967169, %v1374_v51  ;;  %v4629_v47 = vsub.s32 0, %v10169_v44  ;;  %v10201_v35 = vmul.u32.u64.low %v10195_v4, %v1516_v34  ;;  %v10202_v40 = vmul.u32.u64.high %v10195_v4, %v1516_v34, %v10201_v35 }
 0x19f   : > { %v455_v7 = vmul.f32 %v16538_v0, %v298_v10  ;;  %v10206_v37 = vshrl.u32 %v4521_v56, 30  ;;  %v10209_v29 = vmul.u32.u64.low %v10195_v4, %v1520_v49  ;;  %v10210_v2 = vmul.u32.u64.high %v10195_v4, %v1520_v49, %v10209_v29 }
 0x1a0   : > { %v1380_v39 = vadd.s32 1, %v7648_v53  ;;  %8322 = vsinq.f32 %v9941_v32  ;;  %v4445_v62 = vsel %vm10153_vm11, %v16644_v28, %v4442_v11  ;;  %v4338_v51 = vxor.u32 2147483648, %v4337_v58 }
 0x1a1   : > { %16652 = vst [vmem:[#allocation77_spill] sm:$0xff] %v10206_v37  ;;  %v1350_v63 = vmul.f32 %v1349_v23, %v1347_v54  ;;  %vm7643_vm15 = vcmp.lt.s32.totalorder %v7642_v48, 0  ;;  %v1510_v34 = vsel %vm1508_vm4, %v1498_v18, 2102212464  ;;  %v16046_v56 = vand.u32 2147483647, %v10123_v22 }
 0x1a2   : > { %vm1381_vm10 = vcmp.gt.s32.totalorder %v1380_v39, 0  ;;  %v7773_v31 = vmin.u32 %v4629_v47, %v10169_v44  ;;  %v1489_v10 = vshrl.u32 %v16574_v12, %v10114_v20  ;;  %v10223_v32 = vadd.f32 %v16537_v1, %v455_v7 }
 0x1a3   : > { %v1382_v42 = vsel %vm1381_vm10, %v1380_v39, 0  ;;  %8324 = vcosq.f32 %v4445_v62  ;;  %v16654_v11 = vand.u32 2147483647, %v16650_v46  ;;  %v16655_v19 = vmov 0 }
 0x1a4   : > { %16653 = vst [vmem:[#allocation78_spill] sm:$0xff] %v10223_v32  ;;  %v4523_v18 = vshll.u32 %v10206_v37, 30  ;;  %v1384_v54 = vand.u32 31, %v1382_v42  ;;  %8326 = vsinq.f32 %v4445_v62  ;;  %vm16058_vm4 = vcmp.lt.s32.totalorder %v16658_v55, 0 }
 0x1a5   : > { %vm10227_vm7 = vcmp.le.f32.partialorder %v16654_v11, 0.7853982  ;;  %v1509_v20 = vsel %vm1505_vm3, %v1489_v10, %v10138_v38  ;;  %v1511_v47 = vsel %vm1507_vm2, %v10140_v27, %v1510_v34  ;;  %v4339_v23 = vsel %vm16072_vm12, %v4338_v51, %v4337_v58 }
 0x1a6   : > { %v16656_v19 = vsel %vm10227_vm7, 4294967295, %v16655_v19  ;;  %v1351_v49 = vxor.u32 2147483648, %v1350_v63  ;;  %v10242_v53 = vsel %vm7643_vm15, 0, %v7642_v48  ;;  %v1385_v7 = vsub.s32 32, %v1384_v54 }
 0x1a7   : > { %16657 = vst [vmem:[#allocation79_spill] sm:$0xff] %v16656_v19  ;;  %v4631_v29 = vclz %v7773_v31  ;;  %v1531_v39 = vadd.s32 1, %v10202_v40  ;;  %v1377_v62 = vand.u32 8388607, %v16046_v56  ;;  %v4772_v38 = vand.u32 2139095040, %v10223_v32 }
 0x1a8   : > { %v10249_v10 = vsub.s32 %v10157_v25, %v4523_v18  ;;  %v1512_v27 = vsel %vm1506_vm0, %v1509_v20, %v1511_v47  ;;  %vm1530_vm10 = vc.u32 %v10210_v2, %v10201_v35  ;;  %v1387_v58 = vshll.u32 %v16574_v12, %v1384_v54 }
 0x1a9   : > { %v1388_v48 = vshrl.u32 %v16569_v13, %v1385_v7  ;;  %v1390_v51 = vshll.u32 %v16569_v13, %v1384_v54  ;;  %v1391_v34 = vshrl.u32 %v16570_v6, %v1385_v7  ;;  %v1394_v31 = vshrl.u32 %v16571_v15, %v1385_v7 }
 0x1aa   : > { %v10260_v11 = vshrl.u32 %v1382_v42, 5  ;;  %v1393_v25 = vshll.u32 %v16570_v6, %v1384_v54  ;;  %v1396_v24 = vshll.u32 %v16571_v15, %v1384_v54  ;;  %v1397_v18 = vshrl.u32 %v16572_v9, %v1385_v7  ;;  %v10265_v20 = vpop.eup %8322 }
 0x1ab   : > { %16659 = vst [vmem:[#allocation80_spill] sm:$0xff] %v10265_v20  ;;  %v1532_v47 = vsel %vm1530_vm10, %v1531_v39, %v10202_v40  ;;  %v1389_v56 = vor.u32 %v1388_v48, %v1387_v58  ;;  %v1392_v37 = vor.u32 %v1391_v34, %v1390_v51  ;;  %v4773_v41 = vshrl.u32 %v4772_v38, 23 }
 0x1ac   : > { %v1395_v28 = vor.u32 %v1394_v31, %v1393_v25  ;;  %v1398_v17 = vor.u32 %v1397_v18, %v1396_v24  ;;  %v1399_v5 = vshll.u32 %v16572_v9, %v1384_v54  ;;  %v1400_v42 = vshrl.u32 %v16573_v8, %v1385_v7 }
 0x1ad   : > { %v10273_v52 = vsel %vm10227_vm7, %v16650_v46, %v4339_v23  ;;  %v16660_v16 = vand.u32 2147483647, %v16658_v55  ;;  %v16661_v20 = vmov 0  ;;  %v1352_v40 = vsel %vm16058_vm4, %v1351_v49, %v1350_v63  ;;  %v10284_v54 = vpop.eup %8324 }
 0x1ae   : > { %v1528_v39 = vmul.u32 %v10195_v4, %v1512_v27  ;;  %v1378_v38 = vor.u32 8388608, %v1377_v62  ;;  %16664 = vst [vmem:[#allocation82_spill] sm:$0xff] %v10284_v54  ;;  %v1240_v58 = vsub.s32 4294967266, %v10242_v53  ;;  %v4526_v48 = vsub.s32 0, %v10249_v10  ;;  %v10289_v51 = vpop.eup %8326 }
 0x1af   : > { %vm10277_vm15 = vcmp.le.f32.partialorder %v16660_v16, 0.7853982  ;;  %v1401_v23 = vor.u32 %v1400_v42, %v1399_v5  ;;  %vm1402_vm3 = vcmp.lt.s32.totalorder %v10260_v11, 1  ;;  %16665 = vst [vmem:[#allocation83_spill] sm:$0xff] %v10289_v51  ;;  %v7774_v16 = vadd.s32 4294967294, %v4631_v29 }
 0x1b0   : > { %v16662_v20 = vsel %vm10277_vm15, 4294967295, %v16661_v20  ;;  %v10291_v34 = vadd.s32 %v1532_v47, %v1528_v39  ;;  %vm1405_vm2 = vcmp.lt.s32.totalorder %v10260_v11, 4  ;;  %v1410_v4 = vsel %vm1402_vm3, %v1389_v56, %v1392_v37  ;;  %v293_v47 = vpop.permute.xlu0 %292 }
 0x1b1   : > { %16663 = vst [vmem:[#allocation81_spill] sm:$0xff] %v16662_v20  ;;  %vm1404_vm0 = vcmp.lt.s32.totalorder %v10260_v11, 3  ;;  %v1411_v63 = vsel %vm1405_vm2, %v1398_v17, 920167782  ;;  %v1414_v5 = vsel %vm1402_vm3, %v1392_v37, %v1395_v28  ;;  %v7780_v49 = vadd.s32 4294967169, %v4773_v41 }
 0x1b2   : > { %vm1403_vm10 = vcmp.lt.s32.totalorder %v10260_v11, 2  ;;  %v1412_v29 = vsel %vm1404_vm0, %v1395_v28, %v1411_v63  ;;  %v1415_v62 = vsel %vm1405_vm2, %v1401_v23, 1326507024  ;;  %v1418_v27 = vshll.u32 %v1378_v38, 8 }
 0x1b3   : > { %v1241_v31 = vadd.s32 127, %v1240_v58  ;;  %v7769_v25 = vmin.u32 %v4526_v48, %v10249_v10  ;;  %v1413_v24 = vsel %vm1403_vm10, %v1410_v4, %v1412_v29  ;;  %v1416_v18 = vsel %vm1404_vm0, %v1398_v17, %v1415_v62 }
 0x1b4   : > { %v1534_v41 = vadd.s32 536870912, %v10291_v34  ;;  %v1417_v42 = vsel %vm1403_vm10, %v1414_v5, %v1416_v18  ;;  %v10314_v39 = vmul.u32.u64.low %v1418_v27, %v1413_v24  ;;  %v10315_v63 = vmul.u32.u64.high %v1418_v27, %v1413_v24, %v10314_v39 }
 0x1b5   : > { %v1407_v38 = vsel %vm1405_vm2, %v1395_v28, 2102212464  ;;  %v10320_v58 = vmul.u32.u64.low %v1418_v27, %v1417_v42  ;;  %v10321_v48 = vmul.u32.u64.high %v1418_v27, %v1417_v42, %v10320_v58  ;;  %v4779_v23 = vadd.s32 1, %v7780_v49 }
 0x1b6   : > { %8328 = vcosq.f32 %v10273_v52  ;;  %vm7775_vm4 = vcmp.lt.s32.totalorder %v7774_v16, 0  ;;  %v1386_v17 = vshrl.u32 %v16574_v12, %v1385_v7  ;;  %v454_v4 = vmul.f32 %v16538_v0, %v293_v47 }
 0x1b7   : > { %v10329_v5 = vsel %vm10277_vm15, %v16658_v55, %v1352_v40  ;;  %v1220_v29 = vadd.s32 %v9906_v36, %v9921_v60  ;;  %v1236_v28 = vsub.s32 32, %v10242_v53  ;;  %vm4780_vm2 = vcmp.gt.s32.totalorder %v4779_v23, 0 }
 0x1b8   : > { %v1242_v62 = vshll.u32 %v1241_v31, 23  ;;  %v1406_v49 = vsel %vm1402_vm3, %v1386_v17, %v1389_v56  ;;  %v1408_v7 = vsel %vm1404_vm0, %v1392_v37, %v1407_v38  ;;  %v4781_v24 = vsel %vm4780_vm2, %v4779_v23, 0 }
 0x1b9   : > { %v10338_v18 = vsel %vm7775_vm4, 0, %v7774_v16  ;;  %v4528_v47 = vclz %v7769_v25  ;;  %v10340_v42 = vshrl.u32 %v1534_v41, 30  ;;  %v16061_v40 = vand.u32 2147483647, %v10223_v32 }
 0x1ba   : > { %v4619_v60 = vadd.s32 %v9984_v50, %v10009_v3  ;;  %v1428_v31 = vadd.s32 1, %v10315_v63  ;;  %v10349_v56 = vadd.f32 %v16537_v1, %v454_v4  ;;  %v10351_v37 = vshrl.u32 %v1220_v29, %v1236_v28 }
 0x1bb   : > { %16666 = vst [vmem:[#allocation84_spill] sm:$0xff] %v10340_v42  ;;  %v1409_v16 = vsel %vm1403_vm10, %v1406_v49, %v1408_v7  ;;  %vm1427_vm4 = vc.u32 %v10321_v48, %v10314_v39  ;;  %v4783_v25 = vand.u32 31, %v4781_v24  ;;  %v10357_v41 = vor.u32 4788187, %v1242_v62 }
 0x1bc   : > { %16667 = vst [vmem:[#allocation85_spill] sm:$0xff] %v10349_v56  ;;  %v4635_v38 = vsub.s32 32, %v10338_v18  ;;  %v4639_v3 = vsub.s32 4294967266, %v10338_v18  ;;  %v7770_v58 = vadd.s32 4294967294, %v4528_v47  ;;  %v1536_v23 = vshll.u32 %v10340_v42, 30 }
 0x1bd   : > { %v4776_v11 = vand.u32 8388607, %v16061_v40  ;;  %v4784_v17 = vsub.s32 32, %v4783_v25  ;;  %v1425_v4 = vmul.u32 %v1418_v27, %v1409_v16  ;;  %v1429_v29 = vsel %vm1427_vm4, %v1428_v31, %v10315_v63 }
 0x1be   : > { %v4786_v28 = vshll.u32 %v16574_v12, %v4783_v25  ;;  %v4669_v62 = vand.u32 2139095040, %v10349_v56  ;;  %v4789_v7 = vshll.u32 %v16569_v13, %v4783_v25  ;;  %v4782_v42 = vshrl.u32 %v4781_v24, 5 }
 0x1bf   : > { %v4787_v49 = vshrl.u32 %v16569_v13, %v4784_v17  ;;  %v4790_v50 = vshrl.u32 %v16570_v6, %v4784_v17  ;;  %v4793_v47 = vshrl.u32 %v16571_v15, %v4784_v17  ;;  %v4792_v40 = vshll.u32 %v16570_v6, %v4783_v25 }
 0x1c0   : > { %v10373_v36 = vpop.eup %8328  ;;  %v4795_v27 = vshll.u32 %v16571_v15, %v4783_v25  ;;  %v4796_v63 = vshrl.u32 %v16572_v9, %v4784_v17  ;;  %v10378_v31 = vadd.s32 %v1429_v29, %v1425_v4  ;;  %v4777_v16 = vor.u32 8388608, %v4776_v11 }
 0x1c1   : > { %16668 = vst [vmem:[#allocation86_spill] sm:$0xff] %v10373_v36  ;;  %v4788_v20 = vor.u32 %v4787_v49, %v4786_v28  ;;  %v4791_v55 = vor.u32 %v4790_v50, %v4789_v7  ;;  %v4794_v54 = vor.u32 %v4793_v47, %v4792_v40  ;;  %v4798_v19 = vshll.u32 %v16572_v9, %v4783_v25 }
 0x1c2   : > { %v4797_v51 = vor.u32 %v4796_v63, %v4795_v27  ;;  %v4799_v46 = vshrl.u32 %v16573_v8, %v4784_v17  ;;  %v4637_v43 = vshrl.u32 %v4619_v60, %v4635_v38  ;;  %v4640_v36 = vadd.s32 127, %v4639_v3 }
 0x1c3   : > { %vm7771_vm3 = vcmp.lt.s32.totalorder %v7770_v58, 0  ;;  %v4670_v24 = vshrl.u32 %v4669_v62, 23  ;;  %v10383_v26 = vsub.s32 %v10291_v34, %v1536_v23  ;;  %vm4801_vm0 = vcmp.lt.s32.totalorder %v4782_v42, 1 }
 0x1c4   : > { %v4800_v59 = vor.u32 %v4799_v46, %v4798_v19  ;;  %vm4804_vm10 = vcmp.lt.s32.totalorder %v4782_v42, 4  ;;  %vm4803_vm2 = vcmp.lt.s32.totalorder %v4782_v42, 3  ;;  %v4809_v11 = vsel %vm4801_vm0, %v4788_v20, %v4791_v55 }
 0x1c5   : > { %v4810_v50 = vsel %vm4804_vm10, %v4797_v51, 920167782  ;;  %v4817_v40 = vshll.u32 %v4777_v16, 8  ;;  %v1431_v4 = vadd.s32 536870912, %v10378_v31  ;;  %vm4802_vm4 = vcmp.lt.s32.totalorder %v4782_v42, 2 }
 0x1c6   : > { %v4811_v25 = vsel %vm4803_vm2, %v4794_v54, %v4810_v50  ;;  %v4813_v60 = vsel %vm4801_vm0, %v4791_v55, %v4794_v54  ;;  %v4531_v38 = vsel %vm7771_vm3, 0, %v7770_v58  ;;  %v4814_v34 = vsel %vm4804_vm10, %v4800_v59, 1326507024 }
 0x1c7   : > { %v4812_v3 = vsel %vm4802_vm4, %v4809_v11, %v4811_v25  ;;  %v7776_v23 = vadd.s32 4294967169, %v4670_v24  ;;  %v4641_v46 = vshll.u32 %v4640_v36, 23  ;;  %v1539_v19 = vsub.s32 0, %v10383_v26 }
 0x1c8   : > { %v4806_v29 = vsel %vm4804_vm10, %v4794_v54, 2102212464  ;;  %v4815_v28 = vsel %vm4803_vm2, %v4797_v51, %v4814_v34  ;;  %v4785_v62 = vshrl.u32 %v16574_v12, %v4784_v17  ;;  %v4532_v27 = vsub.s32 32, %v4531_v38 }
 0x1c9   : > { %v4816_v49 = vsel %vm4802_vm4, %v4813_v60, %v4815_v28  ;;  %v10394_v7 = vmul.u32.u64.low %v4817_v40, %v4812_v3  ;;  %v10395_v47 = vmul.u32.u64.high %v4817_v40, %v4812_v3, %v10394_v7  ;;  %v10398_v58 = vshrl.u32 %v1431_v4, 30 }
 0x1ca   : > { %v10400_v63 = vmul.u32.u64.low %v4817_v40, %v4816_v49  ;;  %v10401_v59 = vmul.u32.u64.high %v4817_v40, %v4816_v49, %v10400_v63  ;;  %v4536_v36 = vsub.s32 4294967266, %v4531_v38  ;;  %v4805_v16 = vsel %vm4801_vm0, %v4785_v62, %v4788_v20 }
 0x1cb   : > { %16669 = vst [vmem:[#allocation87_spill] sm:$0xff] %v10398_v58  ;;  %v4807_v54 = vsel %vm4803_vm2, %v4791_v55, %v4806_v29  ;;  %v4676_v51 = vadd.s32 1, %v7776_v23  ;;  %v16670_v17 = vshll.u32 %v10086_v45, %v10242_v53  ;;  %v1244_v11 = vand.u32 2147483647, %v10357_v41  ;;  %v148_v29 = vpop.permute.xlu1 %147 }
 0x1cc   : > { %v16671_v50 = vshll.u32 %v10169_v44, %v10338_v18  ;;  %v7653_v25 = vmin.u32 %v1539_v19, %v10383_v26  ;;  %v4642_v60 = vor.u32 4788187, %v4641_v46  ;;  %v4516_v20 = vadd.s32 %v10094_v33, %v10092_v30 }
 0x1cd   : > { %v1239_v24 = vor.u32 %v10351_v37, %v16670_v17  ;;  %v4827_v55 = vadd.s32 1, %v10395_v47  ;;  %vm4677_vm3 = vcmp.gt.s32.totalorder %v4676_v51, 0  ;;  %v1433_v3 = vshll.u32 %v10398_v58, 30 }
 0x1ce   : > { %v4638_v4 = vor.u32 %v4637_v43, %v16671_v50  ;;  %v4808_v45 = vsel %vm4802_vm4, %v4805_v16, %v4807_v54  ;;  %vm4826_vm0 = vc.u32 %v10401_v59, %v10394_v7  ;;  %v4678_v53 = vsel %vm4677_vm3, %v4676_v51, 0 }
 0x1cf   : > { %8330 = vsinq.f32 %v10273_v52  ;;  %v4534_v43 = vshrl.u32 %v4516_v20, %v4532_v27  ;;  %v4537_v44 = vadd.s32 127, %v4536_v36  ;;  %v4680_v18 = vand.u32 31, %v4678_v53 }
 0x1d0   : > { %8332 = vcosq.f32 %v10329_v5  ;;  %v1246_v37 = vcvt.s32.f32 %v1239_v24  ;;  %v1541_v30 = vclz %v7653_v25  ;;  %v4828_v33 = vsel %vm4826_vm0, %v4827_v55, %v10395_v47 }
 0x1d1   : > { %8334 = vsinq.f32 %v10329_v5  ;;  %v4533_v42 = vshll.u32 %v10249_v10, %v4531_v38  ;;  %v4824_v41 = vmul.u32 %v4817_v40, %v4808_v45  ;;  %v10426_v34 = vsub.s32 32, %v4680_v18 }
 0x1d2   : > { %v1247_v23 = vmul.f32 %v1246_v37, %v1244_v11  ;;  %v4643_v46 = vand.u32 2147483647, %v4642_v60  ;;  %v4645_v19 = vcvt.s32.f32 %v4638_v4  ;;  %v10429_v52 = vsub.s32 %v10378_v31, %v1433_v3 }
 0x1d3   : > { %v10431_v28 = vor.u32 %v4534_v43, %v4533_v42  ;;  %v4538_v62 = vshll.u32 %v4537_v44, 23  ;;  %v10433_v49 = vadd.s32 %v4828_v33, %v4824_v41  ;;  %v16078_v47 = vand.u32 2147483647, %v10349_v56  ;;  %v143_v33 = vpop.permute.xlu0 %142 }
 0x1d4   : > { %v7654_v5 = vadd.s32 4294967294, %v1541_v30  ;;  %v4684_v10 = vshrl.u32 %v16569_v13, %v10426_v34  ;;  %v4692_v40 = vshll.u32 %v16571_v15, %v4680_v18  ;;  %v4693_v38 = vshrl.u32 %v16572_v9, %v10426_v34 }
 0x1d5   : > { %v10441_v27 = vshrl.u32 %v4678_v53, 5  ;;  %v4687_v31 = vshrl.u32 %v16570_v6, %v10426_v34  ;;  %v4690_v63 = vshrl.u32 %v16571_v15, %v10426_v34  ;;  %v425_v36 = vmul.f32 %v16538_v0, %v148_v29 }
 0x1d6   : > { %vm16075_vm10 = vcmp.lt.s32.totalorder %v9591_v21, 0  ;;  %v1436_v16 = vsub.s32 0, %v10429_v52  ;;  %v4683_v54 = vshll.u32 %v16574_v12, %v4680_v18  ;;  %v4686_v51 = vshll.u32 %v16569_v13, %v4680_v18 }
 0x1d7   : > { %v4694_v17 = vor.u32 %v4693_v38, %v4692_v40  ;;  %v4830_v24 = vadd.s32 536870912, %v10433_v49  ;;  %v4689_v11 = vshll.u32 %v16570_v6, %v4680_v18  ;;  %v4695_v50 = vshll.u32 %v16572_v9, %v4680_v18 }
 0x1d8   : > { %v4696_v4 = vshrl.u32 %v16573_v8, %v10426_v34  ;;  %v4539_v25 = vor.u32 4788187, %v4538_v62  ;;  %vm7655_vm2 = vcmp.lt.s32.totalorder %v7654_v5, 0  ;;  %v4673_v60 = vand.u32 8388607, %v16078_v47 }
 0x1d9   : > { %v10459_v20 = vor.u32 %v4684_v10, %v4683_v54  ;;  %v10461_v55 = vpop.eup %8330  ;;  %v10463_v3 = vor.u32 %v4687_v31, %v4686_v51  ;;  %v4691_v45 = vor.u32 %v4690_v63, %v4689_v11  ;;  %vm4701_vm4 = vcmp.lt.s32.totalorder %v10441_v27, 4 }
 0x1da   : > { %16672 = vst [vmem:[#allocation88_spill] sm:$0xff] %v10461_v55  ;;  %v4697_v53 = vor.u32 %v4696_v4, %v4695_v50  ;;  %v10466_v43 = vpop.eup %8332  ;;  %v1248_v44 = vxor.u32 2147483648, %v1247_v23  ;;  %v4646_v18 = vmul.f32 %v4645_v19, %v4643_v46  ;;  %v7649_v37 = vmin.u32 %v1436_v16, %v10429_v52 }
 0x1db   : > { %16673 = vst [vmem:[#allocation89_spill] sm:$0xff] %v10466_v43  ;;  %v4707_v30 = vsel %vm4701_vm4, %v4694_v17, 920167782  ;;  %v10471_v42 = vpop.eup %8334  ;;  %v10473_v41 = vsel %vm7655_vm2, 0, %v7654_v5  ;;  %v10475_v29 = vshrl.u32 %v4830_v24, 30  ;;  %v10480_v10 = vadd.f32 %v16537_v1, %v425_v36 }
 0x1dc   : > { %16674 = vst [vmem:[#allocation90_spill] sm:$0xff] %v10471_v42  ;;  %v4711_v62 = vsel %vm4701_vm4, %v4697_v53, 1326507024  ;;  %v16677_v46 = vand.u32 2147483647, %v9591_v21  ;;  %v16678_v19 = vmov 0  ;;  %v4542_v5 = vcvt.s32.f32 %v10431_v28 }
 0x1dd   : > { %16675 = vst [vmem:[#allocation91_spill] sm:$0xff] %v10475_v29  ;;  %16676 = vst [vmem:[#allocation92_spill] sm:$0xff] %v10480_v10  ;;  %v4540_v40 = vand.u32 2147483647, %v4539_v25  ;;  %vm16074_vm2 = vcmp.lt.s32.totalorder %v10441_v27, 1  ;;  %vm4700_vm12 = vcmp.lt.s32.totalorder %v10441_v27, 3  ;;  %v424_v36 = vmul.f32 %v16538_v0, %v143_v33 }
 0x1de   : > { %vm10484_vm3 = vcmp.le.f32.partialorder %v16677_v46, 0.7853982  ;;  %v4674_v38 = vor.u32 8388608, %v4673_v60  ;;  %v4706_v31 = vsel %vm16074_vm2, %v10459_v20, %v10463_v3  ;;  %v4708_v63 = vsel %vm4700_vm12, %v4691_v45, %v4707_v30 }
 0x1df   : > { %v16679_v19 = vsel %vm10484_vm3, 4294967295, %v16678_v19  ;;  %v1549_v16 = vsub.s32 4294967266, %v10473_v41  ;;  %v1438_v54 = vclz %v7649_v37  ;;  %v4710_v28 = vsel %vm16074_vm2, %v10463_v3, %v4691_v45 }
 0x1e0   : > { %16680 = vst [vmem:[#allocation93_spill] sm:$0xff] %v16679_v19  ;;  %v4712_v51 = vsel %vm4700_vm12, %v4694_v17, %v4711_v62  ;;  %v1249_v24 = vsel %vm16075_vm10, %v1248_v44, %v1247_v23  ;;  %v4832_v11 = vshll.u32 %v10475_v29, 30  ;;  %vm16076_vm14 = vcmp.lt.s32.totalorder %v10441_v27, 2 }
 0x1e1   : > { %v1682_v50 = vand.u32 2139095040, %v10480_v10  ;;  %v16681_v4 = vand.u32 2147483647, %v9732_v14  ;;  %v16682_v25 = vmov 0  ;;  %v4647_v60 = vxor.u32 2147483648, %v4646_v18 }
 0x1e2   : > { %v4543_v53 = vmul.f32 %v4542_v5, %v4540_v40  ;;  %v1529_v17 = vadd.s32 %v10201_v35, %v10210_v2  ;;  %v4709_v23 = vsel %vm16076_vm14, %v4706_v31, %v4708_v63  ;;  %v1545_v44 = vsub.s32 32, %v10473_v41 }
 0x1e3   : > { %vm10512_vm0 = vcmp.le.f32.partialorder %v16681_v4, 0.7853982  ;;  %v4713_v37 = vsel %vm16076_vm14, %v4710_v28, %v4712_v51  ;;  %v10524_v30 = vshll.u32 %v4674_v38, 8  ;;  %v1683_v33 = vshrl.u32 %v1682_v50, 23 }
 0x1e4   : > { %v16683_v25 = vsel %vm10512_vm0, 4294967295, %v16682_v25  ;;  %v1550_v62 = vadd.s32 127, %v1549_v16  ;;  %v7650_v46 = vadd.s32 4294967294, %v1438_v54  ;;  %v16077_v4 = vand.u32 2147483647, %v10480_v10 }
 0x1e5   : > { %16684 = vst [vmem:[#allocation94_spill] sm:$0xff] %v16683_v25  ;;  %v10528_v40 = vadd.f32 %v16537_v1, %v424_v36  ;;  %v10531_v35 = vsub.s32 %v10433_v49, %v4832_v11  ;;  %v10534_v2 = vmul.u32.u64.low %v10524_v30, %v4709_v23  ;;  %v10535_v5 = vmul.u32.u64.high %v10524_v30, %v4709_v23, %v10534_v2 }
 0x1e6   : > { %v7660_v31 = vadd.s32 4294967169, %v1683_v33  ;;  %v4682_v38 = vshrl.u32 %v16574_v12, %v10426_v34  ;;  %v4703_v63 = vsel %vm4701_vm4, %v4691_v45, 2102212464  ;;  %v1252_v49 = vsel %vm10484_vm3, %v9591_v21, %v1249_v24 }
 0x1e7   : > { %16685 = vst [vmem:[#allocation95_spill] sm:$0xff] %v10528_v40  ;;  %v10543_v16 = vmul.u32.u64.low %v10524_v30, %v4713_v37  ;;  %v10544_v54 = vmul.u32.u64.high %v10524_v30, %v4713_v37, %v10543_v16  ;;  %vm16686_vm10 = vcmp.lt.s32.totalorder %v9732_v14, 0  ;;  %v4544_v28 = vxor.u32 2147483648, %v4543_v53 }
 0x1e8   : > { %v4648_v36 = vsel %vm16686_vm10, %v4647_v60, %v4646_v18  ;;  %v1689_v51 = vadd.s32 1, %v7660_v31  ;;  %v1547_v11 = vshrl.u32 %v1529_v17, %v1545_v44  ;;  %v1551_v50 = vshll.u32 %v1550_v62, 23 }
 0x1e9   : > { %vm7651_vm14 = vcmp.lt.s32.totalorder %v7650_v46, 0  ;;  %vm16687_vm2 = vcmp.lt.s32.totalorder %v10441_v27, 1  ;;  %v4835_v45 = vsub.s32 0, %v10531_v35  ;;  %v4704_v23 = vsel %vm4700_vm12, %v10463_v3, %v4703_v63 }
 0x1ea   : > { %v4702_v34 = vsel %vm16687_vm2, %v4682_v38, %v10459_v20  ;;  %vm1690_vm4 = vcmp.gt.s32.totalorder %v1689_v51, 0  ;;  %v1579_v24 = vand.u32 2139095040, %v10528_v40  ;;  %8336 = vcosq.f32 %v1252_v49 }
 0x1eb   : > { %v1546_v18 = vshll.u32 %v10383_v26, %v10473_v41  ;;  %v1686_v60 = vand.u32 8388607, %v16077_v4  ;;  %v1691_v17 = vsel %vm1690_vm4, %v1689_v51, 0  ;;  %8338 = vsinq.f32 %v1252_v49  ;;  %v308_v51 = vpop.permute.xlu1 %307 }
 0x1ec   : > { %v10566_v20 = vsel %vm10512_vm0, %v9732_v14, %v4648_v36  ;;  %vm16688_vm10 = vcmp.lt.s32.totalorder %v9916_v61, 0  ;;  %v1693_v44 = vand.u32 31, %v1691_v17  ;;  %v10574_v33 = vor.u32 4788187, %v1551_v50 }
 0x1ed   : > { %v10570_v3 = vsel %vm16688_vm10, %v4544_v28, %v4543_v53  ;;  %v10572_v37 = vor.u32 %v1547_v11, %v1546_v18  ;;  %v10577_v26 = vsel %vm7651_vm14, 0, %v7650_v46  ;;  %vm16689_vm12 = vcmp.lt.s32.totalorder %v10441_v27, 2 }
 0x1ee   : > { %v4705_v41 = vsel %vm16689_vm12, %v4702_v34, %v4704_v23  ;;  %v7781_v62 = vmin.u32 %v4835_v45, %v10531_v35  ;;  %v4724_v31 = vadd.s32 1, %v10535_v5  ;;  %v1694_v38 = vsub.s32 32, %v1693_v44 }
 0x1ef   : > { %v1580_v63 = vshrl.u32 %v1579_v24, 23  ;;  %vm4723_vm2 = vc.u32 %v10544_v54, %v10534_v2  ;;  %v1687_v53 = vor.u32 8388608, %v1686_v60  ;;  %v10585_v16 = vshrl.u32 %v1691_v17, 5 }
 0x1f0   : > { %v1696_v49 = vshll.u32 %v16574_v12, %v1693_v44  ;;  %v1697_v46 = vshrl.u32 %v16569_v13, %v1694_v38  ;;  %v1699_v36 = vshll.u32 %v16569_v13, %v1693_v44  ;;  %v1700_v27 = vshrl.u32 %v16570_v6, %v1694_v38 }
 0x1f1   : > { %v1703_v28 = vshrl.u32 %v16571_v15, %v1694_v38  ;;  %v1702_v11 = vshll.u32 %v16570_v6, %v1693_v44  ;;  %v1705_v50 = vshll.u32 %v16571_v15, %v1693_v44  ;;  %v1706_v34 = vshrl.u32 %v16572_v9, %v1694_v38 }
 0x1f2   : > { %v1709_v45 = vshrl.u32 %v16573_v8, %v1694_v38  ;;  %v1698_v23 = vor.u32 %v1697_v46, %v1696_v49  ;;  %v1701_v24 = vor.u32 %v1700_v27, %v1699_v36  ;;  %v1708_v18 = vshll.u32 %v16572_v9, %v1693_v44 }
 0x1f3   : > { %v7656_v60 = vadd.s32 4294967169, %v1580_v63  ;;  %v4725_v17 = vsel %vm4723_vm2, %v4724_v31, %v10535_v5  ;;  %v1704_v4 = vor.u32 %v1703_v28, %v1702_v11  ;;  %v1707_v47 = vor.u32 %v1706_v34, %v1705_v50  ;;  %v8295_v31 = vld [vmem:[%s15928_s2 + $0x18] sm:$0xff]  }
 0x1f4   : > { %v457_v29 = vmul.f32 %v16538_v0, %v308_v51  ;;  %v1446_v58 = vsub.s32 4294967266, %v10577_v26  ;;  %v4721_v25 = vmul.u32 %v10524_v30, %v4705_v41  ;;  %v1710_v14 = vor.u32 %v1709_v45, %v1708_v18  ;;  %v10605_v49 = vpop.eup %8336  ;;  %7926 = vmatprep.subr.bf16.mxu0 %v8295_v31  ;;  %8003 = vmatprep.subr.bf16.mxu1 %v8295_v31 }
 0x1f5   : > { %vm1711_vm14 = vcmp.lt.s32.totalorder %v10585_v16, 1  ;;  %16690 = vst [vmem:[#allocation96_spill] sm:$0xff] %v10605_v49  ;;  %v4837_v44 = vclz %v7781_v62  ;;  %vm1714_vm4 = vcmp.lt.s32.totalorder %v10585_v16, 4  ;;  %v10610_v5 = vshll.u32 %v1687_v53, 8  ;;  %v10615_v46 = vpop.eup %8338  ;;  %7927 = vmatpush3.bf16.xpose.msra.mxu0 %v8295_v31  ;;  %8011 = vmatpush3.bf16.xpose.msra.mxu1 %v8295_v31 }
 0x1f6   : > { %v1719_v63 = vsel %vm1711_vm14, %v1698_v23, %v1701_v24  ;;  %16691 = vst [vmem:[#allocation97_spill] sm:$0xff] %v10615_v46  ;;  %v10617_v30 = vadd.s32 %v4725_v17, %v4721_v25  ;;  %vm1713_vm10 = vcmp.lt.s32.totalorder %v10585_v16, 3  ;;  %v1720_v41 = vsel %vm1714_vm4, %v1707_v47, 920167782 }
 0x1f7   : > { %v1586_v62 = vadd.s32 1, %v7656_v60  ;;  %vm1712_vm12 = vcmp.lt.s32.totalorder %v10585_v16, 2  ;;  %v1716_v53 = vsel %vm1714_vm4, %v1704_v4, 2102212464  ;;  %v1721_v36 = vsel %vm1713_vm10, %v1704_v4, %v1720_v41 }
 0x1f8   : > { %v1723_v27 = vsel %vm1711_vm14, %v1701_v24, %v1704_v4  ;;  %v1442_v25 = vsub.s32 32, %v10577_v26  ;;  %v1695_v28 = vshrl.u32 %v16574_v12, %v1694_v38  ;;  %v1722_v51 = vsel %vm1712_vm12, %v1719_v63, %v1721_v36 }
 0x1f9   : > { %v1724_v11 = vsel %vm1714_vm4, %v1710_v14, 1326507024  ;;  %v1447_v50 = vadd.s32 127, %v1446_v58  ;;  %v10638_v4 = vmul.u32.u64.low %v10610_v5, %v1722_v51  ;;  %v10639_v45 = vmul.u32.u64.high %v10610_v5, %v1722_v51, %v10638_v4 }
 0x1fa   : > { %v1725_v34 = vsel %vm1713_vm10, %v1707_v47, %v1724_v11  ;;  %v1715_v38 = vsel %vm1711_vm14, %v1695_v28, %v1698_v23  ;;  %v1717_v18 = vsel %vm1713_vm10, %v1701_v24, %v1716_v53  ;;  %vm1587_vm2 = vcmp.gt.s32.totalorder %v1586_v62, 0 }
 0x1fb   : > { %v1726_v14 = vsel %vm1712_vm12, %v1723_v27, %v1725_v34  ;;  %v7782_v60 = vadd.s32 4294967294, %v4837_v44  ;;  %v4727_v58 = vadd.s32 536870912, %v10617_v30  ;;  %v16086_v47 = vand.u32 2147483647, %v10528_v40 }
 0x1fc   : > { %v1588_v17 = vsel %vm1587_vm2, %v1586_v62, 0  ;;  %v1426_v63 = vadd.s32 %v10314_v39, %v10321_v48  ;;  %v10653_v31 = vmul.u32.u64.low %v10610_v5, %v1726_v14  ;;  %v10654_v41 = vmul.u32.u64.high %v10610_v5, %v1726_v14, %v10653_v31 }
 0x1fd   : > { %v1590_v23 = vand.u32 31, %v1588_v17  ;;  %v1553_v24 = vand.u32 2147483647, %v10574_v33  ;;  %v1555_v53 = vcvt.s32.f32 %v10572_v37  ;;  %v1443_v44 = vshll.u32 %v10429_v52, %v10577_v26 }
 0x1fe   : > { %v1718_v36 = vsel %vm1712_vm12, %v1715_v38, %v1717_v18  ;;  %v1444_v27 = vshrl.u32 %v1426_v63, %v1442_v25  ;;  %v1448_v62 = vshll.u32 %v1447_v50, 23  ;;  %v1737_v28 = vadd.s32 1, %v10639_v45 }
 0x1ff   : > { %v10663_v39 = vsub.s32 32, %v1590_v23  ;;  %vm7783_vm14 = vcmp.lt.s32.totalorder %v7782_v60, 0  ;;  %v10665_v48 = vshrl.u32 %v4727_v58, 30  ;;  %v1583_v33 = vand.u32 8388607, %v16086_v47 }
 0x200   : > { %v10670_v37 = vadd.f32 %v16537_v1, %v457_v29  ;;  %v1734_v52 = vmul.u32 %v10610_v5, %v1718_v36  ;;  %vm1736_vm4 = vc.u32 %v10654_v41, %v10638_v4  ;;  %v10675_v26 = vshrl.u32 %v1588_v17, 5 }
 0x201   : > { %16692 = vst [vmem:[#allocation98_spill] sm:$0xff] %v10665_v48  ;;  %v1594_v16 = vshrl.u32 %v16569_v13, %v10663_v39  ;;  %v1593_v25 = vshll.u32 %v16574_v12, %v1590_v23  ;;  %v1596_v51 = vshll.u32 %v16569_v13, %v1590_v23  ;;  %v1597_v11 = vshrl.u32 %v16570_v6, %v10663_v39 }
 0x202   : > { %16693 = vst [vmem:[#allocation99_spill] sm:$0xff] %v10670_v37  ;;  %v1599_v29 = vshll.u32 %v16570_v6, %v1590_v23  ;;  %v1738_v50 = vsel %vm1736_vm4, %v1737_v28, %v10639_v45  ;;  %v1600_v5 = vshrl.u32 %v16571_v15, %v10663_v39  ;;  %v1602_v34 = vshll.u32 %v16571_v15, %v1590_v23 }
 0x203   : > { %v1603_v38 = vshrl.u32 %v16572_v9, %v10663_v39  ;;  %v16694_v18 = vand.u32 2147483647, %v9916_v61  ;;  %v16695_v14 = vmov 0  ;;  %v10696_v58 = vor.u32 %v1594_v16, %v1593_v25 }
 0x204   : > { %v10698_v17 = vor.u32 %v1597_v11, %v1596_v51  ;;  %v1605_v45 = vshll.u32 %v16572_v9, %v1590_v23  ;;  %v1606_v63 = vshrl.u32 %v16573_v8, %v10663_v39  ;;  %v1556_v31 = vmul.f32 %v1555_v53, %v1553_v24 }
 0x205   : > { %vm10692_vm10 = vcmp.le.f32.partialorder %v16694_v18, 0.7853982  ;;  %v1449_v36 = vor.u32 4788187, %v1448_v62  ;;  %v1601_v28 = vor.u32 %v1600_v5, %v1599_v29  ;;  %v1604_v47 = vor.u32 %v1603_v38, %v1602_v34 }
 0x206   : > { %v16696_v14 = vsel %vm10692_vm10, 4294967295, %v16695_v14  ;;  %v1445_v43 = vor.u32 %v1444_v27, %v1443_v44  ;;  %v10704_v42 = vsel %vm7783_vm14, 0, %v7782_v60  ;;  %v10706_v18 = vadd.s32 %v1738_v50, %v1734_v52  ;;  %v303_v52 = vpop.permute.xlu0 %302 }
 0x207   : > { %16697 = vst [vmem:[#allocation100_spill] sm:$0xff] %v16696_v14  ;;  %v1607_v49 = vor.u32 %v1606_v63, %v1605_v45  ;;  %v4729_v16 = vshll.u32 %v10665_v48, 30  ;;  %vm16093_vm12 = vcmp.lt.s32.totalorder %v10675_v26, 1  ;;  %vm1611_vm2 = vcmp.lt.s32.totalorder %v10675_v26, 4 }
 0x208   : > { %v4978_v23 = vand.u32 2139095040, %v10670_v37  ;;  %vm16106_vm4 = vcmp.lt.s32.totalorder %v9989_v57, 0  ;;  %v1584_v24 = vor.u32 8388608, %v1583_v33  ;;  %vm16092_vm0 = vcmp.lt.s32.totalorder %v10675_v26, 3 }
 0x209   : > { %v1616_v60 = vsel %vm16093_vm12, %v10696_v58, %v10698_v17  ;;  %v1617_v53 = vsel %vm1611_vm2, %v1604_v47, 920167782  ;;  %v1450_v44 = vand.u32 2147483647, %v1449_v36  ;;  %v1620_v62 = vsel %vm16093_vm12, %v10698_v17, %v1601_v28 }
 0x20a   : > { %v1618_v27 = vsel %vm16092_vm0, %v1601_v28, %v1617_v53  ;;  %v1621_v33 = vsel %vm1611_vm2, %v1607_v49, 1326507024  ;;  %v1452_v25 = vcvt.s32.f32 %v1445_v43  ;;  %v1740_v51 = vadd.s32 536870912, %v10706_v18 }
 0x20b   : > { %vm16091_vm14 = vcmp.lt.s32.totalorder %v10675_v26, 2  ;;  %v1622_v11 = vsel %vm16092_vm0, %v1604_v47, %v1621_v33  ;;  %v4845_v29 = vsub.s32 4294967266, %v10704_v42  ;;  %v10733_v50 = vsub.s32 %v10617_v30, %v4729_v16 }
 0x20c   : > { %v1619_v5 = vsel %vm16091_vm14, %v1616_v60, %v1618_v27  ;;  %v4979_v34 = vshrl.u32 %v4978_v23, 23  ;;  %8340 = vcosq.f32 %v10566_v20  ;;  %v1623_v43 = vsel %vm16091_vm14, %v1620_v62, %v1622_v11 }
 0x20d   : > { %v10740_v49 = vshll.u32 %v1584_v24, 8  ;;  %v456_v38 = vmul.f32 %v16538_v0, %v303_v52  ;;  %8342 = vsinq.f32 %v10566_v20  ;;  %v4548_v30 = vsel %vm10692_vm10, %v9916_v61, %v10570_v3 }
 0x20e   : > { %v1557_v47 = vxor.u32 2147483648, %v1556_v31  ;;  %v1453_v45 = vmul.f32 %v1452_v25, %v1450_v44  ;;  %v10748_v63 = vshrl.u32 %v1740_v51, 30  ;;  %v7788_v23 = vadd.s32 4294967169, %v4979_v34 }
 0x20f   : > { %v10751_v36 = vmul.u32.u64.low %v10740_v49, %v1619_v5  ;;  %v10752_v16 = vmul.u32.u64.high %v10740_v49, %v1619_v5, %v10751_v36  ;;  %v4846_v24 = vadd.s32 127, %v4845_v29  ;;  %v4732_v60 = vsub.s32 0, %v10733_v50 }
 0x210   : > { %16698 = vst [vmem:[#allocation101_spill] sm:$0xff] %v10748_v63  ;;  %v10757_v20 = vmul.u32.u64.low %v10740_v49, %v1623_v43  ;;  %v10758_v53 = vmul.u32.u64.high %v10740_v49, %v1623_v43, %v10757_v20  ;;  %8344 = vcosq.f32 %v4548_v30  ;;  %v16699_v3 = vand.u32 2147483647, %v9989_v57 }
 0x211   : > { %v16700_v44 = vmov 0  ;;  %v4985_v27 = vadd.s32 1, %v7788_v23  ;;  %v10767_v62 = vadd.f32 %v16537_v1, %v456_v38  ;;  %8346 = vsinq.f32 %v4548_v30 }
 0x212   : > { %vm10762_vm14 = vcmp.le.f32.partialorder %v16699_v3, 0.7853982  ;;  %v1558_v33 = vsel %vm16106_vm4, %v1557_v47, %v1556_v31  ;;  %vm16107_vm0 = vcmp.lt.s32.totalorder %v10123_v22, 0  ;;  %v1454_v52 = vxor.u32 2147483648, %v1453_v45 }
 0x213   : > { %v16701_v44 = vsel %vm10762_vm14, 4294967295, %v16700_v44  ;;  %16703 = vst [vmem:[#allocation103_spill] sm:$0xff] %v10767_v62  ;;  %v4841_v25 = vsub.s32 32, %v10704_v42  ;;  %v1742_v51 = vshll.u32 %v10748_v63, 30  ;;  %v1613_v11 = vsel %vm1611_vm2, %v1601_v28, 2102212464 }
 0x214   : > { %16702 = vst [vmem:[#allocation102_spill] sm:$0xff] %v16701_v44  ;;  %vm4986_vm12 = vcmp.gt.s32.totalorder %v4985_v27, 0  ;;  %v4847_v29 = vshll.u32 %v4846_v24, 23  ;;  %v7777_v5 = vmin.u32 %v4732_v60, %v10733_v50  ;;  %v1592_v34 = vshrl.u32 %v16574_v12, %v10663_v39 }
 0x215   : > { %v4987_v43 = vsel %vm4986_vm12, %v4985_v27, 0  ;;  %v10782_v31 = vsel %vm10762_vm14, %v9989_v57, %v1558_v33  ;;  %v4825_v38 = vadd.s32 %v10394_v7, %v10401_v59  ;;  %v4875_v47 = vand.u32 2139095040, %v10767_v62 }
 0x216   : > { %v4989_v30 = vand.u32 31, %v4987_v43  ;;  %v10789_v28 = vsel %vm16107_vm0, %v1454_v52, %v1453_v45  ;;  %vm16704_vm2 = vcmp.lt.s32.totalorder %v10675_v26, 1  ;;  %vm16705_vm12 = vcmp.lt.s32.totalorder %v10675_v26, 3  ;;  %v10798_v60 = vpop.eup %8340 }
 0x217   : > { %v1612_v39 = vsel %vm16704_vm2, %v1592_v34, %v10696_v58  ;;  %v1614_v23 = vsel %vm16705_vm12, %v10698_v17, %v1613_v11  ;;  %v16094_v24 = vand.u32 2147483647, %v10670_v37  ;;  %16706 = vst [vmem:[#allocation104_spill] sm:$0xff] %v10798_v60  ;;  %v4842_v7 = vshll.u32 %v10531_v35, %v10704_v42  ;;  %v10806_v3 = vpop.eup %8342 }
 0x218   : > { %v10803_v59 = vsub.s32 %v10706_v18, %v1742_v51  ;;  %v1634_v45 = vadd.s32 1, %v10752_v16  ;;  %v4990_v20 = vsub.s32 32, %v4989_v30  ;;  %16707 = vst [vmem:[#allocation105_spill] sm:$0xff] %v10806_v3  ;;  %v4843_v58 = vshrl.u32 %v4825_v38, %v4841_v25 }
 0x219   : > { %v10808_v27 = vor.u32 4788187, %v4847_v29  ;;  %v4734_v33 = vclz %v7777_v5  ;;  %vm1633_vm2 = vc.u32 %v10758_v53, %v10751_v36  ;;  %vm16708_vm12 = vcmp.lt.s32.totalorder %v10675_v26, 2 }
 0x21a   : > { %v1615_v17 = vsel %vm16708_vm12, %v1612_v39, %v1614_v23  ;;  %v4993_v42 = vshrl.u32 %v16569_v13, %v4990_v20  ;;  %v4996_v35 = vshrl.u32 %v16570_v6, %v4990_v20  ;;  %v4876_v18 = vshrl.u32 %v4875_v47, 23  ;;  %v10821_v29 = vpop.eup %8344 }
 0x21b   : > { %v4982_v52 = vand.u32 8388607, %v16094_v24  ;;  %v4992_v51 = vshll.u32 %v16574_v12, %v4989_v30  ;;  %v4995_v25 = vshll.u32 %v16569_v13, %v4989_v30  ;;  %v4999_v11 = vshrl.u32 %v16571_v15, %v4990_v20  ;;  %16709 = vst [vmem:[#allocation106_spill] sm:$0xff] %v10821_v29  ;;  %v10826_v39 = vpop.eup %8346 }
 0x21c   : > { %v1745_v5 = vsub.s32 0, %v10803_v59  ;;  %v1635_v26 = vsel %vm1633_vm2, %v1634_v45, %v10752_v16  ;;  %v4988_v34 = vshrl.u32 %v4987_v43, 5  ;;  %v4998_v38 = vshll.u32 %v16570_v6, %v4989_v30  ;;  %16710 = vst [vmem:[#allocation107_spill] sm:$0xff] %v10826_v39 }
 0x21d   : > { %v4994_v47 = vor.u32 %v4993_v42, %v4992_v51  ;;  %v4997_v23 = vor.u32 %v4996_v35, %v4995_v25  ;;  %v5001_v24 = vshll.u32 %v16571_v15, %v4989_v30  ;;  %v5002_v63 = vshrl.u32 %v16572_v9, %v4990_v20 }
 0x21e   : > { %v5000_v48 = vor.u32 %v4999_v11, %v4998_v38  ;;  %v5004_v44 = vshll.u32 %v16572_v9, %v4989_v30  ;;  %v5005_v57 = vshrl.u32 %v16573_v8, %v4990_v20  ;;  %v7784_v60 = vadd.s32 4294967169, %v4876_v18 }
 0x21f   : > { %v4844_v3 = vor.u32 %v4843_v58, %v4842_v7  ;;  %v1631_v16 = vmul.u32 %v10740_v49, %v1615_v17  ;;  %v4983_v43 = vor.u32 8388608, %v4982_v52  ;;  %v5003_v45 = vor.u32 %v5002_v63, %v5001_v24 }
 0x220   : > { %v4849_v29 = vand.u32 2147483647, %v10808_v27  ;;  %v7778_v39 = vadd.s32 4294967294, %v4734_v33  ;;  %v5006_v42 = vor.u32 %v5005_v57, %v5004_v44  ;;  %vm16109_vm2 = vcmp.lt.s32.totalorder %v4988_v34, 1 }
 0x221   : > { %v7661_v35 = vmin.u32 %v1745_v5, %v10803_v59  ;;  %v10835_v51 = vadd.s32 %v1635_v26, %v1631_v16  ;;  %vm5010_vm12 = vcmp.lt.s32.totalorder %v4988_v34, 4  ;;  %v5015_v30 = vsel %vm16109_vm2, %v4994_v47, %v4997_v23  ;;  %v158_v26 = vpop.permute.xlu1 %157 }
 0x222   : > { %vm5009_vm4 = vcmp.lt.s32.totalorder %v4988_v34, 3  ;;  %v5016_v25 = vsel %vm5010_vm12, %v5003_v45, 920167782  ;;  %v5019_v7 = vsel %vm16109_vm2, %v4997_v23, %v5000_v48  ;;  %v4882_v58 = vadd.s32 1, %v7784_v60 }
 0x223   : > { %vm16110_vm0 = vcmp.lt.s32.totalorder %v4988_v34, 2  ;;  %v5017_v49 = vsel %vm5009_vm4, %v5000_v48, %v5016_v25  ;;  %v5020_v63 = vsel %vm5010_vm12, %v5006_v42, 1326507024  ;;  %v5023_v24 = vshll.u32 %v4983_v43, 8 }
 0x224   : > { %vm7779_vm14 = vcmp.lt.s32.totalorder %v7778_v39, 0  ;;  %v5012_v57 = vsel %vm5010_vm12, %v5000_v48, 2102212464  ;;  %v5018_v44 = vsel %vm16110_vm0, %v5015_v30, %v5017_v49  ;;  %v5021_v27 = vsel %vm5009_vm4, %v5003_v45, %v5020_v63 }
 0x225   : > { %v4991_v33 = vshrl.u32 %v16574_v12, %v4990_v20  ;;  %v5022_v17 = vsel %vm16110_vm0, %v5019_v7, %v5021_v27  ;;  %v10844_v18 = vmul.u32.u64.low %v5023_v24, %v5018_v44  ;;  %v10845_v52 = vmul.u32.u64.high %v5023_v24, %v5018_v44, %v10844_v18 }
 0x226   : > { %v1637_v60 = vadd.s32 536870912, %v10835_v51  ;;  %v10849_v11 = vmul.u32.u64.low %v5023_v24, %v5022_v17  ;;  %v10850_v5 = vmul.u32.u64.high %v5023_v24, %v5022_v17, %v10849_v11  ;;  %vm4883_vm2 = vcmp.gt.s32.totalorder %v4882_v58, 0 }
 0x227   : > { %v1747_v48 = vclz %v7661_v35  ;;  %vm16711_vm12 = vcmp.lt.s32.totalorder %v4988_v34, 1  ;;  %v5013_v16 = vsel %vm5009_vm4, %v4997_v23, %v5012_v57  ;;  %v4884_v43 = vsel %vm4883_vm2, %v4882_v58, 0 }
 0x228   : > { %v5011_v38 = vsel %vm16711_vm12, %v4991_v33, %v4994_v47  ;;  %8348 = vcosq.f32 %v10782_v31  ;;  %v16712_v20 = vand.u32 2147483647, %v10123_v22  ;;  %v16713_v45 = vmov 0 }
 0x229   : > { %v16111_v42 = vand.u32 2147483647, %v10767_v62  ;;  %v4886_v30 = vand.u32 31, %v4884_v43  ;;  %v4851_v25 = vcvt.s32.f32 %v4844_v3  ;;  %v10863_v7 = vsel %vm7779_vm14, 0, %v7778_v39 }
 0x22a   : > { %vm10857_vm0 = vcmp.le.f32.partialorder %v16712_v20, 0.7853982  ;;  %v5033_v47 = vadd.s32 1, %v10845_v52  ;;  %v427_v23 = vmul.f32 %v16538_v0, %v158_v26  ;;  %v10875_v58 = vadd.s32 %v10534_v2, %v10544_v54 }
 0x22b   : > { %v16714_v45 = vsel %vm10857_vm0, 4294967295, %v16713_v45  ;;  %v10871_v35 = vsel %vm10857_vm0, %v10123_v22, %v10789_v28  ;;  %v10877_v49 = vshrl.u32 %v1637_v60, 30  ;;  %vm16717_vm4 = vcmp.lt.s32.totalorder %v4988_v34, 2 }
 0x22c   : > { %16715 = vst [vmem:[#allocation108_spill] sm:$0xff] %v16714_v45  ;;  %v5014_v3 = vsel %vm16717_vm4, %v5011_v38, %v5013_v16  ;;  %v10880_v39 = vmul.f32 %v4851_v25, %v4849_v29  ;;  %v7662_v63 = vadd.s32 4294967294, %v1747_v48  ;;  %vm5032_vm14 = vc.u32 %v10850_v5, %v10844_v18 }
 0x22d   : > { %16716 = vst [vmem:[#allocation109_spill] sm:$0xff] %v10877_v49  ;;  %v4887_v57 = vsub.s32 32, %v4886_v30  ;;  %v4738_v44 = vsub.s32 32, %v10863_v7  ;;  %v4742_v28 = vsub.s32 4294967266, %v10863_v7  ;;  %v5034_v27 = vsel %vm5032_vm14, %v5033_v47, %v10845_v52 }
 0x22e   : > { %v4879_v2 = vand.u32 8388607, %v16111_v42  ;;  %v5030_v54 = vmul.u32 %v5023_v24, %v5014_v3  ;;  %v10892_v33 = vadd.f32 %v16537_v1, %v427_v23  ;;  %v1639_v17 = vshll.u32 %v10877_v49, 30 }
 0x22f   : > { %v4890_v34 = vshrl.u32 %v16569_v13, %v4887_v57  ;;  %v4893_v29 = vshrl.u32 %v16570_v6, %v4887_v57  ;;  %v4889_v60 = vshll.u32 %v16574_v12, %v4886_v30  ;;  %v4892_v11 = vshll.u32 %v16569_v13, %v4886_v30 }
 0x230   : > { %16718 = vst [vmem:[#allocation110_spill] sm:$0xff] %v10892_v33  ;;  %v4896_v26 = vshrl.u32 %v16571_v15, %v4887_v57  ;;  %vm7663_vm2 = vcmp.lt.s32.totalorder %v7662_v63, 0  ;;  %v10898_v52 = vadd.s32 %v5034_v27, %v5030_v54  ;;  %v10900_v48 = vshrl.u32 %v4884_v43, 5 }
 0x231   : > { %v4895_v24 = vshll.u32 %v16570_v6, %v4886_v30  ;;  %v4891_v38 = vor.u32 %v4890_v34, %v4889_v60  ;;  %v4894_v16 = vor.u32 %v4893_v29, %v4892_v11  ;;  %v4898_v20 = vshll.u32 %v16571_v15, %v4886_v30 }
 0x232   : > { %v4899_v25 = vshrl.u32 %v16572_v9, %v4887_v57  ;;  %v4880_v47 = vor.u32 8388608, %v4879_v2  ;;  %v4901_v3 = vshll.u32 %v16572_v9, %v4886_v30  ;;  %v4902_v42 = vshrl.u32 %v16573_v8, %v4887_v57  ;;  %v10907_v49 = vpop.eup %8348 }
 0x233   : > { %v4897_v23 = vor.u32 %v4896_v26, %v4895_v24  ;;  %16719 = vst [vmem:[#allocation111_spill] sm:$0xff] %v10907_v49  ;;  %v4743_v27 = vadd.s32 127, %v4742_v28  ;;  %v1750_v54 = vsel %vm7663_vm2, 0, %v7662_v63  ;;  %v10910_v43 = vsub.s32 %v10835_v51, %v1639_v17  ;;  %v153_v24 = vpop.permute.xlu0 %152 }
 0x234   : > { %v4900_v45 = vor.u32 %v4899_v25, %v4898_v20  ;;  %v4903_v34 = vor.u32 %v4902_v42, %v4901_v3  ;;  %vm4904_vm12 = vcmp.lt.s32.totalorder %v10900_v48, 1  ;;  %vm4907_vm4 = vcmp.lt.s32.totalorder %v10900_v48, 4 }
 0x235   : > { %v1888_v2 = vand.u32 2139095040, %v10892_v33  ;;  %v5036_v29 = vadd.s32 536870912, %v10898_v52  ;;  %vm4906_vm14 = vcmp.lt.s32.totalorder %v10900_v48, 3  ;;  %v4912_v30 = vsel %vm4904_vm12, %v4891_v38, %v4894_v16 }
 0x236   : > { %v4913_v63 = vsel %vm4907_vm4, %v4900_v45, 920167782  ;;  %vm4905_vm2 = vcmp.lt.s32.totalorder %v10900_v48, 2  ;;  %v4916_v42 = vsel %vm4904_vm12, %v4894_v16, %v4897_v23  ;;  %v4920_v28 = vshll.u32 %v4880_v47, 8 }
 0x237   : > { %v4914_v51 = vsel %vm4906_vm14, %v4897_v23, %v4913_v63  ;;  %v1751_v17 = vsub.s32 32, %v1750_v54  ;;  %v1755_v60 = vsub.s32 4294967266, %v1750_v54  ;;  %v4917_v26 = vsel %vm4907_vm4, %v4903_v34, 1326507024 }
 0x238   : > { %v4915_v11 = vsel %vm4905_vm2, %v4912_v30, %v4914_v51  ;;  %v1642_v20 = vsub.s32 0, %v10910_v43  ;;  %v4918_v25 = vsel %vm4906_vm14, %v4900_v45, %v4917_v26  ;;  %v10937_v49 = vshrl.u32 %v5036_v29, 30 }
 0x239   : > { %v10933_v3 = vmul.u32.u64.low %v4920_v28, %v4915_v11  ;;  %v10934_v63 = vmul.u32.u64.high %v4920_v28, %v4915_v11, %v10933_v3  ;;  %v4909_v47 = vsel %vm4907_vm4, %v4897_v23, 2102212464  ;;  %v4919_v30 = vsel %vm4905_vm2, %v4916_v42, %v4918_v25 }
 0x23a   : > { %16720 = vst [vmem:[#allocation112_spill] sm:$0xff] %v10937_v49  ;;  %v1889_v51 = vshrl.u32 %v1888_v2, 23  ;;  %v4888_v34 = vshrl.u32 %v16574_v12, %v4887_v57  ;;  %v10944_v22 = vmul.u32.u64.low %v4920_v28, %v4919_v30  ;;  %v10945_v14 = vmul.u32.u64.high %v4920_v28, %v4919_v30, %v10944_v22  ;;  %v16722_v30 = vld [vmem:[#allocation46_spill] sm:$0xff] }
 0x23b   : > { %v426_v45 = vmul.f32 %v16538_v0, %v153_v24  ;;  %v4740_v11 = vshrl.u32 %v10875_v58, %v4738_v44  ;;  %v1735_v29 = vadd.s32 %v10638_v4, %v10654_v41  ;;  %v1756_v26 = vadd.s32 127, %v1755_v60 }
 0x23c   : > { %v7668_v61 = vadd.s32 4294967169, %v1889_v51  ;;  %v4744_v46 = vshll.u32 %v4743_v27, 23  ;;  %v7657_v23 = vmin.u32 %v1642_v20, %v10910_v43  ;;  %v4908_v2 = vsel %vm4904_vm12, %v4888_v34, %v4891_v38 }
 0x23d   : > { %v4910_v57 = vsel %vm4906_vm14, %v4894_v16, %v4909_v47  ;;  %v1753_v42 = vshrl.u32 %v1735_v29, %v1751_v17  ;;  %v5038_v22 = vshll.u32 %v10937_v49, 30  ;;  %v4930_v24 = vadd.s32 1, %v10934_v63 }
 0x23e   : > { %v1895_v58 = vadd.s32 1, %v7668_v61  ;;  %v4853_v44 = vxor.u32 2147483648, %v10880_v39  ;;  %v4739_v4 = vshll.u32 %v10733_v50, %v10863_v7  ;;  %vm4929_vm4 = vc.u32 %v10945_v14, %v10933_v3 }
 0x23f   : > { %v10964_v41 = vadd.f32 %v16537_v1, %v426_v45  ;;  %v1752_v38 = vshll.u32 %v10803_v59, %v1750_v54  ;;  %v1757_v16 = vshll.u32 %v1756_v26, 23  ;;  %v4911_v27 = vsel %vm4905_vm2, %v4908_v2, %v4910_v57 }
 0x240   : > { %vm1896_vm12 = vcmp.gt.s32.totalorder %v1895_v58, 0  ;;  %v4741_v17 = vor.u32 %v4740_v11, %v4739_v4  ;;  %v4745_v61 = vor.u32 4788187, %v4744_v46  ;;  %v1644_v60 = vclz %v7657_v23 }
 0x241   : > { %16721 = vst [vmem:[#allocation113_spill] sm:$0xff] %v10964_v41  ;;  %v1897_v20 = vsel %vm1896_vm12, %v1895_v58, 0  ;;  %v1754_v25 = vor.u32 %v1753_v42, %v1752_v38  ;;  %v10970_v50 = vsub.s32 %v10898_v52, %v5038_v22  ;;  %v4931_v7 = vsel %vm4929_vm4, %v4930_v24, %v10934_v63 }
 0x242   : > { %v1899_v47 = vand.u32 31, %v1897_v20  ;;  %v10975_v51 = vshrl.u32 %v16572_v9, %v16722_v30  ;;  %8350 = vsinq.f32 %v10782_v31  ;;  %v4927_v59 = vmul.u32 %v4920_v28, %v4911_v27 }
 0x243   : > { %v1785_v48 = vand.u32 2139095040, %v10964_v41  ;;  %8352 = vcosq.f32 %v10871_v35  ;;  %vm16122_vm14 = vcmp.lt.s32.totalorder %v10223_v32, 0  ;;  %v1758_v46 = vor.u32 4788187, %v1757_v16 }
 0x244   : > { %v10981_v54 = vsub.s32 32, %v1899_v47  ;;  %v4854_v52 = vsel %vm16122_vm14, %v4853_v44, %v10880_v39  ;;  %v4748_v63 = vcvt.s32.f32 %v4741_v17  ;;  %v7658_v34 = vadd.s32 4294967294, %v1644_v60 }
 0x245   : > { %v10986_v45 = vadd.s32 %v4931_v7, %v4927_v59  ;;  %v4746_v11 = vand.u32 2147483647, %v4745_v61  ;;  %v1761_v31 = vcvt.s32.f32 %v1754_v25  ;;  %v5041_v28 = vsub.s32 0, %v10970_v50 }
 0x246   : > { %v16125_v29 = vand.u32 2147483647, %v10892_v33  ;;  %v1903_v26 = vshrl.u32 %v16569_v13, %v10981_v54  ;;  %v1911_v23 = vshll.u32 %v16571_v15, %v1899_v47  ;;  %v1912_v2 = vshrl.u32 %v16572_v9, %v10981_v54 }
 0x247   : > { %v1786_v57 = vshrl.u32 %v1785_v48, 23  ;;  %v1759_v39 = vand.u32 2147483647, %v1758_v46  ;;  %v10995_v42 = vshrl.u32 %v1897_v20, 5  ;;  %v1906_v22 = vshrl.u32 %v16570_v6, %v10981_v54 }
 0x248   : > { %v1909_v24 = vshrl.u32 %v16571_v15, %v10981_v54  ;;  %vm7659_vm2 = vcmp.lt.s32.totalorder %v7658_v34, 0  ;;  %v4933_v58 = vadd.s32 536870912, %v10986_v45  ;;  %v1902_v44 = vshll.u32 %v16574_v12, %v1899_v47 }
 0x249   : > { %v1913_v4 = vor.u32 %v1912_v2, %v1911_v23  ;;  %v1905_v38 = vshll.u32 %v16569_v13, %v1899_v47  ;;  %v1908_v16 = vshll.u32 %v16570_v6, %v1899_v47  ;;  %v1914_v27 = vshll.u32 %v16572_v9, %v1899_v47 }
 0x24a   : > { %v1915_v17 = vshrl.u32 %v16573_v8, %v10981_v54  ;;  %v7789_v61 = vmin.u32 %v5041_v28, %v10970_v50  ;;  %v1892_v60 = vand.u32 8388607, %v16125_v29  ;;  %v1904_v20 = vor.u32 %v1903_v26, %v1902_v44 }
 0x24b   : > { %v7664_v25 = vadd.s32 4294967169, %v1786_v57  ;;  %v1907_v7 = vor.u32 %v1906_v22, %v1905_v38  ;;  %v1910_v59 = vor.u32 %v1909_v24, %v1908_v16  ;;  %vm16124_vm4 = vcmp.lt.s32.totalorder %v10995_v42, 4 }
 0x24c   : > { %v1916_v48 = vor.u32 %v1915_v17, %v1914_v27  ;;  %v11012_v46 = vpop.eup %8350  ;;  %8354 = vsinq.f32 %v10871_v35  ;;  %v16724_v47 = vand.u32 2147483647, %v10223_v32  ;;  %v16725_v23 = vmov 0 }
 0x24d   : > { %16723 = vst [vmem:[#allocation114_spill] sm:$0xff] %v11012_v46  ;;  %v11021_v28 = vshrl.u32 %v4933_v58, 30  ;;  %v1926_v26 = vsel %vm16124_vm4, %v1913_v4, 920167782  ;;  %v11025_v2 = vpop.eup %8352  ;;  %v11032_v22 = vmul.f32 %v4748_v63, %v4746_v11  ;;  %v11034_v35 = vmul.f32 %v1761_v31, %v1759_v39  ;;  %v8296_v31 = vld [vmem:[%s15928_s2 + $0x20] sm:$0xff]  }
 0x24e   : > { %vm11017_vm12 = vcmp.le.f32.partialorder %v16724_v47, 0.7853982  ;;  %16729 = vst [vmem:[#allocation117_spill] sm:$0xff] %v11025_v2  ;;  %v1930_v24 = vsel %vm16124_vm4, %v1916_v48, 1326507024  ;;  %v11039_v58 = vsel %vm7659_vm2, 0, %v7658_v34  ;;  %v5043_v44 = vclz %v7789_v61  ;;  %7928 = vmatprep.subr.bf16.mxu0 %v8296_v31  ;;  %8004 = vmatprep.subr.bf16.mxu1 %v8296_v31 }
 0x24f   : > { %v16726_v23 = vsel %vm11017_vm12, 4294967295, %v16725_v23  ;;  %16728 = vst [vmem:[#allocation116_spill] sm:$0xff] %v11021_v28  ;;  %v11030_v57 = vsel %vm11017_vm12, %v10223_v32, %v4854_v52  ;;  %vm1917_vm14 = vcmp.lt.s32.totalorder %v10995_v42, 1  ;;  %vm1919_vm0 = vcmp.lt.s32.totalorder %v10995_v42, 3  ;;  %7929 = vmatpush3.bf16.xpose.msra.mxu0 %v8296_v31  ;;  %8012 = vmatpush3.bf16.xpose.msra.mxu1 %v8296_v31 }
 0x250   : > { %16727 = vst [vmem:[#allocation115_spill] sm:$0xff] %v16726_v23  ;;  %v1893_v38 = vor.u32 8388608, %v1892_v60  ;;  %v1925_v52 = vsel %vm1917_vm14, %v1904_v20, %v1907_v7  ;;  %v1927_v63 = vsel %vm1919_vm0, %v1910_v59, %v1926_v26  ;;  %v1792_v11 = vadd.s32 1, %v7664_v25 }
 0x251   : > { %v4935_v34 = vshll.u32 %v11021_v28, 30  ;;  %v1929_v39 = vsel %vm1917_vm14, %v1907_v7, %v1910_v59  ;;  %v1931_v16 = vsel %vm1919_vm0, %v1913_v4, %v1930_v24  ;;  %v16126_v27 = vand.u32 2147483647, %v10964_v41 }
 0x252   : > { %8356 = vcosq.f32 %v11030_v57  ;;  %vm16127_vm2 = vcmp.lt.s32.totalorder %v10995_v42, 2  ;;  %vm1793_vm4 = vcmp.gt.s32.totalorder %v1792_v11, 0  ;;  %v1632_v61 = vadd.s32 %v10751_v36, %v10758_v53 }
 0x253   : > { %v1648_v60 = vsub.s32 32, %v11039_v58  ;;  %v1928_v25 = vsel %vm16127_vm2, %v1925_v52, %v1927_v63  ;;  %v1794_v4 = vsel %vm1793_vm4, %v1792_v11, 0  ;;  %v1652_v48 = vsub.s32 4294967266, %v11039_v58 }
 0x254   : > { %v7790_v47 = vadd.s32 4294967294, %v5043_v44  ;;  %v1932_v26 = vsel %vm16127_vm2, %v1929_v39, %v1931_v16  ;;  %v11067_v24 = vshll.u32 %v1893_v38, 8  ;;  %v11073_v53 = vsub.s32 %v10986_v45, %v4935_v34 }
 0x255   : > { %v1789_v52 = vand.u32 8388607, %v16126_v27  ;;  %vm16730_vm4 = vcmp.lt.s32.totalorder %v10995_v42, 4  ;;  %v1796_v38 = vand.u32 31, %v1794_v4  ;;  %v1650_v39 = vshrl.u32 %v1632_v61, %v1648_v60 }
 0x256   : > { %v1922_v63 = vsel %vm16730_vm4, %v1910_v59, 2102212464  ;;  %v11080_v44 = vmul.u32.u64.low %v11067_v24, %v1928_v25  ;;  %v11081_v11 = vmul.u32.u64.high %v11067_v24, %v1928_v25, %v11080_v44  ;;  %v11084_v31 = vpop.eup %8354  ;;  %v1901_v16 = vshrl.u32 %v16574_v12, %v10981_v54 }
 0x257   : > { %16731 = vst [vmem:[#allocation118_spill] sm:$0xff] %v11084_v31  ;;  %v11089_v45 = vmul.u32.u64.low %v11067_v24, %v1932_v26  ;;  %v11090_v34 = vmul.u32.u64.high %v11067_v24, %v1932_v26, %v11089_v45  ;;  %v1653_v27 = vadd.s32 127, %v1652_v48  ;;  %v11092_v29 = vshrl.u32 %v1794_v4, 5 }
 0x258   : > { %v11094_v59 = vsub.s32 32, %v1796_v38  ;;  %v4938_v25 = vsub.s32 0, %v11073_v53  ;;  %v1921_v36 = vsel %vm1917_vm14, %v1901_v16, %v1904_v20  ;;  %v1923_v61 = vsel %vm1919_vm0, %v1907_v7, %v1922_v63  ;;  %v318_v63 = vpop.permute.xlu1 %317 }
 0x259   : > { %v1790_v60 = vor.u32 8388608, %v1789_v52  ;;  %v1799_v54 = vshll.u32 %v16574_v12, %v1796_v38  ;;  %v1802_v48 = vshll.u32 %v16569_v13, %v1796_v38  ;;  %v1805_v45 = vshll.u32 %v16570_v6, %v1796_v38 }
 0x25a   : > { %v1800_v26 = vshrl.u32 %v16569_v13, %v11094_v59  ;;  %v1803_v4 = vshrl.u32 %v16570_v6, %v11094_v59  ;;  %v1806_v20 = vshrl.u32 %v16571_v15, %v11094_v59  ;;  %v1808_v7 = vshll.u32 %v16571_v15, %v1796_v38 }
 0x25b   : > { %v1809_v52 = vshrl.u32 %v16572_v9, %v11094_v59  ;;  %vm16733_vm0 = vcmp.lt.s32.totalorder %v10995_v42, 2  ;;  %vm1814_vm14 = vcmp.lt.s32.totalorder %v11092_v29, 1  ;;  %v1811_v46 = vshll.u32 %v16572_v9, %v1796_v38 }
 0x25c   : > { %v11114_v16 = vpop.eup %8356  ;;  %v1924_v17 = vsel %vm16733_vm0, %v1921_v36, %v1923_v61  ;;  %v1801_v49 = vor.u32 %v1800_v26, %v1799_v54  ;;  %v1804_v28 = vor.u32 %v1803_v4, %v1802_v48  ;;  %v1807_v23 = vor.u32 %v1806_v20, %v1805_v45 }
 0x25d   : > { %16732 = vst [vmem:[#allocation119_spill] sm:$0xff] %v11114_v16  ;;  %v1810_v32 = vor.u32 %v1809_v52, %v1808_v7  ;;  %v1812_v2 = vshrl.u32 %v16573_v8, %v11094_v59  ;;  %v16734_v31 = vand.u32 2147483647, %v10349_v56  ;;  %v16735_v19 = vmov 0 }
 0x25e   : > { %v1943_v42 = vadd.s32 1, %v11081_v11  ;;  %vm1817_vm0 = vcmp.lt.s32.totalorder %v11092_v29, 4  ;;  %v1822_v36 = vsel %vm1814_vm14, %v1801_v49, %v1804_v28  ;;  %v459_v38 = vmul.f32 %v16538_v0, %v318_v63 }
 0x25f   : > { %vm11124_vm4 = vcmp.le.f32.partialorder %v16734_v31, 0.7853982  ;;  %vm1942_vm12 = vc.u32 %v11090_v34, %v11080_v44  ;;  %v1813_v61 = vor.u32 %v1812_v2, %v1811_v46  ;;  %vm1816_vm10 = vcmp.lt.s32.totalorder %v11092_v29, 3 }
 0x260   : > { %v16736_v19 = vsel %vm11124_vm4, 4294967295, %v16735_v19  ;;  %v1823_v31 = vsel %vm1817_vm0, %v1810_v32, 920167782  ;;  %v1654_v54 = vshll.u32 %v1653_v27, 23  ;;  %vm1815_vm2 = vcmp.lt.s32.totalorder %v11092_v29, 2 }
 0x261   : > { %16737 = vst [vmem:[#allocation120_spill] sm:$0xff] %v16736_v19  ;;  %v1824_v26 = vsel %vm1816_vm10, %v1807_v23, %v1823_v31  ;;  %v1826_v48 = vsel %vm1814_vm14, %v1804_v28, %v1807_v23  ;;  %vm16738_vm15 = vcmp.lt.s32.totalorder %v7790_v47, 0  ;;  %v1827_v2 = vsel %vm1817_vm0, %v1813_v61, 1326507024  ;;  %v313_v61 = vpop.permute.xlu0 %312 }
 0x262   : > { %v11145_v4 = vsel %vm16738_vm15, 0, %v7790_v47  ;;  %v1825_v46 = vsel %vm1815_vm2, %v1822_v36, %v1824_v26  ;;  %v11151_v45 = vshll.u32 %v1790_v60, 8  ;;  %v7785_v27 = vmin.u32 %v4938_v25, %v11073_v53 }
 0x263   : > { %v1940_v20 = vmul.u32 %v11067_v24, %v1924_v17  ;;  %v1944_v7 = vsel %vm1942_vm12, %v1943_v42, %v11081_v11  ;;  %v1828_v52 = vsel %vm1816_vm10, %v1810_v32, %v1827_v2  ;;  %v11166_v60 = vadd.f32 %v16537_v1, %v459_v38 }
 0x264   : > { %v1829_v47 = vsel %vm1815_vm2, %v1826_v48, %v1828_v52  ;;  %v11161_v63 = vmul.u32.u64.low %v11151_v45, %v1825_v46  ;;  %v11162_v36 = vmul.u32.u64.high %v11151_v45, %v1825_v46, %v11161_v63  ;;  %v16740_v17 = vxor.u32 2147483648, %v11032_v22 }
 0x265   : > { %16739 = vst [vmem:[#allocation121_spill] sm:$0xff] %v11166_v60  ;;  %vm16741_vm15 = vcmp.lt.s32.totalorder %v10349_v56, 0  ;;  %v1655_v11 = vor.u32 4788187, %v1654_v54  ;;  %v11174_v32 = vmul.u32.u64.low %v11151_v45, %v1829_v47  ;;  %v11175_v25 = vmul.u32.u64.high %v11151_v45, %v1829_v47, %v11174_v32 }
 0x266   : > { %v4751_v24 = vsel %vm16741_vm15, %v16740_v17, %v11032_v22  ;;  %v16742_v42 = vshll.u32 %v10910_v43, %v11039_v58  ;;  %v5051_v26 = vsub.s32 4294967266, %v11145_v4  ;;  %v11181_v38 = vadd.s32 %v1944_v7, %v1940_v20 }
 0x267   : > { %v5184_v48 = vand.u32 2139095040, %v11166_v60  ;;  %8358 = vsinq.f32 %v11030_v57  ;;  %v16743_v46 = vand.u32 2147483647, %v10480_v10  ;;  %v16744_v22 = vmov 0 }
 0x268   : > { %v1651_v31 = vor.u32 %v1650_v39, %v16742_v42  ;;  %v4940_v54 = vclz %v7785_v27  ;;  %v458_v2 = vmul.f32 %v16538_v0, %v313_v61  ;;  %v4754_v43 = vsel %vm11124_vm4, %v10349_v56, %v4751_v24 }
 0x269   : > { %vm11187_vm12 = vcmp.le.f32.partialorder %v16743_v46, 0.7853982  ;;  %v16747_v58 = vxor.u32 2147483648, %v11034_v35  ;;  %vm16748_vm15 = vcmp.lt.s32.totalorder %v10480_v10, 0  ;;  %v1819_v57 = vsel %vm1817_vm0, %v1807_v23, 2102212464 }
 0x26a   : > { %v16745_v22 = vsel %vm11187_vm12, 4294967295, %v16744_v22  ;;  %v5185_v20 = vshrl.u32 %v5184_v48, 23  ;;  %v1656_v7 = vand.u32 2147483647, %v1655_v11  ;;  %v5031_v27 = vadd.s32 %v10844_v18, %v10850_v5 }
 0x26b   : > { %16746 = vst [vmem:[#allocation122_spill] sm:$0xff] %v16745_v22  ;;  %v1764_v39 = vsel %vm16748_vm15, %v16747_v58, %v11034_v35  ;;  %v5047_v52 = vsub.s32 32, %v11145_v4  ;;  %v1798_v47 = vshrl.u32 %v16574_v12, %v11094_v59  ;;  %v1658_v61 = vcvt.s32.f32 %v1651_v31 }
 0x26c   : > { %v5052_v17 = vadd.s32 127, %v5051_v26  ;;  %v1946_v24 = vadd.s32 536870912, %v11181_v38  ;;  %v7796_v32 = vadd.s32 4294967169, %v5185_v20  ;;  %v7786_v42 = vadd.s32 4294967294, %v4940_v54 }
 0x26d   : > { %v1818_v35 = vsel %vm1814_vm14, %v1798_v47, %v1801_v49  ;;  %v1820_v23 = vsel %vm1816_vm10, %v1804_v28, %v1819_v57  ;;  %v11213_v11 = vadd.f32 %v16537_v1, %v458_v2  ;;  %8360 = vcosq.f32 %v4754_v43 }
 0x26e   : > { %v11218_v18 = vsel %vm11187_vm12, %v10480_v10, %v1764_v39  ;;  %v1840_v5 = vadd.s32 1, %v11162_v36  ;;  %v5191_v59 = vadd.s32 1, %v7796_v32  ;;  %v1659_v31 = vmul.f32 %v1658_v61, %v1656_v7 }
 0x26f   : > { %16749 = vst [vmem:[#allocation123_spill] sm:$0xff] %v11213_v11  ;;  %v5048_v26 = vshll.u32 %v10970_v50, %v11145_v4  ;;  %v5049_v49 = vshrl.u32 %v5031_v27, %v5047_v52  ;;  %vm1839_vm10 = vc.u32 %v11175_v25, %v11161_v63  ;;  %v5053_v28 = vshll.u32 %v5052_v17, 23 }
 0x270   : > { %v11225_v48 = vshrl.u32 %v1946_v24, 30  ;;  %v1821_v46 = vsel %vm1815_vm2, %v1818_v35, %v1820_v23  ;;  %vm5192_vm14 = vcmp.gt.s32.totalorder %v5191_v59, 0  ;;  %vm7787_vm0 = vcmp.lt.s32.totalorder %v7786_v42, 0 }
 0x271   : > { %v16142_v54 = vand.u32 2147483647, %v11166_v60  ;;  %v5193_v2 = vsel %vm5192_vm14, %v5191_v59, 0  ;;  %v5081_v58 = vand.u32 2139095040, %v11213_v11  ;;  %8362 = vsinq.f32 %v4754_v43  ;;  %v11233_v39 = vpop.eup %8358 }
 0x272   : > { %16750 = vst [vmem:[#allocation124_spill] sm:$0xff] %v11225_v48  ;;  %vm16149_vm15 = vcmp.lt.s32.totalorder %v10528_v40, 0  ;;  %v1841_v50 = vsel %vm1839_vm10, %v1840_v5, %v11162_v36  ;;  %v5195_v4 = vand.u32 31, %v5193_v2  ;;  %16751 = vst [vmem:[#allocation125_spill] sm:$0xff] %v11233_v39  ;;  %8364 = vcosq.f32 %v11218_v18 }
 0x273   : > { %v1660_v57 = vxor.u32 2147483648, %v1659_v31  ;;  %v5050_v29 = vor.u32 %v5049_v49, %v5048_v26  ;;  %v1837_v20 = vmul.u32 %v11151_v45, %v1821_v46  ;;  %v5054_v7 = vor.u32 4788187, %v5053_v28 }
 0x274   : > { %v11237_v27 = vsel %vm7787_vm0, 0, %v7786_v42  ;;  %v1948_v52 = vshll.u32 %v11225_v48, 30  ;;  %v5196_v47 = vsub.s32 32, %v5195_v4  ;;  %v5188_v36 = vand.u32 8388607, %v16142_v54 }
 0x275   : > { %v11240_v43 = vadd.s32 %v1841_v50, %v1837_v20  ;;  %v5198_v61 = vshll.u32 %v16574_v12, %v5195_v4  ;;  %v5082_v17 = vshrl.u32 %v5081_v58, 23  ;;  %v5201_v32 = vshll.u32 %v16569_v13, %v5195_v4 }
 0x276   : > { %v5199_v24 = vshrl.u32 %v16569_v13, %v5196_v47  ;;  %v5202_v45 = vshrl.u32 %v16570_v6, %v5196_v47  ;;  %v5205_v42 = vshrl.u32 %v16571_v15, %v5196_v47  ;;  %v5194_v35 = vshrl.u32 %v5193_v2, 5 }
 0x277   : > { %v5204_v23 = vshll.u32 %v16570_v6, %v5195_v4  ;;  %v5207_v5 = vshll.u32 %v16571_v15, %v5195_v4  ;;  %v5208_v59 = vshrl.u32 %v16572_v9, %v5196_v47  ;;  %v11252_v26 = vpop.eup %8360  ;;  %v5210_v46 = vshll.u32 %v16572_v9, %v5195_v4 }
 0x278   : > { %16752 = vst [vmem:[#allocation126_spill] sm:$0xff] %v11252_v26  ;;  %v5200_v49 = vor.u32 %v5199_v24, %v5198_v61  ;;  %v5203_v28 = vor.u32 %v5202_v45, %v5201_v32  ;;  %v5211_v58 = vshrl.u32 %v16573_v8, %v5196_v47  ;;  %v5055_v50 = vand.u32 2147483647, %v5054_v7 }
 0x279   : > { %v11257_v20 = vsub.s32 %v11181_v38, %v1948_v52  ;;  %v5206_v54 = vor.u32 %v5205_v42, %v5204_v23  ;;  %v5209_v2 = vor.u32 %v5208_v59, %v5207_v5  ;;  %v1661_v48 = vsel %vm16149_vm15, %v1660_v57, %v1659_v31 }
 0x27a   : > { %v5057_v22 = vcvt.s32.f32 %v5050_v29  ;;  %v1843_v10 = vadd.s32 536870912, %v11240_v43  ;;  %v5212_v16 = vor.u32 %v5211_v58, %v5210_v46  ;;  %v16753_v61 = vand.u32 2147483647, %v10528_v40 }
 0x27b   : > { %v16754_v24 = vmov 0  ;;  %v4948_v4 = vsub.s32 4294967266, %v11237_v27  ;;  %vm5213_vm10 = vcmp.lt.s32.totalorder %v5194_v35, 1  ;;  %vm5216_vm14 = vcmp.lt.s32.totalorder %v5194_v35, 4  ;;  %v11269_v7 = vpop.eup %8362 }
 0x27c   : > { %vm11264_vm2 = vcmp.le.f32.partialorder %v16753_v61, 0.7853982  ;;  %v7792_v38 = vadd.s32 4294967169, %v5082_v17  ;;  %16757 = vst [vmem:[#allocation128_spill] sm:$0xff] %v11269_v7  ;;  %v5189_v52 = vor.u32 8388608, %v5188_v36  ;;  %vm5215_vm0 = vcmp.lt.s32.totalorder %v5194_v35, 3  ;;  %v11272_v29 = vpop.eup %8364 }
 0x27d   : > { %v16755_v24 = vsel %vm11264_vm2, 4294967295, %v16754_v24  ;;  %v5221_v31 = vsel %vm5213_vm10, %v5200_v49, %v5203_v28  ;;  %v5222_v57 = vsel %vm5216_vm14, %v5209_v2, 920167782  ;;  %16758 = vst [vmem:[#allocation129_spill] sm:$0xff] %v11272_v29  ;;  %v11274_v32 = vmul.f32 %v5057_v22, %v5055_v50 }
 0x27e   : > { %16756 = vst [vmem:[#allocation127_spill] sm:$0xff] %v16755_v24  ;;  %v1951_v45 = vsub.s32 0, %v11257_v20  ;;  %v5223_v42 = vsel %vm5215_vm0, %v5206_v54, %v5222_v57  ;;  %v5225_v23 = vsel %vm5213_vm10, %v5203_v28, %v5206_v54  ;;  %v11279_v5 = vshrl.u32 %v1843_v10, 30 }
 0x27f   : > { %vm5214_vm15 = vcmp.lt.s32.totalorder %v5194_v35, 2  ;;  %v5218_v17 = vsel %vm5216_vm14, %v5206_v54, 2102212464  ;;  %v5226_v59 = vsel %vm5216_vm14, %v5212_v16, 1326507024  ;;  %v5197_v36 = vshrl.u32 %v16574_v12, %v5196_v47 }
 0x280   : > { %16759 = vst [vmem:[#allocation130_spill] sm:$0xff] %v11279_v5  ;;  %v5224_v46 = vsel %vm5214_vm15, %v5221_v31, %v5223_v42  ;;  %v5227_v58 = vsel %vm5215_vm0, %v5209_v2, %v5226_v59  ;;  %v5088_v61 = vadd.s32 1, %v7792_v38  ;;  %v4944_v22 = vsub.s32 32, %v11237_v27 }
 0x281   : > { %v4949_v50 = vadd.s32 127, %v4948_v4  ;;  %v5228_v29 = vsel %vm5214_vm15, %v5225_v23, %v5227_v58  ;;  %v5229_v57 = vshll.u32 %v5189_v52, 8  ;;  %v7669_v39 = vmin.u32 %v1951_v45, %v11257_v20  ;;  %v168_v45 = vpop.permute.xlu1 %167 }
 0x282   : > { %v5217_v10 = vsel %vm5213_vm10, %v5197_v36, %v5200_v49  ;;  %v5219_v54 = vsel %vm5215_vm0, %v5203_v28, %v5218_v17  ;;  %vm5089_vm14 = vcmp.gt.s32.totalorder %v5088_v61, 0  ;;  %v4928_v2 = vadd.s32 %v10933_v3, %v10945_v14 }
 0x283   : > { %v11289_v16 = vmul.u32.u64.low %v5229_v57, %v5228_v29  ;;  %v11290_v47 = vmul.u32.u64.high %v5229_v57, %v5228_v29, %v11289_v16  ;;  %v11292_v31 = vmul.u32.u64.low %v5229_v57, %v5224_v46  ;;  %v11293_v42 = vmul.u32.u64.high %v5229_v57, %v5224_v46, %v11292_v31 }
 0x284   : > { %v1845_v4 = vshll.u32 %v11279_v5, 30  ;;  %v16152_v38 = vand.u32 2147483647, %v11213_v11  ;;  %v5090_v52 = vsel %vm5089_vm14, %v5088_v61, 0  ;;  %8366 = vsinq.f32 %v11218_v18  ;;  %v16763_v5 = vld [vmem:[#allocation24_spill] sm:$0xff] }
 0x285   : > { %v11304_v49 = vsel %vm11264_vm2, %v10528_v40, %v1661_v48  ;;  %v5220_v28 = vsel %vm5214_vm15, %v5217_v10, %v5219_v54  ;;  %v5092_v29 = vand.u32 31, %v5090_v52  ;;  %v4946_v17 = vshrl.u32 %v4928_v2, %v4944_v22 }
 0x286   : > { %v4950_v14 = vshll.u32 %v4949_v50, 23  ;;  %v1953_v3 = vclz %v7669_v39  ;;  %vm5238_vm10 = vc.u32 %v11290_v47, %v11292_v31  ;;  %v5239_v59 = vadd.s32 1, %v11293_v42 }
 0x287   : > { %v5093_v36 = vsub.s32 32, %v5092_v29  ;;  %v429_v18 = vmul.f32 %v16538_v0, %v168_v45  ;;  %v11313_v46 = vsub.s32 %v11240_v43, %v1845_v4  ;;  %v5236_v48 = vmul.u32 %v5229_v57, %v5220_v28 }
 0x288   : > { %v5085_v35 = vand.u32 8388607, %v16152_v38  ;;  %v5095_v58 = vshll.u32 %v16574_v12, %v5092_v29  ;;  %v5240_v61 = vsel %vm5238_vm10, %v5239_v59, %v11293_v42  ;;  %v5098_v22 = vshll.u32 %v16569_v13, %v5092_v29 }
 0x289   : > { %v5096_v39 = vshrl.u32 %v16569_v13, %v5093_v36  ;;  %v5099_v50 = vshrl.u32 %v16570_v6, %v5093_v36  ;;  %v5241_v10 = vadd.s32 %v5240_v61, %v5236_v48  ;;  %v11322_v54 = vshrl.u32 %v5090_v52, 5 }
 0x28a   : > { %v5101_v43 = vshll.u32 %v16570_v6, %v5092_v29  ;;  %v5102_v57 = vshrl.u32 %v16571_v15, %v5093_v36  ;;  %v5104_v4 = vshll.u32 %v16571_v15, %v5092_v29  ;;  %v5105_v45 = vshrl.u32 %v16572_v9, %v5093_v36 }
 0x28b   : > { %v5097_v16 = vor.u32 %v5096_v39, %v5095_v58  ;;  %v5100_v2 = vor.u32 %v5099_v50, %v5098_v22  ;;  %v4945_v42 = vshll.u32 %v11073_v53, %v11237_v27  ;;  %v5242_v28 = vadd.s32 536870912, %v5241_v10 }
 0x28c   : > { %v5086_v59 = vor.u32 8388608, %v5085_v35  ;;  %v11331_v38 = vadd.f32 %v16537_v1, %v429_v18  ;;  %v5103_v52 = vor.u32 %v5102_v57, %v5101_v43  ;;  %v5106_v48 = vor.u32 %v5105_v45, %v5104_v4 }
 0x28d   : > { %v5107_v61 = vshll.u32 %v16572_v9, %v5092_v29  ;;  %v5108_v58 = vshrl.u32 %v16573_v8, %v5093_v36  ;;  %v4947_v39 = vor.u32 %v4946_v17, %v4945_v42  ;;  %v7670_v22 = vadd.s32 4294967294, %v1953_v3  ;;  %v163_v3 = vpop.permute.xlu0 %162 }
 0x28e   : > { %16760 = vst [vmem:[#allocation131_spill] sm:$0xff] %v11331_v38  ;;  %v1848_v50 = vsub.s32 0, %v11313_v46  ;;  %vm16156_vm0 = vcmp.lt.s32.totalorder %v11322_v54, 1  ;;  %v11338_v53 = vpop.eup %8366  ;;  %v4951_v27 = vor.u32 4788187, %v4950_v14  ;;  %vm5113_vm14 = vcmp.lt.s32.totalorder %v11322_v54, 4 }
 0x28f   : > { %16761 = vst [vmem:[#allocation132_spill] sm:$0xff] %v11338_v53  ;;  %v5109_v35 = vor.u32 %v5108_v58, %v5107_v61  ;;  %v5118_v18 = vsel %vm16156_vm0, %v5097_v16, %v5100_v2  ;;  %v11343_v43 = vshrl.u32 %v5242_v28, 30  ;;  %vm5112_vm10 = vcmp.lt.s32.totalorder %v11322_v54, 3 }
 0x290   : > { %v5119_v29 = vsel %vm5113_vm14, %v5106_v48, 920167782  ;;  %v2094_v17 = vand.u32 2139095040, %v11331_v38  ;;  %vm5111_vm15 = vcmp.lt.s32.totalorder %v11322_v54, 2  ;;  %v5122_v57 = vsel %vm16156_vm0, %v5100_v2, %v5103_v52 }
 0x291   : > { %16762 = vst [vmem:[#allocation133_spill] sm:$0xff] %v11343_v43  ;;  %v5120_v14 = vsel %vm5112_vm10, %v5103_v52, %v5119_v29  ;;  %v5126_v4 = vshll.u32 %v5086_v59, 8  ;;  %vm7671_vm12 = vcmp.lt.s32.totalorder %v7670_v22, 0  ;;  %v7665_v45 = vmin.u32 %v1848_v50, %v11313_v46 }
 0x292   : > { %v5121_v42 = vsel %vm5111_vm15, %v5118_v18, %v5120_v14  ;;  %v5123_v28 = vsel %vm5113_vm14, %v5109_v35, 1326507024  ;;  %v428_v29 = vmul.f32 %v16538_v0, %v163_v3  ;;  %v5244_v59 = vshll.u32 %v11343_v43, 30 }
 0x293   : > { %v5124_v61 = vsel %vm5112_vm10, %v5106_v48, %v5123_v28  ;;  %v11361_v58 = vmul.u32.u64.low %v5126_v4, %v5121_v42  ;;  %v11362_v23 = vmul.u32.u64.high %v5126_v4, %v5121_v42, %v11361_v58  ;;  %v5115_v50 = vsel %vm5113_vm14, %v5103_v52, 2102212464 }
 0x294   : > { %v5125_v18 = vsel %vm5111_vm15, %v5122_v57, %v5124_v61  ;;  %v2095_v35 = vshrl.u32 %v2094_v17, 23  ;;  %8368 = vcosq.f32 %v11304_v49  ;;  %v5094_v48 = vshrl.u32 %v16574_v12, %v5093_v36 }
 0x295   : > { %v11374_v14 = vmul.u32.u64.low %v5126_v4, %v5125_v18  ;;  %v11375_v42 = vmul.u32.u64.high %v5126_v4, %v5125_v18, %v11374_v14  ;;  %v16764_v3 = vxor.u32 2147483648, %v11274_v32  ;;  %vm16765_vm0 = vcmp.lt.s32.totalorder %v10670_v37, 0 }
 0x296   : > { %v4952_v43 = vand.u32 2147483647, %v4951_v27  ;;  %v4954_v53 = vcvt.s32.f32 %v4947_v39  ;;  %v7676_v52 = vadd.s32 4294967169, %v2095_v35  ;;  %v11383_v24 = vsel %vm7671_vm12, 0, %v7670_v22 }
 0x297   : > { %v5060_v28 = vsel %vm16765_vm0, %v16764_v3, %v11274_v32  ;;  %v1850_v17 = vclz %v7665_v45  ;;  %vm16766_vm14 = vcmp.lt.s32.totalorder %v11322_v54, 1  ;;  %v5116_v36 = vsel %vm5112_vm10, %v5100_v2, %v5115_v50  ;;  %v16775_v54 = vld [vmem:[#allocation41_spill] sm:$0xff] }
 0x298   : > { %v5114_v57 = vsel %vm16766_vm14, %v5094_v48, %v5097_v16  ;;  %v11389_v61 = vsub.s32 %v5241_v10, %v5244_v59  ;;  %v5136_v18 = vadd.s32 1, %v11362_v23  ;;  %v2101_v14 = vadd.s32 1, %v7676_v52 }
 0x299   : > { %v11393_v32 = vadd.f32 %v16537_v1, %v428_v29  ;;  %v11397_v39 = vshrl.u32 %v16573_v8, %v16722_v30  ;;  %8370 = vsinq.f32 %v11304_v49  ;;  %v16768_v22 = vand.u32 2147483647, %v10670_v37 }
 0x29a   : > { %v16769_v16 = vmov 0  ;;  %vm5135_vm0 = vc.u32 %v11375_v42, %v11361_v58  ;;  %v11413_v2 = vmul.f32 %v4954_v53, %v4952_v43  ;;  %v5117_v27 = vsel %vm5111_vm15, %v5114_v57, %v5116_v36  ;;  %v16776_v43 = vld [vmem:[#allocation40_spill] sm:$0xff] }
 0x29b   : > { %16767 = vst [vmem:[#allocation134_spill] sm:$0xff] %v11393_v32  ;;  %vm11402_vm12 = vcmp.le.f32.partialorder %v16768_v22, 0.7853982  ;;  %vm2102_vm10 = vcmp.gt.s32.totalorder %v2101_v14, 0  ;;  %v1961_v49 = vsub.s32 4294967266, %v11383_v24  ;;  %v7666_v45 = vadd.s32 4294967294, %v1850_v17 }
 0x29c   : > { %v16770_v16 = vsel %vm11402_vm12, 4294967295, %v16769_v16  ;;  %v11411_v10 = vsel %vm11402_vm12, %v10670_v37, %v5060_v28  ;;  %v2103_v59 = vsel %vm2102_vm10, %v2101_v14, 0  ;;  %v5247_v50 = vsub.s32 0, %v11389_v61  ;;  %v16772_v28 = vld [vmem:[#allocation57_spill] sm:$0xff] }
 0x29d   : > { %16771 = vst [vmem:[#allocation135_spill] sm:$0xff] %v16770_v16  ;;  %v5137_v35 = vsel %vm5135_vm0, %v5136_v18, %v11362_v23  ;;  %v2105_v48 = vand.u32 31, %v2103_v59  ;;  %v1991_v3 = vand.u32 2139095040, %v11393_v32  ;;  %vm16773_vm14 = vcmp.lt.s32.totalorder %v16763_v5, 4 }
 0x29e   : > { %v11425_v53 = vsel %vm16773_vm14, %v16772_v28, 920167782  ;;  %v16777_v52 = vor.u32 %v16775_v54, %v16776_v43  ;;  %vm16778_vm15 = vmmov %vm16773_vm14  ;;  %8372 = vcosq.f32 %v11411_v10  ;;  %v5133_v57 = vmul.u32 %v5126_v4, %v5117_v27  ;;  %v11439_v22 = vpop.eup %8368 }
 0x29f   : > { %16774 = vst [vmem:[#allocation136_spill] sm:$0xff] %v11425_v53  ;;  %v1941_v36 = vadd.s32 %v11080_v44, %v11090_v34  ;;  %v1957_v18 = vsub.s32 32, %v11383_v24  ;;  %v2106_v14 = vsub.s32 32, %v2105_v48  ;;  %16780 = vst [vmem:[#allocation40_spill] sm:$0xff] %v11439_v22  ;;  %v1958_v54 = vshll.u32 %v11257_v20, %v11383_v24 }
 0x2a0   : > { %v11432_v17 = vsel %vm16778_vm15, %v16777_v52, 1326507024  ;;  %v1962_v43 = vadd.s32 127, %v1961_v49  ;;  %v11443_v29 = vadd.s32 %v5137_v35, %v5133_v57  ;;  %v16781_v52 = vand.u32 2147483647, %v11331_v38 }
 0x2a1   : > { %16779 = vst [vmem:[#allocation41_spill] sm:$0xff] %v11432_v17  ;;  %vm7667_vm0 = vcmp.lt.s32.totalorder %v7666_v45, 0  ;;  %v7797_v4 = vmin.u32 %v5247_v50, %v11389_v61  ;;  %v2109_v27 = vshrl.u32 %v16569_v13, %v2106_v14  ;;  %v1992_v44 = vshrl.u32 %v1991_v3, 23 }
 0x2a2   : > { %v2098_v16 = vand.u32 8388607, %v16781_v52  ;;  %v2108_v34 = vshll.u32 %v16574_v12, %v2105_v48  ;;  %v2111_v23 = vshll.u32 %v16569_v13, %v2105_v48  ;;  %v2112_v37 = vshrl.u32 %v16570_v6, %v2106_v14 }
 0x2a3   : > { %v2115_v20 = vshrl.u32 %v16571_v15, %v2106_v14  ;;  %v11453_v24 = vshrl.u32 %v2103_v59, 5  ;;  %v2114_v49 = vshll.u32 %v16570_v6, %v2105_v48  ;;  %v2117_v35 = vshll.u32 %v16571_v15, %v2105_v48  ;;  %v11458_v50 = vpop.eup %8370 }
 0x2a4   : > { %v2118_v57 = vshrl.u32 %v16572_v9, %v2106_v14  ;;  %16782 = vst [vmem:[#allocation137_spill] sm:$0xff] %v11458_v50  ;;  %v5139_v3 = vadd.s32 536870912, %v11443_v29  ;;  %v2099_v52 = vor.u32 8388608, %v2098_v16  ;;  %v2110_v22 = vor.u32 %v2109_v27, %v2108_v34 }
 0x2a5   : > { %v2113_v40 = vor.u32 %v2112_v37, %v2111_v23  ;;  %v2116_v26 = vor.u32 %v2115_v20, %v2114_v49  ;;  %v2120_v19 = vshll.u32 %v16572_v9, %v2105_v48  ;;  %v2121_v59 = vshrl.u32 %v16573_v8, %v2106_v14 }
 0x2a6   : > { %v2119_v7 = vor.u32 %v2118_v57, %v2117_v35  ;;  %vm16181_vm10 = vcmp.lt.s32.totalorder %v10767_v62, 0  ;;  %v1959_v56 = vshrl.u32 %v1941_v36, %v1957_v18  ;;  %v1963_v21 = vshll.u32 %v1962_v43, 23 }
 0x2a7   : > { %v11465_v55 = vsel %vm7667_vm0, 0, %v7666_v45  ;;  %v5249_v28 = vclz %v7797_v4  ;;  %v2122_v50 = vor.u32 %v2121_v59, %v2120_v19  ;;  %vm2123_vm14 = vcmp.lt.s32.totalorder %v11453_v24, 1  ;;  %v8297_v19 = vld [vmem:[%s15928_s2 + $0x28] sm:$0xff]   ;;  %v328_v59 = vpop.permute.xlu1 %327 }
 0x2a8   : > { %vm2126_vm15 = vcmp.lt.s32.totalorder %v11453_v24, 4  ;;  %v7672_v37 = vadd.s32 4294967169, %v1992_v44  ;;  %v11469_v16 = vpop.eup %8372  ;;  %v11471_v23 = vshrl.u32 %v5139_v3, 30  ;;  %vm2125_vm12 = vcmp.lt.s32.totalorder %v11453_v24, 3  ;;  %7930 = vmatprep.subr.bf16.mxu0 %v8297_v19  ;;  %8005 = vmatprep.subr.bf16.mxu1 %v8297_v19 }
 0x2a9   : > { %16783 = vst [vmem:[#allocation138_spill] sm:$0xff] %v11469_v16  ;;  %v2131_v48 = vsel %vm2123_vm14, %v2110_v22, %v2113_v40  ;;  %v2132_v45 = vsel %vm2126_vm15, %v2119_v7, 920167782  ;;  %vm2124_vm0 = vcmp.lt.s32.totalorder %v11453_v24, 2  ;;  %v2135_v18 = vsel %vm2123_vm14, %v2113_v40, %v2116_v26  ;;  %7931 = vmatpush3.bf16.xpose.msra.mxu0 %v8297_v19  ;;  %8013 = vmatpush3.bf16.xpose.msra.mxu1 %v8297_v19 }
 0x2aa   : > { %16784 = vst [vmem:[#allocation139_spill] sm:$0xff] %v11471_v23  ;;  %v2133_v36 = vsel %vm2125_vm12, %v2116_v26, %v2132_v45  ;;  %v2139_v43 = vshll.u32 %v2099_v52, 8  ;;  %v7798_v4 = vadd.s32 4294967294, %v5249_v28  ;;  %v2136_v44 = vsel %vm2126_vm15, %v2122_v50, 1326507024 }
 0x2ab   : > { %v2134_v27 = vsel %vm2124_vm0, %v2131_v48, %v2133_v36  ;;  %v16177_v34 = vand.u32 2147483647, %v11393_v32  ;;  %v2128_v20 = vsel %vm2126_vm15, %v2116_v26, 2102212464  ;;  %v2137_v49 = vsel %vm2125_vm12, %v2119_v7, %v2136_v44 }
 0x2ac   : > { %v11495_v35 = vmul.u32.u64.low %v2139_v43, %v2134_v27  ;;  %v11496_v57 = vmul.u32.u64.high %v2139_v43, %v2134_v27, %v11495_v35  ;;  %v5141_v28 = vshll.u32 %v11471_v23, 30  ;;  %v2107_v50 = vshrl.u32 %v16574_v12, %v2106_v14 }
 0x2ad   : > { %v2138_v3 = vsel %vm2124_vm0, %v2135_v18, %v2137_v49  ;;  %v1998_v52 = vadd.s32 1, %v7672_v37  ;;  %v11503_v48 = vor.u32 %v1959_v56, %v1958_v54  ;;  %v11505_v26 = vor.u32 4788187, %v1963_v21 }
 0x2ae   : > { %v11507_v7 = vmul.u32.u64.low %v2139_v43, %v2138_v3  ;;  %v11508_v45 = vmul.u32.u64.high %v2139_v43, %v2138_v3, %v11507_v7  ;;  %v1858_v36 = vsub.s32 4294967266, %v11465_v55  ;;  %v2127_v19 = vsel %vm2123_vm14, %v2107_v50, %v2110_v22 }
 0x2af   : > { %v2129_v14 = vsel %vm2125_vm12, %v2113_v40, %v2128_v20  ;;  %vm1999_vm15 = vcmp.gt.s32.totalorder %v1998_v52, 0  ;;  %v16785_v37 = vxor.u32 2147483648, %v11413_v2  ;;  %v1995_v21 = vand.u32 8388607, %v16177_v34 }
 0x2b0   : > { %v2000_v54 = vsel %vm1999_vm15, %v1998_v52, 0  ;;  %v461_v18 = vmul.f32 %v16538_v0, %v328_v59  ;;  %v1838_v22 = vadd.s32 %v11161_v63, %v11175_v25  ;;  %vm7799_vm14 = vcmp.lt.s32.totalorder %v7798_v4, 0 }
 0x2b1   : > { %v11520_v56 = vsel %vm16181_vm10, %v16785_v37, %v11413_v2  ;;  %v11528_v40 = vsub.s32 %v11443_v29, %v5141_v28  ;;  %v2149_v27 = vadd.s32 1, %v11496_v57  ;;  %v1967_v44 = vcvt.s32.f32 %v11503_v48 }
 0x2b2   : > { %v2130_v2 = vsel %vm2124_vm0, %v2127_v19, %v2129_v14  ;;  %vm2148_vm12 = vc.u32 %v11508_v45, %v11495_v35  ;;  %v2002_v20 = vand.u32 31, %v2000_v54  ;;  %v1965_v49 = vand.u32 2147483647, %v11505_v26 }
 0x2b3   : > { %v1854_v50 = vsub.s32 32, %v11465_v55  ;;  %v1855_v63 = vshll.u32 %v11313_v46, %v11465_v55  ;;  %v1859_v25 = vadd.s32 127, %v1858_v36  ;;  %v11540_v29 = vsel %vm7799_vm14, 0, %v7798_v4 }
 0x2b4   : > { %v1996_v28 = vor.u32 8388608, %v1995_v21  ;;  %v11542_v3 = vsub.s32 32, %v2002_v20  ;;  %v11545_v24 = vadd.f32 %v16537_v1, %v461_v18  ;;  %v5144_v52 = vsub.s32 0, %v11528_v40 }
 0x2b5   : > { %v2146_v59 = vmul.u32 %v2139_v43, %v2130_v2  ;;  %v2150_v48 = vsel %vm2148_vm12, %v2149_v27, %v11496_v57  ;;  %v11549_v26 = vshrl.u32 %v2000_v54, 5  ;;  %v2005_v7 = vshll.u32 %v16574_v12, %v2002_v20 }
 0x2b6   : > { %16786 = vst [vmem:[#allocation140_spill] sm:$0xff] %v11545_v24  ;;  %v2006_v55 = vshrl.u32 %v16569_v13, %v11542_v3  ;;  %v2008_v46 = vshll.u32 %v16569_v13, %v2002_v20  ;;  %v2009_v4 = vshrl.u32 %v16570_v6, %v11542_v3  ;;  %v2011_v36 = vshll.u32 %v16570_v6, %v2002_v20 }
 0x2b7   : > { %v2012_v19 = vshrl.u32 %v16571_v15, %v11542_v3  ;;  %v2014_v43 = vshll.u32 %v16571_v15, %v2002_v20  ;;  %v2015_v57 = vshrl.u32 %v16572_v9, %v11542_v3  ;;  %v11563_v14 = vadd.s32 %v2150_v48, %v2146_v59 }
 0x2b8   : > { %v2007_v37 = vor.u32 %v2006_v55, %v2005_v7  ;;  %v2010_v21 = vor.u32 %v2009_v4, %v2008_v46  ;;  %v5390_v54 = vand.u32 2139095040, %v11545_v24  ;;  %v16787_v18 = vand.u32 2147483647, %v10767_v62 }
 0x2b9   : > { %v16788_v27 = vmov 0  ;;  %v2013_v2 = vor.u32 %v2012_v19, %v2011_v36  ;;  %v2016_v34 = vor.u32 %v2015_v57, %v2014_v43  ;;  %v2017_v23 = vshll.u32 %v16572_v9, %v2002_v20 }
 0x2ba   : > { %vm11568_vm0 = vcmp.le.f32.partialorder %v16787_v18, 0.7853982  ;;  %v2018_v16 = vshrl.u32 %v16573_v8, %v11542_v3  ;;  %v1856_v17 = vshrl.u32 %v1838_v22, %v1854_v50  ;;  %v1860_v59 = vshll.u32 %v1859_v25, 23 }
 0x2bb   : > { %v16789_v27 = vsel %vm11568_vm0, 4294967295, %v16788_v27  ;;  %v5257_v48 = vsub.s32 4294967266, %v11540_v29  ;;  %v11576_v7 = vshll.u32 %v1996_v28, 8  ;;  %v7793_v55 = vmin.u32 %v5144_v52, %v11528_v40 }
 0x2bc   : > { %16790 = vst [vmem:[#allocation141_spill] sm:$0xff] %v16789_v27  ;;  %v2019_v46 = vor.u32 %v2018_v16, %v2017_v23  ;;  %vm2020_vm15 = vcmp.lt.s32.totalorder %v11549_v26, 1  ;;  %vm2023_vm14 = vcmp.lt.s32.totalorder %v11549_v26, 4  ;;  %vm16182_vm12 = vcmp.lt.s32.totalorder %v11549_v26, 3 }
 0x2bd   : > { %v2028_v20 = vsel %vm2020_vm15, %v2007_v37, %v2010_v21  ;;  %v2029_v22 = vsel %vm2023_vm14, %v2016_v34, 920167782  ;;  %v5391_v50 = vshrl.u32 %v5390_v54, 23  ;;  %v2152_v25 = vadd.s32 536870912, %v11563_v14 }
 0x2be   : > { %vm16183_vm10 = vcmp.lt.s32.totalorder %v11549_v26, 2  ;;  %v2030_v16 = vsel %vm16182_vm12, %v2013_v2, %v2029_v22  ;;  %v2032_v23 = vsel %vm2020_vm15, %v2010_v21, %v2013_v2  ;;  %v1968_v28 = vmul.f32 %v1967_v44, %v1965_v49 }
 0x2bf   : > { %v1857_v52 = vor.u32 %v1856_v17, %v1855_v63  ;;  %v2031_v4 = vsel %vm16183_vm10, %v2028_v20, %v2030_v16  ;;  %v2033_v36 = vsel %vm2023_vm14, %v2019_v46, 1326507024  ;;  %v1861_v19 = vor.u32 4788187, %v1860_v59 }
 0x2c0   : > { %v2034_v43 = vsel %vm16182_vm12, %v2016_v34, %v2033_v36  ;;  %v11599_v57 = vmul.u32.u64.low %v11576_v7, %v2031_v4  ;;  %v11600_v54 = vmul.u32.u64.high %v11576_v7, %v2031_v4, %v11599_v57  ;;  %v5253_v18 = vsub.s32 32, %v11540_v29 }
 0x2c1   : > { %v5258_v22 = vadd.s32 127, %v5257_v48  ;;  %v5146_v44 = vclz %v7793_v55  ;;  %v2035_v17 = vsel %vm16183_vm10, %v2032_v23, %v2034_v43  ;;  %v11606_v49 = vshrl.u32 %v2152_v25, 30  ;;  %v323_v23 = vpop.permute.xlu0 %322 }
 0x2c2   : > { %v11609_v63 = vmul.u32.u64.low %v11576_v7, %v2035_v17  ;;  %v11610_v59 = vmul.u32.u64.high %v11576_v7, %v2035_v17, %v11609_v63  ;;  %v7804_v46 = vadd.s32 4294967169, %v5391_v50  ;;  %8374 = vsinq.f32 %v11411_v10 }
 0x2c3   : > { %16791 = vst [vmem:[#allocation142_spill] sm:$0xff] %v11606_v49  ;;  %v11617_v34 = vsel %vm11568_vm0, %v10767_v62, %v11520_v56  ;;  %v5237_v48 = vadd.s32 %v11292_v31, %v11290_v47  ;;  %v1969_v55 = vxor.u32 2147483648, %v1968_v28  ;;  %v1862_v20 = vand.u32 2147483647, %v1861_v19 }
 0x2c4   : > { %v1864_v25 = vcvt.s32.f32 %v1857_v52  ;;  %v5397_v16 = vadd.s32 1, %v7804_v46  ;;  %v5259_v50 = vshll.u32 %v5258_v22, 23  ;;  %v2025_v10 = vsel %vm2023_vm14, %v2013_v2, 2102212464 }
 0x2c5   : > { %v5255_v4 = vshrl.u32 %v5237_v48, %v5253_v18  ;;  %v16185_v36 = vand.u32 2147483647, %v11545_v24  ;;  %v7794_v43 = vadd.s32 4294967294, %v5146_v44  ;;  %v2154_v56 = vshll.u32 %v11606_v49, 30 }
 0x2c6   : > { %v2004_v17 = vshrl.u32 %v16574_v12, %v11542_v3  ;;  %vm5398_vm10 = vcmp.gt.s32.totalorder %v5397_v16, 0  ;;  %v5254_v47 = vshll.u32 %v11389_v61, %v11540_v29  ;;  %v2046_v31 = vadd.s32 1, %v11600_v54 }
 0x2c7   : > { %v5399_v52 = vsel %vm5398_vm10, %v5397_v16, 0  ;;  %v460_v19 = vmul.f32 %v16538_v0, %v323_v23  ;;  %vm16792_vm14 = vcmp.lt.s32.totalorder %v11549_v26, 3  ;;  %vm2045_vm12 = vc.u32 %v11610_v59, %v11599_v57 }
 0x2c8   : > { %v2024_v2 = vsel %vm2020_vm15, %v2004_v17, %v2007_v37  ;;  %v2026_v18 = vsel %vm16792_vm14, %v2010_v21, %v2025_v10  ;;  %v5401_v22 = vand.u32 31, %v5399_v52  ;;  %vm16793_vm0 = vcmp.lt.s32.totalorder %v10892_v33, 0 }
 0x2c9   : > { %v1970_v3 = vsel %vm16793_vm0, %v1969_v55, %v1968_v28  ;;  %v11640_v44 = vmul.f32 %v1864_v25, %v1862_v20  ;;  %v5256_v61 = vor.u32 %v5255_v4, %v5254_v47  ;;  %v5260_v29 = vor.u32 4788187, %v5259_v50 }
 0x2ca   : > { %vm7795_vm10 = vcmp.lt.s32.totalorder %v7794_v43, 0  ;;  %v11643_v63 = vsub.s32 %v11563_v14, %v2154_v56  ;;  %v5394_v37 = vand.u32 8388607, %v16185_v36  ;;  %v11647_v46 = vsub.s32 32, %v5401_v22 }
 0x2cb   : > { %vm16794_vm15 = vcmp.lt.s32.totalorder %v11549_v26, 2  ;;  %v2047_v48 = vsel %vm2045_vm12, %v2046_v31, %v11600_v54  ;;  %v11652_v16 = vshrl.u32 %v5399_v52, 5  ;;  %v11655_v28 = vadd.f32 %v16537_v1, %v460_v19 }
 0x2cc   : > { %v2027_v21 = vsel %vm16794_vm15, %v2024_v2, %v2026_v18  ;;  %v5404_v55 = vshll.u32 %v16574_v12, %v5401_v22  ;;  %v5405_v14 = vshrl.u32 %v16569_v13, %v11647_v46  ;;  %v5407_v20 = vshll.u32 %v16569_v13, %v5401_v22  ;;  %v11663_v23 = vpop.eup %8374 }
 0x2cd   : > { %16795 = vst [vmem:[#allocation143_spill] sm:$0xff] %v11655_v28  ;;  %v5408_v25 = vshrl.u32 %v16570_v6, %v11647_v46  ;;  %16796 = vst [vmem:[#allocation144_spill] sm:$0xff] %v11663_v23  ;;  %v5410_v26 = vshll.u32 %v16570_v6, %v5401_v22  ;;  %v5411_v54 = vshrl.u32 %v16571_v15, %v11647_v46  ;;  %v16797_v10 = vand.u32 2147483647, %v10892_v33 }
 0x2ce   : > { %v5413_v4 = vshll.u32 %v16571_v15, %v5401_v22  ;;  %v5414_v50 = vshrl.u32 %v16572_v9, %v11647_v46  ;;  %v16798_v56 = vmov 0  ;;  %v5149_v17 = vsel %vm7795_vm10, 0, %v7794_v43 }
 0x2cf   : > { %vm11673_vm0 = vcmp.le.f32.partialorder %v16797_v10, 0.7853982  ;;  %v2043_v47 = vmul.u32 %v11576_v7, %v2027_v21  ;;  %v5406_v31 = vor.u32 %v5405_v14, %v5404_v55  ;;  %v5409_v52 = vor.u32 %v5408_v25, %v5407_v20 }
 0x2d0   : > { %v16799_v56 = vsel %vm11673_vm0, 4294967295, %v16798_v56  ;;  %v5263_v19 = vcvt.s32.f32 %v5256_v61  ;;  %v5412_v2 = vor.u32 %v5411_v54, %v5410_v26  ;;  %v5415_v18 = vor.u32 %v5414_v50, %v5413_v4 }
 0x2d1   : > { %16800 = vst [vmem:[#allocation145_spill] sm:$0xff] %v16799_v56  ;;  %v5287_v36 = vand.u32 2139095040, %v11655_v28  ;;  %v5261_v49 = vand.u32 2147483647, %v5260_v29  ;;  %v11680_v23 = vadd.s32 %v2047_v48, %v2043_v47  ;;  %v5416_v27 = vshll.u32 %v16572_v9, %v5401_v22 }
 0x2d2   : > { %v5417_v10 = vshrl.u32 %v16573_v8, %v11647_v46  ;;  %v5150_v43 = vsub.s32 32, %v5149_v17  ;;  %v5154_v62 = vsub.s32 4294967266, %v5149_v17  ;;  %v2157_v7 = vsub.s32 0, %v11643_v63 }
 0x2d3   : > { %vm16194_vm14 = vcmp.lt.s32.totalorder %v11652_v16, 1  ;;  %v5395_v61 = vor.u32 8388608, %v5394_v37  ;;  %vm5422_vm10 = vcmp.lt.s32.totalorder %v11652_v16, 4  ;;  %vm16193_vm15 = vcmp.lt.s32.totalorder %v11652_v16, 3 }
 0x2d4   : > { %v5418_v21 = vor.u32 %v5417_v10, %v5416_v27  ;;  %v5427_v29 = vsel %vm16194_vm14, %v5406_v31, %v5409_v52  ;;  %v5428_v22 = vsel %vm5422_vm10, %v5415_v18, 920167782  ;;  %v5431_v48 = vsel %vm16194_vm14, %v5409_v52, %v5412_v2 }
 0x2d5   : > { %v5288_v55 = vshrl.u32 %v5287_v36, 23  ;;  %v2049_v14 = vadd.s32 536870912, %v11680_v23  ;;  %vm16192_vm12 = vcmp.lt.s32.totalorder %v11652_v16, 2  ;;  %v5429_v27 = vsel %vm16193_vm15, %v5412_v2, %v5428_v22 }
 0x2d6   : > { %v5432_v37 = vsel %vm5422_vm10, %v5418_v21, 1326507024  ;;  %8376 = vcosq.f32 %v11617_v34  ;;  %v5134_v20 = vadd.s32 %v11361_v58, %v11375_v42  ;;  %v5430_v25 = vsel %vm16192_vm12, %v5427_v29, %v5429_v27  ;;  %v178_v27 = vpop.permute.xlu1 %177 }
 0x2d7   : > { %v5433_v36 = vsel %vm16193_vm15, %v5415_v18, %v5432_v37  ;;  %v1866_v26 = vxor.u32 2147483648, %v11640_v44  ;;  %v5264_v54 = vmul.f32 %v5263_v19, %v5261_v49  ;;  %v11712_v50 = vshll.u32 %v5395_v61, 8 }
 0x2d8   : > { %v5434_v4 = vsel %vm16192_vm12, %v5431_v48, %v5433_v36  ;;  %v1973_v47 = vsel %vm11673_vm0, %v10892_v33, %v1970_v3  ;;  %v5152_v10 = vshrl.u32 %v5134_v20, %v5150_v43  ;;  %v5155_v58 = vadd.s32 127, %v5154_v62 }
 0x2d9   : > { %v7800_v42 = vadd.s32 4294967169, %v5288_v55  ;;  %v7677_v21 = vmin.u32 %v2157_v7, %v11643_v63  ;;  %v11718_v29 = vshrl.u32 %v2049_v14, 30  ;;  %v5151_v49 = vshll.u32 %v11528_v40, %v5149_v17 }
 0x2da   : > { %v11721_v18 = vmul.u32.u64.low %v11712_v50, %v5430_v25  ;;  %v11722_v22 = vmul.u32.u64.high %v11712_v50, %v5430_v25, %v11721_v18  ;;  %v11727_v19 = vmul.u32.u64.low %v11712_v50, %v5434_v4  ;;  %v11728_v61 = vmul.u32.u64.high %v11712_v50, %v5434_v4, %v11727_v19 }
 0x2db   : > { %16801 = vst [vmem:[#allocation146_spill] sm:$0xff] %v11718_v29  ;;  %v5294_v48 = vadd.s32 1, %v7800_v42  ;;  %8378 = vsinq.f32 %v11617_v34  ;;  %vm16802_vm12 = vcmp.lt.s32.totalorder %v10964_v41, 0  ;;  %v5265_v3 = vxor.u32 2147483648, %v5264_v54 }
 0x2dc   : > { %v1867_v62 = vsel %vm16802_vm12, %v1866_v26, %v11640_v44  ;;  %v5424_v43 = vsel %vm5422_vm10, %v5412_v2, 2102212464  ;;  %v11736_v7 = vor.u32 %v5152_v10, %v5151_v49  ;;  %v5156_v55 = vshll.u32 %v5155_v58, 23 }
 0x2dd   : > { %v5403_v40 = vshrl.u32 %v16574_v12, %v11647_v46  ;;  %vm5295_vm15 = vcmp.gt.s32.totalorder %v5294_v48, 0  ;;  %8380 = vcosq.f32 %v1973_v47  ;;  %v16803_v17 = vand.u32 2147483647, %v10964_v41 }
 0x2de   : > { %v16804_v34 = vmov 0  ;;  %v2159_v14 = vclz %v7677_v21  ;;  %v2051_v44 = vshll.u32 %v11718_v29, 30  ;;  %vm16807_vm12 = vcmp.lt.s32.totalorder %v11652_v16, 1 }
 0x2df   : > { %vm11742_vm14 = vcmp.le.f32.partialorder %v16803_v17, 0.7853982  ;;  %v5423_v2 = vsel %vm16807_vm12, %v5403_v40, %v5406_v31  ;;  %vm16808_vm10 = vcmp.lt.s32.totalorder %v11652_v16, 3  ;;  %v16196_v46 = vand.u32 2147483647, %v11655_v28 }
 0x2e0   : > { %v16805_v34 = vsel %vm11742_vm14, 4294967295, %v16804_v34  ;;  %v5425_v37 = vsel %vm16808_vm10, %v5409_v52, %v5424_v43  ;;  %v5296_v20 = vsel %vm5295_vm15, %v5294_v48, 0  ;;  %8382 = vsinq.f32 %v1973_v47  ;;  %v11758_v26 = vpop.eup %8376 }
 0x2e1   : > { %16806 = vst [vmem:[#allocation147_spill] sm:$0xff] %v16805_v34  ;;  %v11755_v25 = vsel %vm11742_vm14, %v10964_v41, %v1867_v62  ;;  %vm16203_vm0 = vcmp.lt.s32.totalorder %v11166_v60, 0  ;;  %v5298_v36 = vand.u32 31, %v5296_v20  ;;  %16809 = vst [vmem:[#allocation148_spill] sm:$0xff] %v11758_v26  ;;  %v11764_v4 = vor.u32 4788187, %v5156_v55 }
 0x2e2   : > { %v11762_v31 = vsel %vm16203_vm0, %v5265_v3, %v5264_v54  ;;  %v431_v47 = vmul.f32 %v16538_v0, %v178_v27  ;;  %v7678_v10 = vadd.s32 4294967294, %v2159_v14  ;;  %v11769_v58 = vsub.s32 %v11680_v23, %v2051_v44 }
 0x2e3   : > { %vm16810_vm15 = vcmp.lt.s32.totalorder %v11652_v16, 2  ;;  %v5299_v21 = vsub.s32 32, %v5298_v36  ;;  %vm5444_vm12 = vc.u32 %v11728_v61, %v11721_v18  ;;  %v5445_v54 = vadd.s32 1, %v11722_v22 }
 0x2e4   : > { %v5426_v42 = vsel %vm16810_vm15, %v5423_v2, %v5425_v37  ;;  %v5291_v49 = vand.u32 8388607, %v16196_v46  ;;  %v11778_v19 = vshrl.u32 %v5296_v20, 5  ;;  %v5301_v48 = vshll.u32 %v16574_v12, %v5298_v36 }
 0x2e5   : > { %v5302_v62 = vshrl.u32 %v16569_v13, %v5299_v21  ;;  %v5304_v23 = vshll.u32 %v16569_v13, %v5298_v36  ;;  %v5307_v16 = vshll.u32 %v16570_v6, %v5298_v36  ;;  %v5305_v3 = vshrl.u32 %v16570_v6, %v5299_v21  ;;  %v11788_v17 = vpop.eup %8378 }
 0x2e6   : > { %v5308_v43 = vshrl.u32 %v16571_v15, %v5299_v21  ;;  %v5310_v55 = vshll.u32 %v16571_v15, %v5298_v36  ;;  %v5311_v40 = vshrl.u32 %v16572_v9, %v5299_v21  ;;  %16811 = vst [vmem:[#allocation149_spill] sm:$0xff] %v11788_v17  ;;  %vm7679_vm10 = vcmp.lt.s32.totalorder %v7678_v10, 0 }
 0x2e7   : > { %v5303_v14 = vor.u32 %v5302_v62, %v5301_v48  ;;  %v5313_v44 = vshll.u32 %v16572_v9, %v5298_v36  ;;  %v5314_v27 = vshrl.u32 %v16573_v8, %v5299_v21  ;;  %v5446_v2 = vsel %vm5444_vm12, %v5445_v54, %v11722_v22  ;;  %v11796_v52 = vpop.eup %8380  ;;  %v173_v36 = vpop.permute.xlu0 %172 }
 0x2e8   : > { %v5306_v37 = vor.u32 %v5305_v3, %v5304_v23  ;;  %v5309_v20 = vor.u32 %v5308_v43, %v5307_v16  ;;  %v5312_v46 = vor.u32 %v5311_v40, %v5310_v55  ;;  %16812 = vst [vmem:[#allocation150_spill] sm:$0xff] %v11796_v52  ;;  %v5442_v29 = vmul.u32 %v11712_v50, %v5426_v42 }
 0x2e9   : > { %v5292_v56 = vor.u32 8388608, %v5291_v49  ;;  %v5315_v33 = vor.u32 %v5314_v27, %v5313_v44  ;;  %v11800_v48 = vadd.f32 %v16537_v1, %v431_v47  ;;  %v11802_v62 = vsel %vm7679_vm10, 0, %v7678_v10 }
 0x2ea   : > { %v2054_v34 = vsub.s32 0, %v11769_v58  ;;  %vm5316_vm15 = vcmp.lt.s32.totalorder %v11778_v19, 1  ;;  %vm5319_vm12 = vcmp.lt.s32.totalorder %v11778_v19, 4  ;;  %v11807_v22 = vpop.eup %8382  ;;  %v11809_v54 = vadd.s32 %v5446_v2, %v5442_v29 }
 0x2eb   : > { %16813 = vst [vmem:[#allocation151_spill] sm:$0xff] %v11800_v48  ;;  %16814 = vst [vmem:[#allocation152_spill] sm:$0xff] %v11807_v22  ;;  %vm16204_vm0 = vcmp.lt.s32.totalorder %v11778_v19, 3  ;;  %v5324_v50 = vsel %vm5316_vm15, %v5303_v14, %v5306_v37  ;;  %v5325_v47 = vsel %vm5319_vm12, %v5312_v46, 920167782  ;;  %vm16206_vm10 = vcmp.lt.s32.totalorder %v11778_v19, 2 }
 0x2ec   : > { %v5326_v10 = vsel %vm16204_vm0, %v5309_v20, %v5325_v47  ;;  %v5328_v42 = vsel %vm5316_vm15, %v5306_v37, %v5309_v20  ;;  %v430_v49 = vmul.f32 %v16538_v0, %v173_v36  ;;  %v5329_v23 = vsel %vm5319_vm12, %v5315_v33, 1326507024 }
 0x2ed   : > { %v5327_v29 = vsel %vm16206_vm10, %v5324_v50, %v5326_v10  ;;  %v5332_v16 = vshll.u32 %v5292_v56, 8  ;;  %v2300_v3 = vand.u32 2139095040, %v11800_v48  ;;  %v5158_v43 = vand.u32 2147483647, %v11764_v4 }
 0x2ee   : > { %v2167_v55 = vsub.s32 4294967266, %v11802_v62  ;;  %v7673_v40 = vmin.u32 %v2054_v34, %v11769_v58  ;;  %v5330_v44 = vsel %vm16204_vm0, %v5312_v46, %v5329_v23  ;;  %v5448_v27 = vadd.s32 536870912, %v11809_v54 }
 0x2ef   : > { %v5331_v2 = vsel %vm16206_vm10, %v5328_v42, %v5330_v44  ;;  %v11835_v36 = vmul.u32.u64.low %v5332_v16, %v5327_v29  ;;  %v11836_v50 = vmul.u32.u64.high %v5332_v16, %v5327_v29, %v11835_v36  ;;  %v5321_v33 = vsel %vm5319_vm12, %v5309_v20, 2102212464 }
 0x2f0   : > { %v11841_v56 = vmul.u32.u64.low %v5332_v16, %v5331_v2  ;;  %v11842_v4 = vmul.u32.u64.high %v5332_v16, %v5331_v2, %v11841_v56  ;;  %v11845_v34 = vadd.f32 %v16537_v1, %v430_v49  ;;  %8384 = vcosq.f32 %v11755_v25 }
 0x2f1   : > { %v16816_v46 = vand.u32 2147483647, %v11166_v60  ;;  %v16817_v47 = vmov 0  ;;  %v5300_v10 = vshrl.u32 %v16574_v12, %v5299_v21  ;;  %v2301_v42 = vshrl.u32 %v2300_v3, 23  ;;  %v16823_v3 = vld [vmem:[#allocation48_spill] sm:$0xff] }
 0x2f2   : > { %16815 = vst [vmem:[#allocation153_spill] sm:$0xff] %v11845_v34  ;;  %v16820_v29 = vcvt.s32.f32 %v11736_v7  ;;  %v2168_v23 = vadd.s32 127, %v2167_v55  ;;  %v2056_v44 = vclz %v7673_v40  ;;  %v11861_v2 = vshrl.u32 %v5448_v27, 30 }
 0x2f3   : > { %vm11850_vm0 = vcmp.le.f32.partialorder %v16816_v46, 0.7853982  ;;  %v5320_v56 = vsel %vm5316_vm15, %v5300_v10, %v5303_v14  ;;  %vm16822_vm12 = vcmp.lt.s32.totalorder %v11778_v19, 3  ;;  %v7684_v21 = vadd.s32 4294967169, %v2301_v42 }
 0x2f4   : > { %v16818_v47 = vsel %vm11850_vm0, 4294967295, %v16817_v47  ;;  %v5269_v20 = vsel %vm11850_vm0, %v11166_v60, %v11762_v31  ;;  %v5161_v49 = vmul.f32 %v16820_v29, %v5158_v43  ;;  %16821 = vst [vmem:[#allocation155_spill] sm:$0xff] %v11861_v2  ;;  %v5322_v46 = vsel %vm16822_vm12, %v5306_v37, %v5321_v33 }
 0x2f5   : > { %16819 = vst [vmem:[#allocation154_spill] sm:$0xff] %v16818_v47  ;;  %v11869_v52 = vor.u32 %v10975_v51, %v16823_v3  ;;  %8386 = vsinq.f32 %v11755_v25  ;;  %v5342_v7 = vadd.s32 1, %v11836_v50  ;;  %v2197_v31 = vand.u32 2139095040, %v11845_v34 }
 0x2f6   : > { %8388 = vcosq.f32 %v5269_v20  ;;  %vm5341_vm15 = vc.u32 %v11842_v4, %v11835_v36  ;;  %v2307_v14 = vadd.s32 1, %v7684_v21  ;;  %v5162_v43 = vxor.u32 2147483648, %v5161_v49 }
 0x2f7   : > { %16824 = vst [vmem:[#allocation48_spill] sm:$0xff] %v11869_v52  ;;  %v2163_v37 = vsub.s32 32, %v11802_v62  ;;  %v2169_v55 = vshll.u32 %v2168_v23, 23  ;;  %vm16825_vm12 = vcmp.lt.s32.totalorder %v11778_v19, 2  ;;  %v2147_v25 = vadd.s32 %v11495_v35, %v11508_v45 }
 0x2f8   : > { %v5323_v51 = vsel %vm16825_vm12, %v5320_v56, %v5322_v46  ;;  %v7674_v40 = vadd.s32 4294967294, %v2056_v44  ;;  %v5450_v27 = vshll.u32 %v11861_v2, 30  ;;  %vm2308_vm0 = vcmp.gt.s32.totalorder %v2307_v14, 0 }
 0x2f9   : > { %v5343_v33 = vsel %vm5341_vm15, %v5342_v7, %v11836_v50  ;;  %v16208_v10 = vand.u32 2147483647, %v11800_v48  ;;  %v2309_v42 = vsel %vm2308_vm0, %v2307_v14, 0  ;;  %v2198_v29 = vshrl.u32 %v2197_v31, 23 }
 0x2fa   : > { %8390 = vsinq.f32 %v5269_v20  ;;  %v16826_v21 = vand.u32 2147483647, %v11213_v11  ;;  %v16827_v23 = vmov 0  ;;  %v5339_v19 = vmul.u32 %v5332_v16, %v5323_v51  ;;  %v11897_v46 = vpop.eup %8384 }
 0x2fb   : > { %v2311_v56 = vand.u32 31, %v2309_v42  ;;  %vm16830_vm12 = vcmp.lt.s32.totalorder %v11213_v11, 0  ;;  %v2164_v45 = vshll.u32 %v11643_v63, %v11802_v62  ;;  %v2165_v50 = vshrl.u32 %v2147_v25, %v2163_v37  ;;  %16831 = vst [vmem:[#allocation157_spill] sm:$0xff] %v11897_v46 }
 0x2fc   : > { %vm11887_vm10 = vcmp.le.f32.partialorder %v16826_v21, 0.7853982  ;;  %v5163_v35 = vsel %vm16830_vm12, %v5162_v43, %v5161_v49  ;;  %v11895_v44 = vor.u32 4788187, %v2169_v55  ;;  %vm7675_vm0 = vcmp.lt.s32.totalorder %v7674_v40, 0 }
 0x2fd   : > { %v16828_v23 = vsel %vm11887_vm10, 4294967295, %v16827_v23  ;;  %v11900_v20 = vsub.s32 %v11809_v54, %v5450_v27  ;;  %v11902_v3 = vadd.s32 %v5343_v33, %v5339_v19  ;;  %v2312_v7 = vsub.s32 32, %v2311_v56 }
 0x2fe   : > { %16829 = vst [vmem:[#allocation156_spill] sm:$0xff] %v16828_v23  ;;  %v2304_v16 = vand.u32 8388607, %v16208_v10  ;;  %v11906_v31 = vshrl.u32 %v2309_v42, 5  ;;  %v2314_v49 = vshll.u32 %v16574_v12, %v2311_v56  ;;  %v7680_v63 = vadd.s32 4294967169, %v2198_v29 }
 0x2ff   : > { %v2315_v62 = vshrl.u32 %v16569_v13, %v2312_v7  ;;  %v2317_v14 = vshll.u32 %v16569_v13, %v2311_v56  ;;  %v2318_v43 = vshrl.u32 %v16570_v6, %v2312_v7  ;;  %v2320_v54 = vshll.u32 %v16570_v6, %v2311_v56  ;;  %v11913_v37 = vpop.eup %8386 }
 0x300   : > { %16832 = vst [vmem:[#allocation158_spill] sm:$0xff] %v11913_v37  ;;  %v2321_v55 = vshrl.u32 %v16571_v15, %v2312_v7  ;;  %v2323_v51 = vshll.u32 %v16571_v15, %v2311_v56  ;;  %v2324_v25 = vshrl.u32 %v16572_v9, %v2312_v7  ;;  %v2327_v27 = vshrl.u32 %v16573_v8, %v2312_v7  ;;  %v11919_v33 = vpop.eup %8388 }
 0x301   : > { %16833 = vst [vmem:[#allocation159_spill] sm:$0xff] %v11919_v33  ;;  %v5345_v42 = vadd.s32 536870912, %v11902_v3  ;;  %v2316_v29 = vor.u32 %v2315_v62, %v2314_v49  ;;  %v2319_v21 = vor.u32 %v2318_v43, %v2317_v14  ;;  %v2326_v19 = vshll.u32 %v16572_v9, %v2311_v56  ;;  %v338_v62 = vpop.permute.xlu1 %337 }
 0x302   : > { %v5166_v10 = vsel %vm11887_vm10, %v11213_v11, %v5163_v35  ;;  %v2305_v2 = vor.u32 8388608, %v2304_v16  ;;  %v2322_v47 = vor.u32 %v2321_v55, %v2320_v54  ;;  %v2325_v60 = vor.u32 %v2324_v25, %v2323_v51 }
 0x303   : > { %v2166_v22 = vor.u32 %v2165_v50, %v2164_v45  ;;  %v5453_v46 = vsub.s32 0, %v11900_v20  ;;  %v2328_v37 = vor.u32 %v2327_v27, %v2326_v19  ;;  %vm16219_vm15 = vcmp.lt.s32.totalorder %v11906_v31, 1 }
 0x304   : > { %v2171_v33 = vand.u32 2147483647, %v11895_v44  ;;  %v11930_v49 = vsel %vm7675_vm0, 0, %v7674_v40  ;;  %vm2332_vm12 = vcmp.lt.s32.totalorder %v11906_v31, 4  ;;  %v2337_v56 = vsel %vm16219_vm15, %v2316_v29, %v2319_v21  ;;  %v11935_v35 = vpop.eup %8390  ;;  %v8298_v40 = vld [vmem:[%s15928_s2 + $0x30] sm:$0xff]  }
 0x305   : > { %16834 = vst [vmem:[#allocation160_spill] sm:$0xff] %v11935_v35  ;;  %v11937_v16 = vshrl.u32 %v5345_v42, 30  ;;  %vm2331_vm10 = vcmp.lt.s32.totalorder %v11906_v31, 3  ;;  %v2338_v45 = vsel %vm2332_vm12, %v2325_v60, 920167782  ;;  %v2204_v50 = vadd.s32 1, %v7680_v63  ;;  %7932 = vmatprep.subr.bf16.mxu0 %v8298_v40  ;;  %8006 = vmatprep.subr.bf16.mxu1 %v8298_v40 }
 0x306   : > { %vm2330_vm0 = vcmp.lt.s32.totalorder %v11906_v31, 2  ;;  %v2339_v44 = vsel %vm2331_vm10, %v2322_v47, %v2338_v45  ;;  %v2341_v14 = vsel %vm16219_vm15, %v2319_v21, %v2322_v47  ;;  %v11950_v43 = vshll.u32 %v2305_v2, 8  ;;  %7933 = vmatpush3.bf16.xpose.msra.mxu0 %v8298_v40  ;;  %8014 = vmatpush3.bf16.xpose.msra.mxu1 %v8298_v40 }
 0x307   : > { %16835 = vst [vmem:[#allocation161_spill] sm:$0xff] %v11937_v16  ;;  %v7805_v54 = vmin.u32 %v5453_v46, %v11900_v20  ;;  %v2340_v63 = vsel %vm2330_vm0, %v2337_v56, %v2339_v44  ;;  %v2342_v55 = vsel %vm2332_vm12, %v2328_v37, 1326507024  ;;  %v16223_v51 = vand.u32 2147483647, %v11845_v34 }
 0x308   : > { %v2343_v25 = vsel %vm2331_vm10, %v2325_v60, %v2342_v55  ;;  %v11961_v27 = vmul.u32.u64.low %v11950_v43, %v2340_v63  ;;  %v11962_v42 = vmul.u32.u64.high %v11950_v43, %v2340_v63, %v11961_v27  ;;  %v463_v2 = vmul.f32 %v16538_v0, %v338_v62 }
 0x309   : > { %v2060_v46 = vsub.s32 32, %v11930_v49  ;;  %v5347_v37 = vshll.u32 %v11937_v16, 30  ;;  %v2344_v19 = vsel %vm2330_vm0, %v2341_v14, %v2343_v25  ;;  %vm2205_vm15 = vcmp.gt.s32.totalorder %v2204_v50, 0  ;;  %v16836_v16 = vld [vmem:[#allocation49_spill] sm:$0xff] }
 0x30a   : > { %v2334_v60 = vsel %vm2332_vm12, %v2322_v47, 2102212464  ;;  %v11973_v56 = vmul.u32.u64.low %v11950_v43, %v2344_v19  ;;  %v11974_v45 = vmul.u32.u64.high %v11950_v43, %v2344_v19, %v11973_v56  ;;  %v2206_v44 = vsel %vm2205_vm15, %v2204_v50, 0 }
 0x30b   : > { %v5455_v63 = vclz %v7805_v54  ;;  %v2313_v62 = vshrl.u32 %v16574_v12, %v2312_v7  ;;  %v2201_v40 = vand.u32 8388607, %v16223_v51  ;;  %v2208_v55 = vand.u32 31, %v2206_v44 }
 0x30c   : > { %8392 = vcosq.f32 %v5166_v10  ;;  %v2173_v14 = vcvt.s32.f32 %v2166_v22  ;;  %v2044_v47 = vadd.s32 %v11599_v57, %v11610_v59  ;;  %v11984_v25 = vsub.s32 %v11902_v3, %v5347_v37 }
 0x30d   : > { %vm16837_vm15 = vcmp.lt.s32.totalorder %v11906_v31, 1  ;;  %v2335_v7 = vsel %vm2331_vm10, %v2319_v21, %v2334_v60  ;;  %v2209_v54 = vsub.s32 32, %v2208_v55  ;;  %8394 = vsinq.f32 %v5166_v10 }
 0x30e   : > { %v2333_v50 = vsel %vm16837_vm15, %v2313_v62, %v2316_v29  ;;  %v11990_v19 = vmul.f32 %v2173_v14, %v2171_v33  ;;  %v11992_v56 = vshrl.u32 %v2044_v47, %v2060_v46  ;;  %v2064_v22 = vsub.s32 4294967266, %v11930_v49 }
 0x30f   : > { %v7806_v35 = vadd.s32 4294967294, %v5455_v63  ;;  %v2355_v57 = vadd.s32 1, %v11962_v42  ;;  %v2202_v59 = vor.u32 8388608, %v2201_v40  ;;  %v11997_v3 = vadd.f32 %v16537_v1, %v463_v2  ;;  %v333_v40 = vpop.permute.xlu0 %332 }
 0x310   : > { %v2336_v29 = vsel %vm2330_vm0, %v2333_v50, %v2335_v7  ;;  %vm2354_vm10 = vc.u32 %v11974_v45, %v11961_v27  ;;  %v2212_v10 = vshrl.u32 %v16569_v13, %v2209_v54  ;;  %v2215_v33 = vshrl.u32 %v16570_v6, %v2209_v54 }
 0x311   : > { %16838 = vst [vmem:[#allocation49_spill] sm:$0xff] %v11997_v3  ;;  %v5350_v21 = vsub.s32 0, %v11984_v25  ;;  %v2211_v46 = vshll.u32 %v16574_v12, %v2208_v55  ;;  %v2214_v37 = vshll.u32 %v16569_v13, %v2208_v55  ;;  %v2218_v60 = vshrl.u32 %v16571_v15, %v2209_v54 }
 0x312   : > { %v12009_v2 = vshrl.u32 %v2206_v44, 5  ;;  %v2217_v31 = vshll.u32 %v16570_v6, %v2208_v55  ;;  %v2220_v63 = vshll.u32 %v16571_v15, %v2208_v55  ;;  %v2221_v62 = vshrl.u32 %v16572_v9, %v2209_v54 }
 0x313   : > { %v2352_v14 = vmul.u32 %v11950_v43, %v2336_v29  ;;  %v2356_v47 = vsel %vm2354_vm10, %v2355_v57, %v11962_v42  ;;  %v2213_v50 = vor.u32 %v2212_v10, %v2211_v46  ;;  %v2216_v7 = vor.u32 %v2215_v33, %v2214_v37 }
 0x314   : > { %v2219_v51 = vor.u32 %v2218_v60, %v2217_v31  ;;  %v2222_v23 = vor.u32 %v2221_v62, %v2220_v63  ;;  %v2223_v11 = vshll.u32 %v16572_v9, %v2208_v55  ;;  %v2224_v44 = vshrl.u32 %v16573_v8, %v2209_v54 }
 0x315   : > { %v2065_v41 = vadd.s32 127, %v2064_v22  ;;  %v7801_v26 = vmin.u32 %v5350_v21, %v11984_v25  ;;  %v462_v17 = vmul.f32 %v16538_v0, %v333_v40  ;;  %v12022_v5 = vadd.s32 %v2356_v47, %v2352_v14 }
 0x316   : > { %v12020_v53 = vpop.eup %8392  ;;  %v2225_v43 = vor.u32 %v2224_v44, %v2223_v11  ;;  %vm2226_vm0 = vcmp.lt.s32.totalorder %v12009_v2, 1  ;;  %vm2229_vm15 = vcmp.lt.s32.totalorder %v12009_v2, 4  ;;  %vm2228_vm14 = vcmp.lt.s32.totalorder %v12009_v2, 3 }
 0x317   : > { %16839 = vst [vmem:[#allocation162_spill] sm:$0xff] %v12020_v53  ;;  %v2234_v42 = vsel %vm2226_vm0, %v2213_v50, %v2216_v7  ;;  %v2235_v55 = vsel %vm2229_vm15, %v2222_v23, 920167782  ;;  %v5596_v22 = vand.u32 2139095040, %v11997_v3  ;;  %v12033_v57 = vpop.eup %8394  ;;  %vm2227_vm12 = vcmp.lt.s32.totalorder %v12009_v2, 2 }
 0x318   : > { %16840 = vst [vmem:[#allocation163_spill] sm:$0xff] %v12033_v57  ;;  %v2236_v11 = vsel %vm2228_vm14, %v2219_v51, %v2235_v55  ;;  %v2238_v29 = vsel %vm2226_vm0, %v2216_v7, %v2219_v51  ;;  %v2242_v10 = vshll.u32 %v2202_v59, 8  ;;  %vm16841_vm10 = vcmp.lt.s32.totalorder %v7806_v35, 0 }
 0x319   : > { %v12041_v33 = vsel %vm16841_vm10, 0, %v7806_v35  ;;  %v5352_v21 = vclz %v7801_v26  ;;  %v2237_v46 = vsel %vm2227_vm12, %v2234_v42, %v2236_v11  ;;  %v2239_v37 = vsel %vm2229_vm15, %v2225_v43, 1326507024 }
 0x31a   : > { %v2358_v60 = vadd.s32 536870912, %v12022_v5  ;;  %v2240_v31 = vsel %vm2228_vm14, %v2222_v23, %v2239_v37  ;;  %v12050_v63 = vmul.u32.u64.low %v2242_v10, %v2237_v46  ;;  %v12051_v62 = vmul.u32.u64.high %v2242_v10, %v2237_v46, %v12050_v63 }
 0x31b   : > { %v2066_v59 = vshll.u32 %v2065_v41, 23  ;;  %v2231_v35 = vsel %vm2229_vm15, %v2219_v51, 2102212464  ;;  %v2241_v26 = vsel %vm2227_vm12, %v2238_v29, %v2240_v31  ;;  %v5597_v40 = vshrl.u32 %v5596_v22, 23 }
 0x31c   : > { %v2175_v14 = vxor.u32 2147483648, %v11990_v19  ;;  %v2210_v47 = vshrl.u32 %v16574_v12, %v2209_v54  ;;  %v12060_v44 = vmul.u32.u64.low %v2242_v10, %v2241_v26  ;;  %v12061_v43 = vmul.u32.u64.high %v2242_v10, %v2241_v26, %v12060_v44 }
 0x31d   : > { %v2061_v23 = vshll.u32 %v11769_v58, %v11930_v49  ;;  %v5463_v42 = vsub.s32 4294967266, %v12041_v33  ;;  %v7802_v41 = vadd.s32 4294967294, %v5352_v21  ;;  %v7812_v55 = vadd.s32 4294967169, %v5597_v40 }
 0x31e   : > { %v12066_v11 = vshrl.u32 %v2358_v60, 30  ;;  %v2230_v51 = vsel %vm2226_vm0, %v2210_v47, %v2213_v50  ;;  %v2232_v22 = vsel %vm2228_vm14, %v2216_v7, %v2231_v35  ;;  %v12073_v54 = vadd.f32 %v16537_v1, %v462_v17 }
 0x31f   : > { %v12076_v29 = vor.u32 %v11992_v56, %v2061_v23  ;;  %v12078_v46 = vor.u32 4788187, %v2066_v59  ;;  %v2252_v58 = vadd.s32 1, %v12051_v62  ;;  %v5603_v49 = vadd.s32 1, %v7812_v55 }
 0x320   : > { %16842 = vst [vmem:[#allocation164_spill] sm:$0xff] %v12066_v11  ;;  %16843 = vst [vmem:[#allocation165_spill] sm:$0xff] %v12073_v54  ;;  %vm16844_vm15 = vcmp.lt.s32.totalorder %v11331_v38, 0  ;;  %v5443_v50 = vadd.s32 %v11721_v18, %v11728_v61  ;;  %v5459_v7 = vsub.s32 32, %v12041_v33  ;;  %vm2251_vm14 = vc.u32 %v12061_v43, %v12050_v63 }
 0x321   : > { %v12084_v21 = vsel %vm16844_vm15, %v2175_v14, %v11990_v19  ;;  %v5464_v17 = vadd.s32 127, %v5463_v42  ;;  %v2233_v56 = vsel %vm2227_vm12, %v2230_v51, %v2232_v22  ;;  %v16233_v37 = vand.u32 2147483647, %v11997_v3 }
 0x322   : > { %vm5604_vm0 = vcmp.gt.s32.totalorder %v5603_v49, 0  ;;  %vm7803_vm10 = vcmp.lt.s32.totalorder %v7802_v41, 0  ;;  %v2360_v60 = vshll.u32 %v12066_v11, 30  ;;  %v5493_v31 = vand.u32 2139095040, %v12073_v54 }
 0x323   : > { %v5605_v19 = vsel %vm5604_vm0, %v5603_v49, 0  ;;  %v2070_v61 = vcvt.s32.f32 %v12076_v29  ;;  %v2253_v59 = vsel %vm2251_vm14, %v2252_v58, %v12051_v62  ;;  %v5460_v2 = vshll.u32 %v11900_v20, %v12041_v33 }
 0x324   : > { %v5607_v35 = vand.u32 31, %v5605_v19  ;;  %v5461_v26 = vshrl.u32 %v5443_v50, %v5459_v7  ;;  %v12103_v40 = vadd.s32 %v11835_v36, %v11842_v4  ;;  %v2249_v14 = vmul.u32 %v2242_v10, %v2233_v56 }
 0x325   : > { %v5465_v47 = vshll.u32 %v5464_v17, 23  ;;  %v12105_v44 = vsel %vm7803_vm10, 0, %v7802_v41  ;;  %v5600_v23 = vand.u32 8388607, %v16233_v37  ;;  %v12110_v55 = vsub.s32 %v12022_v5, %v2360_v60 }
 0x326   : > { %v5608_v42 = vsub.s32 32, %v5607_v35  ;;  %v12112_v62 = vadd.s32 %v2253_v59, %v2249_v14  ;;  %v5610_v20 = vshll.u32 %v16574_v12, %v5607_v35  ;;  %v5494_v33 = vshrl.u32 %v5493_v31, 23 }
 0x327   : > { %v5613_v36 = vshll.u32 %v16569_v13, %v5607_v35  ;;  %v12119_v41 = vshrl.u32 %v5605_v19, 5  ;;  %v5616_v22 = vshll.u32 %v16570_v6, %v5607_v35  ;;  %v5619_v5 = vshll.u32 %v16571_v15, %v5607_v35 }
 0x328   : > { %v5611_v51 = vshrl.u32 %v16569_v13, %v5608_v42  ;;  %v5614_v4 = vshrl.u32 %v16570_v6, %v5608_v42  ;;  %v5617_v10 = vshrl.u32 %v16571_v15, %v5608_v42  ;;  %v5620_v29 = vshrl.u32 %v16572_v9, %v5608_v42 }
 0x329   : > { %v12124_v58 = vor.u32 %v5461_v26, %v5460_v2  ;;  %v12126_v49 = vor.u32 4788187, %v5465_v47  ;;  %v2363_v17 = vsub.s32 0, %v12110_v55  ;;  %v2255_v56 = vadd.s32 536870912, %v12112_v62 }
 0x32a   : > { %v5612_v50 = vor.u32 %v5611_v51, %v5610_v20  ;;  %v5615_v7 = vor.u32 %v5614_v4, %v5613_v36  ;;  %v5618_v60 = vor.u32 %v5617_v10, %v5616_v22  ;;  %v5621_v31 = vor.u32 %v5620_v29, %v5619_v5 }
 0x32b   : > { %v5356_v19 = vsub.s32 32, %v12105_v44  ;;  %v5601_v59 = vor.u32 8388608, %v5600_v23  ;;  %v5622_v14 = vshll.u32 %v16572_v9, %v5607_v35  ;;  %v5623_v37 = vshrl.u32 %v16573_v8, %v5608_v42 }
 0x32c   : > { %v16845_v2 = vand.u32 2147483647, %v11331_v38  ;;  %v16846_v26 = vmov 0  ;;  %v5360_v47 = vsub.s32 4294967266, %v12105_v44  ;;  %vm5625_vm15 = vcmp.lt.s32.totalorder %v12119_v41, 1 }
 0x32d   : > { %vm5628_vm14 = vcmp.lt.s32.totalorder %v12119_v41, 4  ;;  %v7808_v20 = vadd.s32 4294967169, %v5494_v33  ;;  %v5624_v51 = vor.u32 %v5623_v37, %v5622_v14  ;;  %vm5627_vm0 = vcmp.lt.s32.totalorder %v12119_v41, 3 }
 0x32e   : > { %vm12135_vm12 = vcmp.le.f32.partialorder %v16845_v2, 0.7853982  ;;  %v5633_v35 = vsel %vm5625_vm15, %v5612_v50, %v5615_v7  ;;  %v5634_v23 = vsel %vm5628_vm14, %v5621_v31, 920167782  ;;  %v7685_v36 = vmin.u32 %v2363_v17, %v12110_v55 }
 0x32f   : > { %v16847_v26 = vsel %vm12135_vm12, 4294967295, %v16846_v26  ;;  %v12146_v4 = vshrl.u32 %v2255_v56, 30  ;;  %vm5626_vm10 = vcmp.lt.s32.totalorder %v12119_v41, 2  ;;  %v5635_v10 = vsel %vm5627_vm0, %v5618_v60, %v5634_v23 }
 0x330   : > { %16848 = vst [vmem:[#allocation166_spill] sm:$0xff] %v16847_v26  ;;  %v5636_v22 = vsel %vm5626_vm10, %v5633_v35, %v5635_v10  ;;  %v5637_v37 = vsel %vm5625_vm15, %v5615_v7, %v5618_v60  ;;  %v5638_v33 = vsel %vm5628_vm14, %v5624_v51, 1326507024  ;;  %v5641_v5 = vshll.u32 %v5601_v59, 8 }
 0x331   : > { %16849 = vst [vmem:[#allocation167_spill] sm:$0xff] %v12146_v4  ;;  %v5361_v29 = vadd.s32 127, %v5360_v47  ;;  %v5630_v14 = vsel %vm5628_vm14, %v5618_v60, 2102212464  ;;  %v5639_v17 = vsel %vm5627_vm0, %v5621_v31, %v5638_v33  ;;  %v5500_v35 = vadd.s32 1, %v7808_v20 }
 0x332   : > { %v5640_v2 = vsel %vm5626_vm10, %v5637_v37, %v5639_v17  ;;  %v12160_v18 = vmul.u32.u64.low %v5641_v5, %v5636_v22  ;;  %v12161_v23 = vmul.u32.u64.high %v5641_v5, %v5636_v22, %v12160_v18  ;;  %v2257_v10 = vshll.u32 %v12146_v4, 30  ;;  %v188_v37 = vpop.permute.xlu1 %187 }
 0x333   : > { %v5609_v51 = vshrl.u32 %v16574_v12, %v5608_v42  ;;  %v12166_v59 = vmul.u32.u64.low %v5641_v5, %v5640_v2  ;;  %v12167_v47 = vmul.u32.u64.high %v5641_v5, %v5640_v2, %v12166_v59  ;;  %v16850_v60 = vand.u32 2147483647, %v12078_v46 }
 0x334   : > { %v5467_v33 = vand.u32 2147483647, %v12126_v49  ;;  %v2365_v56 = vclz %v7685_v36  ;;  %vm5501_vm14 = vcmp.gt.s32.totalorder %v5500_v35, 0  ;;  %v5358_v22 = vshrl.u32 %v12103_v40, %v5356_v19 }
 0x335   : > { %v12171_v31 = vmul.f32 %v2070_v61, %v16850_v60  ;;  %v5629_v20 = vsel %vm5625_vm15, %v5609_v51, %v5612_v50  ;;  %v5631_v42 = vsel %vm5627_vm0, %v5615_v7, %v5630_v14  ;;  %v5502_v17 = vsel %vm5501_vm14, %v5500_v35, 0 }
 0x336   : > { %v12183_v46 = vsel %vm12135_vm12, %v11331_v38, %v12084_v21  ;;  %v5469_v61 = vcvt.s32.f32 %v12124_v58  ;;  %v5362_v49 = vshll.u32 %v5361_v29, 23  ;;  %v16851_v36 = vand.u32 2147483647, %v12073_v54 }
 0x337   : > { %v5357_v40 = vshll.u32 %v11984_v25, %v12105_v44  ;;  %v12191_v50 = vsub.s32 %v12112_v62, %v2257_v10  ;;  %v5651_v7 = vadd.s32 1, %v12161_v23  ;;  %v433_v19 = vmul.f32 %v16538_v0, %v188_v37 }
 0x338   : > { %v5497_v2 = vand.u32 8388607, %v16851_v36  ;;  %v12195_v14 = vadd.s32 4294967294, %v2365_v56  ;;  %v5632_v21 = vsel %vm5626_vm10, %v5629_v20, %v5631_v42  ;;  %vm5650_vm15 = vc.u32 %v12167_v47, %v12160_v18 }
 0x339   : > { %v5504_v58 = vand.u32 31, %v5502_v17  ;;  %8396 = vcosq.f32 %v12183_v46  ;;  %v2072_v25 = vxor.u32 2147483648, %v12171_v31  ;;  %v12203_v44 = vmul.f32 %v5469_v61, %v5467_v33 }
 0x33a   : > { %v12205_v62 = vor.u32 %v5358_v22, %v5357_v40  ;;  %v12207_v29 = vor.u32 4788187, %v5362_v49  ;;  %v5498_v35 = vor.u32 8388608, %v5497_v2  ;;  %v5503_v56 = vshrl.u32 %v5502_v17, 5 }
 0x33b   : > { %v5505_v10 = vsub.s32 32, %v5504_v58  ;;  %v2260_v41 = vsub.s32 0, %v12191_v50  ;;  %v5648_v51 = vmul.u32 %v5641_v5, %v5632_v21  ;;  %v5652_v59 = vsel %vm5650_vm15, %v5651_v7, %v12161_v23 }
 0x33c   : > { %v12212_v60 = vadd.f32 %v16537_v1, %v433_v19  ;;  %v5507_v33 = vshll.u32 %v16574_v12, %v5504_v58  ;;  %v5510_v22 = vshll.u32 %v16569_v13, %v5504_v58  ;;  %v5513_v42 = vshll.u32 %v16570_v6, %v5504_v58 }
 0x33d   : > { %v5508_v37 = vshrl.u32 %v16569_v13, %v5505_v10  ;;  %v5511_v20 = vshrl.u32 %v16570_v6, %v5505_v10  ;;  %v5514_v5 = vshrl.u32 %v16571_v15, %v5505_v10  ;;  %v5516_v23 = vshll.u32 %v16571_v15, %v5504_v58 }
 0x33e   : > { %16852 = vst [vmem:[#allocation168_spill] sm:$0xff] %v12212_v60  ;;  %v5517_v17 = vshrl.u32 %v16572_v9, %v5505_v10  ;;  %v12224_v61 = vadd.s32 %v5652_v59, %v5648_v51  ;;  %vm5522_vm14 = vcmp.lt.s32.totalorder %v5503_v56, 1  ;;  %v5519_v7 = vshll.u32 %v16572_v9, %v5504_v58 }
 0x33f   : > { %v5509_v49 = vor.u32 %v5508_v37, %v5507_v33  ;;  %v5512_v36 = vor.u32 %v5511_v20, %v5510_v22  ;;  %v5515_v2 = vor.u32 %v5514_v5, %v5513_v42  ;;  %v5520_v19 = vshrl.u32 %v16573_v8, %v5505_v10 }
 0x340   : > { %v5518_v40 = vor.u32 %v5517_v17, %v5516_v23  ;;  %v16853_v21 = vand.u32 2147483647, %v11393_v32  ;;  %v16854_v11 = vmov 0  ;;  %v7681_v4 = vmin.u32 %v2260_v41, %v12191_v50 }
 0x341   : > { %vm5524_vm10 = vcmp.lt.s32.totalorder %v5503_v56, 3  ;;  %vm5525_vm0 = vcmp.lt.s32.totalorder %v5503_v56, 4  ;;  %v5530_v51 = vsel %vm5522_vm14, %v5509_v49, %v5512_v36  ;;  %v5506_v59 = vshrl.u32 %v16574_v12, %v5505_v10 }
 0x342   : > { %vm12230_vm15 = vcmp.le.f32.partialorder %v16853_v21, 0.7853982  ;;  %v5521_v33 = vor.u32 %v5520_v19, %v5519_v7  ;;  %v5527_v37 = vsel %vm5525_vm0, %v5515_v2, 2102212464  ;;  %v5531_v22 = vsel %vm5525_vm0, %v5518_v40, 920167782 }
 0x343   : > { %v16855_v11 = vsel %vm12230_vm15, 4294967295, %v16854_v11  ;;  %vm5523_vm12 = vcmp.lt.s32.totalorder %v5503_v56, 2  ;;  %v5532_v58 = vsel %vm5524_vm10, %v5515_v2, %v5531_v22  ;;  %v5534_v20 = vsel %vm5522_vm14, %v5512_v36, %v5515_v2  ;;  %v12239_v5 = vpop.eup %8396 }
 0x344   : > { %16856 = vst [vmem:[#allocation169_spill] sm:$0xff] %v16855_v11  ;;  %v5538_v42 = vshll.u32 %v5498_v35, 8  ;;  %16857 = vst [vmem:[#allocation170_spill] sm:$0xff] %v12239_v5  ;;  %v5654_v23 = vadd.s32 536870912, %v12224_v61  ;;  %v5526_v41 = vsel %vm5522_vm14, %v5506_v59, %v5509_v49  ;;  %v5533_v17 = vsel %vm5523_vm12, %v5530_v51, %v5532_v58  ;;  %v183_v59 = vpop.permute.xlu0 %182 }
 0x345   : > { %v5535_v21 = vsel %vm5525_vm0, %v5521_v33, 1326507024  ;;  %v5528_v10 = vsel %vm5524_vm10, %v5512_v36, %v5527_v37  ;;  %vm16858_vm2 = vcmp.lt.s32.totalorder %v11393_v32, 0  ;;  %v5364_v2 = vand.u32 2147483647, %v12207_v29 }
 0x346   : > { %v5536_v7 = vsel %vm5524_vm10, %v5518_v40, %v5535_v21  ;;  %v12246_v19 = vmul.u32.u64.low %v5538_v42, %v5533_v17  ;;  %v12247_v26 = vmul.u32.u64.high %v5538_v42, %v5533_v17, %v12246_v19  ;;  %v2073_v35 = vsel %vm16858_vm2, %v2072_v25, %v12171_v31  ;;  %v16861_v25 = vld [vmem:[#allocation28_spill] sm:$0xff] }
 0x347   : > { %v2262_v22 = vclz %v7681_v4  ;;  %v5537_v49 = vsel %vm5523_vm12, %v5534_v20, %v5536_v7  ;;  %v5471_v51 = vxor.u32 2147483648, %v12203_v44  ;;  %v5366_v36 = vcvt.s32.f32 %v12205_v62 }
 0x348   : > { %v12257_v33 = vmul.u32.u64.low %v5538_v42, %v5537_v49  ;;  %v12258_v40 = vmul.u32.u64.high %v5538_v42, %v5537_v49, %v12257_v33  ;;  %vm16859_vm0 = vcmp.lt.s32.totalorder %v12195_v14, 0  ;;  %v12263_v58 = vshrl.u32 %v5654_v23, 30 }
 0x349   : > { %v2368_v37 = vsel %vm16859_vm0, 0, %v12195_v14  ;;  %v5529_v31 = vsel %vm5523_vm12, %v5526_v41, %v5528_v10  ;;  %v2506_v4 = vand.u32 2139095040, %v12212_v60  ;;  %vm16261_vm2 = vcmp.lt.s32.totalorder %v16861_v25, 4 }
 0x34a   : > { %16860 = vst [vmem:[#allocation171_spill] sm:$0xff] %v12263_v58  ;;  %8398 = vsinq.f32 %v12183_v46  ;;  %vm16241_vm10 = vcmp.lt.s32.totalorder %v11545_v24, 0  ;;  %v5548_v62 = vadd.s32 1, %v12247_v26  ;;  %v432_v29 = vmul.f32 %v16538_v0, %v183_v59 }
 0x34b   : > { %v2076_v14 = vsel %vm12230_vm15, %v11393_v32, %v2073_v35  ;;  %v5367_v20 = vmul.f32 %v5366_v36, %v5364_v2  ;;  %v7682_v23 = vadd.s32 4294967294, %v2262_v22  ;;  %v2507_v56 = vshrl.u32 %v2506_v4, 23 }
 0x34c   : > { %v2369_v41 = vsub.s32 32, %v2368_v37  ;;  %v2373_v17 = vsub.s32 4294967266, %v2368_v37  ;;  %v5545_v21 = vmul.u32 %v5538_v42, %v5529_v31  ;;  %vm5547_vm12 = vc.u32 %v12258_v40, %v12246_v19 }
 0x34d   : > { %v5472_v46 = vsel %vm16241_vm10, %v5471_v51, %v12203_v44  ;;  %v5656_v10 = vshll.u32 %v12263_v58, 30  ;;  %v5549_v7 = vsel %vm5547_vm12, %v5548_v62, %v12247_v26  ;;  %v7692_v49 = vadd.s32 4294967169, %v2507_v56 }
 0x34e   : > { %8400 = vcosq.f32 %v2076_v14  ;;  %v2353_v35 = vadd.s32 %v11961_v27, %v11974_v45  ;;  %v12284_v2 = vadd.s32 %v5549_v7, %v5545_v21  ;;  %v12287_v42 = vadd.f32 %v16537_v1, %v432_v29 }
 0x34f   : > { %8402 = vsinq.f32 %v2076_v14  ;;  %v16863_v22 = vand.u32 2147483647, %v11545_v24  ;;  %v16864_v59 = vmov 0  ;;  %vm7683_vm0 = vcmp.lt.s32.totalorder %v7682_v23, 0 }
 0x350   : > { %16862 = vst [vmem:[#allocation172_spill] sm:$0xff] %v12287_v42  ;;  %v2513_v44 = vadd.s32 1, %v7692_v49  ;;  %v5368_v27 = vxor.u32 2147483648, %v5367_v20  ;;  %v2371_v45 = vshrl.u32 %v2353_v35, %v2369_v41  ;;  %v2374_v51 = vadd.s32 127, %v2373_v17 }
 0x351   : > { %vm12291_vm14 = vcmp.le.f32.partialorder %v16863_v22, 0.7853982  ;;  %v2370_v36 = vshll.u32 %v12110_v55, %v2368_v37  ;;  %v12302_v33 = vsub.s32 %v12224_v61, %v5656_v10  ;;  %v16242_v31 = vand.u32 2147483647, %v12212_v60 }
 0x352   : > { %v16865_v59 = vsel %vm12291_vm14, 4294967295, %v16864_v59  ;;  %v12298_v26 = vsel %vm12291_vm14, %v11545_v24, %v5472_v46  ;;  %vm2514_vm12 = vcmp.gt.s32.totalorder %v2513_v44, 0  ;;  %v2265_v4 = vsel %vm7683_vm0, 0, %v7682_v23 }
 0x353   : > { %16866 = vst [vmem:[#allocation173_spill] sm:$0xff] %v16865_v59  ;;  %v5551_v62 = vadd.s32 536870912, %v12284_v2  ;;  %v2515_v29 = vsel %vm2514_vm12, %v2513_v44, 0  ;;  %v2403_v14 = vand.u32 2139095040, %v12287_v42  ;;  %v12310_v56 = vsel %vm16261_vm2, %v11869_v52, 920167782 }
 0x354   : > { %16867 = vst [vmem:[#allocation174_spill] sm:$0xff] %v12310_v56  ;;  %8404 = vcosq.f32 %v12298_v26  ;;  %vm16260_vm10 = vcmp.lt.s32.totalorder %v11655_v28, 0  ;;  %v2517_v55 = vand.u32 31, %v2515_v29  ;;  %v12314_v61 = vpop.eup %8398  ;;  %v12320_v23 = vor.u32 %v2371_v45, %v2370_v36 }
 0x355   : > { %16868 = vst [vmem:[#allocation175_spill] sm:$0xff] %v12314_v61  ;;  %v12318_v37 = vsel %vm16260_vm10, %v5368_v27, %v5367_v20  ;;  %v2375_v41 = vshll.u32 %v2374_v51, 23  ;;  %v2250_v17 = vadd.s32 %v12050_v63, %v12061_v43  ;;  %v2266_v21 = vsub.s32 32, %v2265_v4 }
 0x356   : > { %v2270_v46 = vsub.s32 4294967266, %v2265_v4  ;;  %v5659_v10 = vsub.s32 0, %v12302_v33  ;;  %v2518_v7 = vsub.s32 32, %v2517_v55  ;;  %v12325_v49 = vshrl.u32 %v5551_v62, 30 }
 0x357   : > { %v2510_v35 = vand.u32 8388607, %v16242_v31  ;;  %v2520_v22 = vshll.u32 %v16574_v12, %v2517_v55  ;;  %v2404_v20 = vshrl.u32 %v2403_v14, 23  ;;  %v2523_v27 = vshll.u32 %v16569_v13, %v2517_v55 }
 0x358   : > { %16869 = vst [vmem:[#allocation176_spill] sm:$0xff] %v12325_v49  ;;  %v2521_v44 = vshrl.u32 %v16569_v13, %v2518_v7  ;;  %v2524_v45 = vshrl.u32 %v16570_v6, %v2518_v7  ;;  %v2527_v63 = vshrl.u32 %v16571_v15, %v2518_v7  ;;  %v12334_v43 = vpop.eup %8400  ;;  %v12336_v51 = vshrl.u32 %v2515_v29, 5 }
 0x359   : > { %16870 = vst [vmem:[#allocation177_spill] sm:$0xff] %v12334_v43  ;;  %v2526_v36 = vshll.u32 %v16570_v6, %v2517_v55  ;;  %v2529_v62 = vshll.u32 %v16571_v15, %v2517_v55  ;;  %v2530_v31 = vshrl.u32 %v16572_v9, %v2518_v7  ;;  %v12341_v58 = vpop.eup %8402  ;;  %v2532_v24 = vshll.u32 %v16572_v9, %v2517_v55 }
 0x35a   : > { %16871 = vst [vmem:[#allocation178_spill] sm:$0xff] %v12341_v58  ;;  %v2522_v14 = vor.u32 %v2521_v44, %v2520_v22  ;;  %v2525_v59 = vor.u32 %v2524_v45, %v2523_v27  ;;  %v2533_v5 = vshrl.u32 %v16573_v8, %v2518_v7  ;;  %v2376_v61 = vor.u32 4788187, %v2375_v41 }
 0x35b   : > { %v2268_v38 = vshrl.u32 %v2250_v17, %v2266_v21  ;;  %v2528_v11 = vor.u32 %v2527_v63, %v2526_v36  ;;  %v2531_v43 = vor.u32 %v2530_v31, %v2529_v62  ;;  %v2267_v29 = vshll.u32 %v12191_v50, %v2265_v4 }
 0x35c   : > { %v2271_v32 = vadd.s32 127, %v2270_v46  ;;  %v5553_v53 = vshll.u32 %v12325_v49, 30  ;;  %v2534_v57 = vor.u32 %v2533_v5, %v2532_v24  ;;  %v16872_v52 = vand.u32 2147483647, %v11655_v28  ;;  %v8299_v46 = vld [vmem:[%s15928_s2 + $0x38] sm:$0xff]  }
 0x35d   : > { %v16873_v58 = vmov 0  ;;  %v7813_v55 = vmin.u32 %v5659_v10, %v12302_v33  ;;  %vm2535_vm12 = vcmp.lt.s32.totalorder %v12336_v51, 1  ;;  %vm2538_vm10 = vcmp.lt.s32.totalorder %v12336_v51, 4  ;;  %7934 = vmatprep.subr.bf16.mxu0 %v8299_v46  ;;  %8007 = vmatprep.subr.bf16.mxu1 %v8299_v46 }
 0x35e   : > { %vm12349_vm0 = vcmp.le.f32.partialorder %v16872_v52, 0.7853982  ;;  %v7688_v41 = vadd.s32 4294967169, %v2404_v20  ;;  %v12356_v31 = vpop.eup %8404  ;;  %v2511_v50 = vor.u32 8388608, %v2510_v35  ;;  %vm2537_vm2 = vcmp.lt.s32.totalorder %v12336_v51, 3  ;;  %7935 = vmatpush3.bf16.xpose.msra.mxu0 %v8299_v46  ;;  %8015 = vmatpush3.bf16.xpose.msra.mxu1 %v8299_v46 }
 0x35f   : > { %v16874_v58 = vsel %vm12349_vm0, 4294967295, %v16873_v58  ;;  %16876 = vst [vmem:[#allocation180_spill] sm:$0xff] %v12356_v31  ;;  %v2543_v24 = vsel %vm2535_vm12, %v2522_v14, %v2525_v59  ;;  %v2544_v5 = vsel %vm2538_vm10, %v2531_v43, 920167782  ;;  %v2377_v52 = vand.u32 2147483647, %v2376_v61  ;;  %v348_v61 = vpop.permute.xlu1 %347 }
 0x360   : > { %16875 = vst [vmem:[#allocation179_spill] sm:$0xff] %v16874_v58  ;;  %v12361_v4 = vor.u32 %v2268_v38, %v2267_v29  ;;  %v2545_v17 = vsel %vm2537_vm2, %v2528_v11, %v2544_v5  ;;  %v2547_v21 = vsel %vm2535_vm12, %v2525_v59, %v2528_v11  ;;  %v12371_v10 = vsub.s32 %v12284_v2, %v5553_v53 }
 0x361   : > { %vm2536_vm14 = vcmp.lt.s32.totalorder %v12336_v51, 2  ;;  %v2540_v35 = vsel %vm2538_vm10, %v2528_v11, 2102212464  ;;  %v2548_v22 = vsel %vm2538_vm10, %v2534_v57, 1326507024  ;;  %v2519_v38 = vshrl.u32 %v16574_v12, %v2518_v7 }
 0x362   : > { %v2546_v20 = vsel %vm2536_vm14, %v2543_v24, %v2545_v17  ;;  %v2549_v44 = vsel %vm2537_vm2, %v2531_v43, %v2548_v22  ;;  %v2410_v27 = vadd.s32 1, %v7688_v41  ;;  %v2272_v45 = vshll.u32 %v2271_v32, 23 }
 0x363   : > { %v5661_v63 = vclz %v7813_v55  ;;  %v2550_v53 = vsel %vm2536_vm14, %v2547_v21, %v2549_v44  ;;  %v2551_v2 = vshll.u32 %v2511_v50, 8  ;;  %v2539_v57 = vsel %vm2535_vm12, %v2519_v38, %v2522_v14 }
 0x364   : > { %v2541_v11 = vsel %vm2537_vm2, %v2525_v59, %v2540_v35  ;;  %vm2411_vm10 = vcmp.gt.s32.totalorder %v2410_v27, 0  ;;  %v465_v7 = vmul.f32 %v16538_v0, %v348_v61  ;;  %v2379_v29 = vcvt.s32.f32 %v12320_v23 }
 0x365   : > { %v12386_v43 = vmul.u32.u64.low %v2551_v2, %v2550_v53  ;;  %v12387_v36 = vmul.u32.u64.high %v2551_v2, %v2550_v53, %v12386_v43  ;;  %v12389_v32 = vmul.u32.u64.low %v2551_v2, %v2546_v20  ;;  %v12390_v62 = vmul.u32.u64.high %v2551_v2, %v2546_v20, %v12389_v32 }
 0x366   : > { %v5556_v55 = vsub.s32 0, %v12371_v10  ;;  %v16264_v41 = vand.u32 2147483647, %v12287_v42  ;;  %v2412_v14 = vsel %vm2411_vm10, %v2410_v27, 0  ;;  %8406 = vsinq.f32 %v12298_v26  ;;  %v343_v43 = vpop.permute.xlu0 %342 }
 0x367   : > { %v12401_v59 = vsel %vm12349_vm0, %v11655_v28, %v12318_v37  ;;  %v2542_v50 = vsel %vm2536_vm14, %v2539_v57, %v2541_v11  ;;  %v2414_v24 = vand.u32 31, %v2412_v14  ;;  %v12405_v5 = vmul.f32 %v2379_v29, %v2377_v52  ;;  %v198_v28 = vpop.permute.xlu1 %197 }
 0x368   : > { %v12407_v23 = vor.u32 4788187, %v2272_v45  ;;  %v7814_v21 = vadd.s32 4294967294, %v5661_v63  ;;  %vm2560_vm2 = vc.u32 %v12387_v36, %v12389_v32  ;;  %v2561_v26 = vadd.s32 1, %v12390_v62 }
 0x369   : > { %v2415_v46 = vsub.s32 32, %v2414_v24  ;;  %v12414_v37 = vadd.f32 %v16537_v1, %v465_v7  ;;  %v7809_v51 = vmin.u32 %v5556_v55, %v12371_v10  ;;  %v2558_v35 = vmul.u32 %v2551_v2, %v2542_v50 }
 0x36a   : > { %v2407_v52 = vand.u32 8388607, %v16264_v41  ;;  %v2417_v22 = vshll.u32 %v16574_v12, %v2414_v24  ;;  %v2562_v61 = vsel %vm2560_vm2, %v2561_v26, %v12390_v62  ;;  %v2420_v20 = vshll.u32 %v16569_v13, %v2414_v24 }
 0x36b   : > { %16877 = vst [vmem:[#allocation181_spill] sm:$0xff] %v12414_v37  ;;  %v2418_v38 = vshrl.u32 %v16569_v13, %v2415_v46  ;;  %v2421_v44 = vshrl.u32 %v16570_v6, %v2415_v46  ;;  %v12424_v27 = vadd.s32 %v2562_v61, %v2558_v35  ;;  %v2413_v45 = vshrl.u32 %v2412_v14, 5 }
 0x36c   : > { %v2423_v63 = vshll.u32 %v16570_v6, %v2414_v24  ;;  %v2424_v53 = vshrl.u32 %v16571_v15, %v2415_v46  ;;  %v2426_v11 = vshll.u32 %v16571_v15, %v2414_v24  ;;  %v2427_v7 = vshrl.u32 %v16572_v9, %v2415_v46 }
 0x36d   : > { %v2419_v2 = vor.u32 %v2418_v38, %v2417_v22  ;;  %v2422_v57 = vor.u32 %v2421_v44, %v2420_v20  ;;  %vm7815_vm14 = vcmp.lt.s32.totalorder %v7814_v21, 0  ;;  %v5558_v62 = vclz %v7809_v51 }
 0x36e   : > { %v2408_v29 = vor.u32 8388608, %v2407_v52  ;;  %v5802_v55 = vand.u32 2139095040, %v12414_v37  ;;  %v2425_v50 = vor.u32 %v2424_v53, %v2423_v63  ;;  %v2428_v26 = vor.u32 %v2427_v7, %v2426_v11 }
 0x36f   : > { %v2429_v14 = vshll.u32 %v16572_v9, %v2414_v24  ;;  %v2430_v35 = vshrl.u32 %v16573_v8, %v2415_v46  ;;  %v2274_v61 = vand.u32 2147483647, %v12407_v23  ;;  %v2564_v22 = vadd.s32 536870912, %v12424_v27 }
 0x370   : > { %vm2432_vm12 = vcmp.lt.s32.totalorder %v2413_v45, 1  ;;  %v464_v38 = vmul.f32 %v16538_v0, %v343_v43  ;;  %v12436_v20 = vpop.eup %8406  ;;  %v12438_v44 = vsel %vm7815_vm14, 0, %v7814_v21  ;;  %vm2435_vm10 = vcmp.lt.s32.totalorder %v2413_v45, 4 }
 0x371   : > { %16878 = vst [vmem:[#allocation182_spill] sm:$0xff] %v12436_v20  ;;  %v2431_v51 = vor.u32 %v2430_v35, %v2429_v14  ;;  %v2440_v52 = vsel %vm2432_vm12, %v2419_v2, %v2422_v57  ;;  %vm2434_vm2 = vcmp.lt.s32.totalorder %v2413_v45, 3  ;;  %v2441_v63 = vsel %vm2435_vm10, %v2428_v26, 920167782 }
 0x372   : > { %v2448_v24 = vshll.u32 %v2408_v29, 8  ;;  %v5803_v53 = vshrl.u32 %v5802_v55, 23  ;;  %v7810_v11 = vadd.s32 4294967294, %v5558_v62  ;;  %vm2433_vm0 = vcmp.lt.s32.totalorder %v2413_v45, 2 }
 0x373   : > { %v2442_v23 = vsel %vm2434_vm2, %v2425_v50, %v2441_v63  ;;  %v2444_v7 = vsel %vm2432_vm12, %v2422_v57, %v2425_v50  ;;  %v12443_v41 = vshrl.u32 %v2564_v22, 30  ;;  %v2437_v43 = vsel %vm2435_vm10, %v2425_v50, 2102212464 }
 0x374   : > { %v2443_v21 = vsel %vm2433_vm0, %v2440_v52, %v2442_v23  ;;  %v2445_v17 = vsel %vm2435_vm10, %v2431_v51, 1326507024  ;;  %v2416_v14 = vshrl.u32 %v16574_v12, %v2415_v46  ;;  %v5669_v62 = vsub.s32 4294967266, %v12438_v44 }
 0x375   : > { %16879 = vst [vmem:[#allocation183_spill] sm:$0xff] %v12443_v41  ;;  %v2446_v35 = vsel %vm2434_vm2, %v2428_v26, %v2445_v17  ;;  %v12448_v49 = vmul.u32.u64.low %v2448_v24, %v2443_v21  ;;  %v12449_v31 = vmul.u32.u64.high %v2448_v24, %v2443_v21, %v12448_v49  ;;  %v16268_v55 = vand.u32 2147483647, %v12414_v37 }
 0x376   : > { %v2447_v29 = vsel %vm2433_vm0, %v2444_v7, %v2446_v35  ;;  %v7820_v22 = vadd.s32 4294967169, %v5803_v53  ;;  %v2436_v50 = vsel %vm2432_vm12, %v2416_v14, %v2419_v2  ;;  %v2438_v52 = vsel %vm2434_vm2, %v2422_v57, %v2437_v43 }
 0x377   : > { %v12457_v51 = vmul.u32.u64.low %v2448_v24, %v2447_v29  ;;  %v12458_v63 = vmul.u32.u64.high %v2448_v24, %v2447_v29, %v12457_v51  ;;  %vm7811_vm14 = vcmp.lt.s32.totalorder %v7810_v11, 0  ;;  %v2566_v17 = vshll.u32 %v12443_v41, 30 }
 0x378   : > { %v5809_v46 = vadd.s32 1, %v7820_v22  ;;  %v12462_v26 = vadd.f32 %v16537_v1, %v464_v38  ;;  %8408 = vcosq.f32 %v12401_v59  ;;  %v2381_v23 = vxor.u32 2147483648, %v12405_v5 }
 0x379   : > { %v16881_v53 = vcvt.s32.f32 %v12361_v4  ;;  %v2458_v2 = vadd.s32 1, %v12449_v31  ;;  %v5665_v57 = vsub.s32 32, %v12438_v44  ;;  %v5670_v43 = vadd.s32 127, %v5669_v62 }
 0x37a   : > { %16880 = vst [vmem:[#allocation184_spill] sm:$0xff] %v12462_v26  ;;  %v2439_v21 = vsel %vm2433_vm0, %v2436_v50, %v2438_v52  ;;  %vm5810_vm12 = vcmp.gt.s32.totalorder %v5809_v46, 0  ;;  %v12473_v14 = vsel %vm7811_vm14, 0, %v7810_v11  ;;  %vm2457_vm10 = vc.u32 %v12458_v63, %v12448_v49 }
 0x37b   : > { %v12468_v7 = vmul.f32 %v16881_v53, %v2274_v61  ;;  %v5806_v38 = vand.u32 8388607, %v16268_v55  ;;  %v5811_v35 = vsel %vm5810_vm12, %v5809_v46, 0  ;;  %v12480_v4 = vsub.s32 %v12424_v27, %v2566_v17 }
 0x37c   : > { %v2459_v61 = vsel %vm2457_vm10, %v2458_v2, %v12449_v31  ;;  %v5813_v29 = vand.u32 31, %v5811_v35  ;;  %v5699_v62 = vand.u32 2139095040, %v12462_v26  ;;  %8410 = vsinq.f32 %v12401_v59 }
 0x37d   : > { %vm16273_vm0 = vcmp.lt.s32.totalorder %v11800_v48, 0  ;;  %v5649_v45 = vadd.s32 %v12160_v18, %v12167_v47  ;;  %v2455_v11 = vmul.u32 %v2448_v24, %v2439_v21  ;;  %v5666_v31 = vshll.u32 %v12302_v33, %v12438_v44 }
 0x37e   : > { %v12491_v22 = vsel %vm16273_vm0, %v2381_v23, %v12405_v5  ;;  %v5814_v50 = vsub.s32 32, %v5813_v29  ;;  %v5671_v51 = vshll.u32 %v5670_v43, 23  ;;  %v5566_v59 = vsub.s32 4294967266, %v12473_v14 }
 0x37f   : > { %v5667_v52 = vshrl.u32 %v5649_v45, %v5665_v57  ;;  %v12497_v17 = vadd.s32 %v2459_v61, %v2455_v11  ;;  %v2569_v18 = vsub.s32 0, %v12480_v4  ;;  %v5807_v47 = vor.u32 8388608, %v5806_v38 }
 0x380   : > { %v5816_v24 = vshll.u32 %v16574_v12, %v5813_v29  ;;  %v5700_v46 = vshrl.u32 %v5699_v62, 23  ;;  %v5817_v5 = vshrl.u32 %v16569_v13, %v5814_v50  ;;  %v5819_v23 = vshll.u32 %v16569_v13, %v5813_v29 }
 0x381   : > { %v5820_v53 = vshrl.u32 %v16570_v6, %v5814_v50  ;;  %v5823_v33 = vshrl.u32 %v16571_v15, %v5814_v50  ;;  %v5812_v44 = vshrl.u32 %v5811_v35, 5  ;;  %v5822_v2 = vshll.u32 %v16570_v6, %v5813_v29 }
 0x382   : > { %v5825_v57 = vshll.u32 %v16571_v15, %v5813_v29  ;;  %v5826_v43 = vshrl.u32 %v16572_v9, %v5814_v50  ;;  %v12508_v21 = vpop.eup %8408  ;;  %v12510_v38 = vor.u32 %v5667_v52, %v5666_v31  ;;  %v2461_v61 = vadd.s32 536870912, %v12497_v17 }
 0x383   : > { %16882 = vst [vmem:[#allocation185_spill] sm:$0xff] %v12508_v21  ;;  %v5818_v62 = vor.u32 %v5817_v5, %v5816_v24  ;;  %v5821_v45 = vor.u32 %v5820_v53, %v5819_v23  ;;  %v16883_v11 = vand.u32 2147483647, %v11800_v48  ;;  %v16884_v55 = vmov 0 }
 0x384   : > { %v5824_v35 = vor.u32 %v5823_v33, %v5822_v2  ;;  %v5827_v27 = vor.u32 %v5826_v43, %v5825_v57  ;;  %v5828_v41 = vshll.u32 %v16572_v9, %v5813_v29  ;;  %v5829_v20 = vshrl.u32 %v16573_v8, %v5814_v50 }
 0x385   : > { %vm12515_vm2 = vcmp.le.f32.partialorder %v16883_v11, 0.7853982  ;;  %v5672_v31 = vor.u32 4788187, %v5671_v51  ;;  %v5562_v52 = vsub.s32 32, %v12473_v14  ;;  %v5567_v58 = vadd.s32 127, %v5566_v59 }
 0x386   : > { %v16885_v55 = vsel %vm12515_vm2, 4294967295, %v16884_v55  ;;  %v7693_v24 = vmin.u32 %v2569_v18, %v12480_v4  ;;  %v5830_v5 = vor.u32 %v5829_v20, %v5828_v41  ;;  %vm5831_vm12 = vcmp.lt.s32.totalorder %v5812_v44, 1  ;;  %v12524_v11 = vpop.eup %8410 }
 0x387   : > { %16886 = vst [vmem:[#allocation186_spill] sm:$0xff] %v16885_v55  ;;  %v5847_v23 = vshll.u32 %v5807_v47, 8  ;;  %v7816_v53 = vadd.s32 4294967169, %v5700_v46  ;;  %16887 = vst [vmem:[#allocation187_spill] sm:$0xff] %v12524_v11  ;;  %v12526_v33 = vshrl.u32 %v2461_v61, 30  ;;  %v5815_v29 = vshrl.u32 %v16574_v12, %v5814_v50 }
 0x388   : > { %vm5834_vm10 = vcmp.lt.s32.totalorder %v5812_v44, 4  ;;  %v5839_v2 = vsel %vm5831_vm12, %v5818_v62, %v5821_v45  ;;  %vm5833_vm0 = vcmp.lt.s32.totalorder %v5812_v44, 3  ;;  %v5843_v59 = vsel %vm5831_vm12, %v5821_v45, %v5824_v35 }
 0x389   : > { %16888 = vst [vmem:[#allocation188_spill] sm:$0xff] %v12526_v33  ;;  %v5836_v51 = vsel %vm5834_vm10, %v5824_v35, 2102212464  ;;  %v5840_v57 = vsel %vm5834_vm10, %v5827_v27, 920167782  ;;  %v16890_v41 = vmov 0  ;;  %v2571_v20 = vclz %v7693_v24 }
 0x38a   : > { %v16889_v18 = vand.u32 2147483647, %v11845_v34  ;;  %vm5832_vm15 = vcmp.lt.s32.totalorder %v5812_v44, 2  ;;  %v5841_v47 = vsel %vm5833_vm0, %v5824_v35, %v5840_v57  ;;  %v5844_v46 = vsel %vm5834_vm10, %v5830_v5, 1326507024 }
 0x38b   : > { %v5835_v50 = vsel %vm5831_vm12, %v5815_v29, %v5818_v62  ;;  %v5842_v43 = vsel %vm5832_vm15, %v5839_v2, %v5841_v47  ;;  %v5845_v61 = vsel %vm5833_vm0, %v5827_v27, %v5844_v46  ;;  %v16281_v21 = vand.u32 2147483647, %v12462_v26 }
 0x38c   : > { %vm12533_vm14 = vcmp.le.f32.partialorder %v16889_v18, 0.7853982  ;;  %v5837_v11 = vsel %vm5833_vm0, %v5821_v45, %v5836_v51  ;;  %v5846_v56 = vsel %vm5832_vm15, %v5843_v59, %v5845_v61  ;;  %v2463_v24 = vshll.u32 %v12526_v33, 30 }
 0x38d   : > { %v16891_v41 = vsel %vm12533_vm14, 4294967295, %v16890_v41  ;;  %v12541_v30 = vmul.u32.u64.low %v5847_v23, %v5842_v43  ;;  %v12542_v18 = vmul.u32.u64.high %v5847_v23, %v5842_v43, %v12541_v30  ;;  %v5706_v5 = vadd.s32 1, %v7816_v53 }
 0x38e   : > { %16892 = vst [vmem:[#allocation189_spill] sm:$0xff] %v16891_v41  ;;  %v12546_v25 = vmul.u32.u64.low %v5847_v23, %v5846_v56  ;;  %v12547_v35 = vmul.u32.u64.high %v5847_v23, %v5846_v56, %v12546_v25  ;;  %v12553_v27 = vsel %vm12515_vm2, %v11800_v48, %v12491_v22  ;;  %v5546_v62 = vadd.s32 %v12246_v19, %v12258_v40 }
 0x38f   : > { %v7694_v45 = vadd.s32 4294967294, %v2571_v20  ;;  %v435_v29 = vmul.f32 %v16538_v0, %v198_v28  ;;  %v16893_v2 = vxor.u32 2147483648, %v12468_v7  ;;  %vm16894_vm0 = vcmp.lt.s32.totalorder %v11845_v34, 0 }
 0x390   : > { %v5673_v25 = vand.u32 2147483647, %v5672_v31  ;;  %v5838_v53 = vsel %vm5832_vm15, %v5835_v50, %v5837_v11  ;;  %vm5707_vm12 = vcmp.gt.s32.totalorder %v5706_v5, 0  ;;  %v5564_v51 = vshrl.u32 %v5546_v62, %v5562_v52 }
 0x391   : > { %v2279_v56 = vsel %vm16894_vm0, %v16893_v2, %v12468_v7  ;;  %v5568_v57 = vshll.u32 %v5567_v58, 23  ;;  %v5857_v22 = vadd.s32 1, %v12542_v18  ;;  %v5708_v59 = vsel %vm5707_vm12, %v5706_v5, 0 }
 0x392   : > { %v5675_v19 = vcvt.s32.f32 %v12510_v38  ;;  %v12567_v40 = vsub.s32 %v12497_v17, %v2463_v24  ;;  %vm5856_vm10 = vc.u32 %v12547_v35, %v12541_v30  ;;  %v5703_v28 = vand.u32 8388607, %v16281_v21 }
 0x393   : > { %v5563_v7 = vshll.u32 %v12371_v10, %v12473_v14  ;;  %vm7695_vm15 = vcmp.lt.s32.totalorder %v7694_v45, 0  ;;  %v5854_v44 = vmul.u32 %v5847_v23, %v5838_v53  ;;  %v12576_v58 = vadd.f32 %v16537_v1, %v435_v29 }
 0x394   : > { %8412 = vcosq.f32 %v12553_v27  ;;  %v12582_v17 = vsel %vm12533_vm14, %v11845_v34, %v2279_v56  ;;  %v5858_v38 = vsel %vm5856_vm10, %v5857_v22, %v12542_v18  ;;  %v5710_v31 = vand.u32 31, %v5708_v59 }
 0x395   : > { %16895 = vst [vmem:[#allocation190_spill] sm:$0xff] %v12576_v58  ;;  %v12585_v52 = vmul.f32 %v5675_v19, %v5673_v25  ;;  %v12587_v11 = vor.u32 %v5564_v51, %v5563_v7  ;;  %v12589_v10 = vor.u32 4788187, %v5568_v57  ;;  %v5859_v14 = vadd.s32 %v5858_v38, %v5854_v44 }
 0x396   : > { %v12591_v23 = vsel %vm7695_vm15, 0, %v7694_v45  ;;  %v2466_v20 = vsub.s32 0, %v12567_v40  ;;  %v5704_v47 = vor.u32 8388608, %v5703_v28  ;;  %v5711_v46 = vsub.s32 32, %v5710_v31 }
 0x397   : > { %v5860_v50 = vadd.s32 536870912, %v5859_v14  ;;  %v5713_v43 = vshll.u32 %v16574_v12, %v5710_v31  ;;  %v5716_v61 = vshll.u32 %v16569_v13, %v5710_v31  ;;  %v2712_v18 = vand.u32 2139095040, %v12576_v58 }
 0x398   : > { %v5714_v24 = vshrl.u32 %v16569_v13, %v5711_v46  ;;  %v5717_v5 = vshrl.u32 %v16570_v6, %v5711_v46  ;;  %v5719_v62 = vshll.u32 %v16570_v6, %v5710_v31  ;;  %v5720_v45 = vshrl.u32 %v16571_v15, %v5711_v46 }
 0x399   : > { %v12601_v29 = vshrl.u32 %v5860_v50, 30  ;;  %v5709_v2 = vshrl.u32 %v5708_v59, 5  ;;  %v5722_v56 = vshll.u32 %v16571_v15, %v5710_v31  ;;  %v5723_v25 = vshrl.u32 %v16572_v9, %v5711_v46 }
 0x39a   : > { %v5570_v53 = vand.u32 2147483647, %v12589_v10  ;;  %v5715_v51 = vor.u32 %v5714_v24, %v5713_v43  ;;  %v5718_v57 = vor.u32 %v5717_v5, %v5716_v61  ;;  %v5721_v22 = vor.u32 %v5720_v45, %v5719_v62 }
 0x39b   : > { %16896 = vst [vmem:[#allocation191_spill] sm:$0xff] %v12601_v29  ;;  %v5862_v19 = vshll.u32 %v12601_v29, 30  ;;  %v5724_v28 = vor.u32 %v5723_v25, %v5722_v56  ;;  %v5725_v7 = vshll.u32 %v16572_v9, %v5710_v31  ;;  %v5726_v44 = vshrl.u32 %v16573_v8, %v5711_v46 }
 0x39c   : > { %v2579_v38 = vsub.s32 4294967266, %v12591_v23  ;;  %v7689_v59 = vmin.u32 %v2466_v20, %v12567_v40  ;;  %v5744_v50 = vshll.u32 %v5704_v47, 8  ;;  %v2713_v21 = vshrl.u32 %v2712_v18, 23 }
 0x39d   : > { %v12611_v33 = vsub.s32 %v5859_v14, %v5862_v19  ;;  %v5727_v55 = vor.u32 %v5726_v44, %v5725_v7  ;;  %vm5728_vm0 = vcmp.lt.s32.totalorder %v5709_v2, 1  ;;  %vm5731_vm12 = vcmp.lt.s32.totalorder %v5709_v2, 4 }
 0x39e   : > { %v12613_v10 = vpop.eup %8412  ;;  %vm5730_vm10 = vcmp.lt.s32.totalorder %v5709_v2, 3  ;;  %v5733_v43 = vsel %vm5731_vm12, %v5721_v22, 2102212464  ;;  %v5736_v61 = vsel %vm5728_vm0, %v5715_v51, %v5718_v57  ;;  %v5737_v31 = vsel %vm5731_vm12, %v5724_v28, 920167782 }
 0x39f   : > { %16897 = vst [vmem:[#allocation192_spill] sm:$0xff] %v12613_v10  ;;  %vm16289_vm15 = vcmp.lt.s32.totalorder %v11997_v3, 0  ;;  %v5712_v24 = vshrl.u32 %v16574_v12, %v5711_v46  ;;  %vm5729_vm2 = vcmp.lt.s32.totalorder %v5709_v2, 2  ;;  %v5738_v20 = vsel %vm5730_vm10, %v5721_v22, %v5737_v31 }
 0x3a0   : > { %v5740_v14 = vsel %vm5728_vm0, %v5718_v57, %v5721_v22  ;;  %v2580_v47 = vadd.s32 127, %v2579_v38  ;;  %v5739_v18 = vsel %vm5729_vm2, %v5736_v61, %v5738_v20  ;;  %v5741_v5 = vsel %vm5731_vm12, %v5727_v55, 1326507024 }
 0x3a1   : > { %v7700_v62 = vadd.s32 4294967169, %v2713_v21  ;;  %v5865_v45 = vsub.s32 0, %v12611_v33  ;;  %v5732_v56 = vsel %vm5728_vm0, %v5712_v24, %v5715_v51  ;;  %v5734_v25 = vsel %vm5730_vm10, %v5718_v57, %v5733_v43 }
 0x3a2   : > { %v5742_v19 = vsel %vm5730_vm10, %v5724_v28, %v5741_v5  ;;  %v2468_v7 = vclz %v7689_v59  ;;  %v12626_v44 = vmul.u32.u64.low %v5744_v50, %v5739_v18  ;;  %v12627_v31 = vmul.u32.u64.high %v5744_v50, %v5739_v18, %v12626_v44 }
 0x3a3   : > { %v5743_v46 = vsel %vm5729_vm2, %v5740_v14, %v5742_v19  ;;  %v5572_v22 = vcvt.s32.f32 %v12587_v11  ;;  %v16286_v21 = vand.u32 2147483647, %v12576_v58  ;;  %8414 = vsinq.f32 %v12553_v27 }
 0x3a4   : > { %v12631_v38 = vmul.u32.u64.low %v5744_v50, %v5743_v46  ;;  %v12632_v55 = vmul.u32.u64.high %v5744_v50, %v5743_v46, %v12631_v38  ;;  %v5677_v51 = vxor.u32 2147483648, %v12585_v52  ;;  %v5735_v57 = vsel %vm5729_vm2, %v5732_v56, %v5734_v25 }
 0x3a5   : > { %v2719_v28 = vadd.s32 1, %v7700_v62  ;;  %8416 = vcosq.f32 %v12582_v17  ;;  %v12639_v59 = vmul.f32 %v5572_v22, %v5570_v53  ;;  %v2575_v43 = vsub.s32 32, %v12591_v23 }
 0x3a6   : > { %v7821_v11 = vmin.u32 %v5865_v45, %v12611_v33  ;;  %v2581_v61 = vshll.u32 %v2580_v47, 23  ;;  %v7690_v24 = vadd.s32 4294967294, %v2468_v7  ;;  %v5754_v20 = vadd.s32 1, %v12627_v31 }
 0x3a7   : > { %vm2720_vm0 = vcmp.gt.s32.totalorder %v2719_v28, 0  ;;  %v5751_v14 = vmul.u32 %v5744_v50, %v5735_v57  ;;  %vm5753_vm12 = vc.u32 %v12632_v55, %v12626_v44  ;;  %v2716_v27 = vand.u32 8388607, %v16286_v21 }
 0x3a8   : > { %v2721_v2 = vsel %vm2720_vm0, %v2719_v28, 0  ;;  %v12651_v53 = vsel %vm16289_vm15, %v5677_v51, %v12585_v52  ;;  %v2559_v47 = vadd.s32 %v12389_v32, %v12387_v36  ;;  %v5755_v18 = vsel %vm5753_vm12, %v5754_v20, %v12627_v31 }
 0x3a9   : > { %v2723_v5 = vand.u32 31, %v2721_v2  ;;  %v2576_v62 = vshll.u32 %v12480_v4, %v12591_v23  ;;  %v5867_v45 = vclz %v7821_v11  ;;  %v5756_v56 = vadd.s32 %v5755_v18, %v5751_v14  ;;  %v193_v23 = vpop.permute.xlu0 %192 }
 0x3aa   : > { %v2577_v25 = vshrl.u32 %v2559_v47, %v2575_v43  ;;  %v12659_v19 = vor.u32 4788187, %v2581_v61  ;;  %vm7691_vm2 = vcmp.lt.s32.totalorder %v7690_v24, 0  ;;  %v2717_v52 = vor.u32 8388608, %v2716_v27 }
 0x3ab   : > { %v2724_v7 = vsub.s32 32, %v2723_v5  ;;  %v2726_v46 = vshll.u32 %v16574_v12, %v2723_v5  ;;  %v2729_v36 = vshll.u32 %v16569_v13, %v2723_v5  ;;  %v2732_v32 = vshll.u32 %v16570_v6, %v2723_v5 }
 0x3ac   : > { %v5757_v31 = vadd.s32 536870912, %v5756_v56  ;;  %v7822_v51 = vadd.s32 4294967294, %v5867_v45  ;;  %v2722_v57 = vshrl.u32 %v2721_v2, 5  ;;  %v2735_v28 = vshll.u32 %v16571_v15, %v2723_v5 }
 0x3ad   : > { %v2727_v22 = vshrl.u32 %v16569_v13, %v2724_v7  ;;  %v2730_v38 = vshrl.u32 %v16570_v6, %v2724_v7  ;;  %v2733_v4 = vshrl.u32 %v16571_v15, %v2724_v7  ;;  %v2736_v43 = vshrl.u32 %v16572_v9, %v2724_v7  ;;  %v12669_v11 = vpop.eup %8414 }
 0x3ae   : > { %16898 = vst [vmem:[#allocation193_spill] sm:$0xff] %v12669_v11  ;;  %v2578_v61 = vor.u32 %v2577_v25, %v2576_v62  ;;  %v2583_v18 = vand.u32 2147483647, %v12659_v19  ;;  %v12675_v21 = vsel %vm7691_vm2, 0, %v7690_v24  ;;  %v434_v2 = vmul.f32 %v16538_v0, %v193_v23 }
 0x3af   : > { %v2728_v20 = vor.u32 %v2727_v22, %v2726_v46  ;;  %v2731_v14 = vor.u32 %v2730_v38, %v2729_v36  ;;  %v2734_v27 = vor.u32 %v2733_v4, %v2732_v32  ;;  %v12671_v47 = vpop.eup %8416  ;;  %v2737_v50 = vor.u32 %v2736_v43, %v2735_v28 }
 0x3b0   : > { %16899 = vst [vmem:[#allocation194_spill] sm:$0xff] %v12671_v47  ;;  %v16900_v45 = vand.u32 2147483647, %v11997_v3  ;;  %v16901_v29 = vmov 0  ;;  %v12685_v62 = vshrl.u32 %v5757_v31, 30  ;;  %v2738_v25 = vshll.u32 %v16572_v9, %v2723_v5 }
 0x3b1   : > { %v2739_v19 = vshrl.u32 %v16573_v8, %v2724_v7  ;;  %v2757_v46 = vshll.u32 %v2717_v52, 8  ;;  %vm7823_vm12 = vcmp.lt.s32.totalorder %v7822_v51, 0  ;;  %vm2741_vm2 = vcmp.lt.s32.totalorder %v2722_v57, 1 }
 0x3b2   : > { %vm12680_vm10 = vcmp.le.f32.partialorder %v16900_v45, 0.7853982  ;;  %16904 = vst [vmem:[#allocation196_spill] sm:$0xff] %v12685_v62  ;;  %vm2743_vm15 = vcmp.lt.s32.totalorder %v2722_v57, 3  ;;  %vm2744_vm14 = vcmp.lt.s32.totalorder %v2722_v57, 4  ;;  %v2749_v32 = vsel %vm2741_vm2, %v2728_v20, %v2731_v14 }
 0x3b3   : > { %v16902_v29 = vsel %vm12680_vm10, 4294967295, %v16901_v29  ;;  %v2740_v24 = vor.u32 %v2739_v19, %v2738_v25  ;;  %v2746_v36 = vsel %vm2744_vm14, %v2734_v27, 2102212464  ;;  %v2750_v22 = vsel %vm2744_vm14, %v2737_v50, 920167782 }
 0x3b4   : > { %16903 = vst [vmem:[#allocation195_spill] sm:$0xff] %v16902_v29  ;;  %v2725_v38 = vshrl.u32 %v16574_v12, %v2724_v7  ;;  %vm2742_vm4 = vcmp.lt.s32.totalorder %v2722_v57, 2  ;;  %v2751_v31 = vsel %vm2743_vm15, %v2734_v27, %v2750_v22  ;;  %v12693_v4 = vadd.f32 %v16537_v1, %v434_v2 }
 0x3b5   : > { %v5759_v5 = vshll.u32 %v12685_v62, 30  ;;  %v2752_v52 = vsel %vm2742_vm4, %v2749_v32, %v2751_v31  ;;  %v2753_v23 = vsel %vm2741_vm2, %v2731_v14, %v2734_v27  ;;  %v2754_v28 = vsel %vm2744_vm14, %v2740_v24, 1326507024 }
 0x3b6   : > { %16905 = vst [vmem:[#allocation197_spill] sm:$0xff] %v12693_v4  ;;  %v12699_v43 = vsel %vm7823_vm12, 0, %v7822_v51  ;;  %v2745_v45 = vsel %vm2741_vm2, %v2725_v38, %v2728_v20  ;;  %v2747_v7 = vsel %vm2743_vm15, %v2731_v14, %v2746_v36  ;;  %v2755_v25 = vsel %vm2743_vm15, %v2737_v50, %v2754_v28 }
 0x3b7   : > { %v16906_v19 = vand.u32 2147483647, %v12073_v54  ;;  %v16907_v2 = vmov 0  ;;  %v2476_v32 = vsub.s32 4294967266, %v12675_v21  ;;  %v2756_v27 = vsel %vm2742_vm4, %v2753_v23, %v2755_v25 }
 0x3b8   : > { %v12712_v24 = vmul.u32.u64.low %v2757_v46, %v2752_v52  ;;  %v12713_v22 = vmul.u32.u64.high %v2757_v46, %v2752_v52, %v12712_v24  ;;  %v2585_v51 = vcvt.s32.f32 %v2578_v61  ;;  %v2472_v20 = vsub.s32 32, %v12675_v21 }
 0x3b9   : > { %vm12706_vm0 = vcmp.le.f32.partialorder %v16906_v19, 0.7853982  ;;  %v12717_v14 = vmul.u32.u64.low %v2757_v46, %v2756_v27  ;;  %v12718_v36 = vmul.u32.u64.high %v2757_v46, %v2756_v27, %v12717_v14  ;;  %v5875_v50 = vsub.s32 4294967266, %v12699_v43  ;;  %v358_v19 = vpop.permute.xlu1 %357 }
 0x3ba   : > { %v16908_v2 = vsel %vm12706_vm0, 4294967295, %v16907_v2  ;;  %v12721_v38 = vsub.s32 %v5756_v56, %v5759_v5  ;;  %v2748_v31 = vsel %vm2742_vm4, %v2745_v45, %v2747_v7  ;;  %v2609_v28 = vand.u32 2139095040, %v12693_v4 }
 0x3bb   : > { %16909 = vst [vmem:[#allocation198_spill] sm:$0xff] %v16908_v2  ;;  %8418 = vsinq.f32 %v12582_v17  ;;  %v5681_v61 = vsel %vm12680_vm10, %v11997_v3, %v12651_v53  ;;  %v16910_v52 = vxor.u32 2147483648, %v12639_v59  ;;  %vm16911_vm14 = vcmp.lt.s32.totalorder %v12073_v54, 0 }
 0x3bc   : > { %vm16308_vm15 = vcmp.lt.s32.totalorder %v12212_v60, 0  ;;  %v2456_v56 = vadd.s32 %v12448_v49, %v12458_v63  ;;  %v2586_v57 = vmul.f32 %v2585_v51, %v2583_v18  ;;  %v2477_v5 = vadd.s32 127, %v2476_v32 }
 0x3bd   : > { %v5575_v23 = vsel %vm16911_vm14, %v16910_v52, %v12639_v59  ;;  %v2767_v17 = vadd.s32 1, %v12713_v22  ;;  %v2610_v45 = vshrl.u32 %v2609_v28, 23  ;;  %v2764_v25 = vmul.u32 %v2757_v46, %v2748_v31 }
 0x3be   : > { %v2474_v7 = vshrl.u32 %v2456_v56, %v2472_v20  ;;  %vm2766_vm4 = vc.u32 %v12718_v36, %v12712_v24  ;;  %v467_v53 = vmul.f32 %v16538_v0, %v358_v19  ;;  %v5876_v27 = vadd.s32 127, %v5875_v50 }
 0x3bf   : > { %v5762_v59 = vsub.s32 0, %v12721_v38  ;;  %v2768_v14 = vsel %vm2766_vm4, %v2767_v17, %v12713_v22  ;;  %v7696_v52 = vadd.s32 4294967169, %v2610_v45  ;;  %8420 = vcosq.f32 %v5681_v61 }
 0x3c0   : > { %v2473_v49 = vshll.u32 %v12567_v40, %v12675_v21  ;;  %v2769_v63 = vadd.s32 %v2768_v14, %v2764_v25  ;;  %v16292_v18 = vand.u32 2147483647, %v12693_v4  ;;  %8422 = vsinq.f32 %v5681_v61 }
 0x3c1   : > { %v2587_v46 = vxor.u32 2147483648, %v2586_v57  ;;  %v2478_v32 = vshll.u32 %v2477_v5, 23  ;;  %v2616_v51 = vadd.s32 1, %v7696_v52  ;;  %v12750_v20 = vsel %vm12706_vm0, %v12073_v54, %v5575_v23 }
 0x3c2   : > { %v12752_v50 = vor.u32 %v2474_v7, %v2473_v49  ;;  %v5871_v22 = vsub.s32 32, %v12699_v43  ;;  %v2770_v31 = vadd.s32 536870912, %v2769_v63  ;;  %v5877_v28 = vshll.u32 %v5876_v27, 23 }
 0x3c3   : > { %v7817_v40 = vmin.u32 %v5762_v59, %v12721_v38  ;;  %vm2617_vm12 = vcmp.gt.s32.totalorder %v2616_v51, 0  ;;  %v12757_v21 = vadd.f32 %v16537_v1, %v467_v53  ;;  %v5855_v19 = vadd.s32 %v12541_v30, %v12547_v35 }
 0x3c4   : > { %v12761_v61 = vshrl.u32 %v2770_v31, 30  ;;  %v2613_v23 = vand.u32 8388607, %v16292_v18  ;;  %v2618_v56 = vsel %vm2617_vm12, %v2616_v51, 0  ;;  %8424 = vcosq.f32 %v12750_v20 }
 0x3c5   : > { %16912 = vst [vmem:[#allocation199_spill] sm:$0xff] %v12757_v21  ;;  %v12768_v5 = vsel %vm16308_vm15, %v2587_v46, %v2586_v57  ;;  %v12770_v17 = vor.u32 4788187, %v2478_v32  ;;  %v2620_v45 = vand.u32 31, %v2618_v56  ;;  %v12772_v7 = vpop.eup %8418  ;;  %v5872_v30 = vshll.u32 %v12611_v33, %v12699_v43 }
 0x3c6   : > { %16913 = vst [vmem:[#allocation200_spill] sm:$0xff] %v12761_v61  ;;  %v5873_v35 = vshrl.u32 %v5855_v19, %v5871_v22  ;;  %v2772_v53 = vshll.u32 %v12761_v61, 30  ;;  %v12778_v27 = vor.u32 4788187, %v5877_v28  ;;  %v5764_v59 = vclz %v7817_v40  ;;  %v353_v22 = vpop.permute.xlu0 %352 }
 0x3c7   : > { %v2621_v14 = vsub.s32 32, %v2620_v45  ;;  %v6008_v57 = vand.u32 2139095040, %v12757_v21  ;;  %v2614_v52 = vor.u32 8388608, %v2613_v23  ;;  %v2619_v49 = vshrl.u32 %v2618_v56, 5 }
 0x3c8   : > { %v2623_v46 = vshll.u32 %v16574_v12, %v2620_v45  ;;  %v2626_v32 = vshll.u32 %v16569_v13, %v2620_v45  ;;  %v2629_v33 = vshll.u32 %v16570_v6, %v2620_v45  ;;  %v12789_v40 = vsub.s32 %v2769_v63, %v2772_v53 }
 0x3c9   : > { %v2624_v51 = vshrl.u32 %v16569_v13, %v2621_v14  ;;  %v2627_v31 = vshrl.u32 %v16570_v6, %v2621_v14  ;;  %v2630_v43 = vshrl.u32 %v16571_v15, %v2621_v14  ;;  %v12787_v28 = vpop.eup %8420  ;;  %v2632_v19 = vshll.u32 %v16571_v15, %v2620_v45 }
 0x3ca   : > { %16914 = vst [vmem:[#allocation201_spill] sm:$0xff] %v12787_v28  ;;  %v2633_v23 = vshrl.u32 %v16572_v9, %v2621_v14  ;;  %v2636_v56 = vshrl.u32 %v16573_v8, %v2621_v14  ;;  %v12794_v18 = vpop.eup %8422  ;;  %v2635_v62 = vshll.u32 %v16572_v9, %v2620_v45  ;;  %v6009_v29 = vshrl.u32 %v6008_v57, 23 }
 0x3cb   : > { %16915 = vst [vmem:[#allocation202_spill] sm:$0xff] %v12794_v18  ;;  %v2625_v25 = vor.u32 %v2624_v51, %v2623_v46  ;;  %v2628_v61 = vor.u32 %v2627_v31, %v2626_v32  ;;  %v2480_v3 = vand.u32 2147483647, %v12770_v17  ;;  %v2631_v2 = vor.u32 %v2630_v43, %v2629_v33  ;;  %v208_v31 = vpop.permute.xlu1 %207 }
 0x3cc   : > { %v2634_v54 = vor.u32 %v2633_v23, %v2632_v19  ;;  %v466_v63 = vmul.f32 %v16538_v0, %v353_v22  ;;  %v5874_v53 = vor.u32 %v5873_v35, %v5872_v30  ;;  %v7818_v28 = vadd.s32 4294967294, %v5764_v59 }
 0x3cd   : > { %v2637_v10 = vor.u32 %v2636_v56, %v2635_v62  ;;  %vm2638_vm2 = vcmp.lt.s32.totalorder %v2619_v49, 1  ;;  %v5879_v48 = vand.u32 2147483647, %v12778_v27  ;;  %v2775_v11 = vsub.s32 0, %v12789_v40 }
 0x3ce   : > { %vm2641_vm14 = vcmp.lt.s32.totalorder %v2619_v49, 4  ;;  %v2646_v46 = vsel %vm2638_vm2, %v2625_v25, %v2628_v61  ;;  %v12802_v32 = vpop.eup %8424  ;;  %vm2640_vm4 = vcmp.lt.s32.totalorder %v2619_v49, 3  ;;  %v2654_v17 = vshll.u32 %v2614_v52, 8 }
 0x3cf   : > { %16916 = vst [vmem:[#allocation203_spill] sm:$0xff] %v12802_v32  ;;  %v2647_v45 = vsel %vm2641_vm14, %v2634_v54, 920167782  ;;  %v7828_v57 = vadd.s32 4294967169, %v6009_v29  ;;  %vm2639_vm12 = vcmp.lt.s32.totalorder %v2619_v49, 2  ;;  %v2650_v62 = vsel %vm2638_vm2, %v2628_v61, %v2631_v2 }
 0x3d0   : > { %v2643_v51 = vsel %vm2641_vm14, %v2631_v2, 2102212464  ;;  %v2648_v30 = vsel %vm2640_vm4, %v2631_v2, %v2647_v45  ;;  %vm7819_vm15 = vcmp.lt.s32.totalorder %v7818_v28, 0  ;;  %v2622_v35 = vshrl.u32 %v16574_v12, %v2621_v14 }
 0x3d1   : > { %v2649_v27 = vsel %vm2639_vm12, %v2646_v46, %v2648_v30  ;;  %v2651_v59 = vsel %vm2641_vm14, %v2637_v10, 1326507024  ;;  %v7701_v33 = vmin.u32 %v2775_v11, %v12789_v40  ;;  %v2644_v19 = vsel %vm2640_vm4, %v2628_v61, %v2643_v51 }
 0x3d2   : > { %v2652_v43 = vsel %vm2640_vm4, %v2634_v54, %v2651_v59  ;;  %v12810_v22 = vmul.u32.u64.low %v2654_v17, %v2649_v27  ;;  %v12811_v52 = vmul.u32.u64.high %v2654_v17, %v2649_v27, %v12810_v22  ;;  %v2642_v29 = vsel %vm2638_vm2, %v2622_v35, %v2625_v25 }
 0x3d3   : > { %v2653_v2 = vsel %vm2639_vm12, %v2650_v62, %v2652_v43  ;;  %v6015_v23 = vadd.s32 1, %v7828_v57  ;;  %v5881_v14 = vcvt.s32.f32 %v5874_v53  ;;  %v16309_v56 = vand.u32 2147483647, %v12757_v21 }
 0x3d4   : > { %v12819_v10 = vadd.f32 %v16537_v1, %v466_v63  ;;  %v437_v11 = vmul.f32 %v16538_v0, %v208_v31  ;;  %v12823_v54 = vsel %vm7819_vm15, 0, %v7818_v28  ;;  %v2777_v25 = vclz %v7701_v33 }
 0x3d5   : > { %v12825_v46 = vmul.u32.u64.low %v2654_v17, %v2653_v2  ;;  %v12826_v45 = vmul.u32.u64.high %v2654_v17, %v2653_v2, %v12825_v46  ;;  %vm6016_vm2 = vcmp.gt.s32.totalorder %v6015_v23, 0  ;;  %v2645_v61 = vsel %vm2639_vm12, %v2642_v29, %v2644_v19 }
 0x3d6   : > { %v2664_v57 = vadd.s32 1, %v12811_v52  ;;  %v6017_v53 = vsel %vm6016_vm2, %v6015_v23, 0  ;;  %v16917_v51 = vcvt.s32.f32 %v12752_v50  ;;  %v12834_v63 = vmul.f32 %v5881_v14, %v5879_v48 }
 0x3d7   : > { %v5752_v28 = vadd.s32 %v12626_v44, %v12632_v55  ;;  %v6019_v62 = vand.u32 31, %v6017_v53  ;;  %v5768_v35 = vsub.s32 32, %v12823_v54  ;;  %v5772_v49 = vsub.s32 4294967266, %v12823_v54 }
 0x3d8   : > { %v12832_v30 = vmul.f32 %v16917_v51, %v2480_v3  ;;  %v12843_v59 = vadd.f32 %v16537_v1, %v437_v11  ;;  %v2661_v31 = vmul.u32 %v2654_v17, %v2645_v61  ;;  %vm2663_vm15 = vc.u32 %v12826_v45, %v12810_v22 }
 0x3d9   : > { %v6012_v48 = vand.u32 8388607, %v16309_v56  ;;  %v6020_v3 = vsub.s32 32, %v6019_v62  ;;  %v7702_v44 = vadd.s32 4294967294, %v2777_v25  ;;  %v2665_v55 = vsel %vm2663_vm15, %v2664_v57, %v12811_v52 }
 0x3da   : > { %16918 = vst [vmem:[#allocation204_spill] sm:$0xff] %v12843_v59  ;;  %v6022_v50 = vshll.u32 %v16574_v12, %v6019_v62  ;;  %v5905_v33 = vand.u32 2139095040, %v12819_v10  ;;  %v2666_v43 = vadd.s32 %v2665_v55, %v2661_v31  ;;  %v6025_v19 = vshll.u32 %v16569_v13, %v6019_v62 }
 0x3db   : > { %v6023_v29 = vshrl.u32 %v16569_v13, %v6020_v3  ;;  %v6026_v17 = vshrl.u32 %v16570_v6, %v6020_v3  ;;  %v6018_v2 = vshrl.u32 %v6017_v53, 5  ;;  %v6028_v23 = vshll.u32 %v16570_v6, %v6019_v62 }
 0x3dc   : > { %v6029_v14 = vshrl.u32 %v16571_v15, %v6020_v3  ;;  %v6031_v11 = vshll.u32 %v16571_v15, %v6019_v62  ;;  %v2667_v46 = vadd.s32 536870912, %v2666_v43  ;;  %v6032_v61 = vshrl.u32 %v16572_v9, %v6020_v3 }
 0x3dd   : > { %v6024_v52 = vor.u32 %v6023_v29, %v6022_v50  ;;  %v6027_v25 = vor.u32 %v6026_v17, %v6025_v19  ;;  %v5770_v57 = vshrl.u32 %v5752_v28, %v5768_v35  ;;  %v6034_v31 = vshll.u32 %v16572_v9, %v6019_v62 }
 0x3de   : > { %v6030_v51 = vor.u32 %v6029_v14, %v6028_v23  ;;  %v6035_v55 = vshrl.u32 %v16573_v8, %v6020_v3  ;;  %v16919_v56 = vand.u32 2147483647, %v12212_v60  ;;  %v16920_v53 = vmov 0 }
 0x3df   : > { %v5773_v27 = vadd.s32 127, %v5772_v49  ;;  %v12867_v18 = vshrl.u32 %v2667_v46, 30  ;;  %v6033_v32 = vor.u32 %v6032_v61, %v6031_v11  ;;  %v6013_v29 = vor.u32 8388608, %v6012_v48 }
 0x3e0   : > { %vm12863_vm14 = vcmp.le.f32.partialorder %v16919_v56, 0.7853982  ;;  %v6036_v28 = vor.u32 %v6035_v55, %v6034_v31  ;;  %vm6037_vm12 = vcmp.lt.s32.totalorder %v6018_v2, 1  ;;  %vm6040_vm2 = vcmp.lt.s32.totalorder %v6018_v2, 4 }
 0x3e1   : > { %v16921_v53 = vsel %vm12863_vm14, 4294967295, %v16920_v53  ;;  %16923 = vst [vmem:[#allocation206_spill] sm:$0xff] %v12867_v18  ;;  %v2669_v62 = vshll.u32 %v12867_v18, 30  ;;  %v6045_v35 = vsel %vm6037_vm12, %v6024_v52, %v6027_v25  ;;  %v5906_v19 = vshrl.u32 %v5905_v33, 23 }
 0x3e2   : > { %16922 = vst [vmem:[#allocation205_spill] sm:$0xff] %v16921_v53  ;;  %v6021_v56 = vshrl.u32 %v16574_v12, %v6020_v3  ;;  %vm6039_vm15 = vcmp.lt.s32.totalorder %v6018_v2, 3  ;;  %v6042_v17 = vsel %vm6040_vm2, %v6030_v51, 2102212464  ;;  %v6046_v49 = vsel %vm6040_vm2, %v6033_v32, 920167782 }
 0x3e3   : > { %vm16321_vm10 = vcmp.lt.s32.totalorder %v12287_v42, 0  ;;  %v12874_v23 = vsub.s32 %v2666_v43, %v2669_v62  ;;  %vm6038_vm0 = vcmp.lt.s32.totalorder %v6018_v2, 2  ;;  %v6047_v14 = vsel %vm6039_vm15, %v6030_v51, %v6046_v49 }
 0x3e4   : > { %v6049_v48 = vsel %vm6037_vm12, %v6027_v25, %v6030_v51  ;;  %vm16320_vm4 = vcmp.lt.s32.totalorder %v12414_v37, 0  ;;  %v5774_v11 = vshll.u32 %v5773_v27, 23  ;;  %v6048_v46 = vsel %vm6038_vm0, %v6045_v35, %v6047_v14 }
 0x3e5   : > { %v6050_v61 = vsel %vm6040_vm2, %v6036_v28, 1326507024  ;;  %v6053_v33 = vshll.u32 %v6013_v29, 8  ;;  %v6041_v3 = vsel %vm6037_vm12, %v6021_v56, %v6024_v52  ;;  %v6043_v31 = vsel %vm6039_vm15, %v6027_v25, %v6042_v17 }
 0x3e6   : > { %v6051_v55 = vsel %vm6039_vm15, %v6033_v32, %v6050_v61  ;;  %v7824_v50 = vadd.s32 4294967169, %v5906_v19  ;;  %vm16924_vm3 = vcmp.lt.s32.totalorder %v7702_v44, 0  ;;  %v2672_v27 = vsub.s32 0, %v12874_v23 }
 0x3e7   : > { %v12881_v18 = vsel %vm16924_vm3, 0, %v7702_v44  ;;  %v6052_v43 = vsel %vm6038_vm0, %v6049_v48, %v6051_v55  ;;  %v12884_v62 = vmul.u32.u64.low %v6053_v33, %v6048_v46  ;;  %v12885_v49 = vmul.u32.u64.high %v6053_v33, %v6048_v46, %v12884_v62 }
 0x3e8   : > { %v12889_v51 = vmul.u32.u64.low %v6053_v33, %v6052_v43  ;;  %v12890_v35 = vmul.u32.u64.high %v6053_v33, %v6052_v43, %v12889_v51  ;;  %v5912_v29 = vadd.s32 1, %v7824_v50  ;;  %8426 = vsinq.f32 %v12750_v20 }
 0x3e9   : > { %v12897_v32 = vsel %vm12863_vm14, %v12212_v60, %v12768_v5  ;;  %v2484_v44 = vxor.u32 2147483648, %v12832_v30  ;;  %v6044_v52 = vsel %vm6038_vm0, %v6041_v3, %v6043_v31  ;;  %v5883_v25 = vxor.u32 2147483648, %v12834_v63 }
 0x3ea   : > { %v16925_v28 = vshll.u32 %v12721_v38, %v12823_v54  ;;  %v5775_v56 = vor.u32 4788187, %v5774_v11  ;;  %vm5913_vm3 = vcmp.gt.s32.totalorder %v5912_v29, 0  ;;  %v2785_v20 = vsub.s32 4294967266, %v12881_v18 }
 0x3eb   : > { %v6063_v50 = vadd.s32 1, %v12885_v49  ;;  %v16926_v17 = vand.u32 2147483647, %v12819_v10  ;;  %v5914_v14 = vsel %vm5913_vm3, %v5912_v29, 0  ;;  %v7697_v48 = vmin.u32 %v2672_v27, %v12874_v23 }
 0x3ec   : > { %v5771_v19 = vor.u32 %v5770_v57, %v16925_v28  ;;  %v6060_v2 = vmul.u32 %v6053_v33, %v6044_v52  ;;  %vm6062_vm0 = vc.u32 %v12890_v35, %v12884_v62  ;;  %v2918_v46 = vand.u32 2139095040, %v12843_v59 }
 0x3ed   : > { %v5909_v5 = vand.u32 8388607, %v16926_v17  ;;  %8428 = vcosq.f32 %v12897_v32  ;;  %v12917_v38 = vsel %vm16321_vm10, %v2484_v44, %v12832_v30  ;;  %v6064_v54 = vsel %vm6062_vm0, %v6063_v50, %v12885_v49 }
 0x3ee   : > { %v5916_v57 = vand.u32 31, %v5914_v14  ;;  %v12923_v11 = vsel %vm16320_vm4, %v5883_v25, %v12834_v63  ;;  %v5778_v61 = vcvt.s32.f32 %v5771_v19  ;;  %v2765_v33 = vadd.s32 %v12712_v24, %v12718_v36 }
 0x3ef   : > { %v6065_v3 = vadd.s32 %v6064_v54, %v6060_v2  ;;  %v5776_v31 = vand.u32 2147483647, %v5775_v56  ;;  %v2781_v55 = vsub.s32 32, %v12881_v18  ;;  %v2786_v43 = vadd.s32 127, %v2785_v20 }
 0x3f0   : > { %v5917_v27 = vsub.s32 32, %v5916_v57  ;;  %v2674_v30 = vclz %v7697_v48  ;;  %v5910_v29 = vor.u32 8388608, %v5909_v5  ;;  %v2919_v49 = vshrl.u32 %v2918_v46, 23 }
 0x3f1   : > { %v6066_v51 = vadd.s32 536870912, %v6065_v3  ;;  %v5919_v44 = vshll.u32 %v16574_v12, %v5916_v57  ;;  %v5922_v63 = vshll.u32 %v16569_v13, %v5916_v57  ;;  %v5915_v24 = vshrl.u32 %v5914_v14, 5 }
 0x3f2   : > { %v5920_v52 = vshrl.u32 %v16569_v13, %v5917_v27  ;;  %v5923_v25 = vshrl.u32 %v16570_v6, %v5917_v27  ;;  %v5925_v36 = vshll.u32 %v16570_v6, %v5916_v57  ;;  %v5926_v19 = vshrl.u32 %v16571_v15, %v5917_v27  ;;  %v12936_v56 = vpop.eup %8426 }
 0x3f3   : > { %v12932_v28 = vshrl.u32 %v6066_v51, 30  ;;  %16928 = vst [vmem:[#allocation208_spill] sm:$0xff] %v12936_v56  ;;  %v5928_v17 = vshll.u32 %v16571_v15, %v5916_v57  ;;  %v5929_v5 = vshrl.u32 %v16572_v9, %v5917_v27  ;;  %v5779_v48 = vmul.f32 %v5778_v61, %v5776_v31 }
 0x3f4   : > { %v5921_v20 = vor.u32 %v5920_v52, %v5919_v44  ;;  %v5924_v50 = vor.u32 %v5923_v25, %v5922_v63  ;;  %v2783_v2 = vshrl.u32 %v2765_v33, %v2781_v55  ;;  %v2787_v46 = vshll.u32 %v2786_v43, 23 }
 0x3f5   : > { %16927 = vst [vmem:[#allocation207_spill] sm:$0xff] %v12932_v28  ;;  %v5927_v54 = vor.u32 %v5926_v19, %v5925_v36  ;;  %v16929_v51 = vand.u32 2147483647, %v12287_v42  ;;  %v16930_v14 = vmov 0  ;;  %v6068_v53 = vshll.u32 %v12932_v28, 30 }
 0x3f6   : > { %v5930_v60 = vor.u32 %v5929_v5, %v5928_v17  ;;  %v5931_v44 = vshll.u32 %v16572_v9, %v5916_v57  ;;  %v5932_v52 = vshrl.u32 %v16573_v8, %v5917_v27  ;;  %v16933_v63 = vand.u32 2147483647, %v12414_v37 }
 0x3f7   : > { %vm12942_vm12 = vcmp.le.f32.partialorder %v16929_v51, 0.7853982  ;;  %v16934_v61 = vmov 0  ;;  %v7698_v33 = vadd.s32 4294967294, %v2674_v30  ;;  %vm5934_vm15 = vcmp.lt.s32.totalorder %v5915_v24, 1  ;;  %v12955_v55 = vpop.eup %8428 }
 0x3f8   : > { %v16931_v14 = vsel %vm12942_vm12, 4294967295, %v16930_v14  ;;  %vm12951_vm2 = vcmp.le.f32.partialorder %v16933_v63, 0.7853982  ;;  %vm5937_vm3 = vcmp.lt.s32.totalorder %v5915_v24, 4  ;;  %v5950_v31 = vshll.u32 %v5910_v29, 8  ;;  %16937 = vst [vmem:[#allocation211_spill] sm:$0xff] %v12955_v55 }
 0x3f9   : > { %16932 = vst [vmem:[#allocation209_spill] sm:$0xff] %v16931_v14  ;;  %v16935_v61 = vsel %vm12951_vm2, 4294967295, %v16934_v61  ;;  %v5933_v43 = vor.u32 %v5932_v52, %v5931_v44  ;;  %v5939_v25 = vsel %vm5937_vm3, %v5927_v54, 2102212464  ;;  %v5942_v57 = vsel %vm5934_vm15, %v5921_v20, %v5924_v50 }
 0x3fa   : > { %16936 = vst [vmem:[#allocation210_spill] sm:$0xff] %v16935_v61  ;;  %v7708_v36 = vadd.s32 4294967169, %v2919_v49  ;;  %v5918_v19 = vshrl.u32 %v16574_v12, %v5917_v27  ;;  %vm5935_vm4 = vcmp.lt.s32.totalorder %v5915_v24, 2  ;;  %vm5936_vm10 = vcmp.lt.s32.totalorder %v5915_v24, 3 }
 0x3fb   : > { %v5943_v17 = vsel %vm5937_vm3, %v5930_v60, 920167782  ;;  %v12960_v5 = vsub.s32 %v6065_v3, %v6068_v53  ;;  %v5946_v51 = vsel %vm5934_vm15, %v5924_v50, %v5927_v54  ;;  %v5947_v29 = vsel %vm5937_vm3, %v5933_v43, 1326507024 }
 0x3fc   : > { %v5944_v30 = vsel %vm5936_vm10, %v5927_v54, %v5943_v17  ;;  %v5938_v63 = vsel %vm5934_vm15, %v5918_v19, %v5921_v20  ;;  %v5940_v28 = vsel %vm5936_vm10, %v5924_v50, %v5939_v25  ;;  %v5948_v52 = vsel %vm5936_vm10, %v5930_v60, %v5947_v29 }
 0x3fd   : > { %v5945_v44 = vsel %vm5935_vm4, %v5942_v57, %v5944_v30  ;;  %vm7699_vm0 = vcmp.lt.s32.totalorder %v7698_v33, 0  ;;  %v5949_v49 = vsel %vm5935_vm4, %v5946_v51, %v5948_v52  ;;  %v5780_v56 = vxor.u32 2147483648, %v5779_v48 }
 0x3fe   : > { %v12966_v55 = vmul.u32.u64.low %v5950_v31, %v5945_v44  ;;  %v12967_v27 = vmul.u32.u64.high %v5950_v31, %v5945_v44, %v12966_v55  ;;  %v2788_v53 = vor.u32 4788187, %v2787_v46  ;;  %v2782_v54 = vshll.u32 %v12789_v40, %v12881_v18 }
 0x3ff   : > { %v12970_v3 = vmul.u32.u64.low %v5950_v31, %v5949_v49  ;;  %v12971_v17 = vmul.u32.u64.high %v5950_v31, %v5949_v49, %v12970_v3  ;;  %v5941_v20 = vsel %vm5935_vm4, %v5938_v63, %v5940_v28  ;;  %v16326_v50 = vand.u32 2147483647, %v12843_v59 }
 0x400   : > { %v2925_v60 = vadd.s32 1, %v7708_v36  ;;  %8430 = vsinq.f32 %v12897_v32  ;;  %v2488_v43 = vsel %vm12942_vm12, %v12287_v42, %v12917_v38  ;;  %v12982_v25 = vsel %vm7699_vm0, 0, %v7698_v33  ;;  %v203_v32 = vpop.permute.xlu0 %202 }
 0x401   : > { %v6071_v46 = vsub.s32 0, %v12960_v5  ;;  %v12989_v18 = vsel %vm12951_vm2, %v12414_v37, %v12923_v11  ;;  %v2784_v40 = vor.u32 %v2783_v2, %v2782_v54  ;;  %v5960_v28 = vadd.s32 1, %v12967_v27 }
 0x402   : > { %vm2926_vm10 = vcmp.gt.s32.totalorder %v2925_v60, 0  ;;  %vm16938_vm4 = vcmp.lt.s32.totalorder %v12462_v26, 0  ;;  %v2789_v57 = vand.u32 2147483647, %v2788_v53  ;;  %v5957_v38 = vmul.u32 %v5950_v31, %v5941_v20 }
 0x403   : > { %v5781_v24 = vsel %vm16938_vm4, %v5780_v56, %v5779_v48  ;;  %vm5959_vm15 = vc.u32 %v12971_v17, %v12966_v55  ;;  %v2682_v33 = vsub.s32 4294967266, %v12982_v25  ;;  %v2922_v11 = vand.u32 8388607, %v16326_v50 }
 0x404   : > { %v5961_v36 = vsel %vm5959_vm15, %v5960_v28, %v12967_v27  ;;  %v2927_v2 = vsel %vm2926_vm10, %v2925_v60, 0  ;;  %8432 = vcosq.f32 %v2488_v43  ;;  %v7829_v19 = vmin.u32 %v6071_v46, %v12960_v5 }
 0x405   : > { %v5962_v30 = vadd.s32 %v5961_v36, %v5957_v38  ;;  %v436_v51 = vmul.f32 %v16538_v0, %v203_v32  ;;  %8434 = vsinq.f32 %v2488_v43  ;;  %v16939_v56 = vand.u32 2147483647, %v12462_v26 }
 0x406   : > { %v16940_v48 = vmov 0  ;;  %v2791_v31 = vcvt.s32.f32 %v2784_v40  ;;  %v2929_v29 = vand.u32 31, %v2927_v2  ;;  %8436 = vcosq.f32 %v12989_v18 }
 0x407   : > { %vm13004_vm3 = vcmp.le.f32.partialorder %v16939_v56, 0.7853982  ;;  %v2662_v44 = vadd.s32 %v12810_v22, %v12826_v45  ;;  %v5963_v52 = vadd.s32 536870912, %v5962_v30  ;;  %v2683_v27 = vadd.s32 127, %v2682_v33 }
 0x408   : > { %v16941_v48 = vsel %vm13004_vm3, 4294967295, %v16940_v48  ;;  %v13012_v63 = vsel %vm13004_vm3, %v12462_v26, %v5781_v24  ;;  %v13016_v49 = vmul.f32 %v2791_v31, %v2789_v57  ;;  %v2923_v53 = vor.u32 8388608, %v2922_v11 }
 0x409   : > { %16942 = vst [vmem:[#allocation212_spill] sm:$0xff] %v16941_v48  ;;  %v2930_v3 = vsub.s32 32, %v2929_v29  ;;  %v6073_v54 = vclz %v7829_v19  ;;  %v2932_v20 = vshll.u32 %v16574_v12, %v2929_v29  ;;  %v2935_v60 = vshll.u32 %v16569_v13, %v2929_v29 }
 0x40a   : > { %v13021_v43 = vadd.f32 %v16537_v1, %v436_v51  ;;  %v13023_v46 = vshrl.u32 %v5963_v52, 30  ;;  %v13028_v28 = vpop.eup %8430  ;;  %v2928_v32 = vshrl.u32 %v2927_v2, 5  ;;  %v2938_v24 = vshll.u32 %v16570_v6, %v2929_v29 }
 0x40b   : > { %v2933_v40 = vshrl.u32 %v16569_v13, %v2930_v3  ;;  %v2936_v22 = vshrl.u32 %v16570_v6, %v2930_v3  ;;  %v2939_v45 = vshrl.u32 %v16571_v15, %v2930_v3  ;;  %16944 = vst [vmem:[#allocation214_spill] sm:$0xff] %v13028_v28  ;;  %v2941_v57 = vshll.u32 %v16571_v15, %v2929_v29  ;;  %v16958_v28 = vld [vmem:[#allocation21_spill] sm:$0xff] }
 0x40c   : > { %16943 = vst [vmem:[#allocation213_spill] sm:$0xff] %v13023_v46  ;;  %v2942_v38 = vshrl.u32 %v16572_v9, %v2930_v3  ;;  %v2793_v33 = vxor.u32 2147483648, %v13016_v49  ;;  %v13034_v19 = vshll.u32 %v2923_v53, 8  ;;  %v2944_v31 = vshll.u32 %v16572_v9, %v2929_v29 }
 0x40d   : > { %v2934_v36 = vor.u32 %v2933_v40, %v2932_v20  ;;  %v2937_v11 = vor.u32 %v2936_v22, %v2935_v60  ;;  %v2940_v51 = vor.u32 %v2939_v45, %v2938_v24  ;;  %v2945_v52 = vshrl.u32 %v16573_v8, %v2930_v3 }
 0x40e   : > { %v2943_v56 = vor.u32 %v2942_v38, %v2941_v57  ;;  %v2678_v2 = vsub.s32 32, %v12982_v25  ;;  %v2684_v50 = vshll.u32 %v2683_v27, 23  ;;  %v5965_v61 = vshll.u32 %v13023_v46, 30  ;;  %v13041_v48 = vpop.eup %8432 }
 0x40f   : > { %v2815_v37 = vand.u32 2139095040, %v13021_v43  ;;  %16945 = vst [vmem:[#allocation215_spill] sm:$0xff] %v13041_v48  ;;  %v7830_v26 = vadd.s32 4294967294, %v6073_v54  ;;  %v2946_v20 = vor.u32 %v2945_v52, %v2944_v31  ;;  %vm2947_vm0 = vcmp.lt.s32.totalorder %v2928_v32, 1  ;;  %v13043_v53 = vpop.eup %8434 }
 0x410   : > { %vm2950_vm10 = vcmp.lt.s32.totalorder %v2928_v32, 4  ;;  %16946 = vst [vmem:[#allocation216_spill] sm:$0xff] %v13043_v53  ;;  %v2931_v60 = vshrl.u32 %v16574_v12, %v2930_v3  ;;  %vm2949_vm4 = vcmp.lt.s32.totalorder %v2928_v32, 3  ;;  %v2955_v29 = vsel %vm2947_vm0, %v2934_v36, %v2937_v11  ;;  %v13047_v22 = vpop.eup %8436 }
 0x411   : > { %v2956_v40 = vsel %vm2950_vm10, %v2943_v56, 920167782  ;;  %16947 = vst [vmem:[#allocation217_spill] sm:$0xff] %v13047_v22  ;;  %vm2948_vm15 = vcmp.lt.s32.totalorder %v2928_v32, 2  ;;  %v2952_v27 = vsel %vm2950_vm10, %v2940_v51, 2102212464  ;;  %v2959_v24 = vsel %vm2947_vm0, %v2937_v11, %v2940_v51 }
 0x412   : > { %v2957_v45 = vsel %vm2949_vm4, %v2940_v51, %v2956_v40  ;;  %v13051_v54 = vsub.s32 %v5962_v30, %v5965_v61  ;;  %v2960_v38 = vsel %vm2950_vm10, %v2946_v20, 1326507024  ;;  %v2816_v31 = vshrl.u32 %v2815_v37, 23 }
 0x413   : > { %v2958_v57 = vsel %vm2948_vm15, %v2955_v29, %v2957_v45  ;;  %v16948_v3 = vand.u32 2147483647, %v12576_v58  ;;  %v16949_v52 = vmov 0  ;;  %v2680_v46 = vshrl.u32 %v2662_v44, %v2678_v2 }
 0x414   : > { %vm7831_vm3 = vcmp.lt.s32.totalorder %v7830_v26, 0  ;;  %v2951_v22 = vsel %vm2947_vm0, %v2931_v60, %v2934_v36  ;;  %v2961_v40 = vsel %vm2949_vm4, %v2943_v56, %v2960_v38  ;;  %v2953_v51 = vsel %vm2949_vm4, %v2937_v11, %v2952_v27 }
 0x415   : > { %vm13056_vm2 = vcmp.le.f32.partialorder %v16948_v3, 0.7853982  ;;  %v2962_v61 = vsel %vm2948_vm15, %v2959_v24, %v2961_v40  ;;  %v13065_v30 = vmul.u32.u64.low %v13034_v19, %v2958_v57  ;;  %v13066_v20 = vmul.u32.u64.high %v13034_v19, %v2958_v57, %v13065_v30  ;;  %v16952_v24 = vld [vmem:[#allocation10_spill] sm:$0xff] }
 0x416   : > { %v16950_v52 = vsel %vm13056_vm2, 4294967295, %v16949_v52  ;;  %v2679_v37 = vshll.u32 %v12874_v23, %v12982_v25  ;;  %v2685_v29 = vor.u32 4788187, %v2684_v50  ;;  %8438 = vsinq.f32 %v12989_v18 }
 0x417   : > { %16951 = vst [vmem:[#allocation218_spill] sm:$0xff] %v16950_v52  ;;  %v13072_v44 = vmul.u32.u64.low %v13034_v19, %v2962_v61  ;;  %v13073_v2 = vmul.u32.u64.high %v13034_v19, %v2962_v61, %v13072_v44  ;;  %v13076_v36 = vsel %vm7831_vm3, 0, %v7830_v26  ;;  %v5968_v11 = vsub.s32 0, %v13051_v54 }
 0x418   : > { %v7704_v56 = vadd.s32 4294967169, %v2816_v31  ;;  %8440 = vcosq.f32 %v13012_v63  ;;  %v2681_v60 = vor.u32 %v2680_v46, %v2679_v37  ;;  %v2954_v27 = vsel %vm2948_vm15, %v2951_v22, %v2953_v51 }
 0x419   : > { %v16338_v45 = vand.u32 2147483647, %v13021_v43  ;;  %8442 = vsinq.f32 %v13012_v63  ;;  %vm16357_vm0 = vcmp.lt.s32.totalorder %v12576_v58, 0  ;;  %v2973_v23 = vadd.s32 1, %v13066_v20 }
 0x41a   : > { %v2822_v50 = vadd.s32 1, %v7704_v56  ;;  %v2794_v26 = vsel %vm16357_vm0, %v2793_v33, %v13016_v49  ;;  %v2686_v25 = vand.u32 2147483647, %v2685_v29  ;;  %v6081_v18 = vsub.s32 4294967266, %v13076_v36 }
 0x41b   : > { %v16339_v46 = vand.u32 2147483647, %v16952_v24  ;;  %v13091_v32 = vmin.u32 %v5968_v11, %v13051_v54  ;;  %v2970_v22 = vmul.u32 %v13034_v19, %v2954_v27  ;;  %vm2972_vm3 = vc.u32 %v13073_v2, %v13065_v30 }
 0x41c   : > { %vm2823_vm10 = vcmp.gt.s32.totalorder %v2822_v50, 0  ;;  %v2688_v63 = vcvt.s32.f32 %v2681_v60  ;;  %v2974_v57 = vsel %vm2972_vm3, %v2973_v23, %v13066_v20  ;;  %v2819_v49 = vand.u32 8388607, %v16338_v45  ;;  %v16953_v20 = vld [vmem:[#allocation18_spill] sm:$0xff] }
 0x41d   : > { %v2824_v33 = vsel %vm2823_vm10, %v2822_v50, 0  ;;  %v13102_v38 = vsel %vm13056_vm2, %v12576_v58, %v2794_v26  ;;  %v13106_v31 = vadd.s32 %v12884_v62, %v12890_v35  ;;  %v2975_v19 = vadd.s32 %v2974_v57, %v2970_v22 }
 0x41e   : > { %v2826_v3 = vand.u32 31, %v2824_v33  ;;  %v13108_v40 = vmul.f32 %v2688_v63, %v2686_v25  ;;  %v6077_v51 = vsub.s32 32, %v13076_v36  ;;  %v13113_v61 = vand.u32 8388607, %v16339_v46 }
 0x41f   : > { %v563_v37 = vshll.u32 %v16574_v12, %v16953_v20  ;;  %v13117_v29 = vadd.s32 127, %v6081_v18  ;;  %v5970_v44 = vclz %v13091_v32  ;;  %v2976_v11 = vadd.s32 536870912, %v2975_v19 }
 0x420   : > { %v2827_v62 = vsub.s32 32, %v2826_v3  ;;  %v2820_v35 = vor.u32 8388608, %v2819_v49  ;;  %v2825_v56 = vshrl.u32 %v2824_v33, 5  ;;  %v2829_v60 = vshll.u32 %v16574_v12, %v2826_v3  ;;  %v13122_v23 = vpop.eup %8438 }
 0x421   : > { %v2832_v27 = vshll.u32 %v16569_v13, %v2826_v3  ;;  %16954 = vst [vmem:[#allocation10_spill] sm:$0xff] %v13122_v23  ;;  %v13124_v50 = vshrl.u32 %v2976_v11, 30  ;;  %v2835_v18 = vshll.u32 %v16570_v6, %v2826_v3  ;;  %v2838_v63 = vshll.u32 %v16571_v15, %v2826_v3 }
 0x422   : > { %v2830_v26 = vshrl.u32 %v16569_v13, %v2827_v62  ;;  %v2833_v25 = vshrl.u32 %v16570_v6, %v2827_v62  ;;  %v13129_v22 = vpop.eup %8440  ;;  %v2836_v32 = vshrl.u32 %v16571_v15, %v2827_v62  ;;  %v2839_v57 = vshrl.u32 %v16572_v9, %v2827_v62 }
 0x423   : > { %16955 = vst [vmem:[#allocation18_spill] sm:$0xff] %v13124_v50  ;;  %16956 = vst [vmem:[#allocation219_spill] sm:$0xff] %v13129_v22  ;;  %v2841_v49 = vshll.u32 %v16572_v9, %v2826_v3  ;;  %v13135_v33 = vpop.eup %8442  ;;  %v2978_v11 = vshll.u32 %v13124_v50, 30  ;;  %v2842_v52 = vshrl.u32 %v16573_v8, %v2827_v62  ;;  %v564_v22 = vshrl.u32 %v16569_v13, %v16958_v28 }
 0x424   : > { %16957 = vst [vmem:[#allocation220_spill] sm:$0xff] %v13135_v33  ;;  %v2831_v45 = vor.u32 %v2830_v26, %v2829_v60  ;;  %v2834_v46 = vor.u32 %v2833_v25, %v2832_v27  ;;  %v2837_v58 = vor.u32 %v2836_v32, %v2835_v18  ;;  %v2840_v23 = vor.u32 %v2839_v57, %v2838_v63 }
 0x425   : > { %v567_v48 = vshrl.u32 %v16570_v6, %v16958_v28  ;;  %v13143_v14 = vsub.s32 %v2975_v19, %v2978_v11  ;;  %v2843_v53 = vor.u32 %v2842_v52, %v2841_v49  ;;  %vm2844_vm4 = vcmp.lt.s32.totalorder %v2825_v56, 1 }
 0x426   : > { %v2860_v3 = vshll.u32 %v2820_v35, 8  ;;  %v2828_v33 = vshrl.u32 %v16574_v12, %v2827_v62  ;;  %vm2847_vm15 = vcmp.lt.s32.totalorder %v2825_v56, 4  ;;  %v2852_v60 = vsel %vm2844_vm4, %v2831_v45, %v2834_v46 }
 0x427   : > { %v570_v27 = vshrl.u32 %v16571_v15, %v16958_v28  ;;  %v2981_v26 = vsub.s32 0, %v13143_v14  ;;  %vm2846_vm3 = vcmp.lt.s32.totalorder %v2825_v56, 3  ;;  %v2849_v25 = vsel %vm2847_vm15, %v2837_v58, 2102212464 }
 0x428   : > { %v2853_v18 = vsel %vm2847_vm15, %v2840_v23, 920167782  ;;  %vm2845_vm10 = vcmp.lt.s32.totalorder %v2825_v56, 2  ;;  %v2856_v63 = vsel %vm2844_vm4, %v2834_v46, %v2837_v58  ;;  %v2857_v19 = vsel %vm2847_vm15, %v2843_v53, 1326507024 }
 0x429   : > { %v2854_v32 = vsel %vm2846_vm3, %v2837_v58, %v2853_v18  ;;  %v2848_v57 = vsel %vm2844_vm4, %v2828_v33, %v2831_v45  ;;  %v566_v62 = vshll.u32 %v16569_v13, %v16953_v20  ;;  %v569_v35 = vshll.u32 %v16570_v6, %v16953_v20 }
 0x42a   : > { %v2855_v52 = vsel %vm2845_vm10, %v2852_v60, %v2854_v32  ;;  %v2850_v49 = vsel %vm2846_vm3, %v2834_v46, %v2849_v25  ;;  %v2858_v11 = vsel %vm2846_vm3, %v2840_v23, %v2857_v19  ;;  %v7709_v41 = vmin.u32 %v2981_v26, %v13143_v14  ;;  %v16959_v25 = vld [vmem:[#allocation19_spill] sm:$0xff]  ;;  %v16962_v19 = vld [vmem:[#allocation36_spill] sm:$0xff] }
 0x42b   : > { %v13154_v50 = vmul.u32.u64.low %v2860_v3, %v2855_v52  ;;  %v13155_v42 = vmul.u32.u64.high %v2860_v3, %v2855_v52, %v13154_v50  ;;  %v2859_v58 = vsel %vm2845_vm10, %v2856_v63, %v2858_v11  ;;  %v565_v53 = vor.u32 %v564_v22, %v563_v37 }
 0x42c   : > { %v568_v45 = vor.u32 %v567_v48, %v566_v62  ;;  %v7826_v33 = vadd.s32 4294967294, %v5970_v44  ;;  %v13160_v60 = vmul.u32.u64.low %v2860_v3, %v2859_v58  ;;  %v13161_v18 = vmul.u32.u64.high %v2860_v3, %v2859_v58, %v13160_v60 }
 0x42d   : > { %v571_v32 = vor.u32 %v570_v27, %v569_v35  ;;  %v6079_v34 = vshrl.u32 %v13106_v31, %v6077_v51  ;;  %v2851_v46 = vsel %vm2845_vm10, %v2848_v57, %v2850_v49  ;;  %v554_v20 = vor.u32 8388608, %v13113_v61  ;;  %v16961_v51 = vld [vmem:[#allocation35_spill] sm:$0xff]  ;;  %v16963_v57 = vld [vmem:[#allocation25_spill] sm:$0xff] }
 0x42e   : > { %v562_v23 = vshrl.u32 %v16574_v12, %v16958_v28  ;;  %v2870_v26 = vadd.s32 1, %v13155_v42  ;;  %vm578_vm4 = vcmp.lt.s32.totalorder %v16959_v25, 1  ;;  %vm580_vm15 = vcmp.lt.s32.totalorder %v16959_v25, 3 }
 0x42f   : > { %vm16960_vm3 = vcmp.lt.s32.totalorder %v16959_v25, 4  ;;  %v6083_v37 = vshll.u32 %v13117_v29, 23  ;;  %v2983_v44 = vclz %v7709_v41  ;;  %v586_v31 = vsel %vm578_vm4, %v565_v53, %v568_v45 }
 0x430   : > { %v583_v48 = vsel %vm16960_vm3, %v571_v32, 2102212464  ;;  %v588_v61 = vsel %vm580_vm15, %v571_v32, %v16961_v51  ;;  %vm7827_vm10 = vcmp.lt.s32.totalorder %v7826_v33, 0  ;;  %v2867_v56 = vmul.u32 %v2860_v3, %v2851_v46 }
 0x431   : > { %vm2869_vm0 = vc.u32 %v13161_v18, %v13154_v50  ;;  %v590_v28 = vsel %vm578_vm4, %v568_v45, %v571_v32  ;;  %vm579_vm2 = vcmp.lt.s32.totalorder %v16959_v25, 2  ;;  %v582_v27 = vsel %vm578_vm4, %v562_v23, %v565_v53  ;;  %v16964_v53 = vld [vmem:[#allocation13_spill] sm:$0xff] }
 0x432   : > { %v2871_v22 = vsel %vm2869_vm0, %v2870_v26, %v13155_v42  ;;  %v584_v29 = vsel %vm580_vm15, %v568_v45, %v583_v48  ;;  %v589_v63 = vsel %vm579_vm2, %v586_v31, %v588_v61  ;;  %v592_v52 = vsel %vm580_vm15, %v16963_v57, %v16962_v19  ;;  %v16969_v61 = vld [vmem:[#allocation29_spill] sm:$0xff] }
 0x433   : > { %v2872_v41 = vadd.s32 %v2871_v22, %v2867_v56  ;;  %v594_v3 = vshll.u32 %v554_v20, 8  ;;  %v6084_v62 = vor.u32 4788187, %v6083_v37  ;;  %v13187_v35 = vsel %vm7827_vm10, 0, %v7826_v33  ;;  %v16966_v20 = vld [vmem:[#allocation28_spill] sm:$0xff] }
 0x434   : > { %v7710_v49 = vadd.s32 4294967294, %v2983_v44  ;;  %v593_v11 = vsel %vm579_vm2, %v590_v28, %v592_v52  ;;  %v649_v32 = vand.u32 2147483647, %v16964_v53  ;;  %v6078_v45 = vshll.u32 %v12960_v5, %v13076_v36  ;;  %v16970_v28 = vld [vmem:[#allocation46_spill] sm:$0xff] }
 0x435   : > { %v2873_v42 = vadd.s32 536870912, %v2872_v41  ;;  %v13189_v58 = vmul.u32.u64.low %v594_v3, %v593_v11  ;;  %v13190_v60 = vmul.u32.u64.high %v594_v3, %v593_v11, %v13189_v58  ;;  %v585_v46 = vsel %vm579_vm2, %v582_v27, %v584_v29 }
 0x436   : > { %v13195_v23 = vmul.u32.u64.low %v594_v3, %v589_v63  ;;  %v13196_v26 = vmul.u32.u64.high %v594_v3, %v589_v63, %v13195_v23  ;;  %v16965_v33 = vor.u32 %v11397_v39, %v16836_v16  ;;  %vm16967_vm0 = vcmp.lt.s32.totalorder %v16966_v20, 4 }
 0x437   : > { %8444 = vcosq.f32 %v13102_v38  ;;  %v2690_v48 = vxor.u32 2147483648, %v13108_v40  ;;  %v13206_v37 = vshrl.u32 %v2873_v42, 30  ;;  %v6080_v44 = vor.u32 %v6079_v34, %v6078_v45 }
 0x438   : > { %v694_v25 = vsel %vm16967_vm0, %v16965_v33, 1326507024  ;;  %v6085_v31 = vand.u32 2147483647, %v6084_v62  ;;  %v5978_v5 = vsub.s32 4294967266, %v13187_v35  ;;  %vm7711_vm2 = vcmp.lt.s32.totalorder %v7710_v49, 0 }
 0x439   : > { %16968 = vst [vmem:[#allocation21_spill] sm:$0xff] %v13206_v37  ;;  %v2875_v36 = vshll.u32 %v13206_v37, 30  ;;  %v601_v51 = vmul.u32 %v594_v3, %v585_v46  ;;  %vm603_vm4 = vc.u32 %v13190_v60, %v13195_v23  ;;  %v656_v39 = vand.u32 8388607, %v649_v32 }
 0x43a   : > { %v604_v16 = vadd.s32 1, %v13196_v26  ;;  %v666_v56 = vshll.u32 %v16574_v12, %v16969_v61  ;;  %v667_v34 = vshrl.u32 %v16569_v13, %v16970_v28  ;;  %v669_v22 = vshll.u32 %v16569_v13, %v16969_v61 }
 0x43b   : > { %v13221_v27 = vsub.s32 %v2872_v41, %v2875_v36  ;;  %v670_v29 = vshrl.u32 %v16570_v6, %v16970_v28  ;;  %v672_v63 = vshll.u32 %v16570_v6, %v16969_v61  ;;  %v673_v19 = vshrl.u32 %v16571_v15, %v16970_v28 }
 0x43c   : > { %v5974_v57 = vsub.s32 32, %v13187_v35  ;;  %v5979_v52 = vadd.s32 127, %v5978_v5  ;;  %v605_v3 = vsel %vm603_vm4, %v604_v16, %v13196_v26  ;;  %v668_v62 = vor.u32 %v667_v34, %v666_v56  ;;  %v16971_v16 = vld [vmem:[#allocation174_spill] sm:$0xff] }
 0x43d   : > { %v5958_v11 = vadd.s32 %v12966_v55, %v12971_v17  ;;  %v606_v41 = vadd.s32 %v605_v3, %v601_v51  ;;  %v671_v42 = vor.u32 %v670_v29, %v669_v22  ;;  %v674_v58 = vor.u32 %v673_v19, %v672_v63  ;;  %v16978_v63 = vld [vmem:[#allocation48_spill] sm:$0xff] }
 0x43e   : > { %vm16360_vm15 = vcmp.lt.s32.totalorder %v12693_v4, 0  ;;  %v6087_v45 = vcvt.s32.f32 %v6080_v44  ;;  %v13235_v46 = vsel %vm7711_vm2, 0, %v7710_v49  ;;  %v657_v33 = vor.u32 8388608, %v656_v39 }
 0x43f   : > { %vm681_vm3 = vcmp.lt.s32.totalorder %v16966_v20, 1  ;;  %v2878_v5 = vsub.s32 0, %v13221_v27  ;;  %v607_v36 = vadd.s32 536870912, %v606_v41  ;;  %vm683_vm10 = vcmp.lt.s32.totalorder %v16966_v20, 3 }
 0x440   : > { %v689_v55 = vsel %vm681_vm3, %v668_v62, %v671_v42  ;;  %v6088_v17 = vmul.f32 %v6087_v45, %v6085_v31  ;;  %v5976_v26 = vshrl.u32 %v5958_v11, %v5974_v57  ;;  %v5980_v51 = vshll.u32 %v5979_v52, 23 }
 0x441   : > { %v691_v44 = vsel %vm683_vm10, %v674_v58, %v16971_v16  ;;  %v13245_v49 = vpop.eup %8444  ;;  %v16973_v39 = vand.u32 2147483647, %v12693_v4  ;;  %v16974_v61 = vmov 0  ;;  %v2991_v56 = vsub.s32 4294967266, %v13235_v46 }
 0x442   : > { %16972 = vst [vmem:[#allocation19_spill] sm:$0xff] %v13245_v49  ;;  %v13254_v34 = vshrl.u32 %v607_v36, 30  ;;  %vm682_vm2 = vcmp.lt.s32.totalorder %v16966_v20, 2  ;;  %v693_v31 = vsel %vm681_vm3, %v671_v42, %v674_v58  ;;  %vm16977_vm4 = vcmp.lt.s32.totalorder %v16966_v20, 4 }
 0x443   : > { %vm13249_vm0 = vcmp.le.f32.partialorder %v16973_v39, 0.7853982  ;;  %v686_v22 = vsel %vm16977_vm4, %v674_v58, 2102212464  ;;  %v692_v29 = vsel %vm682_vm2, %v689_v55, %v691_v44  ;;  %v695_v19 = vsel %vm683_vm10, %v16978_v63, %v694_v25 }
 0x444   : > { %v16975_v61 = vsel %vm13249_vm0, 4294967295, %v16974_v61  ;;  %v697_v57 = vshll.u32 %v657_v33, 8  ;;  %v5975_v52 = vshll.u32 %v13051_v54, %v13187_v35  ;;  %v7705_v3 = vmin.u32 %v2878_v5, %v13221_v27 }
 0x445   : > { %16976 = vst [vmem:[#allocation35_spill] sm:$0xff] %v16975_v61  ;;  %v609_v11 = vshll.u32 %v13254_v34, 30  ;;  %v665_v45 = vshrl.u32 %v16574_v12, %v16970_v28  ;;  %v5981_v36 = vor.u32 4788187, %v5980_v51  ;;  %v696_v58 = vsel %vm682_vm2, %v693_v31, %v695_v19 }
 0x446   : > { %v13274_v55 = vmul.u32.u64.low %v697_v57, %v692_v29  ;;  %v13275_v16 = vmul.u32.u64.high %v697_v57, %v692_v29, %v13274_v55  ;;  %v5977_v25 = vor.u32 %v5976_v26, %v5975_v52  ;;  %v687_v35 = vsel %vm683_vm10, %v671_v42, %v686_v22 }
 0x447   : > { %v13278_v33 = vsub.s32 %v606_v41, %v609_v11  ;;  %v685_v54 = vsel %vm681_vm3, %v665_v45, %v668_v62  ;;  %v2987_v5 = vsub.s32 32, %v13235_v46  ;;  %v2992_v28 = vadd.s32 127, %v2991_v56 }
 0x448   : > { %v13285_v51 = vmul.u32.u64.low %v697_v57, %v696_v58  ;;  %v13286_v44 = vmul.u32.u64.high %v697_v57, %v696_v58, %v13285_v51  ;;  %v2691_v26 = vsel %vm16360_vm15, %v2690_v48, %v13108_v40  ;;  %v6089_v41 = vxor.u32 2147483648, %v6088_v17 }
 0x449   : > { %v2880_v39 = vclz %v7705_v3  ;;  %v612_v31 = vsub.s32 0, %v13278_v33  ;;  %v5982_v62 = vand.u32 2147483647, %v5981_v36  ;;  %v2971_v42 = vadd.s32 %v13065_v30, %v13073_v2 }
 0x44a   : > { %v688_v56 = vsel %vm682_vm2, %v685_v54, %v687_v35  ;;  %v707_v22 = vadd.s32 1, %v13275_v16  ;;  %8446 = vsinq.f32 %v13102_v38  ;;  %vm16359_vm3 = vcmp.lt.s32.totalorder %v12757_v21, 0 }
 0x44b   : > { %vm16361_vm10 = vcmp.lt.s32.totalorder %v16952_v24, 0  ;;  %v7617_v40 = vmin.u32 %v612_v31, %v13278_v33  ;;  %v13306_v48 = vsel %vm13249_vm0, %v12693_v4, %v2691_v26  ;;  %v5984_v29 = vcvt.s32.f32 %v5977_v25  ;;  %v16984_v26 = vld [vmem:[#allocation16_spill] sm:$0xff] }
 0x44c   : > { %v2989_v30 = vshrl.u32 %v2971_v42, %v2987_v5  ;;  %v2993_v2 = vshll.u32 %v2992_v28, 23  ;;  %v7706_v20 = vadd.s32 4294967294, %v2880_v39  ;;  %v704_v19 = vmul.u32 %v697_v57, %v688_v56 }
 0x44d   : > { %v614_v63 = vclz %v7617_v40  ;;  %vm706_vm2 = vc.u32 %v13286_v44, %v13274_v55  ;;  %v13312_v38 = vsel %vm16359_vm3, %v6089_v41, %v6088_v17  ;;  %v13314_v52 = vmul.f32 %v5984_v29, %v5982_v62 }
 0x44e   : > { %v2988_v3 = vshll.u32 %v13143_v14, %v13235_v46  ;;  %v708_v11 = vsel %vm706_vm2, %v707_v22, %v13275_v16  ;;  %v13321_v45 = vadd.s32 %v13154_v50, %v13161_v18  ;;  %v16979_v57 = vand.u32 2147483647, %v16952_v24  ;;  %v16982_v46 = vld [vmem:[#allocation9_spill] sm:$0xff]  ;;  %v16983_v16 = vld [vmem:[#allocation20_spill] sm:$0xff] }
 0x44f   : > { %v7618_v58 = vadd.s32 4294967294, %v614_v63  ;;  %v632_v17 = vsub.s32 4, %v13254_v34  ;;  %v709_v25 = vadd.s32 %v708_v11, %v704_v19  ;;  %v13332_v35 = vor.u32 4788187, %v2993_v2 }
 0x450   : > { %vm13325_vm4 = vcmp.le.f32.partialorder %v16979_v57, 0.7853982  ;;  %v13330_v54 = vor.u32 %v2989_v30, %v2988_v3  ;;  %v602_v14 = vadd.s32 %v13195_v23, %v13190_v60  ;;  %v16363_v50 = vand.u32 2147483647, %v16982_v46 }
 0x451   : > { %vm7707_vm2 = vcmp.lt.s32.totalorder %v7706_v20, 0  ;;  %vm7619_vm3 = vcmp.lt.s32.totalorder %v7618_v58, 0  ;;  %v710_v18 = vadd.s32 536870912, %v709_v25  ;;  %v3860_v5 = vshrl.u32 %v16569_v13, %v16983_v16 }
 0x452   : > { %v617_v28 = vsel %vm7619_vm3, 0, %v7618_v58  ;;  %v3863_v51 = vshrl.u32 %v16570_v6, %v16983_v16  ;;  %v3865_v41 = vshll.u32 %v16570_v6, %v16984_v26  ;;  %v3866_v39 = vshrl.u32 %v16571_v15, %v16983_v16 }
 0x453   : > { %v618_v31 = vsub.s32 32, %v617_v28  ;;  %v622_v60 = vsub.s32 4294967266, %v617_v28  ;;  %v633_v23 = vsel %vm16361_vm10, %v632_v17, %v13254_v34  ;;  %v3859_v62 = vshll.u32 %v16574_v12, %v16984_v26 }
 0x454   : > { %v711_v42 = vshrl.u32 %v710_v18, 30  ;;  %v3849_v56 = vand.u32 8388607, %v16363_v50  ;;  %v3862_v22 = vshll.u32 %v16569_v13, %v16984_v26  ;;  %v3867_v40 = vor.u32 %v3866_v39, %v3865_v41  ;;  %v13354_v29 = vpop.eup %8446  ;;  %v16986_v26 = vld [vmem:[#allocation15_spill] sm:$0xff] }
 0x455   : > { %16985 = vst [vmem:[#allocation36_spill] sm:$0xff] %v13354_v29  ;;  %v619_v30 = vshll.u32 %v13278_v33, %v617_v28  ;;  %v620_v2 = vshrl.u32 %v602_v14, %v618_v31  ;;  %v623_v63 = vadd.s32 127, %v622_v60  ;;  %v3861_v19 = vor.u32 %v3860_v5, %v3859_v62 }
 0x456   : > { %v712_v11 = vshll.u32 %v711_v42, 30  ;;  %v3864_v57 = vor.u32 %v3863_v51, %v3862_v22  ;;  %v3858_v18 = vshrl.u32 %v16574_v12, %v16983_v16  ;;  %vm16987_vm3 = vcmp.lt.s32.totalorder %v16986_v26, 4  ;;  %v16988_v22 = vld [vmem:[#allocation30_spill] sm:$0xff] }
 0x457   : > { %v621_v58 = vor.u32 %v620_v2, %v619_v30  ;;  %v624_v17 = vshll.u32 %v623_v63, 23  ;;  %v3879_v41 = vsel %vm16987_vm3, %v3867_v40, 2102212464  ;;  %v13364_v39 = vsel %vm7707_vm2, 0, %v7706_v20  ;;  %v16989_v2 = vld [vmem:[#allocation32_spill] sm:$0xff]  ;;  %v16990_v63 = vld [vmem:[#allocation23_spill] sm:$0xff] }
 0x458   : > { %v635_v33 = vsel %vm13325_vm4, 0, %v633_v23  ;;  %vm16365_vm15 = vcmp.lt.s32.totalorder %v16964_v53, 0  ;;  %v13369_v14 = vsub.s32 %v709_v25, %v712_v11  ;;  %vm3874_vm10 = vcmp.lt.s32.totalorder %v16986_v26, 1 }
 0x459   : > { %v625_v5 = vor.u32 4788187, %v624_v17  ;;  %v3850_v28 = vor.u32 8388608, %v3849_v56  ;;  %vm3876_vm0 = vcmp.lt.s32.totalorder %v16986_v26, 3  ;;  %v3878_v16 = vsel %vm3874_vm10, %v3858_v18, %v3861_v19 }
 0x45a   : > { %v628_v51 = vcvt.s32.f32 %v621_v58  ;;  %v715_v31 = vsub.s32 0, %v13369_v14  ;;  %v3880_v60 = vsel %vm3876_vm0, %v3864_v57, %v3879_v41  ;;  %v3882_v20 = vsel %vm3874_vm10, %v3861_v19, %v3864_v57 }
 0x45b   : > { %v626_v62 = vand.u32 2147483647, %v625_v5  ;;  %v3884_v30 = vsel %vm3876_vm0, %v3867_v40, %v16988_v22  ;;  %v3886_v23 = vsel %vm3874_vm10, %v3864_v57, %v3867_v40  ;;  %v3888_v25 = vsel %vm3876_vm0, %v16990_v63, %v16989_v2  ;;  %v16991_v22 = vld [vmem:[#allocation12_spill] sm:$0xff] }
 0x45c   : > { %v2884_v11 = vsub.s32 32, %v13364_v39  ;;  %v7621_v17 = vmin.u32 %v715_v31, %v13369_v14  ;;  %v735_v56 = vsub.s32 4, %v711_v42  ;;  %vm3875_vm2 = vcmp.lt.s32.totalorder %v16986_v26, 2 }
 0x45d   : > { %v629_v18 = vmul.f32 %v628_v51, %v626_v62  ;;  %v3885_v58 = vsel %vm3875_vm2, %v3882_v20, %v3884_v30  ;;  %v3889_v3 = vsel %vm3875_vm2, %v3886_v23, %v3888_v25  ;;  %v3890_v34 = vshll.u32 %v3850_v28, 8  ;;  %v16994_v62 = vld [vmem:[#allocation33_spill] sm:$0xff] }
 0x45e   : > { %v2888_v19 = vsub.s32 4294967266, %v13364_v39  ;;  %v717_v41 = vclz %v7621_v17  ;;  %v3881_v5 = vsel %vm3875_vm2, %v3878_v16, %v3880_v60  ;;  %v16364_v40 = vand.u32 2147483647, %v16991_v22 }
 0x45f   : > { %v630_v57 = vxor.u32 2147483648, %v629_v18  ;;  %v13382_v50 = vand.u32 3, %v635_v33  ;;  %v13384_v2 = vmul.u32.u64.low %v3890_v34, %v3889_v3  ;;  %v13385_v63 = vmul.u32.u64.high %v3890_v34, %v3889_v3, %v13384_v2 }
 0x460   : > { %v705_v31 = vadd.s32 %v13274_v55, %v13286_v44  ;;  %v7622_v26 = vadd.s32 4294967294, %v717_v41  ;;  %v13389_v51 = vmul.u32.u64.low %v3890_v34, %v3885_v58  ;;  %v13390_v20 = vmul.u32.u64.high %v3890_v34, %v3885_v58, %v13389_v51  ;;  %v16993_v44 = vld [vmem:[#allocation26_spill] sm:$0xff] }
 0x461   : > { %vm16992_vm0 = vcmp.lt.s32.totalorder %v16952_v24, 0  ;;  %v13397_v16 = vsel %vm16365_vm15, %v735_v56, %v711_v42  ;;  %v3897_v33 = vmul.u32 %v3890_v34, %v3881_v5  ;;  %v3952_v3 = vand.u32 8388607, %v16364_v40 }
 0x462   : > { %v631_v28 = vsel %vm16992_vm0, %v630_v57, %v629_v18  ;;  %vm7623_vm10 = vcmp.lt.s32.totalorder %v7622_v26, 0  ;;  %v3962_v60 = vshll.u32 %v16574_v12, %v16993_v44  ;;  %v3963_v30 = vshrl.u32 %v16569_v13, %v16994_v62 }
 0x463   : > { %v634_v55 = vsel %vm13325_vm4, %v16952_v24, %v631_v28  ;;  %v720_v23 = vsel %vm7623_vm10, 0, %v7622_v26  ;;  %vm3899_vm3 = vc.u32 %v13385_v63, %v13389_v51  ;;  %v3965_v42 = vshll.u32 %v16569_v13, %v16993_v44 }
 0x464   : > { %8448 = vcosq.f32 %v634_v55  ;;  %v721_v34 = vsub.s32 32, %v720_v23  ;;  %v722_v36 = vshll.u32 %v13369_v14, %v720_v23  ;;  %v725_v25 = vsub.s32 4294967266, %v720_v23 }
 0x465   : > { %8450 = vsinq.f32 %v634_v55  ;;  %vm13415_vm4 = vcmp.le.f32.partialorder %v649_v32, 0.7853982  ;;  %v3900_v56 = vadd.s32 1, %v13390_v20  ;;  %v3953_v18 = vor.u32 8388608, %v3952_v3  ;;  %v16997_v55 = vld [vmem:[#allocation24_spill] sm:$0xff] }
 0x466   : > { %v3964_v58 = vor.u32 %v3963_v30, %v3962_v60  ;;  %v3966_v41 = vshrl.u32 %v16570_v6, %v16994_v62  ;;  %v723_v5 = vshrl.u32 %v705_v31, %v721_v34  ;;  %v726_v57 = vadd.s32 127, %v725_v25 }
 0x467   : > { %v3968_v2 = vshll.u32 %v16570_v6, %v16993_v44  ;;  %v3969_v14 = vshrl.u32 %v16571_v15, %v16994_v62  ;;  %v3901_v32 = vsel %vm3899_vm3, %v3900_v56, %v13390_v20  ;;  %v3961_v26 = vshrl.u32 %v16574_v12, %v16994_v62 }
 0x468   : > { %v3967_v28 = vor.u32 %v3966_v41, %v3965_v42  ;;  %vm3977_vm2 = vcmp.lt.s32.totalorder %v16997_v55, 1  ;;  %v724_v3 = vor.u32 %v723_v5, %v722_v36  ;;  %v727_v60 = vshll.u32 %v726_v57, 23  ;;  %v16999_v42 = vld [vmem:[#allocation136_spill] sm:$0xff]  ;;  %v17000_v36 = vld [vmem:[#allocation41_spill] sm:$0xff] }
 0x469   : > { %v3902_v30 = vadd.s32 %v3901_v32, %v3897_v33  ;;  %v3970_v23 = vor.u32 %v3969_v14, %v3968_v2  ;;  %vm3978_vm0 = vcmp.lt.s32.totalorder %v16997_v55, 2  ;;  %vm3979_vm10 = vcmp.lt.s32.totalorder %v16997_v55, 3  ;;  %v17001_v5 = vld [vmem:[#allocation57_spill] sm:$0xff] }
 0x46a   : > { %v3981_v31 = vsel %vm3977_vm2, %v3961_v26, %v3964_v58  ;;  %v3985_v44 = vsel %vm3977_vm2, %v3964_v58, %v3967_v28  ;;  %v728_v34 = vor.u32 4788187, %v727_v60  ;;  %vm16998_vm3 = vcmp.lt.s32.totalorder %v16997_v55, 4 }
 0x46b   : > { %v3903_v25 = vadd.s32 536870912, %v3902_v30  ;;  %v3982_v20 = vsel %vm16998_vm3, %v3970_v23, 2102212464  ;;  %v3993_v56 = vshll.u32 %v3953_v18, 8  ;;  %v731_v62 = vcvt.s32.f32 %v724_v3 }
 0x46c   : > { %v3987_v41 = vsel %vm3979_vm10, %v3970_v23, %v16999_v42  ;;  %v3989_v40 = vsel %vm3977_vm2, %v3967_v28, %v3970_v23  ;;  %v3991_v33 = vsel %vm3979_vm10, %v17001_v5, %v17000_v36  ;;  %v729_v57 = vand.u32 2147483647, %v728_v34 }
 0x46d   : > { %v3904_v2 = vshrl.u32 %v3903_v25, 30  ;;  %v3983_v14 = vsel %vm3979_vm10, %v3967_v28, %v3982_v20  ;;  %v3988_v32 = vsel %vm3978_vm0, %v3985_v44, %v3987_v41  ;;  %vm16366_vm15 = vcmp.lt.s32.totalorder %v16982_v46, 0  ;;  %v368_v25 = vpop.permute.xlu1 %367 }
 0x46e   : > { %v8449_v58 = vpop.eup %8448  ;;  %v3992_v26 = vsel %vm3978_vm0, %v3989_v40, %v3991_v33  ;;  %v13442_v18 = vmul.u32.u64.low %v3993_v56, %v3988_v32  ;;  %v13443_v3 = vmul.u32.u64.high %v3993_v56, %v3988_v32, %v13442_v18  ;;  %v13449_v23 = vshrl.u32 %v13321_v45, %v2884_v11  ;;  %v363_v32 = vpop.permute.xlu0 %362 }
 0x46f   : > { %v8451_v60 = vpop.eup %8450  ;;  %v732_v28 = vmul.f32 %v731_v62, %v729_v57  ;;  %v738_v44 = vsel %vm13415_vm4, 0, %v13397_v16  ;;  %v3905_v34 = vshll.u32 %v3904_v2, 30  ;;  %v645_v20 = vxor.u32 2147483648, %v8449_v58 }
 0x470   : > { %v3984_v40 = vsel %vm3978_vm0, %v3981_v31, %v3983_v14  ;;  %v13456_v42 = vmul.u32.u64.low %v3993_v56, %v3992_v26  ;;  %v13457_v41 = vmul.u32.u64.high %v3993_v56, %v3992_v26, %v13456_v42  ;;  %v642_v36 = vxor.u32 2147483648, %v8451_v60 }
 0x471   : > { %v733_v5 = vxor.u32 2147483648, %v732_v28  ;;  %v13459_v33 = vsub.s32 %v3902_v30, %v3905_v34  ;;  %v3928_v45 = vsub.s32 4, %v3904_v2  ;;  %v13463_v11 = vadd.s32 127, %v2888_v19 }
 0x472   : > { %vm641_vm10 = vcmp.eq.s32.totalorder %v13382_v50, 0  ;;  %v4003_v16 = vadd.s32 1, %v13443_v3  ;;  %v469_v55 = vmul.f32 %v16538_v0, %v368_v25  ;;  %vm644_vm0 = vcmp.eq.s32.totalorder %v13382_v50, 2 }
 0x473   : > { %vm17002_vm3 = vcmp.lt.s32.totalorder %v16964_v53, 0  ;;  %v13472_v30 = vand.u32 3, %v738_v44  ;;  %v3908_v62 = vsub.s32 0, %v13459_v33  ;;  %v646_v57 = vsel %vm644_vm0, %v645_v20, %v8451_v60 }
 0x474   : > { %v734_v31 = vsel %vm17002_vm3, %v733_v5, %v732_v28  ;;  %v4000_v14 = vmul.u32 %v3993_v56, %v3984_v40  ;;  %vm4002_vm2 = vc.u32 %v13457_v41, %v13442_v18  ;;  %v643_v26 = vsel %vm641_vm10, %v8449_v58, %v642_v36 }
 0x475   : > { %v737_v19 = vsel %vm13415_vm4, %v16964_v53, %v734_v31  ;;  %v7745_v34 = vmin.u32 %v3908_v62, %v13459_v33  ;;  %v3929_v28 = vsel %vm16366_vm15, %v3928_v45, %v3904_v2  ;;  %vm640_vm3 = vcmp.lt.s32.totalorder %v13382_v50, 2 }
 0x476   : > { %8452 = vcosq.f32 %v737_v19  ;;  %v4004_v60 = vsel %vm4002_vm2, %v4003_v16, %v13443_v3  ;;  %v13486_v17 = vadd.f32 %v16537_v1, %v469_v55  ;;  %v17004_v56 = vand.u32 2147483647, %v16982_v46 }
 0x477   : > { %8454 = vsinq.f32 %v737_v19  ;;  %v3910_v58 = vclz %v7745_v34  ;;  %v4005_v25 = vadd.s32 %v4004_v60, %v4000_v14  ;;  %v468_v20 = vmul.f32 %v16538_v0, %v363_v32 }
 0x478   : > { %17003 = vst [vmem:[#allocation25_spill] sm:$0xff] %v13486_v17  ;;  %vm13490_vm4 = vcmp.le.f32.partialorder %v17004_v56, 0.7853982  ;;  %v647_v40 = vsel %vm640_vm3, %v643_v26, %v646_v57  ;;  %v16368_v2 = vand.u32 2147483647, %v13486_v17  ;;  %v6214_v3 = vand.u32 2139095040, %v13486_v17 }
 0x479   : > { %v3931_v50 = vsel %vm13490_vm4, 0, %v3929_v28  ;;  %vm747_vm2 = vcmp.eq.s32.totalorder %v13472_v30, 2  ;;  %v7746_v36 = vadd.s32 4294967294, %v3910_v58  ;;  %v4006_v5 = vadd.s32 536870912, %v4005_v25 }
 0x47a   : > { %v3898_v45 = vadd.s32 %v13389_v51, %v13385_v63  ;;  %vm16377_vm0 = vcmp.lt.s32.totalorder %v16991_v22, 0  ;;  %v6215_v16 = vshrl.u32 %v6214_v3, 23  ;;  %v13506_v55 = vadd.f32 %v16537_v1, %v468_v20  ;;  %v17009_v51 = vld [vmem:[#allocation27_spill] sm:$0xff] }
 0x47b   : > { %vm17008_vm3 = vweird.f32 %v16952_v24  ;;  %vm7747_vm14 = vcmp.lt.s32.totalorder %v7746_v36, 0  ;;  %v13511_v62 = vand.u32 3, %v3931_v50  ;;  %v4007_v57 = vshrl.u32 %v4006_v5, 30 }
 0x47c   : > { %17007 = vst [vmem:[#allocation13_spill] sm:$0xff] %v13506_v55  ;;  %v648_v31 = vsel %vm17008_vm3, nan, %v647_v40  ;;  %v3913_v19 = vsel %vm7747_vm14, 0, %v7746_v36  ;;  %v7836_v14 = vadd.s32 4294967169, %v6215_v16  ;;  %v6218_v63 = vand.u32 8388607, %v16368_v2 }
 0x47d   : > { %v838_v32 = vsub.s32 4, %v17009_v51  ;;  %v3914_v26 = vsub.s32 32, %v3913_v19  ;;  %v3918_v34 = vsub.s32 4294967266, %v3913_v19  ;;  %v17010_v24 = vand.u32 2147483647, %v16991_v22 }
 0x47e   : > { %v13525_v60 = vadd.s32 %v13442_v18, %v13457_v41  ;;  %v4008_v56 = vshll.u32 %v4007_v57, 30  ;;  %v4031_v58 = vsub.s32 4, %v4007_v57  ;;  %v6221_v20 = vadd.s32 1, %v7836_v14  ;;  %v17013_v18 = vld [vmem:[#allocation8_spill] sm:$0xff] }
 0x47f   : > { %vm13519_vm3 = vcmp.le.f32.partialorder %v17010_v24, 0.7853982  ;;  %v6111_v50 = vand.u32 2139095040, %v13506_v55  ;;  %v3915_v36 = vshll.u32 %v13459_v33, %v3913_v19  ;;  %v3916_v5 = vshrl.u32 %v3898_v45, %v3914_v26 }
 0x480   : > { %v8453_v3 = vpop.eup %8452  ;;  %v3919_v16 = vadd.s32 127, %v3918_v34  ;;  %v13530_v24 = vsub.s32 %v4005_v25, %v4008_v56  ;;  %v6219_v37 = vor.u32 8388608, %v6218_v63  ;;  %vm6222_vm14 = vcmp.gt.s32.totalorder %v6221_v20, 0 }
 0x481   : > { %v8455_v2 = vpop.eup %8454  ;;  %v748_v42 = vxor.u32 2147483648, %v8453_v3  ;;  %vm17014_vm10 = vcmp.lt.s32.totalorder %v17013_v18, 0  ;;  %v3917_v40 = vor.u32 %v3916_v5, %v3915_v36  ;;  %v13542_v25 = vsel %vm16377_vm0, %v4031_v58, %v4007_v57  ;;  %v17026_v57 = vld [vmem:[#allocation17_spill] sm:$0xff] }
 0x482   : > { %v13535_v41 = vsel %vm17014_vm10, %v838_v32, %v17009_v51  ;;  %v745_v14 = vxor.u32 2147483648, %v8455_v2  ;;  %v3920_v49 = vshll.u32 %v3919_v16, 23  ;;  %v4011_v61 = vsub.s32 0, %v13530_v24 }
 0x483   : > { %v749_v33 = vsel %vm747_vm2, %v748_v42, %v8455_v2  ;;  %v6223_v45 = vsel %vm6222_vm14, %v6221_v20, 0  ;;  %v6112_v19 = vshrl.u32 %v6111_v50, 23  ;;  %vm17015_vm15 = vcmp.eq.s32.totalorder %v13472_v30, 0 }
 0x484   : > { %v746_v63 = vsel %vm17015_vm15, %v8453_v3, %v745_v14  ;;  %v3921_v26 = vor.u32 4788187, %v3920_v49  ;;  %v7749_v51 = vmin.u32 %v4011_v61, %v13530_v24  ;;  %v17016_v32 = vand.u32 2147483647, %v13506_v55 }
 0x485   : > { %vm17017_vm10 = vcmp.lt.s32.totalorder %v13472_v30, 2  ;;  %v6225_v2 = vand.u32 31, %v6223_v45  ;;  %v13553_v42 = vshll.u32 %v6219_v37, 8  ;;  %vm17019_vm2 = vweird.f32 %v16964_v53 }
 0x486   : > { %v13549_v34 = vand.u32 8388607, %v17016_v32  ;;  %v750_v56 = vsel %vm17017_vm10, %v746_v63, %v749_v33  ;;  %v3922_v49 = vand.u32 2147483647, %v3921_v26  ;;  %v3924_v50 = vcvt.s32.f32 %v3917_v40 }
 0x487   : > { %v751_v20 = vsel %vm17019_vm2, nan, %v750_v56  ;;  %v4013_v61 = vclz %v7749_v51  ;;  %v6224_v30 = vshrl.u32 %v6223_v45, 5  ;;  %v7832_v5 = vadd.s32 4294967169, %v6112_v19 }
 0x488   : > { %v7138_v3 = vpack.c.bf16 %v751_v20, %v648_v31  ;;  %v3925_v16 = vmul.f32 %v3924_v50, %v3922_v49  ;;  %v6226_v14 = vsub.s32 32, %v6225_v2  ;;  %v6116_v33 = vor.u32 8388608, %v13549_v34 }
 0x489   : > { %v7750_v37 = vadd.s32 4294967294, %v4013_v61  ;;  %v6228_v63 = vshll.u32 %v16574_v12, %v6225_v2  ;;  %v6231_v53 = vshll.u32 %v16569_v13, %v6225_v2  ;;  %v6234_v40 = vshll.u32 %v16570_v6, %v6225_v2 }
 0x48a   : > { %7936 = vmatprep.mubr.bf16.mxu0 %v7138_v3  ;;  %v6237_v31 = vshll.u32 %v16571_v15, %v6225_v2  ;;  %v3926_v26 = vxor.u32 2147483648, %v3925_v16  ;;  %v6229_v51 = vshrl.u32 %v16569_v13, %v6226_v14  ;;  %v6240_v45 = vshll.u32 %v16572_v9, %v6225_v2 }
 0x48b   : > { %vm7751_vm15 = vcmp.lt.s32.totalorder %v7750_v37, 0  ;;  %v6232_v32 = vshrl.u32 %v16570_v6, %v6226_v14  ;;  %v6235_v34 = vshrl.u32 %v16571_v15, %v6226_v14  ;;  %v6238_v56 = vshrl.u32 %v16572_v9, %v6226_v14 }
 0x48c   : > { %v4016_v19 = vsel %vm7751_vm15, 0, %v7750_v37  ;;  %vm17020_vm14 = vcmp.lt.s32.totalorder %v16982_v46, 0  ;;  %v6230_v58 = vor.u32 %v6229_v51, %v6228_v63  ;;  %v6227_v47 = vshrl.u32 %v16574_v12, %v6226_v14 }
 0x48d   : > { %v3927_v20 = vsel %vm17020_vm14, %v3926_v26, %v3925_v16  ;;  %v4017_v49 = vsub.s32 32, %v4016_v19  ;;  %v4018_v50 = vshll.u32 %v13530_v24, %v4016_v19  ;;  %v4021_v61 = vsub.s32 4294967266, %v4016_v19 }
 0x48e   : > { %v3930_v3 = vsel %vm13490_vm4, %v16982_v46, %v3927_v20  ;;  %v6233_v2 = vor.u32 %v6232_v32, %v6231_v53  ;;  %v6236_v37 = vor.u32 %v6235_v34, %v6234_v40  ;;  %v6239_v4 = vor.u32 %v6238_v56, %v6237_v31 }
 0x48f   : > { %8456 = vcosq.f32 %v3930_v3  ;;  %v4019_v36 = vshrl.u32 %v13525_v60, %v4017_v49  ;;  %v4022_v29 = vadd.s32 127, %v4021_v61  ;;  %v6241_v16 = vshrl.u32 %v16573_v8, %v6226_v14 }
 0x490   : > { %8458 = vsinq.f32 %v3930_v3  ;;  %vm6243_vm10 = vcmp.lt.s32.totalorder %v6224_v30, 1  ;;  %vm6245_vm2 = vcmp.lt.s32.totalorder %v6224_v30, 3  ;;  %vm6246_vm15 = vcmp.lt.s32.totalorder %v6224_v30, 4 }
 0x491   : > { %v4020_v24 = vor.u32 %v4019_v36, %v4018_v50  ;;  %v4023_v26 = vshll.u32 %v4022_v29, 23  ;;  %v6242_v44 = vor.u32 %v6241_v16, %v6240_v45  ;;  %v6247_v63 = vsel %vm6243_vm10, %v6227_v47, %v6230_v58 }
 0x492   : > { %v6248_v53 = vsel %vm6246_vm15, %v6236_v37, 2102212464  ;;  %v6251_v40 = vsel %vm6243_vm10, %v6230_v58, %v6233_v2  ;;  %vm6244_vm4 = vcmp.lt.s32.totalorder %v6224_v30, 2  ;;  %v6252_v31 = vsel %vm6246_vm15, %v6239_v4, 920167782 }
 0x493   : > { %v4024_v51 = vor.u32 4788187, %v4023_v26  ;;  %v6249_v60 = vsel %vm6245_vm2, %v6233_v2, %v6248_v53  ;;  %v4027_v19 = vcvt.s32.f32 %v4020_v24  ;;  %v6253_v14 = vsel %vm6245_vm2, %v6236_v37, %v6252_v31 }
 0x494   : > { %v6255_v29 = vsel %vm6243_vm10, %v6233_v2, %v6236_v37  ;;  %v6256_v36 = vsel %vm6246_vm15, %v6242_v44, 1326507024  ;;  %vm3936_vm0 = vcmp.lt.s32.totalorder %v13511_v62, 2  ;;  %v6250_v47 = vsel %vm6244_vm4, %v6247_v63, %v6249_v60  ;;  %v17023_v63 = vld [vmem:[#allocation63_spill] sm:$0xff] }
 0x495   : > { %v4025_v45 = vand.u32 2147483647, %v4024_v51  ;;  %v6254_v32 = vsel %vm6244_vm4, %v6251_v40, %v6253_v14  ;;  %v6257_v58 = vsel %vm6245_vm2, %v6239_v4, %v6256_v36  ;;  %v6118_v49 = vadd.s32 1, %v7832_v5 }
 0x496   : > { %v6258_v34 = vsel %vm6244_vm4, %v6255_v29, %v6257_v58  ;;  %v13591_v56 = vmul.u32.u64.low %v13553_v42, %v6254_v32  ;;  %v13592_v20 = vmul.u32.u64.high %v13553_v42, %v6254_v32, %v13591_v56  ;;  %vm3940_vm14 = vcmp.eq.s32.totalorder %v13511_v62, 2 }
 0x497   : > { %v4028_v50 = vmul.f32 %v4027_v19, %v4025_v45  ;;  %v13597_v61 = vmul.u32.u64.low %v13553_v42, %v6258_v34  ;;  %v13598_v3 = vmul.u32.u64.high %v13553_v42, %v6258_v34, %v13597_v61  ;;  %v17021_v2 = vsel %vm13519_vm3, 0, %v13542_v25 }
 0x498   : > { %v13604_v30 = vand.u32 3, %v17021_v2  ;;  %v6266_v4 = vmul.u32 %v13553_v42, %v6250_v47  ;;  %vm6119_vm10 = vcmp.gt.s32.totalorder %v6118_v49, 0  ;;  %v13607_v37 = vshll.u32 %v6116_v33, 8  ;;  %v17024_v42 = vld [vmem:[#allocation62_spill] sm:$0xff] }
 0x499   : > { %v8457_v16 = vpop.eup %8456  ;;  %v4029_v5 = vxor.u32 2147483648, %v4028_v50  ;;  %v6120_v24 = vsel %vm6119_vm10, %v6118_v49, 0  ;;  %v17022_v26 = vsel %vm9692_vm13, 0, %v13535_v41  ;;  %v848_v53 = vxor.u32 2147483648, %v17023_v63 }
 0x49a   : > { %v13613_v44 = vand.u32 3, %v17022_v26  ;;  %v8459_v40 = vpop.eup %8458  ;;  %v3941_v25 = vxor.u32 2147483648, %v8457_v16  ;;  %v6269_v51 = vadd.s32 1, %v13592_v20  ;;  %v6122_v60 = vand.u32 31, %v6120_v24 }
 0x49b   : > { %v851_v31 = vxor.u32 2147483648, %v17024_v42  ;;  %v3938_v33 = vxor.u32 2147483648, %v8459_v40  ;;  %vm17025_vm2 = vcmp.lt.s32.totalorder %v16991_v22, 0  ;;  %vm6268_vm15 = vc.u32 %v13598_v3, %v13591_v56 }
 0x49c   : > { %v4030_v19 = vsel %vm17025_vm2, %v4029_v5, %v4028_v50  ;;  %v941_v41 = vsub.s32 4, %v17026_v57  ;;  %v3942_v14 = vsel %vm3940_vm14, %v3941_v25, %v8459_v40  ;;  %v6270_v36 = vsel %vm6268_vm15, %v6269_v51, %v13592_v20 }
 0x49d   : > { %v4033_v29 = vsel %vm13519_vm3, %v16991_v22, %v4030_v19  ;;  %v6123_v45 = vsub.s32 32, %v6122_v60  ;;  %vm3934_vm13 = vweird.f32 %v16982_v46  ;;  %vm17027_vm4 = vcmp.eq.s32.totalorder %v13511_v62, 0 }
 0x49e   : > { %v3939_v47 = vsel %vm17027_vm4, %v8457_v16, %v3938_v33  ;;  %8460 = vcosq.f32 %v4033_v29  ;;  %v6271_v32 = vadd.s32 %v6270_v36, %v6266_v4  ;;  %v6121_v58 = vshrl.u32 %v6120_v24, 5 }
 0x49f   : > { %v3943_v34 = vsel %vm3936_vm0, %v3939_v47, %v3942_v14  ;;  %8462 = vsinq.f32 %v4033_v29  ;;  %v6125_v49 = vshll.u32 %v16574_v12, %v6122_v60  ;;  %v6126_v28 = vshrl.u32 %v16569_v13, %v6123_v45 }
 0x4a0   : > { %v6272_v50 = vadd.s32 536870912, %v6271_v32  ;;  %v6124_v20 = vshrl.u32 %v16574_v12, %v6123_v45  ;;  %v6128_v61 = vshll.u32 %v16569_v13, %v6122_v60  ;;  %v6129_v2 = vshrl.u32 %v16570_v6, %v6123_v45 }
 0x4a1   : > { %v6127_v5 = vor.u32 %v6126_v28, %v6125_v49  ;;  %v6131_v16 = vshll.u32 %v16570_v6, %v6122_v60  ;;  %v6132_v4 = vshrl.u32 %v16571_v15, %v6123_v45  ;;  %v6134_v62 = vshll.u32 %v16571_v15, %v6122_v60 }
 0x4a2   : > { %v13643_v24 = vshrl.u32 %v6272_v50, 30  ;;  %v6130_v26 = vor.u32 %v6129_v2, %v6128_v61  ;;  %v6135_v40 = vshrl.u32 %v16572_v9, %v6123_v45  ;;  %v6137_v25 = vshll.u32 %v16572_v9, %v6122_v60 }
 0x4a3   : > { %vm4040_vm3 = vcmp.eq.s32.totalorder %v13604_v30, 0  ;;  %v6133_v51 = vor.u32 %v6132_v4, %v6131_v16  ;;  %v6138_v33 = vshrl.u32 %v16573_v8, %v6123_v45  ;;  %vm6140_vm14 = vcmp.lt.s32.totalorder %v6121_v58, 1 }
 0x4a4   : > { %17028 = vst [vmem:[#allocation28_spill] sm:$0xff] %v13643_v24  ;;  %vm6141_vm10 = vcmp.lt.s32.totalorder %v6121_v58, 2  ;;  %vm4039_vm2 = vcmp.lt.s32.totalorder %v13604_v30, 2  ;;  %v6274_v19 = vshll.u32 %v13643_v24, 30  ;;  %v6136_v14 = vor.u32 %v6135_v40, %v6134_v62 }
 0x4a5   : > { %vm6142_vm15 = vcmp.lt.s32.totalorder %v6121_v58, 3  ;;  %vm6143_vm4 = vcmp.lt.s32.totalorder %v6121_v58, 4  ;;  %v6139_v29 = vor.u32 %v6138_v33, %v6137_v25  ;;  %v6144_v36 = vsel %vm6140_vm14, %v6124_v20, %v6127_v5  ;;  %v17030_v58 = vld [vmem:[#allocation7_spill] sm:$0xff] }
 0x4a6   : > { %v6145_v47 = vsel %vm6143_vm4, %v6133_v51, 2102212464  ;;  %v6148_v60 = vsel %vm6140_vm14, %v6127_v5, %v6130_v26  ;;  %v13652_v49 = vsub.s32 %v6271_v32, %v6274_v19  ;;  %v6149_v45 = vsel %vm6143_vm4, %v6136_v14, 920167782 }
 0x4a7   : > { %v6146_v28 = vsel %vm6142_vm15, %v6130_v26, %v6145_v47  ;;  %v6152_v50 = vsel %vm6140_vm14, %v6130_v26, %v6133_v51  ;;  %v3944_v61 = vsel %vm3934_vm13, nan, %v3943_v34  ;;  %v6150_v16 = vsel %vm6142_vm15, %v6133_v51, %v6149_v45 }
 0x4a8   : > { %v6147_v2 = vsel %vm6141_vm10, %v6144_v36, %v6146_v28  ;;  %v6153_v4 = vsel %vm6143_vm4, %v6139_v29, 1326507024  ;;  %v8461_v62 = vpop.eup %8460  ;;  %v6277_v40 = vsub.s32 0, %v13652_v49  ;;  %v6151_v20 = vsel %vm6141_vm10, %v6148_v60, %v6150_v16 }
 0x4a9   : > { %v6154_v32 = vsel %vm6142_vm15, %v6136_v14, %v6153_v4  ;;  %vm846_vm0 = vcmp.lt.s32.totalorder %v13613_v44, 2  ;;  %v8463_v5 = vpop.eup %8462  ;;  %v4044_v25 = vxor.u32 2147483648, %v8461_v62  ;;  %vm17029_vm13 = vcmp.eq.s32.totalorder %v13604_v30, 2 }
 0x4aa   : > { %v6155_v26 = vsel %vm6141_vm10, %v6152_v50, %v6154_v32  ;;  %v13665_v46 = vmul.u32.u64.low %v13607_v37, %v6151_v20  ;;  %v13666_v34 = vmul.u32.u64.high %v13607_v37, %v6151_v20, %v13665_v46  ;;  %v4041_v51 = vxor.u32 2147483648, %v8463_v5  ;;  %v17038_v20 = vld [vmem:[#allocation60_spill] sm:$0xff] }
 0x4ab   : > { %v7837_v33 = vmin.u32 %v6277_v40, %v13652_v49  ;;  %v13671_v19 = vmul.u32.u64.low %v13607_v37, %v6155_v26  ;;  %v13672_v29 = vmul.u32.u64.high %v13607_v37, %v6155_v26, %v13671_v19  ;;  %v4045_v14 = vsel %vm17029_vm13, %v4044_v25, %v8463_v5  ;;  %v218_v25 = vpop.permute.xlu1 %217  ;;  %v213_v26 = vpop.permute.xlu0 %212 }
 0x4ac   : > { %vm847_vm14 = vcmp.eq.s32.totalorder %v13613_v44, 0  ;;  %vm850_vm15 = vcmp.eq.s32.totalorder %v13613_v44, 2  ;;  %vm17031_vm10 = vcmp.lt.s32.totalorder %v17030_v58, 0  ;;  %v4042_v47 = vsel %vm4040_vm3, %v8461_v62, %v4041_v51  ;;  %v17039_v44 = vld [vmem:[#allocation59_spill] sm:$0xff] }
 0x4ad   : > { %v942_v36 = vsel %vm17031_vm10, %v941_v41, %v17026_v57  ;;  %v6279_v60 = vclz %v7837_v33  ;;  %v849_v28 = vsel %vm847_vm14, %v17024_v42, %v848_v53  ;;  %v852_v45 = vsel %vm850_vm15, %v851_v31, %v17023_v63 }
 0x4ae   : > { %v4046_v50 = vsel %vm4039_vm2, %v4042_v47, %v4045_v14  ;;  %v6163_v16 = vmul.u32 %v13607_v37, %v6147_v2  ;;  %v6166_v4 = vadd.s32 1, %v13666_v34  ;;  %v944_v41 = vsel %vm9436_vm5, 0, %v942_v36 }
 0x4af   : > { %vm17033_vm3 = vweird.f32 %v16991_v22  ;;  %v7838_v40 = vadd.s32 4294967294, %v6279_v60  ;;  %vm6165_vm4 = vc.u32 %v13672_v29, %v13665_v46  ;;  %v853_v63 = vsel %vm846_vm0, %v849_v28, %v852_v45 }
 0x4b0   : > { %v4047_v62 = vsel %vm17033_vm3, nan, %v4046_v50  ;;  %v2885_v30 = vshll.u32 %v13221_v27, %v13364_v39  ;;  %v6167_v37 = vsel %vm6165_vm4, %v6166_v4, %v13666_v34  ;;  %v948_v42 = vand.u32 3, %v944_v41 }
 0x4b1   : > { %v7154_v53 = vpack.c.bf16 %v4047_v62, %v3944_v61  ;;  %v17034_v31 = vand.u32 2147483647, %v12757_v21  ;;  %v17035_v2 = vmov 0  ;;  %v6168_v22 = vadd.s32 %v6167_v37, %v6163_v16 }
 0x4b2   : > { %vm844_vm2 = vweird.f32 %v17013_v18  ;;  %v951_v32 = vxor.u32 2147483648, %v17038_v20  ;;  %v954_v5 = vxor.u32 2147483648, %v17039_v44  ;;  %vm16409_vm0 = vcmp.lt.s32.totalorder %v12819_v10, 0 }
 0x4b3   : > { %vm13708_vm5 = vcmp.le.f32.partialorder %v17034_v31, 0.7853982  ;;  %v2887_v27 = vor.u32 %v13449_v23, %v2885_v30  ;;  %v17040_v39 = vshll.u32 %v13463_v11, 23  ;;  %7968 = vmatprep.mubr.bf16.mxu1 %v7154_v53  ;;  %vm7839_vm13 = vcmp.lt.s32.totalorder %v7838_v40, 0 }
 0x4b4   : > { %v17036_v2 = vsel %vm13708_vm5, 4294967295, %v17035_v2  ;;  %v854_v34 = vsel %vm844_vm2, nan, %v853_v63  ;;  %v6169_v51 = vadd.s32 536870912, %v6168_v22  ;;  %vm949_vm14 = vcmp.lt.s32.totalorder %v948_v42, 2 }
 0x4b5   : > { %17037 = vst [vmem:[#allocation29_spill] sm:$0xff] %v17036_v2  ;;  %v2891_v61 = vor.u32 4788187, %v17040_v39  ;;  %vm950_vm15 = vcmp.eq.s32.totalorder %v948_v42, 0  ;;  %vm953_vm10 = vcmp.eq.s32.totalorder %v948_v42, 2  ;;  %v439_v19 = vmul.f32 %v16538_v0, %v218_v25 }
 0x4b6   : > { %v952_v18 = vsel %vm950_vm15, %v17039_v44, %v951_v32  ;;  %v955_v33 = vsel %vm953_vm10, %v954_v5, %v17038_v20  ;;  %v438_v14 = vmul.f32 %v16538_v0, %v213_v26  ;;  %v17041_v23 = vand.u32 2147483647, %v12819_v10 }
 0x4b7   : > { %v6282_v36 = vsel %vm7839_vm13, 0, %v7838_v40  ;;  %v13729_v47 = vshrl.u32 %v6169_v51, 30  ;;  %vm947_vm4 = vweird.f32 %v17030_v58  ;;  %v956_v60 = vsel %vm949_vm14, %v952_v18, %v955_v33  ;;  %v17053_v18 = vld [vmem:[#allocation38_spill] sm:$0xff] }
 0x4b8   : > { %vm13725_vm3 = vcmp.le.f32.partialorder %v17041_v23, 0.7853982  ;;  %v5986_v28 = vxor.u32 2147483648, %v13314_v52  ;;  %v957_v45 = vsel %vm947_vm4, nan, %v956_v60  ;;  %v13734_v50 = vadd.f32 %v16537_v1, %v439_v19 }
 0x4b9   : > { %17044 = vst [vmem:[#allocation46_spill] sm:$0xff] %v13729_v47  ;;  %v13737_v16 = vadd.f32 %v16537_v1, %v438_v14  ;;  %vm16378_vm2 = vcmp.lt.s32.totalorder %v12843_v59, 0  ;;  %v17047_v4 = vand.u32 2147483647, %v13332_v35  ;;  %v17048_v57 = vcvt.s32.f32 %v13330_v54 }
 0x4ba   : > { %17045 = vst [vmem:[#allocation174_spill] sm:$0xff] %v13734_v50  ;;  %v2892_v62 = vand.u32 2147483647, %v2891_v61  ;;  %v6171_v58 = vshll.u32 %v13729_v47, 30  ;;  %v7139_v40 = vpack.c.bf16 %v957_v45, %v854_v34  ;;  %8464 = vcosq.f32 %v13306_v48 }
 0x4bb   : > { %17046 = vst [vmem:[#allocation48_spill] sm:$0xff] %v13737_v16  ;;  %v2998_v41 = vmul.f32 %v17048_v57, %v17047_v4  ;;  %v6283_v63 = vsub.s32 32, %v6282_v36  ;;  %v6287_v30 = vsub.s32 4294967266, %v6282_v36  ;;  %v3124_v53 = vand.u32 2139095040, %v13734_v50 }
 0x4bc   : > { %8466 = vsinq.f32 %v13306_v48  ;;  %v2894_v37 = vcvt.s32.f32 %v2887_v27  ;;  %v13748_v42 = vsub.s32 %v6168_v22, %v6171_v58  ;;  %7937 = vmatmul.mubr.bf16.vlgmr.msra.gmra.mrb[0].mxu0 %v7139_v40  ;;  %v16381_v35 = vand.u32 2147483647, %v13734_v50  ;;  %v17054_v58 = vld [vmem:[#allocation14_spill] sm:$0xff] }
 0x4bd   : > { %v6093_v54 = vsel %vm13708_vm5, %v12757_v21, %v13312_v38  ;;  %v6267_v31 = vadd.s32 %v13591_v56, %v13598_v3  ;;  %v3125_v20 = vshrl.u32 %v3124_v53, 23  ;;  %v3021_v32 = vand.u32 2139095040, %v13737_v16 }
 0x4be   : > { %v5987_v48 = vsel %vm16409_vm0, %v5986_v28, %v13314_v52  ;;  %v2999_v22 = vxor.u32 2147483648, %v2998_v41  ;;  %v2895_v44 = vmul.f32 %v2894_v37, %v2892_v62  ;;  %v6174_v5 = vsub.s32 0, %v13748_v42 }
 0x4bf   : > { %v6285_v25 = vshrl.u32 %v6267_v31, %v6283_v63  ;;  %v6288_v26 = vadd.s32 127, %v6287_v30  ;;  %v7716_v27 = vadd.s32 4294967169, %v3125_v20  ;;  %v3022_v39 = vshrl.u32 %v3021_v32, 23 }
 0x4c0   : > { %8468 = vcosq.f32 %v6093_v54  ;;  %v17049_v38 = vand.u32 2147483647, %v12843_v59  ;;  %v17050_v56 = vmov 0  ;;  %v7833_v3 = vmin.u32 %v6174_v5, %v13748_v42 }
 0x4c1   : > { %v3128_v52 = vand.u32 8388607, %v16381_v35  ;;  %v5990_v61 = vsel %vm13725_vm3, %v12819_v10, %v5987_v48  ;;  %v6284_v34 = vshll.u32 %v13652_v49, %v6282_v36  ;;  %v3131_v51 = vadd.s32 1, %v7716_v27 }
 0x4c2   : > { %vm13764_vm13 = vcmp.le.f32.partialorder %v17049_v38, 0.7853982  ;;  %v4134_v33 = vsub.s32 4, %v17053_v18  ;;  %8470 = vsinq.f32 %v6093_v54  ;;  %v2896_v19 = vxor.u32 2147483648, %v2895_v44 }
 0x4c3   : > { %v17051_v56 = vsel %vm13764_vm13, 4294967295, %v17050_v56  ;;  %v6176_v14 = vclz %v7833_v3  ;;  %v7712_v23 = vadd.s32 4294967169, %v3022_v39  ;;  %v3000_v60 = vsel %vm16378_vm2, %v2999_v22, %v2998_v41 }
 0x4c4   : > { %17052 = vst [vmem:[#allocation9_spill] sm:$0xff] %v17051_v56  ;;  %v13778_v28 = vor.u32 %v6285_v25, %v6284_v34  ;;  %v6289_v45 = vshll.u32 %v6288_v26, 23  ;;  %vm3132_vm14 = vcmp.gt.s32.totalorder %v3131_v51, 0  ;;  %8472 = vcosq.f32 %v5990_v61  ;;  %v13781_v49 = vpop.eup %8464 }
 0x4c5   : > { %v3129_v4 = vor.u32 8388608, %v3128_v52  ;;  %v3133_v57 = vsel %vm3132_vm14, %v3131_v51, 0  ;;  %v16380_v62 = vand.u32 2147483647, %v13737_v16  ;;  %8474 = vsinq.f32 %v5990_v61 }
 0x4c6   : > { %vm16379_vm15 = vcmp.lt.s32.totalorder %v13021_v43, 0  ;;  %v3135_v36 = vand.u32 31, %v3133_v57  ;;  %vm17055_vm10 = vcmp.lt.s32.totalorder %v17054_v58, 0  ;;  %v13787_v41 = vpop.eup %8466  ;;  %v13792_v63 = vsel %vm13764_vm13, %v12843_v59, %v3000_v60 }
 0x4c7   : > { %v4135_v40 = vsel %vm17055_vm10, %v4134_v33, %v17053_v18  ;;  %v13796_v30 = vsel %vm16379_vm15, %v2896_v19, %v2895_v44  ;;  %v7834_v53 = vadd.s32 4294967294, %v6176_v14  ;;  %v3028_v37 = vadd.s32 1, %v7712_v23 }
 0x4c8   : > { %v13798_v54 = vor.u32 4788187, %v6289_v45  ;;  %v13803_v20 = vadd.s32 %v13665_v46, %v13672_v29  ;;  %v3136_v32 = vsub.s32 32, %v3135_v36  ;;  %v3134_v48 = vshrl.u32 %v3133_v57, 5 }
 0x4c9   : > { %v13805_v22 = vshll.u32 %v3129_v4, 8  ;;  %v3025_v5 = vand.u32 8388607, %v16380_v62  ;;  %v4137_v44 = vsel %vm9762_vm6, 0, %v4135_v40  ;;  %v3138_v26 = vshll.u32 %v16574_v12, %v3135_v36 }
 0x4ca   : > { %v3139_v27 = vshrl.u32 %v16569_v13, %v3136_v32  ;;  %v3141_v39 = vshll.u32 %v16569_v13, %v3135_v36  ;;  %v3142_v38 = vshrl.u32 %v16570_v6, %v3136_v32  ;;  %v13815_v46 = vpop.eup %8468  ;;  %vm7835_vm4 = vcmp.lt.s32.totalorder %v7834_v53, 0 }
 0x4cb   : > { %17057 = vst [vmem:[#allocation20_spill] sm:$0xff] %v13815_v46  ;;  %v3144_v29 = vshll.u32 %v16570_v6, %v3135_v36  ;;  %v3145_v3 = vshrl.u32 %v16571_v15, %v3136_v32  ;;  %vm3029_vm14 = vcmp.gt.s32.totalorder %v3028_v37, 0  ;;  %v3147_v34 = vshll.u32 %v16571_v15, %v3135_v36 }
 0x4cc   : > { %v3140_v52 = vor.u32 %v3139_v27, %v3138_v26  ;;  %v3143_v61 = vor.u32 %v3142_v38, %v3141_v39  ;;  %v3148_v51 = vshrl.u32 %v16572_v9, %v3136_v32  ;;  %v13821_v18 = vpop.eup %8470  ;;  %v3150_v19 = vshll.u32 %v16572_v9, %v3135_v36 }
 0x4cd   : > { %17058 = vst [vmem:[#allocation16_spill] sm:$0xff] %v13821_v18  ;;  %v3146_v33 = vor.u32 %v3145_v3, %v3144_v29  ;;  %v3151_v14 = vshrl.u32 %v16573_v8, %v3136_v32  ;;  %v3026_v23 = vor.u32 8388608, %v3025_v5  ;;  %v13825_v60 = vsel %vm7835_vm4, 0, %v7834_v53 }
 0x4ce   : > { %v3137_v45 = vshrl.u32 %v16574_v12, %v3136_v32  ;;  %v3149_v4 = vor.u32 %v3148_v51, %v3147_v34  ;;  %v3030_v57 = vsel %vm3029_vm14, %v3028_v37, 0  ;;  %v13828_v40 = vpop.eup %8472  ;;  %vm3153_vm6 = vcmp.lt.s32.totalorder %v3134_v48, 1 }
 0x4cf   : > { %17059 = vst [vmem:[#allocation15_spill] sm:$0xff] %v13828_v40  ;;  %v3152_v25 = vor.u32 %v3151_v14, %v3150_v19  ;;  %vm3154_vm10 = vcmp.lt.s32.totalorder %v3134_v48, 2  ;;  %vm3156_vm2 = vcmp.lt.s32.totalorder %v3134_v48, 4  ;;  %v13830_v26 = vpop.eup %8474  ;;  %vm3155_vm15 = vcmp.lt.s32.totalorder %v3134_v48, 3 }
 0x4d0   : > { %v3158_v27 = vsel %vm3156_vm2, %v3146_v33, 2102212464  ;;  %v3161_v36 = vsel %vm3153_vm6, %v3140_v52, %v3143_v61  ;;  %v3162_v39 = vsel %vm3156_vm2, %v3149_v4, 920167782  ;;  %v3157_v38 = vsel %vm3153_vm6, %v3137_v45, %v3140_v52 }
 0x4d1   : > { %v3159_v5 = vsel %vm3155_vm15, %v3143_v61, %v3158_v27  ;;  %v3163_v53 = vsel %vm3155_vm15, %v3146_v33, %v3162_v39  ;;  %v3165_v29 = vsel %vm3153_vm6, %v3143_v61, %v3146_v33  ;;  %v6184_v32 = vsub.s32 4294967266, %v13825_v60  ;;  %v17060_v61 = vld [vmem:[#allocation66_spill] sm:$0xff] }
 0x4d2   : > { %v3164_v37 = vsel %vm3154_vm10, %v3161_v36, %v3163_v53  ;;  %v3166_v3 = vsel %vm3156_vm2, %v3152_v25, 1326507024  ;;  %v13834_v34 = vand.u32 3, %v4137_v44  ;;  %v3031_v62 = vshrl.u32 %v3030_v57, 5 }
 0x4d3   : > { %v3167_v51 = vsel %vm3155_vm15, %v3149_v4, %v3166_v3  ;;  %v13837_v19 = vmul.u32.u64.low %v13805_v22, %v3164_v37  ;;  %v13838_v14 = vmul.u32.u64.high %v13805_v22, %v3164_v37, %v13837_v19  ;;  %v3160_v35 = vsel %vm3154_vm10, %v3157_v38, %v3159_v5  ;;  %v17061_v4 = vld [vmem:[#allocation45_spill] sm:$0xff] }
 0x4d4   : > { %v3168_v52 = vsel %vm3154_vm10, %v3165_v29, %v3167_v51  ;;  %v3032_v45 = vand.u32 31, %v3030_v57  ;;  %v4144_v33 = vxor.u32 2147483648, %v17060_v61  ;;  %v13848_v44 = vshll.u32 %v3026_v23, 8 }
 0x4d5   : > { %v13845_v27 = vmul.u32.u64.low %v13805_v22, %v3168_v52  ;;  %v13846_v36 = vmul.u32.u64.high %v13805_v22, %v3168_v52, %v13845_v27  ;;  %v4147_v25 = vxor.u32 2147483648, %v17061_v4  ;;  %v6180_v39 = vsub.s32 32, %v13825_v60 }
 0x4d6   : > { %v6185_v53 = vadd.s32 127, %v6184_v32  ;;  %v3033_v37 = vsub.s32 32, %v3032_v45  ;;  %vm4143_vm2 = vcmp.eq.s32.totalorder %v13834_v34, 0  ;;  %v3176_v48 = vmul.u32 %v13805_v22, %v3160_v35 }
 0x4d7   : > { %v3179_v57 = vadd.s32 1, %v13838_v14  ;;  %v3035_v38 = vshll.u32 %v16574_v12, %v3032_v45  ;;  %vm3050_vm15 = vcmp.lt.s32.totalorder %v3031_v62, 1  ;;  %v3038_v23 = vshll.u32 %v16569_v13, %v3032_v45 }
 0x4d8   : > { %v3036_v5 = vshrl.u32 %v16569_v13, %v3033_v37  ;;  %v3039_v29 = vshrl.u32 %v16570_v6, %v3033_v37  ;;  %v3041_v3 = vshll.u32 %v16570_v6, %v3032_v45  ;;  %vm3178_vm4 = vc.u32 %v13846_v36, %v13837_v19 }
 0x4d9   : > { %v3042_v32 = vshrl.u32 %v16571_v15, %v3033_v37  ;;  %v3044_v35 = vshll.u32 %v16571_v15, %v3032_v45  ;;  %v3047_v22 = vshll.u32 %v16572_v9, %v3032_v45  ;;  %v3180_v51 = vsel %vm3178_vm4, %v3179_v57, %v13838_v14 }
 0x4da   : > { %v3034_v52 = vshrl.u32 %v16574_v12, %v3033_v37  ;;  %v3037_v27 = vor.u32 %v3036_v5, %v3035_v38  ;;  %v3040_v31 = vor.u32 %v3039_v29, %v3038_v23  ;;  %v3181_v24 = vadd.s32 %v3180_v51, %v3176_v48 }
 0x4db   : > { %v3043_v47 = vor.u32 %v3042_v32, %v3041_v3  ;;  %v3045_v56 = vshrl.u32 %v16572_v9, %v3033_v37  ;;  %v3048_v59 = vshrl.u32 %v16573_v8, %v3033_v37  ;;  %v6186_v46 = vshll.u32 %v6185_v53, 23 }
 0x4dc   : > { %vm3052_vm14 = vcmp.lt.s32.totalorder %v3031_v62, 3  ;;  %vm3053_vm6 = vcmp.lt.s32.totalorder %v3031_v62, 4  ;;  %v3054_v2 = vsel %vm3050_vm15, %v3034_v52, %v3037_v27  ;;  %v3182_v21 = vadd.s32 536870912, %v3181_v24 }
 0x4dd   : > { %v3046_v18 = vor.u32 %v3045_v56, %v3044_v35  ;;  %v3049_v45 = vor.u32 %v3048_v59, %v3047_v22  ;;  %v3055_v40 = vsel %vm3053_vm6, %v3043_v47, 2102212464  ;;  %vm3051_vm10 = vcmp.lt.s32.totalorder %v3031_v62, 2 }
 0x4de   : > { %v3056_v14 = vsel %vm3052_vm14, %v3040_v31, %v3055_v40  ;;  %v3058_v57 = vsel %vm3050_vm15, %v3037_v27, %v3040_v31  ;;  %v3062_v48 = vsel %vm3050_vm15, %v3040_v31, %v3043_v47  ;;  %v13873_v38 = vshrl.u32 %v3182_v21, 30  ;;  %v378_v31 = vpop.permute.xlu1 %377 }
 0x4df   : > { %v3059_v5 = vsel %vm3053_vm6, %v3046_v18, 920167782  ;;  %v3063_v37 = vsel %vm3053_vm6, %v3049_v45, 1326507024  ;;  %v4145_v53 = vsel %vm4143_vm2, %v17061_v4, %v4144_v33  ;;  %v3057_v23 = vsel %vm3051_vm10, %v3054_v2, %v3056_v14  ;;  %v17067_v45 = vld [vmem:[#allocation11_spill] sm:$0xff] }
 0x4e0   : > { %17062 = vst [vmem:[#allocation30_spill] sm:$0xff] %v13873_v38  ;;  %v3060_v56 = vsel %vm3052_vm14, %v3043_v47, %v3059_v5  ;;  %v3064_v59 = vsel %vm3052_vm14, %v3046_v18, %v3063_v37  ;;  %vm4146_vm4 = vcmp.eq.s32.totalorder %v13834_v34, 2  ;;  %v3184_v40 = vshll.u32 %v13873_v38, 30  ;;  %v17063_v18 = vld [vmem:[#allocation34_spill] sm:$0xff]  ;;  %v17071_v5 = vld [vmem:[#allocation64_spill] sm:$0xff] }
 0x4e1   : > { %v3061_v29 = vsel %vm3051_vm10, %v3058_v57, %v3060_v56  ;;  %v3065_v3 = vsel %vm3051_vm10, %v3062_v48, %v3064_v59  ;;  %v4148_v21 = vsel %vm4146_vm4, %v4147_v25, %v17060_v61  ;;  %v6291_v47 = vand.u32 2147483647, %v13798_v54 }
 0x4e2   : > { %v13884_v32 = vmul.u32.u64.low %v13848_v44, %v3065_v3  ;;  %v13885_v35 = vmul.u32.u64.high %v13848_v44, %v3065_v3, %v13884_v32  ;;  %v13888_v33 = vmul.u32.u64.low %v13848_v44, %v3061_v29  ;;  %v13889_v2 = vmul.u32.u64.high %v13848_v44, %v3061_v29, %v13888_v33 }
 0x4e3   : > { %v13893_v62 = vsub.s32 %v3181_v24, %v3184_v40  ;;  %vm4142_vm2 = vcmp.lt.s32.totalorder %v13834_v34, 2  ;;  %v4237_v4 = vsub.s32 4, %v17063_v18  ;;  %v6181_v61 = vshll.u32 %v13748_v42, %v13825_v60 }
 0x4e4   : > { %v6182_v25 = vshrl.u32 %v13803_v20, %v6180_v39  ;;  %v6187_v22 = vor.u32 4788187, %v6186_v46  ;;  %v471_v51 = vmul.f32 %v16538_v0, %v378_v31  ;;  %v17064_v52 = vand.u32 2147483647, %v13021_v43  ;;  %v17070_v39 = vld [vmem:[#allocation65_spill] sm:$0xff] }
 0x4e5   : > { %v3187_v24 = vsub.s32 0, %v13893_v62  ;;  %v3073_v54 = vmul.u32 %v13848_v44, %v3057_v23  ;;  %v4149_v34 = vsel %vm4142_vm2, %v4145_v53, %v4148_v21  ;;  %vm17068_vm14 = vcmp.lt.s32.totalorder %v17067_v45, 0  ;;  %v373_v21 = vpop.permute.xlu0 %372 }
 0x4e6   : > { %vm13903_vm15 = vcmp.le.f32.partialorder %v17064_v52, 0.7853982  ;;  %v4238_v42 = vsel %vm17068_vm14, %v4237_v4, %v17063_v18  ;;  %vm3075_vm6 = vc.u32 %v13885_v35, %v13888_v33  ;;  %v3076_v20 = vadd.s32 1, %v13889_v2 }
 0x4e7   : > { %v4240_v60 = vsel %vm9712_vm1, 0, %v4238_v42  ;;  %v4247_v14 = vxor.u32 2147483648, %v17070_v39  ;;  %v7717_v57 = vmin.u32 %v3187_v24, %v13893_v62  ;;  %v4250_v44 = vxor.u32 2147483648, %v17071_v5 }
 0x4e8   : > { %v4244_v48 = vand.u32 3, %v4240_v60  ;;  %v13921_v37 = vadd.f32 %v16537_v1, %v471_v51  ;;  %v17073_v53 = vcvt.s32.f32 %v13778_v28  ;;  %v6183_v56 = vor.u32 %v6182_v25, %v6181_v61 }
 0x4e9   : > { %v3077_v59 = vsel %vm3075_vm6, %v3076_v20, %v13889_v2  ;;  %vm4140_vm10 = vweird.f32 %v17054_v58  ;;  %v6188_v40 = vand.u32 2147483647, %v6187_v22  ;;  %v3189_v29 = vclz %v7717_v57 }
 0x4ea   : > { %17072 = vst [vmem:[#allocation32_spill] sm:$0xff] %v13921_v37  ;;  %v6294_v23 = vmul.f32 %v17073_v53, %v6291_v47  ;;  %v3078_v3 = vadd.s32 %v3077_v59, %v3073_v54  ;;  %vm4246_vm1 = vcmp.eq.s32.totalorder %v4244_v48, 0  ;;  %v4150_v31 = vsel %vm4140_vm10, nan, %v4149_v34 }
 0x4eb   : > { %vm4245_vm4 = vcmp.lt.s32.totalorder %v4244_v48, 2  ;;  %v4248_v32 = vsel %vm4246_vm1, %v17071_v5, %v4247_v14  ;;  %vm4249_vm2 = vcmp.eq.s32.totalorder %v4244_v48, 2  ;;  %v7718_v18 = vadd.s32 4294967294, %v3189_v29  ;;  %v17076_v48 = vld [vmem:[#allocation43_spill] sm:$0xff] }
 0x4ec   : > { %v3079_v4 = vadd.s32 536870912, %v3078_v3  ;;  %v4251_v28 = vsel %vm4249_vm2, %v4250_v44, %v17070_v39  ;;  %v6420_v47 = vand.u32 2139095040, %v13921_v37  ;;  %v6190_v61 = vcvt.s32.f32 %v6183_v56 }
 0x4ed   : > { %vm4243_vm14 = vweird.f32 %v17067_v45  ;;  %v4252_v58 = vsel %vm4245_vm4, %v4248_v32, %v4251_v28  ;;  %v470_v2 = vmul.f32 %v16538_v0, %v373_v21  ;;  %vm7719_vm6 = vcmp.lt.s32.totalorder %v7718_v18, 0 }
 0x4ee   : > { %v13932_v25 = vshrl.u32 %v3079_v4, 30  ;;  %v4253_v22 = vsel %vm4243_vm14, nan, %v4252_v58  ;;  %v6421_v51 = vshrl.u32 %v6420_v47, 23  ;;  %v2900_v52 = vsel %vm13903_vm15, %v13021_v43, %v13796_v30  ;;  %v17081_v4 = vld [vmem:[#allocation31_spill] sm:$0xff] }
 0x4ef   : > { %v6191_v24 = vmul.f32 %v6190_v61, %v6188_v40  ;;  %v13938_v54 = vsel %vm7719_vm6, 0, %v7718_v18  ;;  %v7155_v34 = vpack.c.bf16 %v4253_v22, %v4150_v31  ;;  %8476 = vcosq.f32 %v13792_v63 }
 0x4f0   : > { %17074 = vst [vmem:[#allocation23_spill] sm:$0xff] %v13932_v25  ;;  %v6295_v45 = vxor.u32 2147483648, %v6294_v23  ;;  %v3081_v42 = vshll.u32 %v13932_v25, 30  ;;  %v16396_v20 = vand.u32 2147483647, %v13921_v37  ;;  %8478 = vsinq.f32 %v13792_v63 }
 0x4f1   : > { %7969 = vmatmul.mubr.bf16.vlgmr.msra.gmra.mrb[0].mxu1 %v7155_v34  ;;  %v7844_v46 = vadd.s32 4294967169, %v6421_v51  ;;  %v13945_v60 = vadd.f32 %v16537_v1, %v470_v2  ;;  %8480 = vcosq.f32 %v2900_v52  ;;  %v3197_v30 = vsub.s32 4294967266, %v13938_v54 }
 0x4f2   : > { %v13948_v39 = vsub.s32 %v3078_v3, %v3081_v42  ;;  %vm16406_vm10 = vcmp.lt.s32.totalorder %v13486_v17, 0  ;;  %v6192_v14 = vxor.u32 2147483648, %v6191_v24  ;;  %v1044_v5 = vsub.s32 4, %v17076_v48 }
 0x4f3   : > { %17075 = vst [vmem:[#allocation12_spill] sm:$0xff] %v13945_v60  ;;  %v6427_v57 = vadd.s32 1, %v7844_v46  ;;  %8482 = vsinq.f32 %v2900_v52  ;;  %v6296_v63 = vsel %vm16406_vm10, %v6295_v45, %v6294_v23  ;;  %v6424_v53 = vand.u32 8388607, %v16396_v20 }
 0x4f4   : > { %v3084_v44 = vsub.s32 0, %v13948_v39  ;;  %v17077_v56 = vand.u32 2147483647, %v13486_v17  ;;  %v17078_v59 = vmov 0  ;;  %v16395_v40 = vand.u32 2147483647, %v13945_v60 }
 0x4f5   : > { %vm6428_vm4 = vcmp.gt.s32.totalorder %v6427_v57, 0  ;;  %v6317_v29 = vand.u32 2139095040, %v13945_v60  ;;  %vm16408_vm2 = vcmp.lt.s32.totalorder %v13506_v55, 0  ;;  %v3198_v3 = vadd.s32 127, %v3197_v30 }
 0x4f6   : > { %vm13959_vm1 = vcmp.le.f32.partialorder %v17077_v56, 0.7853982  ;;  %v7713_v23 = vmin.u32 %v3084_v44, %v13948_v39  ;;  %v6429_v21 = vsel %vm6428_vm4, %v6427_v57, 0  ;;  %v13974_v32 = vsel %vm16408_vm2, %v6192_v14, %v6191_v24 }
 0x4f7   : > { %v17079_v59 = vsel %vm13959_vm1, 4294967295, %v17078_v59  ;;  %v13970_v31 = vsel %vm13959_vm1, %v13486_v17, %v6296_v63  ;;  %v6431_v18 = vand.u32 31, %v6429_v21  ;;  %vm17082_vm14 = vcmp.lt.s32.totalorder %v17081_v4, 0 }
 0x4f8   : > { %17080 = vst [vmem:[#allocation26_spill] sm:$0xff] %v17079_v59  ;;  %v1045_v28 = vsel %vm17082_vm14, %v1044_v5, %v17076_v48  ;;  %v3177_v47 = vadd.s32 %v13837_v19, %v13846_v36  ;;  %v13983_v61 = vadd.s32 %v13888_v33, %v13885_v35  ;;  %v3086_v58 = vclz %v7713_v23 }
 0x4f9   : > { %v6425_v2 = vor.u32 8388608, %v6424_v53  ;;  %v3193_v22 = vsub.s32 32, %v13938_v54  ;;  %v6432_v51 = vsub.s32 32, %v6431_v18  ;;  %v6318_v52 = vshrl.u32 %v6317_v29, 23  ;;  %v13990_v34 = vpop.eup %8476 }
 0x4fa   : > { %v13988_v24 = vand.u32 8388607, %v16395_v40  ;;  %17083 = vst [vmem:[#allocation33_spill] sm:$0xff] %v13990_v34  ;;  %v3199_v45 = vshll.u32 %v3198_v3, 23  ;;  %v7714_v42 = vadd.s32 4294967294, %v3086_v58  ;;  %v6434_v19 = vshll.u32 %v16574_v12, %v6431_v18  ;;  %v13995_v33 = vpop.eup %8478 }
 0x4fb   : > { %v1047_v35 = vsel %vm9877_vm8, 0, %v1045_v28  ;;  %17085 = vst [vmem:[#allocation24_spill] sm:$0xff] %v13995_v33  ;;  %v6435_v46 = vshrl.u32 %v16569_v13, %v6432_v51  ;;  %v6437_v30 = vshll.u32 %v16569_v13, %v6431_v18  ;;  %v6438_v14 = vshrl.u32 %v16570_v6, %v6432_v51  ;;  %v14001_v48 = vpop.eup %8480 }
 0x4fc   : > { %v6441_v57 = vshrl.u32 %v16571_v15, %v6432_v51  ;;  %17086 = vst [vmem:[#allocation136_spill] sm:$0xff] %v14001_v48  ;;  %vm7715_vm6 = vcmp.lt.s32.totalorder %v7714_v42, 0  ;;  %v6440_v5 = vshll.u32 %v16570_v6, %v6431_v18  ;;  %v6444_v63 = vshrl.u32 %v16572_v9, %v6432_v51 }
 0x4fd   : > { %v6447_v44 = vshrl.u32 %v16573_v8, %v6432_v51  ;;  %v6430_v53 = vshrl.u32 %v6429_v21, 5  ;;  %v6443_v56 = vshll.u32 %v16571_v15, %v6431_v18  ;;  %v6446_v29 = vshll.u32 %v16572_v9, %v6431_v18  ;;  %v14008_v23 = vpop.eup %8482  ;;  %v17087_v18 = vld [vmem:[#allocation39_spill] sm:$0xff] }
 0x4fe   : > { %v7840_v3 = vadd.s32 4294967169, %v6318_v52  ;;  %v3194_v28 = vshll.u32 %v13893_v62, %v13938_v54  ;;  %v6436_v58 = vor.u32 %v6435_v46, %v6434_v19  ;;  %v6439_v36 = vor.u32 %v6438_v14, %v6437_v30 }
 0x4ff   : > { %v6442_v40 = vor.u32 %v6441_v57, %v6440_v5  ;;  %v14012_v20 = vsel %vm7715_vm6, 0, %v7714_v42  ;;  %v6445_v38 = vor.u32 %v6444_v63, %v6443_v56  ;;  %v6448_v25 = vor.u32 %v6447_v44, %v6446_v29 }
 0x500   : > { %v6465_v59 = vshll.u32 %v6425_v2, 8  ;;  %v3195_v17 = vshrl.u32 %v3177_v47, %v3193_v22  ;;  %v6322_v21 = vor.u32 8388608, %v13988_v24  ;;  %v14015_v34 = vand.u32 3, %v1047_v35 }
 0x501   : > { %v1147_v52 = vsub.s32 4, %v17087_v18  ;;  %v14018_v33 = vor.u32 4788187, %v3199_v45  ;;  %vm6449_vm8 = vcmp.lt.s32.totalorder %v6430_v53, 1  ;;  %vm6452_vm4 = vcmp.lt.s32.totalorder %v6430_v53, 4 }
 0x502   : > { %v6324_v62 = vadd.s32 1, %v7840_v3  ;;  %v3094_v54 = vsub.s32 4294967266, %v14012_v20  ;;  %v6433_v42 = vshrl.u32 %v16574_v12, %v6432_v51  ;;  %v6454_v19 = vsel %vm6452_vm4, %v6442_v40, 2102212464  ;;  %v17088_v3 = vld [vmem:[#allocation80_spill] sm:$0xff] }
 0x503   : > { %v6457_v46 = vsel %vm6449_vm8, %v6436_v58, %v6439_v36  ;;  %vm6451_vm14 = vcmp.lt.s32.totalorder %v6430_v53, 3  ;;  %v6458_v2 = vsel %vm6452_vm4, %v6445_v38, 920167782  ;;  %v6461_v47 = vsel %vm6449_vm8, %v6439_v36, %v6442_v40 }
 0x504   : > { %v6462_v22 = vsel %vm6452_vm4, %v6448_v25, 1326507024  ;;  %v3090_v24 = vsub.s32 32, %v14012_v20  ;;  %vm6450_vm6 = vcmp.lt.s32.totalorder %v6430_v53, 2  ;;  %v6453_v35 = vsel %vm6449_vm8, %v6433_v42, %v6436_v58 }
 0x505   : > { %v6459_v30 = vsel %vm6451_vm14, %v6442_v40, %v6458_v2  ;;  %v6455_v45 = vsel %vm6451_vm14, %v6439_v36, %v6454_v19  ;;  %v6463_v57 = vsel %vm6451_vm14, %v6445_v38, %v6462_v22  ;;  %vm6325_vm10 = vcmp.gt.s32.totalorder %v6324_v62, 0  ;;  %v17089_v36 = vld [vmem:[#allocation72_spill] sm:$0xff]  ;;  %v17090_v19 = vld [vmem:[#allocation22_spill] sm:$0xff] }
 0x506   : > { %v6460_v14 = vsel %vm6450_vm6, %v6457_v46, %v6459_v30  ;;  %v14023_v5 = vadd.s32 127, %v3094_v54  ;;  %v6464_v63 = vsel %vm6450_vm6, %v6461_v47, %v6463_v57  ;;  %v6326_v25 = vsel %vm6325_vm10, %v6324_v62, 0 }
 0x507   : > { %v14025_v44 = vmul.u32.u64.low %v6465_v59, %v6460_v14  ;;  %v14026_v51 = vmul.u32.u64.high %v6465_v59, %v6460_v14, %v14025_v44  ;;  %v14029_v56 = vmul.u32.u64.low %v6465_v59, %v6464_v63  ;;  %v14030_v29 = vmul.u32.u64.high %v6465_v59, %v6464_v63, %v14029_v56 }
 0x508   : > { %v1054_v48 = vxor.u32 2147483648, %v17088_v3  ;;  %v14033_v53 = vor.u32 %v3195_v17, %v3194_v28  ;;  %v6456_v40 = vsel %vm6450_vm6, %v6453_v35, %v6455_v45  ;;  %v6328_v58 = vand.u32 31, %v6326_v25 }
 0x509   : > { %v1057_v38 = vxor.u32 2147483648, %v17089_v36  ;;  %v14037_v42 = vshll.u32 %v6322_v21, 8  ;;  %vm1053_vm8 = vcmp.eq.s32.totalorder %v14015_v34, 0  ;;  %vm17091_vm4 = vcmp.lt.s32.totalorder %v17090_v19, 0 }
 0x50a   : > { %v1148_v46 = vsel %vm17091_vm4, %v1147_v52, %v17087_v18  ;;  %v14044_v62 = vshrl.u32 %v13983_v61, %v3090_v24  ;;  %v6475_v28 = vadd.s32 1, %v14026_v51  ;;  %v6329_v2 = vsub.s32 32, %v6328_v58 }
 0x50b   : > { %v6472_v47 = vmul.u32 %v6465_v59, %v6456_v40  ;;  %vm6474_vm10 = vc.u32 %v14030_v29, %v14025_v44  ;;  %v6327_v21 = vshrl.u32 %v6326_v25, 5  ;;  %v1055_v22 = vsel %vm1053_vm8, %v17089_v36, %v1054_v48 }
 0x50c   : > { %v6476_v35 = vsel %vm6474_vm10, %v6475_v28, %v14026_v51  ;;  %v6331_v30 = vshll.u32 %v16574_v12, %v6328_v58  ;;  %v6332_v18 = vshrl.u32 %v16569_v13, %v6329_v2  ;;  %v6334_v61 = vshll.u32 %v16569_v13, %v6328_v58 }
 0x50d   : > { %vm1052_vm14 = vcmp.lt.s32.totalorder %v14015_v34, 2  ;;  %v6477_v52 = vadd.s32 %v6476_v35, %v6472_v47  ;;  %v6335_v24 = vshrl.u32 %v16570_v6, %v6329_v2  ;;  %v6337_v59 = vshll.u32 %v16570_v6, %v6328_v58 }
 0x50e   : > { %v6338_v45 = vshrl.u32 %v16571_v15, %v6329_v2  ;;  %v6333_v14 = vor.u32 %v6332_v18, %v6331_v30  ;;  %v6340_v48 = vshll.u32 %v16571_v15, %v6328_v58  ;;  %v6341_v57 = vshrl.u32 %v16572_v9, %v6329_v2 }
 0x50f   : > { %vm1056_vm6 = vcmp.eq.s32.totalorder %v14015_v34, 2  ;;  %v6478_v63 = vadd.s32 536870912, %v6477_v52  ;;  %v6336_v51 = vor.u32 %v6335_v24, %v6334_v61  ;;  %vm1050_vm8 = vweird.f32 %v17081_v4 }
 0x510   : > { %v6339_v56 = vor.u32 %v6338_v45, %v6337_v59  ;;  %v1058_v25 = vsel %vm1056_vm6, %v1057_v38, %v17088_v3  ;;  %v6342_v40 = vor.u32 %v6341_v57, %v6340_v48  ;;  %v6343_v36 = vshll.u32 %v16572_v9, %v6328_v58 }
 0x511   : > { %v6344_v28 = vshrl.u32 %v16573_v8, %v6329_v2  ;;  %v1150_v35 = vsel %vm9786_vm9, 0, %v1148_v46  ;;  %v14068_v30 = vshrl.u32 %v6478_v63, 30  ;;  %v6330_v18 = vshrl.u32 %v16574_v12, %v6329_v2 }
 0x512   : > { %vm6346_vm4 = vcmp.lt.s32.totalorder %v6327_v21, 1  ;;  %vm6349_vm10 = vcmp.lt.s32.totalorder %v6327_v21, 4  ;;  %vm6347_vm2 = vcmp.lt.s32.totalorder %v6327_v21, 2  ;;  %vm6348_vm6 = vcmp.lt.s32.totalorder %v6327_v21, 3 }
 0x513   : > { %17093 = vst [vmem:[#allocation41_spill] sm:$0xff] %v14068_v30  ;;  %v6345_v61 = vor.u32 %v6344_v28, %v6343_v36  ;;  %v6351_v24 = vsel %vm6349_vm10, %v6339_v56, 2102212464  ;;  %v6354_v59 = vsel %vm6346_vm4, %v6333_v14, %v6336_v51  ;;  %v6480_v3 = vshll.u32 %v14068_v30, 30  ;;  %v228_v28 = vpop.permute.xlu1 %227 }
 0x514   : > { %v6355_v38 = vsel %vm6349_vm10, %v6342_v40, 920167782  ;;  %v6358_v58 = vsel %vm6346_vm4, %v6336_v51, %v6339_v56  ;;  %vm1153_vm0 = vweird.f32 %v17090_v19  ;;  %v6350_v45 = vsel %vm6346_vm4, %v6330_v18, %v6333_v14  ;;  %v17094_v14 = vld [vmem:[#allocation71_spill] sm:$0xff] }
 0x515   : > { %v6352_v48 = vsel %vm6348_vm6, %v6336_v51, %v6351_v24  ;;  %v6356_v46 = vsel %vm6348_vm6, %v6339_v56, %v6355_v38  ;;  %v6359_v57 = vsel %vm6349_vm10, %v6345_v61, 1326507024  ;;  %v14073_v63 = vsub.s32 %v6477_v52, %v6480_v3 }
 0x516   : > { %v6357_v2 = vsel %vm6347_vm2, %v6354_v59, %v6356_v46  ;;  %v6360_v47 = vsel %vm6348_vm6, %v6342_v40, %v6359_v57  ;;  %v1059_v36 = vsel %vm1052_vm14, %v1055_v22, %v1058_v25  ;;  %v1157_v51 = vxor.u32 2147483648, %v17094_v14  ;;  %v17095_v25 = vld [vmem:[#allocation69_spill] sm:$0xff] }
 0x517   : > { %v6361_v54 = vsel %vm6347_vm2, %v6358_v58, %v6360_v47  ;;  %v14080_v17 = vmul.u32.u64.low %v14037_v42, %v6357_v2  ;;  %v14081_v30 = vmul.u32.u64.high %v14037_v42, %v6357_v2, %v14080_v17  ;;  %v6483_v56 = vsub.s32 0, %v14073_v63 }
 0x518   : > { %v14087_v52 = vmul.u32.u64.low %v14037_v42, %v6361_v54  ;;  %v14088_v18 = vmul.u32.u64.high %v14037_v42, %v6361_v54, %v14087_v52  ;;  %v1154_v40 = vand.u32 3, %v1150_v35  ;;  %v6353_v34 = vsel %vm6347_vm2, %v6350_v45, %v6352_v48  ;;  %v223_v45 = vpop.permute.xlu0 %222 }
 0x519   : > { %v1060_v22 = vsel %vm1050_vm8, nan, %v1059_v36  ;;  %v1160_v61 = vxor.u32 2147483648, %v17095_v25  ;;  %v441_v24 = vmul.f32 %v16538_v0, %v228_v28  ;;  %v7845_v59 = vmin.u32 %v6483_v56, %v14073_v63 }
 0x51a   : > { %vm1155_vm9 = vcmp.lt.s32.totalorder %v1154_v40, 2  ;;  %vm1156_vm14 = vcmp.eq.s32.totalorder %v1154_v40, 0  ;;  %vm1159_vm4 = vcmp.eq.s32.totalorder %v1154_v40, 2  ;;  %v6372_v3 = vadd.s32 1, %v14081_v30 }
 0x51b   : > { %v1158_v54 = vsel %vm1156_vm14, %v17095_v25, %v1157_v51  ;;  %v1161_v35 = vsel %vm1159_vm4, %v1160_v61, %v17094_v14  ;;  %v14100_v21 = vadd.f32 %v16537_v1, %v441_v24  ;;  %v6485_v4 = vclz %v7845_v59  ;;  %v17104_v24 = vld [vmem:[#allocation55_spill] sm:$0xff] }
 0x51c   : > { %v6369_v38 = vmul.u32 %v14037_v42, %v6353_v34  ;;  %vm6371_vm2 = vc.u32 %v14088_v18, %v14080_v17  ;;  %v1162_v58 = vsel %vm1155_vm9, %v1158_v54, %v1161_v35  ;;  %v3091_v48 = vshll.u32 %v13948_v39, %v14012_v20 }
 0x51d   : > { %17096 = vst [vmem:[#allocation57_spill] sm:$0xff] %v14100_v21  ;;  %v17097_v46 = vshll.u32 %v14023_v5, 23  ;;  %v6373_v2 = vsel %vm6371_vm2, %v6372_v3, %v14081_v30  ;;  %v1163_v47 = vsel %vm1153_vm0, nan, %v1162_v58  ;;  %v7846_v36 = vadd.s32 4294967294, %v6485_v4 }
 0x51e   : > { %v6374_v28 = vadd.s32 %v6373_v2, %v6369_v38  ;;  %v7140_v14 = vpack.c.bf16 %v1163_v47, %v1060_v22  ;;  %v3330_v42 = vand.u32 2139095040, %v14100_v21  ;;  %v17098_v51 = vand.u32 2147483647, %v13506_v55  ;;  %v17106_v2 = vld [vmem:[#allocation42_spill] sm:$0xff] }
 0x51f   : > { %v3097_v57 = vor.u32 4788187, %v17097_v46  ;;  %v17099_v56 = vmov 0  ;;  %v3203_v20 = vcvt.s32.f32 %v14033_v53  ;;  %v3093_v39 = vor.u32 %v14044_v62, %v3091_v48 }
 0x520   : > { %vm14115_vm8 = vcmp.le.f32.partialorder %v17098_v51, 0.7853982  ;;  %v440_v5 = vmul.f32 %v16538_v0, %v223_v45  ;;  %8484 = vcosq.f32 %v13970_v31  ;;  %vm7847_vm0 = vcmp.lt.s32.totalorder %v7846_v36, 0  ;;  %7940 = vmatprep.mubr.bf16.mxu0 %v7140_v14 }
 0x521   : > { %v17100_v56 = vsel %vm14115_vm8, 4294967295, %v17099_v56  ;;  %v6375_v19 = vadd.s32 536870912, %v6374_v28  ;;  %v3331_v30 = vshrl.u32 %v3330_v42, 23  ;;  %v6196_v52 = vsel %vm14115_vm8, %v13506_v55, %v13974_v32 }
 0x522   : > { %17101 = vst [vmem:[#allocation27_spill] sm:$0xff] %v17100_v56  ;;  %v17102_v40 = vand.u32 2147483647, %v14018_v33  ;;  %v3098_v22 = vand.u32 2147483647, %v3097_v57  ;;  %v6488_v53 = vsel %vm7847_vm0, 0, %v7846_v36  ;;  %v3100_v3 = vcvt.s32.f32 %v3093_v39 }
 0x523   : > { %v6493_v25 = vsub.s32 4294967266, %v6488_v53  ;;  %v14129_v62 = vshrl.u32 %v6375_v19, 30  ;;  %v16412_v61 = vand.u32 2147483647, %v14100_v21  ;;  %v4340_v59 = vsub.s32 4, %v17104_v24 }
 0x524   : > { %v3204_v34 = vmul.f32 %v3203_v20, %v17102_v40  ;;  %v6489_v54 = vsub.s32 32, %v6488_v53  ;;  %v7724_v35 = vadd.s32 4294967169, %v3331_v30  ;;  %v14134_v4 = vadd.f32 %v16537_v1, %v440_v5 }
 0x525   : > { %17103 = vst [vmem:[#allocation8_spill] sm:$0xff] %v14129_v62  ;;  %8486 = vsinq.f32 %v13970_v31  ;;  %vm16418_vm10 = vcmp.lt.s32.totalorder %v13734_v50, 0  ;;  %v6494_v32 = vadd.s32 127, %v6493_v25  ;;  %v6377_v33 = vshll.u32 %v14129_v62, 30 }
 0x526   : > { %17105 = vst [vmem:[#allocation52_spill] sm:$0xff] %v14134_v4  ;;  %v3205_v38 = vxor.u32 2147483648, %v3204_v34  ;;  %v3101_v58 = vmul.f32 %v3100_v3, %v3098_v22  ;;  %v6473_v45 = vadd.s32 %v14025_v44, %v14030_v29  ;;  %v3337_v48 = vadd.s32 1, %v7724_v35 }
 0x527   : > { %8488 = vcosq.f32 %v6196_v52  ;;  %v14141_v46 = vsub.s32 %v6374_v28, %v6377_v33  ;;  %v3334_v57 = vand.u32 8388607, %v16412_v61  ;;  %vm17107_vm6 = vcmp.lt.s32.totalorder %v17106_v2, 0 }
 0x528   : > { %v4341_v31 = vsel %vm17107_vm6, %v4340_v59, %v17104_v24  ;;  %vm16422_vm9 = vcmp.lt.s32.totalorder %v13737_v16, 0  ;;  %v6491_v47 = vshrl.u32 %v6473_v45, %v6489_v54  ;;  %v6495_v36 = vshll.u32 %v6494_v32, 23 }
 0x529   : > { %vm3338_vm14 = vcmp.gt.s32.totalorder %v3337_v48, 0  ;;  %v3227_v14 = vand.u32 2139095040, %v14134_v4  ;;  %8490 = vsinq.f32 %v6196_v52  ;;  %v17108_v44 = vand.u32 2147483647, %v13734_v50 }
 0x52a   : > { %v17109_v29 = vmov 0  ;;  %v6380_v28 = vsub.s32 0, %v14141_v46  ;;  %v3339_v42 = vsel %vm3338_vm14, %v3337_v48, 0  ;;  %v3206_v51 = vsel %vm16418_vm10, %v3205_v38, %v3204_v34  ;;  %v14160_v19 = vpop.eup %8484 }
 0x52b   : > { %vm14152_vm4 = vcmp.le.f32.partialorder %v17108_v44, 0.7853982  ;;  %v3102_v20 = vxor.u32 2147483648, %v3101_v58  ;;  %v6490_v39 = vshll.u32 %v14073_v63, %v6488_v53  ;;  %v3341_v5 = vand.u32 31, %v3339_v42  ;;  %17112 = vst [vmem:[#allocation62_spill] sm:$0xff] %v14160_v19 }
 0x52c   : > { %v17110_v29 = vsel %vm14152_vm4, 4294967295, %v17109_v29  ;;  %v7841_v30 = vmin.u32 %v6380_v28, %v14141_v46  ;;  %v3335_v52 = vor.u32 8388608, %v3334_v57  ;;  %v16419_v40 = vand.u32 2147483647, %v14134_v4 }
 0x52d   : > { %17111 = vst [vmem:[#allocation63_spill] sm:$0xff] %v17110_v29  ;;  %v4343_v25 = vsel %vm10227_vm7, 0, %v4341_v31  ;;  %v6492_v24 = vor.u32 %v6491_v47, %v6490_v39  ;;  %v6496_v59 = vor.u32 4788187, %v6495_v36  ;;  %v3342_v3 = vsub.s32 32, %v3341_v5 }
 0x52e   : > { %v3228_v54 = vshrl.u32 %v3227_v14, 23  ;;  %v6382_v35 = vclz %v7841_v30  ;;  %v3340_v34 = vshrl.u32 %v3339_v42, 5  ;;  %v3344_v32 = vshll.u32 %v16574_v12, %v3341_v5 }
 0x52f   : > { %v3347_v63 = vshll.u32 %v16569_v13, %v3341_v5  ;;  %v3345_v53 = vshrl.u32 %v16569_v13, %v3342_v3  ;;  %v3348_v33 = vshrl.u32 %v16570_v6, %v3342_v3  ;;  %v3350_v38 = vshll.u32 %v16570_v6, %v3341_v5  ;;  %v14172_v48 = vpop.eup %8486 }
 0x530   : > { %v3351_v45 = vshrl.u32 %v16571_v15, %v3342_v3  ;;  %17114 = vst [vmem:[#allocation17_spill] sm:$0xff] %v14172_v48  ;;  %v7842_v57 = vadd.s32 4294967294, %v6382_v35  ;;  %v3353_v31 = vshll.u32 %v16571_v15, %v3341_v5  ;;  %v3354_v47 = vshrl.u32 %v16572_v9, %v3342_v3  ;;  %v388_v48 = vpop.permute.xlu1 %387 }
 0x531   : > { %v3357_v36 = vshrl.u32 %v16573_v8, %v3342_v3  ;;  %v3346_v14 = vor.u32 %v3345_v53, %v3344_v32  ;;  %v3349_v44 = vor.u32 %v3348_v33, %v3347_v63  ;;  %v3356_v28 = vshll.u32 %v16572_v9, %v3341_v5  ;;  %v14178_v39 = vpop.eup %8488 }
 0x532   : > { %v7720_v42 = vadd.s32 4294967169, %v3228_v54  ;;  %v14183_v30 = vsel %vm14152_vm4, %v13734_v50, %v3206_v51  ;;  %v17115_v22 = vand.u32 2147483647, %v13737_v16  ;;  %v17116_v35 = vmov 0 }
 0x533   : > { %v3103_v32 = vsel %vm16422_vm9, %v3102_v20, %v3101_v58  ;;  %v3352_v63 = vor.u32 %v3351_v45, %v3350_v38  ;;  %v3355_v53 = vor.u32 %v3354_v47, %v3353_v31  ;;  %vm7843_vm2 = vcmp.lt.s32.totalorder %v7842_v57, 0  ;;  %v14195_v61 = vpop.eup %8490 }
 0x534   : > { %vm14187_vm7 = vcmp.le.f32.partialorder %v17115_v22, 0.7853982  ;;  %v3358_v5 = vor.u32 %v3357_v36, %v3356_v28  ;;  %v3375_v54 = vshll.u32 %v3335_v52, 8  ;;  %v3231_v33 = vand.u32 8388607, %v16419_v40 }
 0x535   : > { %v17117_v35 = vsel %vm14187_vm7, 4294967295, %v17116_v35  ;;  %v6497_v51 = vand.u32 2147483647, %v6496_v59  ;;  %v6499_v62 = vcvt.s32.f32 %v6492_v24  ;;  %vm3359_vm0 = vcmp.lt.s32.totalorder %v3340_v34, 1 }
 0x536   : > { %17118 = vst [vmem:[#allocation7_spill] sm:$0xff] %v17117_v35  ;;  %v14197_v22 = vand.u32 3, %v4343_v25  ;;  %v3343_v29 = vshrl.u32 %v16574_v12, %v3342_v3  ;;  %vm3362_vm6 = vcmp.lt.s32.totalorder %v3340_v34, 4  ;;  %v3367_v50 = vsel %vm3359_vm0, %v3346_v14, %v3349_v44  ;;  %v17123_v35 = vld [vmem:[#allocation50_spill] sm:$0xff] }
 0x537   : > { %v3234_v58 = vadd.s32 1, %v7720_v42  ;;  %v14200_v20 = vsel %vm7843_vm2, 0, %v7842_v57  ;;  %vm3361_vm14 = vcmp.lt.s32.totalorder %v3340_v34, 3  ;;  %v3364_v38 = vsel %vm3362_vm6, %v3352_v63, 2102212464 }
 0x538   : > { %v3368_v52 = vsel %vm3362_vm6, %v3355_v53, 920167782  ;;  %vm3360_vm10 = vcmp.lt.s32.totalorder %v3340_v34, 2  ;;  %v3371_v31 = vsel %vm3359_vm0, %v3349_v44, %v3352_v63  ;;  %v3372_v47 = vsel %vm3362_vm6, %v3358_v5, 1326507024  ;;  %v17121_v5 = vld [vmem:[#allocation86_spill] sm:$0xff] }
 0x539   : > { %v3369_v45 = vsel %vm3361_vm14, %v3352_v63, %v3368_v52  ;;  %v14202_v36 = vmul.f32 %v6499_v62, %v6497_v51  ;;  %v3363_v24 = vsel %vm3359_vm0, %v3343_v29, %v3346_v14  ;;  %v3232_v59 = vor.u32 8388608, %v3231_v33 }
 0x53a   : > { %v3370_v25 = vsel %vm3360_vm10, %v3367_v50, %v3369_v45  ;;  %v3365_v28 = vsel %vm3361_vm14, %v3349_v44, %v3364_v38  ;;  %v3373_v3 = vsel %vm3361_vm14, %v3355_v53, %v3372_v47  ;;  %8492 = vcosq.f32 %v14183_v30 }
 0x53b   : > { %v14205_v40 = vmul.u32.u64.low %v3375_v54, %v3370_v25  ;;  %v14206_v19 = vmul.u32.u64.high %v3375_v54, %v3370_v25, %v14205_v40  ;;  %v6386_v57 = vsub.s32 32, %v14200_v20  ;;  %v3374_v42 = vsel %vm3360_vm10, %v3371_v31, %v3373_v3 }
 0x53c   : > { %vm3235_vm2 = vcmp.gt.s32.totalorder %v3234_v58, 0  ;;  %v14215_v62 = vsel %vm14187_vm7, %v13737_v16, %v3103_v32  ;;  %v14217_v50 = vmul.u32.u64.low %v3375_v54, %v3374_v42  ;;  %v14218_v29 = vmul.u32.u64.high %v3375_v54, %v3374_v42, %v14217_v50  ;;  %v17119_v32 = vld [vmem:[#allocation88_spill] sm:$0xff] }
 0x53d   : > { %v3236_v14 = vsel %vm3235_vm2, %v3234_v58, 0  ;;  %v6370_v44 = vadd.s32 %v14080_v17, %v14088_v18  ;;  %v3366_v63 = vsel %vm3360_vm10, %v3363_v24, %v3365_v28  ;;  %vm4349_vm0 = vcmp.eq.s32.totalorder %v14197_v22, 0 }
 0x53e   : > { %v3238_v53 = vand.u32 31, %v3236_v14  ;;  %v3385_v33 = vadd.s32 1, %v14206_v19  ;;  %v14226_v51 = vshll.u32 %v3232_v59, 8  ;;  %v4350_v38 = vxor.u32 2147483648, %v17119_v32 }
 0x53f   : > { %v6387_v52 = vshll.u32 %v14141_v46, %v14200_v20  ;;  %v6388_v58 = vshrl.u32 %v6370_v44, %v6386_v57  ;;  %v6390_v45 = vsub.s32 4294967266, %v14200_v20  ;;  %v3382_v18 = vmul.u32 %v3375_v54, %v3366_v63 }
 0x540   : > { %v3239_v17 = vsub.s32 32, %v3238_v53  ;;  %vm3384_vm10 = vc.u32 %v14218_v29, %v14205_v40  ;;  %v3237_v34 = vshrl.u32 %v3236_v14, 5  ;;  %v3241_v31 = vshll.u32 %v16574_v12, %v3238_v53 }
 0x541   : > { %v3386_v47 = vsel %vm3384_vm10, %v3385_v33, %v14206_v19  ;;  %v3244_v25 = vshll.u32 %v16569_v13, %v3238_v53  ;;  %v3247_v59 = vshll.u32 %v16570_v6, %v3238_v53  ;;  %v3250_v57 = vshll.u32 %v16571_v15, %v3238_v53 }
 0x542   : > { %v3242_v24 = vshrl.u32 %v16569_v13, %v3239_v17  ;;  %v3387_v46 = vadd.s32 %v3386_v47, %v3382_v18  ;;  %v3245_v20 = vshrl.u32 %v16570_v6, %v3239_v17  ;;  %v3248_v54 = vshrl.u32 %v16571_v15, %v3239_v17 }
 0x543   : > { %v3251_v28 = vshrl.u32 %v16572_v9, %v3239_v17  ;;  %v3253_v19 = vshll.u32 %v16572_v9, %v3238_v53  ;;  %v3254_v42 = vshrl.u32 %v16573_v8, %v3239_v17  ;;  %v14246_v50 = vadd.s32 127, %v6390_v45 }
 0x544   : > { %v3243_v3 = vor.u32 %v3242_v24, %v3241_v31  ;;  %v3388_v14 = vadd.s32 536870912, %v3387_v46  ;;  %v3246_v44 = vor.u32 %v3245_v20, %v3244_v25  ;;  %v3249_v63 = vor.u32 %v3248_v54, %v3247_v59  ;;  %v14249_v33 = vpop.eup %8492 }
 0x545   : > { %17120 = vst [vmem:[#allocation44_spill] sm:$0xff] %v14249_v33  ;;  %v3252_v18 = vor.u32 %v3251_v28, %v3250_v57  ;;  %v3255_v47 = vor.u32 %v3254_v42, %v3253_v19  ;;  %v4351_v31 = vsel %vm4349_vm0, %v17121_v5, %v4350_v38  ;;  %v4353_v24 = vxor.u32 2147483648, %v17121_v5 }
 0x546   : > { %v14255_v53 = vshrl.u32 %v3388_v14, 30  ;;  %v3240_v45 = vshrl.u32 %v16574_v12, %v3239_v17  ;;  %vm3256_vm2 = vcmp.lt.s32.totalorder %v3237_v34, 1  ;;  %v4443_v25 = vsub.s32 4, %v17123_v35 }
 0x547   : > { %vm3257_vm10 = vcmp.lt.s32.totalorder %v3237_v34, 2  ;;  %vm3258_vm9 = vcmp.lt.s32.totalorder %v3237_v34, 3  ;;  %vm3259_vm14 = vcmp.lt.s32.totalorder %v3237_v34, 4  ;;  %v3264_v59 = vsel %vm3256_vm2, %v3243_v3, %v3246_v44 }
 0x548   : > { %17122 = vst [vmem:[#allocation60_spill] sm:$0xff] %v14255_v53  ;;  %vm4346_vm6 = vweird.f32 %v17106_v2  ;;  %v3390_v20 = vshll.u32 %v14255_v53, 30  ;;  %v3261_v54 = vsel %vm3259_vm14, %v3249_v63, 2102212464  ;;  %v3265_v28 = vsel %vm3259_vm14, %v3252_v18, 920167782 }
 0x549   : > { %v3268_v38 = vsel %vm3256_vm2, %v3246_v44, %v3249_v63  ;;  %v3260_v57 = vsel %vm3256_vm2, %v3240_v45, %v3243_v3  ;;  %v3262_v5 = vsel %vm3258_vm9, %v3246_v44, %v3261_v54  ;;  %v3266_v19 = vsel %vm3258_vm9, %v3249_v63, %v3265_v28  ;;  %v17130_v54 = vld [vmem:[#allocation82_spill] sm:$0xff] }
 0x54a   : > { %v3269_v42 = vsel %vm3259_vm14, %v3255_v47, 1326507024  ;;  %v14261_v14 = vsub.s32 %v3387_v46, %v3390_v20  ;;  %v3267_v17 = vsel %vm3257_vm10, %v3264_v59, %v3266_v19  ;;  %vm17124_vm0 = vcmp.eq.s32.totalorder %v14197_v22, 2  ;;  %v17129_v20 = vld [vmem:[#allocation83_spill] sm:$0xff] }
 0x54b   : > { %v3270_v33 = vsel %vm3258_vm9, %v3252_v18, %v3269_v42  ;;  %v4354_v16 = vsel %vm17124_vm0, %v4353_v24, %v17119_v32  ;;  %v14267_v56 = vor.u32 %v6388_v58, %v6387_v52  ;;  %v3263_v44 = vsel %vm3257_vm10, %v3260_v57, %v3262_v5  ;;  %v17126_v58 = vld [vmem:[#allocation37_spill] sm:$0xff]  ;;  %v383_v24 = vpop.permute.xlu0 %382 }
 0x54c   : > { %v3271_v53 = vsel %vm3257_vm10, %v3268_v38, %v3270_v33  ;;  %v14271_v55 = vmul.u32.u64.low %v14226_v51, %v3267_v17  ;;  %v14272_v3 = vmul.u32.u64.high %v14226_v51, %v3267_v17, %v14271_v55  ;;  %v3393_v46 = vsub.s32 0, %v14261_v14 }
 0x54d   : > { %v14278_v63 = vmul.u32.u64.low %v14226_v51, %v3271_v53  ;;  %v14279_v18 = vmul.u32.u64.high %v14226_v51, %v3271_v53, %v14278_v63  ;;  %v6392_v32 = vshll.u32 %v14246_v50, 23  ;;  %vm17125_vm9 = vcmp.lt.s32.totalorder %v14197_v22, 2 }
 0x54e   : > { %v4355_v52 = vsel %vm17125_vm9, %v4351_v31, %v4354_v16  ;;  %vm17127_vm14 = vcmp.lt.s32.totalorder %v17126_v58, 0  ;;  %v473_v47 = vmul.f32 %v16538_v0, %v388_v48  ;;  %v7725_v45 = vmin.u32 %v3393_v46, %v14261_v14 }
 0x54f   : > { %v4444_v33 = vsel %vm17127_vm14, %v4443_v25, %v17123_v35  ;;  %v4453_v53 = vxor.u32 2147483648, %v17129_v20  ;;  %v4456_v28 = vxor.u32 2147483648, %v17130_v54  ;;  %v3279_v50 = vmul.u32 %v14226_v51, %v3263_v44 }
 0x550   : > { %v4446_v59 = vsel %vm10153_vm11, 0, %v4444_v33  ;;  %v3282_v16 = vadd.s32 1, %v14272_v3  ;;  %v14296_v31 = vadd.f32 %v16537_v1, %v473_v47  ;;  %vm16440_vm2 = vcmp.lt.s32.totalorder %v13921_v37, 0  ;;  %v17132_v47 = vld [vmem:[#allocation73_spill] sm:$0xff] }
 0x551   : > { %v4450_v22 = vand.u32 3, %v4446_v59  ;;  %v3395_v48 = vclz %v7725_v45  ;;  %vm3281_vm10 = vc.u32 %v14279_v18, %v14271_v55  ;;  %v4356_v35 = vsel %vm4346_vm6, nan, %v4355_v52 }
 0x552   : > { %17131 = vst [vmem:[#allocation59_spill] sm:$0xff] %v14296_v31  ;;  %v472_v25 = vmul.f32 %v16538_v0, %v383_v24  ;;  %v3283_v38 = vsel %vm3281_vm10, %v3282_v16, %v14272_v3  ;;  %vm4449_vm14 = vweird.f32 %v17126_v58  ;;  %v16433_v17 = vand.u32 2147483647, %v14296_v31 }
 0x553   : > { %vm4451_vm11 = vcmp.lt.s32.totalorder %v4450_v22, 2  ;;  %vm4452_vm0 = vcmp.eq.s32.totalorder %v4450_v22, 0  ;;  %vm4455_vm9 = vcmp.eq.s32.totalorder %v4450_v22, 2  ;;  %v7726_v51 = vadd.s32 4294967294, %v3395_v48 }
 0x554   : > { %v3284_v57 = vadd.s32 %v3283_v38, %v3279_v50  ;;  %v4454_v5 = vsel %vm4452_vm0, %v17130_v54, %v4453_v53  ;;  %v4457_v19 = vsel %vm4455_vm9, %v4456_v28, %v17129_v20  ;;  %v6626_v2 = vand.u32 2139095040, %v14296_v31 }
 0x555   : > { %v4458_v42 = vsel %vm4451_vm11, %v4454_v5, %v4457_v19  ;;  %v6393_v46 = vor.u32 4788187, %v6392_v32  ;;  %vm7727_vm6 = vcmp.lt.s32.totalorder %v7726_v51, 0  ;;  %v1250_v24 = vsub.s32 4, %v17132_v47 }
 0x556   : > { %v3285_v44 = vadd.s32 536870912, %v3284_v57  ;;  %v4459_v3 = vsel %vm4449_vm14, nan, %v4458_v42  ;;  %v3398_v63 = vsel %vm7727_vm6, 0, %v7726_v51  ;;  %v6627_v33 = vshrl.u32 %v6626_v2, 23 }
 0x557   : > { %v7156_v52 = vpack.c.bf16 %v4459_v3, %v4356_v35  ;;  %v3399_v45 = vsub.s32 32, %v3398_v63  ;;  %v3403_v34 = vsub.s32 4294967266, %v3398_v63  ;;  %v14314_v58 = vadd.f32 %v16537_v1, %v472_v25 }
 0x558   : > { %v14311_v59 = vshrl.u32 %v3285_v44, 30  ;;  %8494 = vsinq.f32 %v14183_v30  ;;  %v17135_v20 = vand.u32 2147483647, %v13921_v37  ;;  %v17136_v32 = vmov 0 }
 0x559   : > { %17134 = vst [vmem:[#allocation14_spill] sm:$0xff] %v14314_v58  ;;  %7972 = vmatprep.mubr.bf16.mxu1 %v7156_v52  ;;  %v7852_v53 = vadd.s32 4294967169, %v6627_v33  ;;  %v6630_v54 = vand.u32 8388607, %v16433_v17  ;;  %8496 = vcosq.f32 %v14215_v62  ;;  %v3383_v28 = vadd.s32 %v14205_v40, %v14218_v29  ;;  %v17140_v40 = vld [vmem:[#allocation51_spill] sm:$0xff] }
 0x55a   : > { %17133 = vst [vmem:[#allocation38_spill] sm:$0xff] %v14311_v59  ;;  %vm14319_vm10 = vcmp.le.f32.partialorder %v17135_v20, 0.7853982  ;;  %v3404_v50 = vadd.s32 127, %v3403_v34  ;;  %v3287_v16 = vshll.u32 %v14311_v59, 30  ;;  %v17139_v30 = vxor.u32 2147483648, %v14202_v36 }
 0x55b   : > { %v17137_v32 = vsel %vm14319_vm10, 4294967295, %v17136_v32  ;;  %v6394_v48 = vand.u32 2147483647, %v6393_v46  ;;  %v6396_v35 = vcvt.s32.f32 %v14267_v56  ;;  %v6633_v25 = vadd.s32 1, %v7852_v53 }
 0x55c   : > { %17138 = vst [vmem:[#allocation56_spill] sm:$0xff] %v17137_v32  ;;  %v6502_v22 = vsel %vm16440_vm2, %v17139_v30, %v14202_v36  ;;  %v3401_v38 = vshrl.u32 %v3383_v28, %v3399_v45  ;;  %v14335_v51 = vsub.s32 %v3284_v57, %v3287_v16  ;;  %v16432_v5 = vand.u32 2147483647, %v14314_v58 }
 0x55d   : > { %vm17141_vm11 = vcmp.lt.s32.totalorder %v17140_v40, 0  ;;  %v3405_v19 = vshll.u32 %v3404_v50, 23  ;;  %v6631_v42 = vor.u32 8388608, %v6630_v54  ;;  %vm6634_vm0 = vcmp.gt.s32.totalorder %v6633_v25, 0 }
 0x55e   : > { %v14341_v29 = vsel %vm17141_vm11, %v1250_v24, %v17132_v47  ;;  %v6523_v2 = vand.u32 2139095040, %v14314_v58  ;;  %8498 = vsinq.f32 %v14215_v62  ;;  %v3400_v56 = vshll.u32 %v14261_v14, %v3398_v63  ;;  %v17142_v14 = vld [vmem:[#allocation93_spill] sm:$0xff] }
 0x55f   : > { %v3290_v36 = vsub.s32 0, %v14335_v51  ;;  %v6635_v57 = vsel %vm6634_vm0, %v6633_v25, 0  ;;  %v14350_v46 = vsel %vm14319_vm10, %v13921_v37, %v6502_v22  ;;  %v14352_v44 = vmul.f32 %v6396_v35, %v6394_v48 }
 0x560   : > { %v3280_v3 = vadd.s32 %v14271_v55, %v14279_v18  ;;  %v6637_v52 = vand.u32 31, %v6635_v57  ;;  %v3402_v33 = vor.u32 %v3401_v38, %v3400_v56  ;;  %v14359_v62 = vand.u32 8388607, %v16432_v5 }
 0x561   : > { %v7721_v47 = vmin.u32 %v3290_v36, %v14335_v51  ;;  %vm17143_vm9 = vnez %v17142_v14  ;;  %v3406_v24 = vor.u32 4788187, %v3405_v19  ;;  %v14364_v34 = vshll.u32 %v6631_v42, 8 }
 0x562   : > { %v1253_v63 = vsel %vm17143_vm9, 0, %v14341_v29  ;;  %v6638_v45 = vsub.s32 32, %v6637_v52  ;;  %v6524_v20 = vshrl.u32 %v6523_v2, 23  ;;  %v6636_v54 = vshrl.u32 %v6635_v57, 5  ;;  %v14368_v28 = vpop.eup %8494 }
 0x563   : > { %v3292_v53 = vclz %v7721_v47  ;;  %v6640_v55 = vshll.u32 %v16574_v12, %v6637_v52  ;;  %v6643_v18 = vshll.u32 %v16569_v13, %v6637_v52  ;;  %17144 = vst [vmem:[#allocation66_spill] sm:$0xff] %v14368_v28  ;;  %v6646_v30 = vshll.u32 %v16570_v6, %v6637_v52  ;;  %v14374_v48 = vpop.eup %8496 }
 0x564   : > { %v6641_v50 = vshrl.u32 %v16569_v13, %v6638_v45  ;;  %v6644_v16 = vshrl.u32 %v16570_v6, %v6638_v45  ;;  %v6647_v22 = vshrl.u32 %v16571_v15, %v6638_v45  ;;  %v6649_v25 = vshll.u32 %v16571_v15, %v6637_v52 }
 0x565   : > { %v7722_v35 = vadd.s32 4294967294, %v3292_v53  ;;  %v6650_v38 = vshrl.u32 %v16572_v9, %v6638_v45  ;;  %v6653_v29 = vshrl.u32 %v16573_v8, %v6638_v45  ;;  %v6652_v2 = vshll.u32 %v16572_v9, %v6637_v52 }
 0x566   : > { %v6642_v19 = vor.u32 %v6641_v50, %v6640_v55  ;;  %v6645_v42 = vor.u32 %v6644_v16, %v6643_v18  ;;  %v6528_v56 = vor.u32 8388608, %v14359_v62  ;;  %v3409_v36 = vcvt.s32.f32 %v3402_v33 }
 0x567   : > { %vm7723_vm14 = vcmp.lt.s32.totalorder %v7722_v35, 0  ;;  %v6648_v57 = vor.u32 %v6647_v22, %v6646_v30  ;;  %v6651_v47 = vor.u32 %v6650_v38, %v6649_v25  ;;  %v3407_v14 = vand.u32 2147483647, %v3406_v24 }
 0x568   : > { %v3295_v5 = vsel %vm7723_vm14, 0, %v7722_v35  ;;  %v6654_v17 = vor.u32 %v6653_v29, %v6652_v2  ;;  %v7848_v53 = vadd.s32 4294967169, %v6524_v20  ;;  %v14381_v32 = vpop.eup %8498  ;;  %v6639_v28 = vshrl.u32 %v16574_v12, %v6638_v45 }
 0x569   : > { %v3296_v37 = vsub.s32 32, %v3295_v5  ;;  %v3300_v59 = vsub.s32 4294967266, %v3295_v5  ;;  %vm6655_vm6 = vcmp.lt.s32.totalorder %v6636_v54, 1  ;;  %vm6656_vm11 = vcmp.lt.s32.totalorder %v6636_v54, 2 }
 0x56a   : > { %vm6657_vm0 = vcmp.lt.s32.totalorder %v6636_v54, 3  ;;  %vm6658_vm9 = vcmp.lt.s32.totalorder %v6636_v54, 4  ;;  %v6663_v52 = vsel %vm6655_vm6, %v6642_v19, %v6645_v42  ;;  %v3297_v24 = vshll.u32 %v14335_v51, %v3295_v5 }
 0x56b   : > { %v3298_v62 = vshrl.u32 %v3280_v3, %v3296_v37  ;;  %v3301_v33 = vadd.s32 127, %v3300_v59  ;;  %v6660_v55 = vsel %vm6658_vm9, %v6648_v57, 2102212464  ;;  %v6664_v18 = vsel %vm6658_vm9, %v6651_v47, 920167782 }
 0x56c   : > { %v6665_v50 = vsel %vm6657_vm0, %v6648_v57, %v6664_v18  ;;  %v6667_v16 = vsel %vm6655_vm6, %v6645_v42, %v6648_v57  ;;  %v6668_v20 = vsel %vm6658_vm9, %v6654_v17, 1326507024  ;;  %v6659_v22 = vsel %vm6655_vm6, %v6639_v28, %v6642_v19 }
 0x56d   : > { %v3302_v30 = vshll.u32 %v3301_v33, 23  ;;  %v6661_v35 = vsel %vm6657_vm0, %v6645_v42, %v6660_v55  ;;  %v6666_v25 = vsel %vm6656_vm11, %v6663_v52, %v6665_v50  ;;  %v6669_v45 = vsel %vm6657_vm0, %v6651_v47, %v6668_v20 }
 0x56e   : > { %v14387_v38 = vmul.u32.u64.low %v14364_v34, %v6666_v25  ;;  %v14388_v29 = vmul.u32.u64.high %v14364_v34, %v6666_v25, %v14387_v38  ;;  %v1257_v37 = vand.u32 3, %v1253_v63  ;;  %v14391_v59 = vmul.f32 %v3409_v36, %v3407_v14  ;;  %v17145_v63 = vld [vmem:[#allocation97_spill] sm:$0xff] }
 0x56f   : > { %v14393_v3 = vor.u32 %v3298_v62, %v3297_v24  ;;  %v6670_v51 = vsel %vm6656_vm11, %v6667_v16, %v6669_v45  ;;  %v6530_v5 = vadd.s32 1, %v7848_v53  ;;  %v14396_v17 = vor.u32 4788187, %v3302_v30  ;;  %v17146_v53 = vld [vmem:[#allocation96_spill] sm:$0xff]  ;;  %v17147_v16 = vld [vmem:[#allocation61_spill] sm:$0xff] }
 0x570   : > { %v6662_v28 = vsel %vm6656_vm11, %v6659_v22, %v6661_v35  ;;  %v14400_v19 = vmul.u32.u64.low %v14364_v34, %v6670_v51  ;;  %v14401_v42 = vmul.u32.u64.high %v14364_v34, %v6670_v51, %v14400_v19  ;;  %v14404_v57 = vshll.u32 %v6528_v56, 8 }
 0x571   : > { %vm6531_vm14 = vcmp.gt.s32.totalorder %v6530_v5, 0  ;;  %v1260_v36 = vxor.u32 2147483648, %v17145_v63  ;;  %v6681_v47 = vadd.s32 1, %v14388_v29  ;;  %vm1258_vm6 = vcmp.lt.s32.totalorder %v1257_v37, 2 }
 0x572   : > { %v6532_v14 = vsel %vm6531_vm14, %v6530_v5, 0  ;;  %v1263_v52 = vxor.u32 2147483648, %v17146_v53  ;;  %v6678_v62 = vmul.u32 %v14364_v34, %v6662_v28  ;;  %vm1259_vm11 = vcmp.eq.s32.totalorder %v1257_v37, 0 }
 0x573   : > { %v6534_v33 = vand.u32 31, %v6532_v14  ;;  %vm6680_vm0 = vc.u32 %v14401_v42, %v14387_v38  ;;  %vm1262_vm9 = vcmp.eq.s32.totalorder %v1257_v37, 2  ;;  %v1261_v50 = vsel %vm1259_vm11, %v17146_v53, %v1260_v36 }
 0x574   : > { %v6682_v56 = vsel %vm6680_vm0, %v6681_v47, %v14388_v29  ;;  %v1353_v20 = vsub.s32 4, %v17147_v16  ;;  %v6533_v22 = vshrl.u32 %v6532_v14, 5  ;;  %vm1256_vm14 = vweird.f32 %v17140_v40 }
 0x575   : > { %v6535_v24 = vsub.s32 32, %v6534_v33  ;;  %v6683_v30 = vadd.s32 %v6682_v56, %v6678_v62  ;;  %v6537_v34 = vshll.u32 %v16574_v12, %v6534_v33  ;;  %v1264_v35 = vsel %vm1262_vm9, %v1263_v52, %v17145_v63  ;;  %v17148_v63 = vld [vmem:[#allocation47_spill] sm:$0xff] }
 0x576   : > { %v6540_v45 = vshll.u32 %v16569_v13, %v6534_v33  ;;  %v6543_v29 = vshll.u32 %v16570_v6, %v6534_v33  ;;  %v6546_v19 = vshll.u32 %v16571_v15, %v6534_v33  ;;  %v1265_v53 = vsel %vm1258_vm6, %v1261_v50, %v1264_v35 }
 0x577   : > { %v6538_v25 = vshrl.u32 %v16569_v13, %v6535_v24  ;;  %v6541_v51 = vshrl.u32 %v16570_v6, %v6535_v24  ;;  %v6684_v5 = vadd.s32 536870912, %v6683_v30  ;;  %v6544_v28 = vshrl.u32 %v16571_v15, %v6535_v24 }
 0x578   : > { %v6547_v36 = vshrl.u32 %v16572_v9, %v6535_v24  ;;  %vm17149_vm11 = vcmp.lt.s32.totalorder %v17148_v63, 0  ;;  %v6536_v56 = vshrl.u32 %v16574_v12, %v6535_v24  ;;  %v6549_v18 = vshll.u32 %v16572_v9, %v6534_v33 }
 0x579   : > { %v6539_v47 = vor.u32 %v6538_v25, %v6537_v34  ;;  %v6542_v14 = vor.u32 %v6541_v51, %v6540_v45  ;;  %v1354_v52 = vsel %vm17149_vm11, %v1353_v20, %v17147_v16  ;;  %v14432_v62 = vshrl.u32 %v6684_v5, 30 }
 0x57a   : > { %v6545_v54 = vor.u32 %v6544_v28, %v6543_v29  ;;  %v6548_v2 = vor.u32 %v6547_v36, %v6546_v19  ;;  %v6550_v55 = vshrl.u32 %v16573_v8, %v6535_v24  ;;  %vm6552_vm0 = vcmp.lt.s32.totalorder %v6533_v22, 1  ;;  %v17151_v28 = vld [vmem:[#allocation81_spill] sm:$0xff]  ;;  %v238_v36 = vpop.permute.xlu1 %237 }
 0x57b   : > { %17150 = vst [vmem:[#allocation45_spill] sm:$0xff] %v14432_v62  ;;  %vm6553_vm9 = vcmp.lt.s32.totalorder %v6533_v22, 2  ;;  %v6686_v34 = vshll.u32 %v14432_v62, 30  ;;  %vm6554_vm2 = vcmp.lt.s32.totalorder %v6533_v22, 3  ;;  %vm6555_vm6 = vcmp.lt.s32.totalorder %v6533_v22, 4 }
 0x57c   : > { %v6560_v37 = vsel %vm6552_vm0, %v6539_v47, %v6542_v14  ;;  %v6551_v50 = vor.u32 %v6550_v55, %v6549_v18  ;;  %v6556_v35 = vsel %vm6552_vm0, %v6536_v56, %v6539_v47  ;;  %v6557_v16 = vsel %vm6555_vm6, %v6545_v54, 2102212464 }
 0x57d   : > { %v6561_v20 = vsel %vm6555_vm6, %v6548_v2, 920167782  ;;  %v14438_v25 = vsub.s32 %v6683_v30, %v6686_v34  ;;  %v6558_v45 = vsel %vm6554_vm2, %v6542_v14, %v6557_v16  ;;  %v6564_v33 = vsel %vm6552_vm0, %v6542_v14, %v6545_v54  ;;  %v233_v16 = vpop.permute.xlu0 %232 }
 0x57e   : > { %v6562_v51 = vsel %vm6554_vm2, %v6545_v54, %v6561_v20  ;;  %v6565_v29 = vsel %vm6555_vm6, %v6551_v50, 1326507024  ;;  %v1266_v5 = vsel %vm1256_vm14, nan, %v1265_v53  ;;  %vm17152_vm11 = vnez %v17151_v28  ;;  %v17153_v53 = vld [vmem:[#allocation90_spill] sm:$0xff] }
 0x57f   : > { %v6563_v24 = vsel %vm6553_vm9, %v6560_v37, %v6562_v51  ;;  %v1356_v19 = vsel %vm17152_vm11, 0, %v1354_v52  ;;  %vm16460_vm10 = vcmp.lt.s32.totalorder %v13945_v60, 0  ;;  %vm16443_vm4 = vcmp.lt.s32.totalorder %v14100_v21, 0 }
 0x580   : > { %v6689_v55 = vsub.s32 0, %v14438_v25  ;;  %v6566_v18 = vsel %vm6554_vm2, %v6548_v2, %v6565_v29  ;;  %v14452_v30 = vmul.u32.u64.low %v14404_v57, %v6563_v24  ;;  %v14453_v54 = vmul.u32.u64.high %v14404_v57, %v6563_v24, %v14452_v30  ;;  %v17154_v2 = vld [vmem:[#allocation89_spill] sm:$0xff] }
 0x581   : > { %v6559_v40 = vsel %vm6553_vm9, %v6556_v35, %v6558_v45  ;;  %v6567_v47 = vsel %vm6553_vm9, %v6564_v33, %v6566_v18  ;;  %v1360_v14 = vand.u32 3, %v1356_v19  ;;  %v1363_v52 = vxor.u32 2147483648, %v17153_v53 }
 0x582   : > { %v7853_v56 = vmin.u32 %v6689_v55, %v14438_v25  ;;  %v14461_v34 = vmul.u32.u64.low %v14404_v57, %v6567_v47  ;;  %v14462_v37 = vmul.u32.u64.high %v14404_v57, %v6567_v47, %v14461_v34  ;;  %v1366_v50 = vxor.u32 2147483648, %v17154_v2 }
 0x583   : > { %vm1361_vm2 = vcmp.lt.s32.totalorder %v1360_v14, 2  ;;  %vm1362_vm14 = vcmp.eq.s32.totalorder %v1360_v14, 0  ;;  %vm1365_vm0 = vcmp.eq.s32.totalorder %v1360_v14, 2  ;;  %v443_v20 = vmul.f32 %v16538_v0, %v238_v36 }
 0x584   : > { %v6691_v35 = vclz %v7853_v56  ;;  %v6578_v22 = vadd.s32 1, %v14453_v54  ;;  %v1364_v45 = vsel %vm1362_vm14, %v17154_v2, %v1363_v52  ;;  %v1367_v51 = vsel %vm1365_vm0, %v1366_v50, %v17153_v53 }
 0x585   : > { %v17155_v33 = vand.u32 2147483647, %v13945_v60  ;;  %v17156_v24 = vmov 0  ;;  %v17159_v29 = vand.u32 2147483647, %v14100_v21  ;;  %v17160_v28 = vmov 0 }
 0x586   : > { %vm1359_vm11 = vweird.f32 %v17148_v63  ;;  %v1368_v19 = vsel %vm1361_vm2, %v1364_v45, %v1367_v51  ;;  %v14483_v55 = vadd.f32 %v16537_v1, %v443_v20  ;;  %v442_v18 = vmul.f32 %v16538_v0, %v233_v16 }
 0x587   : > { %vm14471_vm9 = vcmp.le.f32.partialorder %v17155_v33, 0.7853982  ;;  %vm14477_vm6 = vcmp.le.f32.partialorder %v17159_v29, 0.7853982  ;;  %vm16459_vm14 = vcmp.lt.s32.totalorder %v14134_v4, 0  ;;  %v7854_v36 = vadd.s32 4294967294, %v6691_v35 }
 0x588   : > { %v17157_v24 = vsel %vm14471_vm9, 4294967295, %v17156_v24  ;;  %v17161_v28 = vsel %vm14477_vm6, 4294967295, %v17160_v28  ;;  %17163 = vst [vmem:[#allocation53_spill] sm:$0xff] %v14483_v55  ;;  %v6575_v47 = vmul.u32 %v14404_v57, %v6559_v40  ;;  %vm6577_vm0 = vc.u32 %v14462_v37, %v14452_v30 }
 0x589   : > { %17158 = vst [vmem:[#allocation34_spill] sm:$0xff] %v17157_v24  ;;  %17162 = vst [vmem:[#allocation11_spill] sm:$0xff] %v17161_v28  ;;  %v1369_v14 = vsel %vm1359_vm11, nan, %v1368_v19  ;;  %v17164_v53 = vand.u32 2147483647, %v14396_v17  ;;  %v17165_v52 = vcvt.s32.f32 %v14393_v3  ;;  %v6579_v56 = vsel %vm6577_vm0, %v6578_v22, %v14453_v54 }
 0x58a   : > { %v7141_v34 = vpack.c.bf16 %v1369_v14, %v1266_v5  ;;  %v16445_v2 = vand.u32 2147483647, %v14483_v55  ;;  %vm7855_vm2 = vcmp.lt.s32.totalorder %v7854_v36, 0  ;;  %v6580_v50 = vadd.s32 %v6579_v56, %v6575_v47 }
 0x58b   : > { %v3307_v63 = vmul.f32 %v17165_v52, %v17164_v53  ;;  %v3536_v16 = vand.u32 2139095040, %v14483_v55  ;;  %v14498_v57 = vadd.f32 %v16537_v1, %v442_v18  ;;  %8500 = vcosq.f32 %v14350_v46 }
 0x58c   : > { %v17167_v17 = vxor.u32 2147483648, %v14352_v44  ;;  %v17168_v5 = vxor.u32 2147483648, %v14391_v59  ;;  %v6694_v40 = vsel %vm7855_vm2, 0, %v7854_v36  ;;  %7941 = vmatmul.mubr.bf16.gmra.mrb[4].mxu0 %v7141_v34  ;;  %v6679_v20 = vadd.s32 %v14387_v38, %v14401_v42 }
 0x58d   : > { %17166 = vst [vmem:[#allocation65_spill] sm:$0xff] %v14498_v57  ;;  %v6695_v35 = vsub.s32 32, %v6694_v40  ;;  %v6699_v22 = vsub.s32 4294967266, %v6694_v40  ;;  %v6581_v45 = vadd.s32 536870912, %v6580_v50  ;;  %v3308_v51 = vxor.u32 2147483648, %v3307_v63 }
 0x58e   : > { %v6399_v3 = vsel %vm16460_vm10, %v17167_v17, %v14352_v44  ;;  %v3412_v54 = vsel %vm16443_vm4, %v17168_v5, %v14391_v59  ;;  %v3537_v33 = vshrl.u32 %v3536_v16, 23  ;;  %v3540_v29 = vand.u32 8388607, %v16445_v2  ;;  %v17169_v44 = vld [vmem:[#allocation77_spill] sm:$0xff] }
 0x58f   : > { %v4546_v19 = vsub.s32 4, %v17169_v44  ;;  %v6700_v18 = vadd.s32 127, %v6699_v22  ;;  %v14516_v47 = vshrl.u32 %v6581_v45, 30  ;;  %v16444_v59 = vand.u32 2147483647, %v14498_v57 }
 0x590   : > { %v3433_v36 = vand.u32 2139095040, %v14498_v57  ;;  %8502 = vsinq.f32 %v14350_v46  ;;  %v17171_v38 = vand.u32 2147483647, %v14134_v4  ;;  %v17172_v42 = vmov 0 }
 0x591   : > { %17170 = vst [vmem:[#allocation64_spill] sm:$0xff] %v14516_v47  ;;  %v6697_v14 = vshrl.u32 %v6679_v20, %v6695_v35  ;;  %v7732_v53 = vadd.s32 4294967169, %v3537_v33  ;;  %v6402_v52 = vsel %vm14471_vm9, %v13945_v60, %v6399_v3  ;;  %v14533_v56 = vsel %vm14477_vm6, %v14100_v21, %v3412_v54  ;;  %v17175_v20 = vld [vmem:[#allocation68_spill] sm:$0xff] }
 0x592   : > { %vm14523_vm11 = vcmp.le.f32.partialorder %v17171_v38, 0.7853982  ;;  %v6583_v34 = vshll.u32 %v14516_v47, 30  ;;  %v3434_v46 = vshrl.u32 %v3433_v36, 23  ;;  %v3309_v16 = vsel %vm16459_vm14, %v3308_v51, %v3307_v63  ;;  %v17177_v51 = vld [vmem:[#allocation100_spill] sm:$0xff] }
 0x593   : > { %v17173_v42 = vsel %vm14523_vm11, 4294967295, %v17172_v42  ;;  %v6696_v17 = vshll.u32 %v14438_v25, %v6694_v40  ;;  %v3543_v5 = vadd.s32 1, %v7732_v53  ;;  %vm17176_vm0 = vcmp.lt.s32.totalorder %v17175_v20, 0  ;;  %v17181_v53 = vld [vmem:[#allocation107_spill] sm:$0xff] }
 0x594   : > { %17174 = vst [vmem:[#allocation43_spill] sm:$0xff] %v17173_v42  ;;  %v4547_v35 = vsel %vm17176_vm0, %v4546_v19, %v17169_v44  ;;  %v6701_v22 = vshll.u32 %v6700_v18, 23  ;;  %v14542_v3 = vsub.s32 %v6580_v50, %v6583_v34  ;;  %v3541_v45 = vor.u32 8388608, %v3540_v29 }
 0x595   : > { %v14546_v54 = vand.u32 8388607, %v16444_v59  ;;  %8504 = vcosq.f32 %v6402_v52  ;;  %v14548_v33 = vor.u32 %v6697_v14, %v6696_v17  ;;  %vm3544_vm2 = vcmp.gt.s32.totalorder %v3543_v5, 0  ;;  %v14553_v19 = vpop.eup %8500 }
 0x596   : > { %v7728_v63 = vadd.s32 4294967169, %v3434_v46  ;;  %8506 = vsinq.f32 %v6402_v52  ;;  %v6586_v25 = vsub.s32 0, %v14542_v3  ;;  %v3545_v40 = vsel %vm3544_vm2, %v3543_v5, 0  ;;  %17179 = vst [vmem:[#allocation31_spill] sm:$0xff] %v14553_v19 }
 0x597   : > { %vm17178_vm4 = vnez %v17177_v51  ;;  %8508 = vcosq.f32 %v14533_v56  ;;  %v14559_v50 = vsel %vm14523_vm11, %v14134_v4, %v3309_v16  ;;  %v6576_v29 = vadd.s32 %v14452_v30, %v14462_v37 }
 0x598   : > { %v4549_v44 = vsel %vm17178_vm4, 0, %v4547_v35  ;;  %v3547_v18 = vand.u32 31, %v3545_v40  ;;  %v6702_v36 = vor.u32 4788187, %v6701_v22  ;;  %v7849_v38 = vmin.u32 %v6586_v25, %v14542_v3 }
 0x599   : > { %v14564_v14 = vshll.u32 %v3541_v45, 8  ;;  %v6705_v52 = vcvt.s32.f32 %v14548_v33  ;;  %v3440_v46 = vadd.s32 1, %v7728_v63  ;;  %v14568_v17 = vand.u32 3, %v4549_v44 }
 0x59a   : > { %v3548_v34 = vsub.s32 32, %v3547_v18  ;;  %v6588_v5 = vclz %v7849_v38  ;;  %v3546_v16 = vshrl.u32 %v3545_v40, 5  ;;  %v3550_v35 = vshll.u32 %v16574_v12, %v3547_v18  ;;  %v14572_v37 = vpop.eup %8502 }
 0x59b   : > { %v3553_v30 = vshll.u32 %v16569_v13, %v3547_v18  ;;  %17180 = vst [vmem:[#allocation67_spill] sm:$0xff] %v14572_v37  ;;  %v3556_v25 = vshll.u32 %v16570_v6, %v3547_v18  ;;  %v3559_v63 = vshll.u32 %v16571_v15, %v3547_v18  ;;  %v3562_v2 = vshll.u32 %v16572_v9, %v3547_v18 }
 0x59c   : > { %v3551_v22 = vshrl.u32 %v16569_v13, %v3548_v34  ;;  %v3554_v45 = vshrl.u32 %v16570_v6, %v3548_v34  ;;  %v3557_v33 = vshrl.u32 %v16571_v15, %v3548_v34  ;;  %v7850_v51 = vadd.s32 4294967294, %v6588_v5 }
 0x59d   : > { %v3560_v44 = vshrl.u32 %v16572_v9, %v3548_v34  ;;  %v3563_v40 = vshrl.u32 %v16573_v8, %v3548_v34  ;;  %v4556_v62 = vxor.u32 2147483648, %v17181_v53  ;;  %v6703_v47 = vand.u32 2147483647, %v6702_v36 }
 0x59e   : > { %v3552_v38 = vor.u32 %v3551_v22, %v3550_v35  ;;  %v3555_v59 = vor.u32 %v3554_v45, %v3553_v30  ;;  %vm7851_vm4 = vcmp.lt.s32.totalorder %v7850_v51, 0  ;;  %v3558_v28 = vor.u32 %v3557_v33, %v3556_v25 }
 0x59f   : > { %v3561_v21 = vor.u32 %v3560_v44, %v3559_v63  ;;  %v14583_v42 = vpop.eup %8504  ;;  %v6591_v19 = vsel %vm7851_vm4, 0, %v7850_v51  ;;  %v3549_v5 = vshrl.u32 %v16574_v12, %v3548_v34  ;;  %v3564_v4 = vor.u32 %v3563_v40, %v3562_v2 }
 0x5a0   : > { %17182 = vst [vmem:[#allocation39_spill] sm:$0xff] %v14583_v42  ;;  %vm3441_vm0 = vcmp.gt.s32.totalorder %v3440_v46, 0  ;;  %v14586_v37 = vpop.eup %8506  ;;  %v6592_v24 = vsub.s32 32, %v6591_v19  ;;  %v6596_v35 = vsub.s32 4294967266, %v6591_v19  ;;  %vm3565_vm2 = vcmp.lt.s32.totalorder %v3546_v16, 1 }
 0x5a1   : > { %17183 = vst [vmem:[#allocation80_spill] sm:$0xff] %v14586_v37  ;;  %vm3566_vm14 = vcmp.lt.s32.totalorder %v3546_v16, 2  ;;  %v14588_v18 = vpop.eup %8508  ;;  %vm3567_vm10 = vcmp.lt.s32.totalorder %v3546_v16, 3  ;;  %vm3568_vm6 = vcmp.lt.s32.totalorder %v3546_v16, 4  ;;  %v3569_v36 = vsel %vm3565_vm2, %v3549_v5, %v3552_v38 }
 0x5a2   : > { %17184 = vst [vmem:[#allocation72_spill] sm:$0xff] %v14588_v18  ;;  %v3573_v30 = vsel %vm3565_vm2, %v3552_v38, %v3555_v59  ;;  %v6594_v22 = vshrl.u32 %v6576_v29, %v6592_v24  ;;  %v6597_v45 = vadd.s32 127, %v6596_v35  ;;  %v3570_v25 = vsel %vm3568_vm6, %v3558_v28, 2102212464 }
 0x5a3   : > { %v3574_v33 = vsel %vm3568_vm6, %v3561_v21, 920167782  ;;  %v3571_v34 = vsel %vm3567_vm10, %v3555_v59, %v3570_v25  ;;  %v3577_v51 = vsel %vm3565_vm2, %v3555_v59, %v3558_v28  ;;  %v3578_v63 = vsel %vm3568_vm6, %v3564_v4, 1326507024 }
 0x5a4   : > { %v3575_v2 = vsel %vm3567_vm10, %v3558_v28, %v3574_v33  ;;  %v14592_v44 = vmul.f32 %v6705_v52, %v6703_v47  ;;  %v6593_v40 = vshll.u32 %v14542_v3, %v6591_v19  ;;  %v3442_v42 = vsel %vm3441_vm0, %v3440_v46, 0  ;;  %v17186_v46 = vld [vmem:[#allocation106_spill] sm:$0xff] }
 0x5a5   : > { %v3576_v18 = vsel %vm3566_vm14, %v3573_v30, %v3575_v2  ;;  %v6598_v5 = vshll.u32 %v6597_v45, 23  ;;  %v3579_v24 = vsel %vm3567_vm10, %v3561_v21, %v3578_v63  ;;  %8510 = vsinq.f32 %v14533_v56  ;;  %v398_v21 = vpop.permute.xlu1 %397 }
 0x5a6   : > { %v14599_v29 = vmul.u32.u64.low %v14564_v14, %v3576_v18  ;;  %v14600_v38 = vmul.u32.u64.high %v14564_v14, %v3576_v18, %v14599_v29  ;;  %v14604_v28 = vor.u32 %v6594_v22, %v6593_v40  ;;  %v3572_v4 = vsel %vm3566_vm14, %v3569_v36, %v3571_v34 }
 0x5a7   : > { %v3580_v47 = vsel %vm3566_vm14, %v3577_v51, %v3579_v24  ;;  %v3444_v19 = vand.u32 31, %v3442_v42  ;;  %vm4555_vm10 = vcmp.eq.s32.totalorder %v14568_v17, 0  ;;  %8512 = vcosq.f32 %v14559_v50 }
 0x5a8   : > { %v14609_v59 = vmul.u32.u64.low %v14564_v14, %v3580_v47  ;;  %v14610_v3 = vmul.u32.u64.high %v14564_v14, %v3580_v47, %v14609_v59  ;;  %v17185_v52 = vor.u32 8388608, %v14546_v54  ;;  %v14620_v35 = vsel %vm4555_vm10, %v17186_v46, %v4556_v62 }
 0x5a9   : > { %v6599_v16 = vor.u32 4788187, %v6598_v5  ;;  %v3588_v18 = vmul.u32 %v14564_v14, %v3572_v4  ;;  %v3591_v36 = vadd.s32 1, %v14600_v38  ;;  %v3445_v30 = vsub.s32 32, %v3444_v19 }
 0x5aa   : > { %v14617_v56 = vshll.u32 %v17185_v52, 8  ;;  %v6602_v22 = vcvt.s32.f32 %v14604_v28  ;;  %v3443_v45 = vshrl.u32 %v3442_v42, 5  ;;  %v3447_v25 = vshll.u32 %v16574_v12, %v3444_v19 }
 0x5ab   : > { %v3450_v33 = vshll.u32 %v16569_v13, %v3444_v19  ;;  %vm3590_vm6 = vc.u32 %v14610_v3, %v14599_v29  ;;  %v3448_v54 = vshrl.u32 %v16569_v13, %v3445_v30  ;;  %v3453_v62 = vshll.u32 %v16570_v6, %v3444_v19 }
 0x5ac   : > { %v3456_v34 = vshll.u32 %v16571_v15, %v3444_v19  ;;  %v3592_v14 = vsel %vm3590_vm6, %v3591_v36, %v14600_v38  ;;  %v3451_v2 = vshrl.u32 %v16570_v6, %v3445_v30  ;;  %v3454_v51 = vshrl.u32 %v16571_v15, %v3445_v30 }
 0x5ad   : > { %v3459_v42 = vshll.u32 %v16572_v9, %v3444_v19  ;;  %vm16464_vm14 = vcmp.lt.s32.totalorder %v14296_v31, 0  ;;  %v3593_v63 = vadd.s32 %v3592_v14, %v3588_v18  ;;  %v3449_v40 = vor.u32 %v3448_v54, %v3447_v25 }
 0x5ae   : > { %v3457_v5 = vshrl.u32 %v16572_v9, %v3445_v30  ;;  %v3460_v24 = vshrl.u32 %v16573_v8, %v3445_v30  ;;  %v3446_v28 = vshrl.u32 %v16574_v12, %v3445_v30  ;;  %v3452_v4 = vor.u32 %v3451_v2, %v3450_v33 }
 0x5af   : > { %v3455_v38 = vor.u32 %v3454_v51, %v3453_v62  ;;  %vm3462_vm0 = vcmp.lt.s32.totalorder %v3443_v45, 1  ;;  %v3594_v47 = vadd.s32 536870912, %v3593_v63  ;;  %vm3465_vm10 = vcmp.lt.s32.totalorder %v3443_v45, 4  ;;  %v14642_v52 = vpop.eup %8510 }
 0x5b0   : > { %v3458_v59 = vor.u32 %v3457_v5, %v3456_v34  ;;  %v3461_v19 = vor.u32 %v3460_v24, %v3459_v42  ;;  %17187 = vst [vmem:[#allocation22_spill] sm:$0xff] %v14642_v52  ;;  %vm3464_vm6 = vcmp.lt.s32.totalorder %v3443_v45, 3  ;;  %v3466_v18 = vsel %vm3462_vm0, %v3446_v28, %v3449_v40 }
 0x5b1   : > { %v3467_v36 = vsel %vm3465_vm10, %v3455_v38, 2102212464  ;;  %v3470_v25 = vsel %vm3462_vm0, %v3449_v40, %v3452_v4  ;;  %v6600_v54 = vand.u32 2147483647, %v6599_v16  ;;  %v14646_v14 = vshrl.u32 %v3594_v47, 30  ;;  %v14650_v62 = vpop.eup %8512 }
 0x5b2   : > { %v3468_v30 = vsel %vm3464_vm6, %v3452_v4, %v3467_v36  ;;  %v3471_v33 = vsel %vm3465_vm10, %v3458_v59, 920167782  ;;  %17189 = vst [vmem:[#allocation71_spill] sm:$0xff] %v14650_v62  ;;  %vm3463_vm4 = vcmp.lt.s32.totalorder %v3443_v45, 2  ;;  %v3474_v2 = vsel %vm3462_vm0, %v3452_v4, %v3455_v38 }
 0x5b3   : > { %17188 = vst [vmem:[#allocation58_spill] sm:$0xff] %v14646_v14  ;;  %v3472_v34 = vsel %vm3464_vm6, %v3455_v38, %v3471_v33  ;;  %v3475_v51 = vsel %vm3465_vm10, %v3461_v19, 1326507024  ;;  %v3596_v42 = vshll.u32 %v14646_v14, 30  ;;  %v3469_v5 = vsel %vm3463_vm4, %v3466_v18, %v3468_v30  ;;  %v17194_v19 = vld [vmem:[#allocation74_spill] sm:$0xff] }
 0x5b4   : > { %v3473_v40 = vsel %vm3463_vm4, %v3470_v25, %v3472_v34  ;;  %v3476_v16 = vsel %vm3464_vm6, %v3458_v59, %v3475_v51  ;;  %v4559_v36 = vxor.u32 2147483648, %v17186_v46  ;;  %v17190_v33 = vand.u32 2147483647, %v14296_v31  ;;  %v393_v25 = vpop.permute.xlu0 %392 }
 0x5b5   : > { %v3477_v24 = vsel %vm3463_vm4, %v3474_v2, %v3476_v16  ;;  %v14657_v28 = vmul.u32.u64.low %v14617_v56, %v3473_v40  ;;  %v14658_v47 = vmul.u32.u64.high %v14617_v56, %v3473_v40, %v14657_v28  ;;  %v17191_v4 = vmov 0  ;;  %v17198_v40 = vld [vmem:[#allocation54_spill] sm:$0xff] }
 0x5b6   : > { %vm14664_vm2 = vcmp.le.f32.partialorder %v17190_v33, 0.7853982  ;;  %v14668_v38 = vsub.s32 %v3593_v63, %v3596_v42  ;;  %v14671_v45 = vmul.u32.u64.low %v14617_v56, %v3477_v24  ;;  %v14672_v59 = vmul.u32.u64.high %v14617_v56, %v3477_v24, %v14671_v45 }
 0x5b7   : > { %v17192_v4 = vsel %vm14664_vm2, 4294967295, %v17191_v4  ;;  %v4649_v18 = vsub.s32 4, %v17194_v19  ;;  %v17195_v30 = vxor.u32 2147483648, %v14592_v44  ;;  %v6603_v34 = vmul.f32 %v6602_v22, %v6600_v54  ;;  %v17200_v22 = vld [vmem:[#allocation94_spill] sm:$0xff] }
 0x5b8   : > { %17193 = vst [vmem:[#allocation69_spill] sm:$0xff] %v17192_v4  ;;  %v3485_v2 = vmul.u32 %v14617_v56, %v3469_v5  ;;  %vm17196_vm4 = vcmp.eq.s32.totalorder %v14568_v17, 2  ;;  %v3599_v51 = vsub.s32 0, %v14668_v38  ;;  %vm17197_vm10 = vcmp.lt.s32.totalorder %v14568_v17, 2 }
 0x5b9   : > { %v6708_v46 = vsel %vm16464_vm14, %v17195_v30, %v14592_v44  ;;  %v4560_v63 = vsel %vm17196_vm4, %v4559_v36, %v17181_v53  ;;  %vm17199_vm6 = vcmp.lt.s32.totalorder %v17198_v40, 0  ;;  %v475_v44 = vmul.f32 %v16538_v0, %v398_v21  ;;  %v17202_v53 = vld [vmem:[#allocation105_spill] sm:$0xff] }
 0x5ba   : > { %v4561_v42 = vsel %vm17197_vm10, %v14620_v35, %v4560_v63  ;;  %v4650_v16 = vsel %vm17199_vm6, %v4649_v18, %v17194_v19  ;;  %v3488_v56 = vadd.s32 1, %v14658_v47  ;;  %vm17201_vm14 = vnez %v17200_v22  ;;  %v17203_v35 = vld [vmem:[#allocation104_spill] sm:$0xff] }
 0x5bb   : > { %v4652_v54 = vsel %vm17201_vm14, 0, %v4650_v16  ;;  %v4659_v5 = vxor.u32 2147483648, %v17202_v53  ;;  %v474_v24 = vmul.f32 %v16538_v0, %v393_v25  ;;  %v7733_v36 = vmin.u32 %v3599_v51, %v14668_v38 }
 0x5bc   : > { %vm3487_vm4 = vc.u32 %v14672_v59, %v14657_v28  ;;  %v4656_v17 = vand.u32 3, %v4652_v54  ;;  %v4662_v33 = vxor.u32 2147483648, %v17203_v35  ;;  %v6604_v45 = vxor.u32 2147483648, %v6603_v34 }
 0x5bd   : > { %v3489_v21 = vsel %vm3487_vm4, %v3488_v56, %v14658_v47  ;;  %vm17204_vm10 = vweird.f32 %v17175_v20  ;;  %v14706_v18 = vadd.f32 %v16537_v1, %v475_v44  ;;  %v3601_v30 = vclz %v7733_v36 }
 0x5be   : > { %v4562_v19 = vsel %vm17204_vm10, nan, %v4561_v42  ;;  %v3490_v63 = vadd.s32 %v3489_v21, %v3485_v2  ;;  %vm4658_vm14 = vcmp.eq.s32.totalorder %v4656_v17, 0  ;;  %v14709_v25 = vadd.f32 %v16537_v1, %v474_v24 }
 0x5bf   : > { %17205 = vst [vmem:[#allocation55_spill] sm:$0xff] %v14706_v18  ;;  %vm4657_vm6 = vcmp.lt.s32.totalorder %v4656_v17, 2  ;;  %v4660_v51 = vsel %vm4658_vm14, %v17203_v35, %v4659_v5  ;;  %vm4661_vm0 = vcmp.eq.s32.totalorder %v4656_v17, 2  ;;  %v16466_v16 = vand.u32 2147483647, %v14706_v18 }
 0x5c0   : > { %v7734_v22 = vadd.s32 4294967294, %v3601_v30  ;;  %v3491_v47 = vadd.s32 536870912, %v3490_v63  ;;  %v4663_v20 = vsel %vm4661_vm0, %v4662_v33, %v17202_v53  ;;  %v6832_v42 = vand.u32 2139095040, %v14706_v18 }
 0x5c1   : > { %v6711_v2 = vsel %vm14664_vm2, %v14296_v31, %v6708_v46  ;;  %v3589_v44 = vadd.s32 %v14599_v29, %v14610_v3  ;;  %vm4655_vm4 = vweird.f32 %v17198_v40  ;;  %v4664_v56 = vsel %vm4657_vm6, %v4660_v51, %v4663_v20 }
 0x5c2   : > { %vm7735_vm10 = vcmp.lt.s32.totalorder %v7734_v22, 0  ;;  %v14721_v54 = vshrl.u32 %v3491_v47, 30  ;;  %v4665_v5 = vsel %vm4655_vm4, nan, %v4664_v56  ;;  %v6833_v24 = vshrl.u32 %v6832_v42, 23 }
 0x5c3   : > { %vm17207_vm14 = vcmp.lt.s32.totalorder %v14314_v58, 0  ;;  %v3604_v36 = vsel %vm7735_vm10, 0, %v7734_v22  ;;  %v7157_v17 = vpack.c.bf16 %v4665_v5, %v4562_v19  ;;  %v6836_v35 = vand.u32 8388607, %v16466_v16  ;;  %v17212_v22 = vld [vmem:[#allocation87_spill] sm:$0xff] }
 0x5c4   : > { %17206 = vst [vmem:[#allocation42_spill] sm:$0xff] %v14721_v54  ;;  %v6605_v53 = vsel %vm17207_vm14, %v6604_v45, %v6603_v34  ;;  %v3605_v46 = vsub.s32 32, %v3604_v36  ;;  %v3609_v33 = vsub.s32 4294967266, %v3604_v36  ;;  %v3493_v29 = vshll.u32 %v14721_v54, 30 }
 0x5c5   : > { %v16465_v3 = vand.u32 2147483647, %v14709_v25  ;;  %8514 = vsinq.f32 %v14559_v50  ;;  %v17208_v40 = vand.u32 2147483647, %v14314_v58  ;;  %v17209_v21 = vmov 0  ;;  %7973 = vmatmul.mubr.bf16.gmra.mrb[4].mxu1 %v7157_v17 }
 0x5c6   : > { %v7860_v34 = vadd.s32 4294967169, %v6833_v24  ;;  %v6729_v45 = vand.u32 2139095040, %v14709_v25  ;;  %v3607_v19 = vshrl.u32 %v3589_v44, %v3605_v46  ;;  %v3610_v30 = vadd.s32 127, %v3609_v33 }
 0x5c7   : > { %vm14732_vm0 = vcmp.le.f32.partialorder %v17208_v40, 0.7853982  ;;  %v14737_v51 = vsub.s32 %v3490_v63, %v3493_v29  ;;  %v1456_v47 = vsub.s32 4, %v17212_v22  ;;  %8516 = vcosq.f32 %v6711_v2  ;;  %v17213_v29 = vld [vmem:[#allocation75_spill] sm:$0xff] }
 0x5c8   : > { %v17210_v21 = vsel %vm14732_vm0, 4294967295, %v17209_v21  ;;  %v14743_v50 = vsel %vm14732_vm0, %v14314_v58, %v6605_v53  ;;  %v3606_v20 = vshll.u32 %v14668_v38, %v3604_v36  ;;  %v6839_v42 = vadd.s32 1, %v7860_v34 }
 0x5c9   : > { %17211 = vst [vmem:[#allocation79_spill] sm:$0xff] %v17210_v21  ;;  %v3611_v56 = vshll.u32 %v3610_v30, 23  ;;  %v3496_v5 = vsub.s32 0, %v14737_v51  ;;  %v6837_v24 = vor.u32 8388608, %v6836_v35  ;;  %v14749_v44 = vand.u32 8388607, %v16465_v3 }
 0x5ca   : > { %8518 = vsinq.f32 %v6711_v2  ;;  %v3608_v63 = vor.u32 %v3607_v19, %v3606_v20  ;;  %vm6840_vm6 = vcmp.gt.s32.totalorder %v6839_v42, 0  ;;  %v6730_v17 = vshrl.u32 %v6729_v45, 23  ;;  %v17215_v20 = vld [vmem:[#allocation108_spill] sm:$0xff] }
 0x5cb   : > { %v3612_v46 = vor.u32 4788187, %v3611_v56  ;;  %v7729_v33 = vmin.u32 %v3496_v5, %v14737_v51  ;;  %v6841_v53 = vsel %vm6840_vm6, %v6839_v42, 0  ;;  %vm17214_vm4 = vcmp.lt.s32.totalorder %v17213_v29, 0 }
 0x5cc   : > { %v1457_v38 = vsel %vm17214_vm4, %v1456_v47, %v17212_v22  ;;  %8520 = vcosq.f32 %v14743_v50  ;;  %v6843_v36 = vand.u32 31, %v6841_v53  ;;  %v3486_v35 = vadd.s32 %v14657_v28, %v14672_v59 }
 0x5cd   : > { %v3498_v40 = vclz %v7729_v33  ;;  %v14758_v34 = vshll.u32 %v6837_v24, 8  ;;  %v3615_v45 = vcvt.s32.f32 %v3608_v63  ;;  %v7856_v30 = vadd.s32 4294967169, %v6730_v17 }
 0x5ce   : > { %v6844_v19 = vsub.s32 32, %v6843_v36  ;;  %vm17216_vm10 = vnez %v17215_v20  ;;  %v3613_v56 = vand.u32 2147483647, %v3612_v46  ;;  %v6842_v22 = vshrl.u32 %v6841_v53, 5 }
 0x5cf   : > { %v1459_v42 = vsel %vm17216_vm10, 0, %v1457_v38  ;;  %v7730_v5 = vadd.s32 4294967294, %v3498_v40  ;;  %v6846_v47 = vshll.u32 %v16574_v12, %v6843_v36  ;;  %v14764_v3 = vpop.eup %8514  ;;  %v6849_v59 = vshll.u32 %v16569_v13, %v6843_v36 }
 0x5d0   : > { %17217 = vst [vmem:[#allocation88_spill] sm:$0xff] %v14764_v3  ;;  %v6847_v28 = vshrl.u32 %v16569_v13, %v6844_v19  ;;  %v6850_v24 = vshrl.u32 %v16570_v6, %v6844_v19  ;;  %v6853_v63 = vshrl.u32 %v16571_v15, %v6844_v19  ;;  %v6852_v17 = vshll.u32 %v16570_v6, %v6843_v36 }
 0x5d1   : > { %vm7731_vm14 = vcmp.lt.s32.totalorder %v7730_v5, 0  ;;  %v6856_v33 = vshrl.u32 %v16572_v9, %v6844_v19  ;;  %v6859_v46 = vshrl.u32 %v16573_v8, %v6844_v19  ;;  %v14773_v53 = vpop.eup %8516  ;;  %v6855_v20 = vshll.u32 %v16571_v15, %v6843_v36 }
 0x5d2   : > { %17218 = vst [vmem:[#allocation86_spill] sm:$0xff] %v14773_v53  ;;  %v3501_v38 = vsel %vm7731_vm14, 0, %v7730_v5  ;;  %v6848_v40 = vor.u32 %v6847_v28, %v6846_v47  ;;  %v6858_v16 = vshll.u32 %v16572_v9, %v6843_v36  ;;  %v6851_v54 = vor.u32 %v6850_v24, %v6849_v59 }
 0x5d3   : > { %v3502_v2 = vsub.s32 32, %v3501_v38  ;;  %v3506_v14 = vsub.s32 4294967266, %v3501_v38  ;;  %v6854_v4 = vor.u32 %v6853_v63, %v6852_v17  ;;  %v6857_v21 = vor.u32 %v6856_v33, %v6855_v20 }
 0x5d4   : > { %v14777_v31 = vpop.eup %8518  ;;  %v6860_v58 = vor.u32 %v6859_v46, %v6858_v16  ;;  %v6736_v52 = vadd.s32 1, %v7856_v30  ;;  %v14779_v62 = vand.u32 3, %v1459_v42  ;;  %v3616_v3 = vmul.f32 %v3615_v45, %v3613_v56 }
 0x5d5   : > { %17219 = vst [vmem:[#allocation50_spill] sm:$0xff] %v14777_v31  ;;  %v3503_v53 = vshll.u32 %v14737_v51, %v3501_v38  ;;  %v3507_v5 = vadd.s32 127, %v3506_v14  ;;  %v6845_v47 = vshrl.u32 %v16574_v12, %v6844_v19  ;;  %v3504_v36 = vshrl.u32 %v3486_v35, %v3502_v2 }
 0x5d6   : > { %v14783_v28 = vpop.eup %8520  ;;  %vm6861_vm6 = vcmp.lt.s32.totalorder %v6842_v22, 1  ;;  %vm6863_vm4 = vcmp.lt.s32.totalorder %v6842_v22, 3  ;;  %vm6864_vm10 = vcmp.lt.s32.totalorder %v6842_v22, 4  ;;  %v3617_v56 = vxor.u32 2147483648, %v3616_v3 }
 0x5d7   : > { %17220 = vst [vmem:[#allocation37_spill] sm:$0xff] %v14783_v28  ;;  %v3508_v59 = vshll.u32 %v3507_v5, 23  ;;  %v6865_v24 = vsel %vm6861_vm6, %v6845_v47, %v6848_v40  ;;  %v6866_v63 = vsel %vm6864_vm10, %v6854_v4, 2102212464  ;;  %v6869_v17 = vsel %vm6861_vm6, %v6848_v40, %v6851_v54  ;;  %v17222_v47 = vld [vmem:[#allocation118_spill] sm:$0xff] }
 0x5d8   : > { %v6867_v16 = vsel %vm6863_vm4, %v6851_v54, %v6866_v63  ;;  %v6870_v30 = vsel %vm6864_vm10, %v6857_v21, 920167782  ;;  %v6873_v42 = vsel %vm6861_vm6, %v6851_v54, %v6854_v4  ;;  %v6874_v45 = vsel %vm6864_vm10, %v6860_v58, 1326507024 }
 0x5d9   : > { %v3509_v51 = vor.u32 4788187, %v3508_v59  ;;  %vm6862_vm14 = vcmp.lt.s32.totalorder %v6842_v22, 2  ;;  %v6871_v14 = vsel %vm6863_vm4, %v6854_v4, %v6870_v30  ;;  %v3505_v19 = vor.u32 %v3504_v36, %v3503_v53  ;;  %v17223_v59 = vld [vmem:[#allocation117_spill] sm:$0xff] }
 0x5da   : > { %v6872_v33 = vsel %vm6862_vm14, %v6869_v17, %v6871_v14  ;;  %v6875_v35 = vsel %vm6863_vm4, %v6857_v21, %v6874_v45  ;;  %vm6737_vm2 = vcmp.gt.s32.totalorder %v6736_v52, 0  ;;  %v6868_v2 = vsel %vm6862_vm14, %v6865_v24, %v6867_v16 }
 0x5db   : > { %v6876_v46 = vsel %vm6862_vm14, %v6873_v42, %v6875_v35  ;;  %v14789_v38 = vmul.u32.u64.low %v14758_v34, %v6872_v33  ;;  %v14790_v40 = vmul.u32.u64.high %v14758_v34, %v6872_v33, %v14789_v38  ;;  %v3510_v20 = vand.u32 2147483647, %v3509_v51 }
 0x5dc   : > { %v14794_v58 = vmul.u32.u64.low %v14758_v34, %v6876_v46  ;;  %v14795_v54 = vmul.u32.u64.high %v14758_v34, %v6876_v46, %v14794_v58  ;;  %v6738_v5 = vsel %vm6737_vm2, %v6736_v52, 0  ;;  %8522 = vsinq.f32 %v14743_v50 }
 0x5dd   : > { %vm16482_vm6 = vcmp.lt.s32.totalorder %v14483_v55, 0  ;;  %v6740_v4 = vand.u32 31, %v6738_v5  ;;  %v3512_v21 = vcvt.s32.f32 %v3505_v19  ;;  %v17221_v22 = vor.u32 8388608, %v14749_v44 }
 0x5de   : > { %v1466_v36 = vxor.u32 2147483648, %v17222_v47  ;;  %v1469_v24 = vxor.u32 2147483648, %v17223_v59  ;;  %v14807_v63 = vsel %vm16482_vm6, %v3617_v56, %v3616_v3  ;;  %v6884_v52 = vmul.u32 %v14758_v34, %v6868_v2 }
 0x5df   : > { %v14801_v53 = vshll.u32 %v17221_v22, 8  ;;  %v6887_v50 = vadd.s32 1, %v14790_v40  ;;  %v6741_v17 = vsub.s32 32, %v6740_v4  ;;  %v14811_v16 = vmul.f32 %v3512_v21, %v3510_v20  ;;  %v17224_v22 = vld [vmem:[#allocation84_spill] sm:$0xff] }
 0x5e0   : > { %vm6886_vm2 = vc.u32 %v14795_v54, %v14789_v38  ;;  %v6739_v44 = vshrl.u32 %v6738_v5, 5  ;;  %vm1465_vm4 = vcmp.eq.s32.totalorder %v14779_v62, 0  ;;  %v6743_v42 = vshll.u32 %v16574_v12, %v6740_v4 }
 0x5e1   : > { %v6888_v30 = vsel %vm6886_vm2, %v6887_v50, %v14790_v40  ;;  %v6744_v3 = vshrl.u32 %v16569_v13, %v6741_v17  ;;  %v6746_v45 = vshll.u32 %v16569_v13, %v6740_v4  ;;  %v6747_v56 = vshrl.u32 %v16570_v6, %v6741_v17 }
 0x5e2   : > { %v6889_v34 = vadd.s32 %v6888_v30, %v6884_v52  ;;  %v6749_v51 = vshll.u32 %v16570_v6, %v6740_v4  ;;  %v6750_v14 = vshrl.u32 %v16571_v15, %v6741_v17  ;;  %v6752_v33 = vshll.u32 %v16571_v15, %v6740_v4 }
 0x5e3   : > { %v6745_v19 = vor.u32 %v6744_v3, %v6743_v42  ;;  %v6753_v35 = vshrl.u32 %v16572_v9, %v6741_v17  ;;  %v1467_v2 = vsel %vm1465_vm4, %v17223_v59, %v1466_v36  ;;  %v6748_v40 = vor.u32 %v6747_v56, %v6746_v45 }
 0x5e4   : > { %v6890_v46 = vadd.s32 536870912, %v6889_v34  ;;  %v6751_v20 = vor.u32 %v6750_v14, %v6749_v51  ;;  %v6755_v5 = vshll.u32 %v16572_v9, %v6740_v4  ;;  %v6756_v21 = vshrl.u32 %v16573_v8, %v6741_v17 }
 0x5e5   : > { %v6754_v58 = vor.u32 %v6753_v35, %v6752_v33  ;;  %v1559_v52 = vsub.s32 4, %v17224_v22  ;;  %v6742_v30 = vshrl.u32 %v16574_v12, %v6741_v17  ;;  %vm6758_vm2 = vcmp.lt.s32.totalorder %v6739_v44, 1 }
 0x5e6   : > { %v14831_v50 = vshrl.u32 %v6890_v46, 30  ;;  %vm6761_vm4 = vcmp.lt.s32.totalorder %v6739_v44, 4  ;;  %v14834_v36 = vpop.eup %8522  ;;  %v6757_v59 = vor.u32 %v6756_v21, %v6755_v5  ;;  %vm6759_vm6 = vcmp.lt.s32.totalorder %v6739_v44, 2  ;;  %v248_v21 = vpop.permute.xlu1 %247 }
 0x5e7   : > { %17226 = vst [vmem:[#allocation83_spill] sm:$0xff] %v14834_v36  ;;  %v6763_v42 = vsel %vm6761_vm4, %v6751_v20, 2102212464  ;;  %v6766_v3 = vsel %vm6758_vm2, %v6745_v19, %v6748_v40  ;;  %vm6760_vm14 = vcmp.lt.s32.totalorder %v6739_v44, 3  ;;  %v6767_v45 = vsel %vm6761_vm4, %v6754_v58, 920167782 }
 0x5e8   : > { %17225 = vst [vmem:[#allocation76_spill] sm:$0xff] %v14831_v50  ;;  %v6892_v4 = vshll.u32 %v14831_v50, 30  ;;  %v6770_v56 = vsel %vm6758_vm2, %v6748_v40, %v6751_v20  ;;  %v6762_v51 = vsel %vm6758_vm2, %v6742_v30, %v6745_v19  ;;  %v6764_v14 = vsel %vm6760_vm14, %v6748_v40, %v6763_v42 }
 0x5e9   : > { %v6768_v33 = vsel %vm6760_vm14, %v6751_v20, %v6767_v45  ;;  %v6771_v35 = vsel %vm6761_vm4, %v6757_v59, 1326507024  ;;  %vm17227_vm0 = vcmp.eq.s32.totalorder %v14779_v62, 2  ;;  %v17228_v28 = vand.u32 2147483647, %v14483_v55  ;;  %v17232_v20 = vld [vmem:[#allocation70_spill] sm:$0xff] }
 0x5ea   : > { %v14838_v17 = vsub.s32 %v6889_v34, %v6892_v4  ;;  %v6769_v46 = vsel %vm6759_vm6, %v6766_v3, %v6768_v33  ;;  %v6772_v31 = vsel %vm6760_vm14, %v6754_v58, %v6771_v35  ;;  %v1470_v5 = vsel %vm17227_vm0, %v1469_v24, %v17222_v47  ;;  %v17235_v45 = vld [vmem:[#allocation102_spill] sm:$0xff] }
 0x5eb   : > { %vm14846_vm10 = vcmp.le.f32.partialorder %v17228_v28, 0.7853982  ;;  %v17229_v50 = vmov 0  ;;  %v6773_v19 = vsel %vm6759_vm6, %v6770_v56, %v6772_v31  ;;  %v3514_v58 = vxor.u32 2147483648, %v14811_v16  ;;  %v243_v28 = vpop.permute.xlu0 %242  ;;  %v17237_v33 = vld [vmem:[#allocation114_spill] sm:$0xff] }
 0x5ec   : > { %v17230_v50 = vsel %vm14846_vm10, 4294967295, %v17229_v50  ;;  %v14852_v40 = vmul.u32.u64.low %v14801_v53, %v6769_v46  ;;  %v14853_v34 = vmul.u32.u64.high %v14801_v53, %v6769_v46, %v14852_v40  ;;  %v6895_v47 = vsub.s32 0, %v14838_v17  ;;  %v17238_v46 = vld [vmem:[#allocation111_spill] sm:$0xff] }
 0x5ed   : > { %17231 = vst [vmem:[#allocation82_spill] sm:$0xff] %v17230_v50  ;;  %v14860_v24 = vmul.u32.u64.low %v14801_v53, %v6773_v19  ;;  %v14861_v30 = vmul.u32.u64.high %v14801_v53, %v6773_v19, %v14860_v24  ;;  %v6765_v31 = vsel %vm6759_vm6, %v6762_v51, %v6764_v14  ;;  %vm17233_vm2 = vcmp.lt.s32.totalorder %v14779_v62, 2 }
 0x5ee   : > { %v1471_v59 = vsel %vm17233_vm2, %v1467_v2, %v1470_v5  ;;  %vm17234_vm4 = vcmp.lt.s32.totalorder %v17232_v20, 0  ;;  %v445_v3 = vmul.f32 %v16538_v0, %v248_v21  ;;  %v7861_v4 = vmin.u32 %v6895_v47, %v14838_v17 }
 0x5ef   : > { %v1560_v42 = vsel %vm17234_vm4, %v1559_v52, %v17224_v22  ;;  %vm17236_vm14 = vnez %v17235_v45  ;;  %v1569_v35 = vxor.u32 2147483648, %v17237_v33  ;;  %v1572_v19 = vxor.u32 2147483648, %v17238_v46 }
 0x5f0   : > { %v1562_v56 = vsel %vm17236_vm14, 0, %v1560_v42  ;;  %v6784_v44 = vadd.s32 1, %v14853_v34  ;;  %v14878_v62 = vadd.f32 %v16537_v1, %v445_v3  ;;  %v444_v2 = vmul.f32 %v16538_v0, %v243_v28 }
 0x5f1   : > { %v1566_v51 = vand.u32 3, %v1562_v56  ;;  %v17239_v22 = vand.u32 2147483647, %v14498_v57  ;;  %v17240_v52 = vmov 0  ;;  %v6897_v14 = vclz %v7861_v4 }
 0x5f2   : > { %v6781_v5 = vmul.u32 %v14801_v53, %v6765_v31  ;;  %vm6783_vm14 = vc.u32 %v14861_v30, %v14852_v40  ;;  %vm17243_vm2 = vweird.f32 %v17213_v29  ;;  %v16490_v53 = vand.u32 2147483647, %v14878_v62 }
 0x5f3   : > { %vm14883_vm6 = vcmp.le.f32.partialorder %v17239_v22, 0.7853982  ;;  %v1472_v21 = vsel %vm17243_vm2, nan, %v1471_v59  ;;  %v6785_v47 = vsel %vm6783_vm14, %v6784_v44, %v14853_v34  ;;  %vm1567_vm4 = vcmp.lt.s32.totalorder %v1566_v51, 2 }
 0x5f4   : > { %v17241_v52 = vsel %vm14883_vm6, 4294967295, %v17240_v52  ;;  %vm1568_vm0 = vcmp.eq.s32.totalorder %v1566_v51, 0  ;;  %vm1571_vm11 = vcmp.eq.s32.totalorder %v1566_v51, 2  ;;  %v7862_v24 = vadd.s32 4294967294, %v6897_v14  ;;  %v17247_v14 = vld [vmem:[#allocation98_spill] sm:$0xff] }
 0x5f5   : > { %17242 = vst [vmem:[#allocation73_spill] sm:$0xff] %v17241_v52  ;;  %v6786_v28 = vadd.s32 %v6785_v47, %v6781_v5  ;;  %v1570_v42 = vsel %vm1568_vm0, %v17238_v46, %v1569_v35  ;;  %v1573_v3 = vsel %vm1571_vm11, %v1572_v19, %v17237_v33  ;;  %v3742_v31 = vand.u32 2139095040, %v14878_v62 }
 0x5f6   : > { %v1574_v4 = vsel %vm1567_vm4, %v1570_v42, %v1573_v3  ;;  %v14898_v45 = vadd.f32 %v16537_v1, %v444_v2  ;;  %v3621_v29 = vsel %vm14846_vm10, %v14483_v55, %v14807_v63  ;;  %vm7863_vm14 = vcmp.lt.s32.totalorder %v7862_v24, 0 }
 0x5f7   : > { %v6787_v34 = vadd.s32 536870912, %v6786_v28  ;;  %vm17244_vm2 = vweird.f32 %v17232_v20  ;;  %v6885_v56 = vadd.s32 %v14789_v38, %v14795_v54  ;;  %v6900_v33 = vsel %vm7863_vm14, 0, %v7862_v24 }
 0x5f8   : > { %v1575_v59 = vsel %vm17244_vm2, nan, %v1574_v4  ;;  %v3743_v46 = vshrl.u32 %v3742_v31, 23  ;;  %vm17245_vm11 = vcmp.lt.s32.totalorder %v14498_v57, 0  ;;  %v6901_v44 = vsub.s32 32, %v6900_v33 }
 0x5f9   : > { %v7142_v35 = vpack.c.bf16 %v1575_v59, %v1472_v21  ;;  %v3515_v19 = vsel %vm17245_vm11, %v3514_v58, %v14811_v16  ;;  %v6905_v51 = vsub.s32 4294967266, %v6900_v33  ;;  %v14911_v2 = vshrl.u32 %v6787_v34, 30 }
 0x5fa   : > { %v7740_v63 = vadd.s32 4294967169, %v3743_v46  ;;  %v3746_v20 = vand.u32 8388607, %v16490_v53  ;;  %v16489_v22 = vand.u32 2147483647, %v14898_v45  ;;  %v4752_v38 = vsub.s32 4, %v17247_v14 }
 0x5fb   : > { %17246 = vst [vmem:[#allocation51_spill] sm:$0xff] %v14911_v2  ;;  %7944 = vmatprep.mubr.bf16.mxu0 %v7142_v35  ;;  %v6902_v54 = vshll.u32 %v14838_v17, %v6900_v33  ;;  %v6903_v5 = vshrl.u32 %v6885_v56, %v6901_v44  ;;  %v6906_v21 = vadd.s32 127, %v6905_v51  ;;  %v6789_v47 = vshll.u32 %v14911_v2, 30  ;;  %v17248_v33 = vld [vmem:[#allocation85_spill] sm:$0xff] }
 0x5fc   : > { %8524 = vcosq.f32 %v3621_v29  ;;  %v14922_v16 = vsel %vm14883_vm6, %v14498_v57, %v3515_v19  ;;  %v3749_v58 = vadd.s32 1, %v7740_v63  ;;  %v3639_v24 = vand.u32 2139095040, %v14898_v45  ;;  %v17258_v57 = vld [vmem:[#allocation128_spill] sm:$0xff] }
 0x5fd   : > { %v6904_v42 = vor.u32 %v6903_v5, %v6902_v54  ;;  %v6907_v3 = vshll.u32 %v6906_v21, 23  ;;  %v14925_v4 = vsub.s32 %v6786_v28, %v6789_v47  ;;  %v3747_v31 = vor.u32 8388608, %v3746_v20 }
 0x5fe   : > { %8526 = vsinq.f32 %v3621_v29  ;;  %vm3750_vm0 = vcmp.gt.s32.totalorder %v3749_v58, 0  ;;  %v14929_v17 = vand.u32 8388607, %v16489_v22  ;;  %vm17249_vm4 = vcmp.lt.s32.totalorder %v17248_v33, 0 }
 0x5ff   : > { %v6908_v34 = vor.u32 4788187, %v6907_v3  ;;  %v6792_v59 = vsub.s32 0, %v14925_v4  ;;  %v3751_v56 = vsel %vm3750_vm0, %v3749_v58, 0  ;;  %v4753_v35 = vsel %vm17249_vm4, %v4752_v38, %v17247_v14  ;;  %v17250_v14 = vld [vmem:[#allocation120_spill] sm:$0xff] }
 0x600   : > { %8528 = vcosq.f32 %v14922_v16  ;;  %v6782_v28 = vadd.s32 %v14852_v40, %v14861_v30  ;;  %v3753_v46 = vand.u32 31, %v3751_v56  ;;  %v3640_v29 = vshrl.u32 %v3639_v24, 23 }
 0x601   : > { %vm16506_vm14 = vcmp.lt.s32.totalorder %v14706_v18, 0  ;;  %v6909_v19 = vand.u32 2147483647, %v6908_v34  ;;  %v6911_v44 = vcvt.s32.f32 %v6904_v42  ;;  %v7857_v51 = vmin.u32 %v6792_v59, %v14925_v4 }
 0x602   : > { %v14940_v63 = vshll.u32 %v3747_v31, 8  ;;  %v3752_v20 = vshrl.u32 %v3751_v56, 5  ;;  %v3754_v54 = vsub.s32 32, %v3753_v46  ;;  %vm17251_vm2 = vnez %v17250_v14 }
 0x603   : > { %v4755_v38 = vsel %vm17251_vm2, 0, %v4753_v35  ;;  %v6912_v21 = vmul.f32 %v6911_v44, %v6909_v19  ;;  %v6794_v47 = vclz %v7857_v51  ;;  %v3756_v40 = vshll.u32 %v16574_v12, %v3753_v46 }
 0x604   : > { %v3759_v30 = vshll.u32 %v16569_v13, %v3753_v46  ;;  %v3757_v58 = vshrl.u32 %v16569_v13, %v3754_v54  ;;  %v3760_v24 = vshrl.u32 %v16570_v6, %v3754_v54  ;;  %v3762_v42 = vshll.u32 %v16570_v6, %v3753_v46 }
 0x605   : > { %v3763_v3 = vshrl.u32 %v16571_v15, %v3754_v54  ;;  %v7858_v31 = vadd.s32 4294967294, %v6794_v47  ;;  %v3765_v34 = vshll.u32 %v16571_v15, %v3753_v46  ;;  %v3766_v59 = vshrl.u32 %v16572_v9, %v3754_v54 }
 0x606   : > { %v3769_v56 = vshrl.u32 %v16573_v8, %v3754_v54  ;;  %v14954_v35 = vpop.eup %8524  ;;  %v17253_v19 = vand.u32 2147483647, %v14706_v18  ;;  %v17254_v44 = vmov 0  ;;  %v6913_v51 = vxor.u32 2147483648, %v6912_v21 }
 0x607   : > { %17252 = vst [vmem:[#allocation93_spill] sm:$0xff] %v14954_v35  ;;  %v3758_v14 = vor.u32 %v3757_v58, %v3756_v40  ;;  %v3761_v22 = vor.u32 %v3760_v24, %v3759_v30  ;;  %v3768_v53 = vshll.u32 %v16572_v9, %v3753_v46  ;;  %vm7859_vm0 = vcmp.lt.s32.totalorder %v7858_v31, 0 }
 0x608   : > { %vm14958_vm11 = vcmp.le.f32.partialorder %v17253_v19, 0.7853982  ;;  %v3764_v47 = vor.u32 %v3763_v3, %v3762_v42  ;;  %v3767_v5 = vor.u32 %v3766_v59, %v3765_v34  ;;  %v7736_v2 = vadd.s32 4294967169, %v3640_v29  ;;  %v14963_v50 = vpop.eup %8526 }
 0x609   : > { %v17255_v44 = vsel %vm14958_vm11, 4294967295, %v17254_v44  ;;  %17257 = vst [vmem:[#allocation96_spill] sm:$0xff] %v14963_v50  ;;  %v6797_v55 = vsel %vm7859_vm0, 0, %v7858_v31  ;;  %v3770_v52 = vor.u32 %v3769_v56, %v3768_v53  ;;  %v14965_v35 = vand.u32 3, %v4755_v38 }
 0x60a   : > { %17256 = vst [vmem:[#allocation97_spill] sm:$0xff] %v17255_v44  ;;  %v4762_v19 = vxor.u32 2147483648, %v17258_v57  ;;  %v6798_v36 = vsub.s32 32, %v6797_v55  ;;  %v6802_v60 = vsub.s32 4294967266, %v6797_v55  ;;  %v3755_v37 = vshrl.u32 %v16574_v12, %v3754_v54  ;;  %v14969_v40 = vpop.eup %8528 }
 0x60b   : > { %vm3771_vm4 = vcmp.lt.s32.totalorder %v3752_v20, 1  ;;  %v6914_v46 = vsel %vm16506_vm14, %v6913_v51, %v6912_v21  ;;  %vm3772_vm2 = vcmp.lt.s32.totalorder %v3752_v20, 2  ;;  %vm3774_vm10 = vcmp.lt.s32.totalorder %v3752_v20, 4 }
 0x60c   : > { %v3779_v29 = vsel %vm3771_vm4, %v3758_v14, %v3761_v22  ;;  %v6803_v30 = vadd.s32 127, %v6802_v60  ;;  %vm3773_vm0 = vcmp.lt.s32.totalorder %v3752_v20, 3  ;;  %v3776_v53 = vsel %vm3774_vm10, %v3764_v47, 2102212464 }
 0x60d   : > { %v3780_v38 = vsel %vm3774_vm10, %v3767_v5, 920167782  ;;  %v6800_v58 = vshrl.u32 %v6782_v28, %v6798_v36  ;;  %v3783_v42 = vsel %vm3771_vm4, %v3761_v22, %v3764_v47  ;;  %v3784_v3 = vsel %vm3774_vm10, %v3770_v52, 1326507024 }
 0x60e   : > { %v3781_v24 = vsel %vm3773_vm0, %v3764_v47, %v3780_v38  ;;  %v6804_v31 = vshll.u32 %v6803_v30, 23  ;;  %v3775_v34 = vsel %vm3771_vm4, %v3755_v37, %v3758_v14  ;;  %v3777_v54 = vsel %vm3773_vm0, %v3761_v22, %v3776_v53 }
 0x60f   : > { %v3782_v59 = vsel %vm3772_vm2, %v3779_v29, %v3781_v24  ;;  %v6799_v56 = vshll.u32 %v14925_v4, %v6797_v55  ;;  %v3785_v50 = vsel %vm3773_vm0, %v3767_v5, %v3784_v3  ;;  %v14983_v60 = vsel %vm14958_vm11, %v14706_v18, %v6914_v46 }
 0x610   : > { %v14976_v21 = vmul.u32.u64.low %v14940_v63, %v3782_v59  ;;  %v14977_v51 = vmul.u32.u64.high %v14940_v63, %v3782_v59, %v14976_v21  ;;  %v6805_v36 = vor.u32 4788187, %v6804_v31  ;;  %v3786_v52 = vsel %vm3772_vm2, %v3783_v42, %v3785_v50 }
 0x611   : > { %v3646_v37 = vadd.s32 1, %v7736_v2  ;;  %v6801_v22 = vor.u32 %v6800_v58, %v6799_v56  ;;  %v3778_v28 = vsel %vm3772_vm2, %v3775_v34, %v3777_v54  ;;  %8530 = vsinq.f32 %v14922_v16  ;;  %v17260_v16 = vld [vmem:[#allocation126_spill] sm:$0xff]  ;;  %v17261_v58 = vld [vmem:[#allocation91_spill] sm:$0xff] }
 0x612   : > { %v14988_v55 = vmul.u32.u64.low %v14940_v63, %v3786_v52  ;;  %v14989_v4 = vmul.u32.u64.high %v14940_v63, %v3786_v52, %v14988_v55  ;;  %v6806_v5 = vand.u32 2147483647, %v6805_v36  ;;  %v3797_v14 = vadd.s32 1, %v14977_v51 }
 0x613   : > { %vm3647_vm10 = vcmp.gt.s32.totalorder %v3646_v37, 0  ;;  %v17259_v46 = vor.u32 8388608, %v14929_v17  ;;  %8532 = vcosq.f32 %v14983_v60  ;;  %v3794_v50 = vmul.u32 %v14940_v63, %v3778_v28  ;;  %v17262_v55 = vld [vmem:[#allocation78_spill] sm:$0xff] }
 0x614   : > { %v3648_v47 = vsel %vm3647_vm10, %v3646_v37, 0  ;;  %vm4761_vm4 = vcmp.eq.s32.totalorder %v14965_v35, 0  ;;  %v6808_v20 = vcvt.s32.f32 %v6801_v22  ;;  %vm3796_vm2 = vc.u32 %v14989_v4, %v14976_v21 }
 0x615   : > { %v14995_v29 = vshll.u32 %v17259_v46, 8  ;;  %v3650_v2 = vand.u32 31, %v3648_v47  ;;  %v4763_v30 = vsel %vm4761_vm4, %v17260_v16, %v4762_v19  ;;  %vm4764_vm0 = vcmp.eq.s32.totalorder %v14965_v35, 2 }
 0x616   : > { %v3798_v53 = vsel %vm3796_vm2, %v3797_v14, %v14977_v51  ;;  %v4765_v38 = vxor.u32 2147483648, %v17260_v16  ;;  %v4855_v24 = vsub.s32 4, %v17261_v58  ;;  %v15007_v42 = vmul.f32 %v6808_v20, %v6806_v5 }
 0x617   : > { %v3651_v17 = vsub.s32 32, %v3650_v2  ;;  %v3799_v63 = vadd.s32 %v3798_v53, %v3794_v50  ;;  %v3649_v3 = vshrl.u32 %v3648_v47, 5  ;;  %v3653_v31 = vshll.u32 %v16574_v12, %v3650_v2 }
 0x618   : > { %v3656_v19 = vshll.u32 %v16569_v13, %v3650_v2  ;;  %v3659_v59 = vshll.u32 %v16570_v6, %v3650_v2  ;;  %v3662_v36 = vshll.u32 %v16571_v15, %v3650_v2  ;;  %v4766_v28 = vsel %vm4764_vm0, %v4765_v38, %v17258_v57 }
 0x619   : > { %v3654_v34 = vshrl.u32 %v16569_v13, %v3651_v17  ;;  %v3657_v54 = vshrl.u32 %v16570_v6, %v3651_v17  ;;  %v3800_v56 = vadd.s32 536870912, %v3799_v63  ;;  %v3660_v51 = vshrl.u32 %v16571_v15, %v3651_v17 }
 0x61a   : > { %v3663_v52 = vshrl.u32 %v16572_v9, %v3651_v17  ;;  %vm17263_vm4 = vcmp.lt.s32.totalorder %v17262_v55, 0  ;;  %v3652_v47 = vshrl.u32 %v16574_v12, %v3651_v17  ;;  %v3665_v16 = vshll.u32 %v16572_v9, %v3650_v2 }
 0x61b   : > { %v3655_v37 = vor.u32 %v3654_v34, %v3653_v31  ;;  %v3658_v22 = vor.u32 %v3657_v54, %v3656_v19  ;;  %v4856_v5 = vsel %vm17263_vm4, %v4855_v24, %v17261_v58  ;;  %v15024_v14 = vshrl.u32 %v3800_v56, 30  ;;  %v15027_v20 = vpop.eup %8530 }
 0x61c   : > { %v3661_v46 = vor.u32 %v3660_v51, %v3659_v59  ;;  %v3664_v50 = vor.u32 %v3663_v52, %v3662_v36  ;;  %v3666_v53 = vshrl.u32 %v16573_v8, %v3651_v17  ;;  %vm3668_vm2 = vcmp.lt.s32.totalorder %v3649_v3, 1 }
 0x61d   : > { %17264 = vst [vmem:[#allocation61_spill] sm:$0xff] %v15024_v14  ;;  %vm3669_vm14 = vcmp.lt.s32.totalorder %v3649_v3, 2  ;;  %v3802_v57 = vshll.u32 %v15024_v14, 30  ;;  %vm3670_vm10 = vcmp.lt.s32.totalorder %v3649_v3, 3  ;;  %vm3671_vm4 = vcmp.lt.s32.totalorder %v3649_v3, 4  ;;  %v15033_v58 = vpop.eup %8532 }
 0x61e   : > { %v3676_v38 = vsel %vm3668_vm2, %v3655_v37, %v3658_v22  ;;  %17265 = vst [vmem:[#allocation47_spill] sm:$0xff] %v15033_v58  ;;  %v3667_v24 = vor.u32 %v3666_v53, %v3665_v16  ;;  %v3672_v31 = vsel %vm3668_vm2, %v3652_v47, %v3655_v37  ;;  %v3673_v34 = vsel %vm3671_vm4, %v3661_v46, 2102212464  ;;  %v17269_v53 = vld [vmem:[#allocation125_spill] sm:$0xff] }
 0x61f   : > { %v3677_v19 = vsel %vm3671_vm4, %v3664_v50, 920167782  ;;  %v15035_v54 = vsub.s32 %v3799_v63, %v3802_v57  ;;  %v3674_v2 = vsel %vm3670_vm10, %v3658_v22, %v3673_v34  ;;  %v3680_v59 = vsel %vm3668_vm2, %v3658_v22, %v3661_v46  ;;  %v408_v22 = vpop.permute.xlu1 %407 }
 0x620   : > { %v3678_v17 = vsel %vm3670_vm10, %v3661_v46, %v3677_v19  ;;  %v3681_v51 = vsel %vm3671_vm4, %v3667_v24, 1326507024  ;;  %vm17266_vm0 = vcmp.lt.s32.totalorder %v14965_v35, 2  ;;  %vm4861_vm11 = vweird.f32 %v17262_v55  ;;  %v403_v46 = vpop.permute.xlu0 %402 }
 0x621   : > { %v3679_v56 = vsel %vm3669_vm14, %v3676_v38, %v3678_v17  ;;  %v4767_v36 = vsel %vm17266_vm0, %v4763_v30, %v4766_v28  ;;  %v3805_v52 = vsub.s32 0, %v15035_v54  ;;  %v3682_v63 = vsel %vm3670_vm10, %v3664_v50, %v3681_v51  ;;  %v17267_v30 = vld [vmem:[#allocation115_spill] sm:$0xff] }
 0x622   : > { %v15047_v37 = vmul.u32.u64.low %v14995_v29, %v3679_v56  ;;  %v15048_v47 = vmul.u32.u64.high %v14995_v29, %v3679_v56, %v15047_v37  ;;  %v3675_v16 = vsel %vm3669_vm14, %v3672_v31, %v3674_v2  ;;  %v3683_v35 = vsel %vm3669_vm14, %v3680_v59, %v3682_v63  ;;  %v17270_v17 = vld [vmem:[#allocation119_spill] sm:$0xff] }
 0x623   : > { %vm17268_vm2 = vnez %v17267_v30  ;;  %v4865_v57 = vxor.u32 2147483648, %v17269_v53  ;;  %v7741_v38 = vmin.u32 %v3805_v52, %v15035_v54  ;;  %v6810_v19 = vxor.u32 2147483648, %v15007_v42 }
 0x624   : > { %v4858_v28 = vsel %vm17268_vm2, 0, %v4856_v5  ;;  %v15058_v50 = vmul.u32.u64.low %v14995_v29, %v3683_v35  ;;  %v15059_v24 = vmul.u32.u64.high %v14995_v29, %v3683_v35, %v15058_v50  ;;  %v4868_v56 = vxor.u32 2147483648, %v17270_v17 }
 0x625   : > { %v4862_v34 = vand.u32 3, %v4858_v28  ;;  %v477_v31 = vmul.f32 %v16538_v0, %v408_v22  ;;  %v476_v3 = vmul.f32 %v16538_v0, %v403_v46  ;;  %v17271_v2 = vand.u32 2147483647, %v14709_v25 }
 0x626   : > { %v17272_v5 = vmov 0  ;;  %v3807_v59 = vclz %v7741_v38  ;;  %v3694_v51 = vadd.s32 1, %v15048_v47  ;;  %vm17274_vm10 = vweird.f32 %v17248_v33 }
 0x627   : > { %vm15067_vm14 = vcmp.le.f32.partialorder %v17271_v2, 0.7853982  ;;  %v4768_v52 = vsel %vm17274_vm10, nan, %v4767_v36  ;;  %vm4864_vm0 = vcmp.eq.s32.totalorder %v4862_v34, 0  ;;  %v3691_v63 = vmul.u32 %v14995_v29, %v3675_v16 }
 0x628   : > { %v17273_v5 = vsel %vm15067_vm14, 4294967295, %v17272_v5  ;;  %v4866_v35 = vsel %vm4864_vm0, %v17270_v17, %v4865_v57  ;;  %vm4867_vm4 = vcmp.eq.s32.totalorder %v4862_v34, 2  ;;  %v15077_v22 = vadd.f32 %v16537_v1, %v477_v31 }
 0x629   : > { %v7742_v46 = vadd.s32 4294967294, %v3807_v59  ;;  %vm3693_vm2 = vc.u32 %v15059_v24, %v15047_v37  ;;  %vm4863_vm6 = vcmp.lt.s32.totalorder %v4862_v34, 2  ;;  %v4869_v30 = vsel %vm4867_vm4, %v4868_v56, %v17269_v53 }
 0x62a   : > { %v3695_v28 = vsel %vm3693_vm2, %v3694_v51, %v15048_v47  ;;  %v4870_v33 = vsel %vm4863_vm6, %v4866_v35, %v4869_v30  ;;  %v16510_v36 = vand.u32 2147483647, %v15077_v22  ;;  %v15085_v29 = vadd.f32 %v16537_v1, %v476_v3  ;;  %v17276_v3 = vld [vmem:[#allocation109_spill] sm:$0xff] }
 0x62b   : > { %vm7743_vm10 = vcmp.lt.s32.totalorder %v7742_v46, 0  ;;  %v3696_v16 = vadd.s32 %v3695_v28, %v3691_v63  ;;  %v4871_v57 = vsel %vm4861_vm11, nan, %v4870_v33  ;;  %v7038_v38 = vand.u32 2139095040, %v15077_v22 }
 0x62c   : > { %vm17275_vm0 = vcmp.lt.s32.totalorder %v14709_v25, 0  ;;  %v3795_v47 = vadd.s32 %v14976_v21, %v14989_v4  ;;  %v3810_v53 = vsel %vm7743_vm10, 0, %v7742_v46  ;;  %v7158_v34 = vpack.c.bf16 %v4871_v57, %v4768_v52 }
 0x62d   : > { %v6811_v50 = vsel %vm17275_vm0, %v6810_v19, %v15007_v42  ;;  %v3811_v17 = vsub.s32 32, %v3810_v53  ;;  %v3815_v56 = vsub.s32 4294967266, %v3810_v53  ;;  %v3697_v31 = vadd.s32 536870912, %v3696_v16 }
 0x62e   : > { %v1662_v2 = vsub.s32 4, %v17276_v3  ;;  %v3812_v59 = vshll.u32 %v15035_v54, %v3810_v53  ;;  %7976 = vmatprep.mubr.bf16.mxu1 %v7158_v34  ;;  %v7039_v55 = vshrl.u32 %v7038_v38, 23  ;;  %v7042_v51 = vand.u32 8388607, %v16510_v36  ;;  %v17278_v53 = vld [vmem:[#allocation95_spill] sm:$0xff] }
 0x62f   : > { %v16509_v63 = vand.u32 2147483647, %v15085_v29  ;;  %v3813_v42 = vshrl.u32 %v3795_v47, %v3811_v17  ;;  %v3816_v19 = vadd.s32 127, %v3815_v56  ;;  %v15100_v35 = vshrl.u32 %v3697_v31, 30  ;;  %v17280_v31 = vld [vmem:[#allocation127_spill] sm:$0xff] }
 0x630   : > { %v6935_v21 = vand.u32 2139095040, %v15085_v29  ;;  %8534 = vsinq.f32 %v14983_v60  ;;  %v6814_v4 = vsel %vm15067_vm14, %v14709_v25, %v6811_v50  ;;  %v7868_v54 = vadd.s32 4294967169, %v7039_v55 }
 0x631   : > { %17277 = vst [vmem:[#allocation81_spill] sm:$0xff] %v15100_v35  ;;  %v6939_v52 = vand.u32 8388607, %v16509_v63  ;;  %v3814_v46 = vor.u32 %v3813_v42, %v3812_v59  ;;  %v3817_v30 = vshll.u32 %v3816_v19, 23  ;;  %v3699_v28 = vshll.u32 %v15100_v35, 30 }
 0x632   : > { %v6936_v33 = vshrl.u32 %v6935_v21, 23  ;;  %v7043_v57 = vor.u32 8388608, %v7042_v51  ;;  %v7045_v38 = vadd.s32 1, %v7868_v54  ;;  %vm17279_vm6 = vcmp.lt.s32.totalorder %v17278_v53, 0 }
 0x633   : > { %v6940_v47 = vor.u32 8388608, %v6939_v52  ;;  %v1663_v60 = vsel %vm17279_vm6, %v1662_v2, %v17276_v3  ;;  %8536 = vcosq.f32 %v6814_v4  ;;  %v3818_v34 = vor.u32 4788187, %v3817_v30 }
 0x634   : > { %v15113_v17 = vsub.s32 %v3696_v16, %v3699_v28  ;;  %v7864_v50 = vadd.s32 4294967169, %v6936_v33  ;;  %8538 = vsinq.f32 %v6814_v4  ;;  %vm16522_vm11 = vcmp.lt.s32.totalorder %v14878_v62, 0 }
 0x635   : > { %v3821_v56 = vcvt.s32.f32 %v3814_v46  ;;  %vm7046_vm4 = vcmp.gt.s32.totalorder %v7045_v38, 0  ;;  %vm17281_vm2 = vnez %v17280_v31  ;;  %v3819_v55 = vand.u32 2147483647, %v3818_v34  ;;  %v17282_v46 = vld [vmem:[#allocation137_spill] sm:$0xff] }
 0x636   : > { %v1665_v59 = vsel %vm17281_vm2, 0, %v1663_v60  ;;  %v3702_v51 = vsub.s32 0, %v15113_v17  ;;  %v7047_v42 = vsel %vm7046_vm4, %v7045_v38, 0  ;;  %v6942_v19 = vadd.s32 1, %v7864_v50  ;;  %v17283_v38 = vld [vmem:[#allocation40_spill] sm:$0xff] }
 0x637   : > { %v3692_v3 = vadd.s32 %v15047_v37, %v15059_v24  ;;  %v7049_v2 = vand.u32 31, %v7047_v42  ;;  %v15121_v16 = vshll.u32 %v7043_v57, 8  ;;  %v15123_v21 = vshll.u32 %v6940_v47, 8 }
 0x638   : > { %v3822_v4 = vmul.f32 %v3821_v56, %v3819_v55  ;;  %v7737_v54 = vmin.u32 %v3702_v51, %v15113_v17  ;;  %v7048_v52 = vshrl.u32 %v7047_v42, 5  ;;  %v15127_v33 = vand.u32 3, %v1665_v59 }
 0x639   : > { %v7050_v28 = vsub.s32 32, %v7049_v2  ;;  %v7052_v37 = vshll.u32 %v16574_v12, %v7049_v2  ;;  %v7055_v24 = vshll.u32 %v16569_v13, %v7049_v2  ;;  %v17284_v47 = vand.u32 2147483647, %v14878_v62 }
 0x63a   : > { %v3823_v34 = vxor.u32 2147483648, %v3822_v4  ;;  %v3704_v50 = vclz %v7737_v54  ;;  %v15132_v57 = vpop.eup %8534  ;;  %v17285_v56 = vmov 0  ;;  %v7058_v55 = vshll.u32 %v16570_v6, %v7049_v2 }
 0x63b   : > { %vm15136_vm0 = vcmp.le.f32.partialorder %v17284_v47, 0.7853982  ;;  %v7053_v31 = vshrl.u32 %v16569_v13, %v7050_v28  ;;  %v7056_v59 = vshrl.u32 %v16570_v6, %v7050_v28  ;;  %v7059_v51 = vshrl.u32 %v16571_v15, %v7050_v28 }
 0x63c   : > { %v17286_v56 = vsel %vm15136_vm0, 4294967295, %v17285_v56  ;;  %v7738_v42 = vadd.s32 4294967294, %v3704_v50  ;;  %v7061_v54 = vshll.u32 %v16571_v15, %v7049_v2  ;;  %v7062_v63 = vshrl.u32 %v16572_v9, %v7050_v28 }
 0x63d   : > { %v7065_v36 = vshrl.u32 %v16573_v8, %v7050_v28  ;;  %v7054_v60 = vor.u32 %v7053_v31, %v7052_v37  ;;  %v7057_v47 = vor.u32 %v7056_v59, %v7055_v24  ;;  %v7060_v30 = vor.u32 %v7059_v51, %v7058_v55  ;;  %v15148_v1 = vpop.eup %8536 }
 0x63e   : > { %v7064_v0 = vshll.u32 %v16572_v9, %v7049_v2  ;;  %v3824_v14 = vsel %vm16522_vm11, %v3823_v34, %v3822_v4  ;;  %vm7739_vm6 = vcmp.lt.s32.totalorder %v7738_v42, 0  ;;  %v7051_v58 = vshrl.u32 %v16574_v12, %v7050_v28  ;;  %v15153_v44 = vpop.eup %8538 }
 0x63f   : > { %v7063_v50 = vor.u32 %v7062_v63, %v7061_v54  ;;  %v3707_v18 = vsel %vm7739_vm6, 0, %v7738_v42  ;;  %vm7067_vm4 = vcmp.lt.s32.totalorder %v7048_v52, 1  ;;  %vm7068_vm2 = vcmp.lt.s32.totalorder %v7048_v52, 2 }
 0x640   : > { %v7066_v35 = vor.u32 %v7065_v36, %v7064_v0  ;;  %v3708_v37 = vsub.s32 32, %v3707_v18  ;;  %v3709_v24 = vshll.u32 %v15113_v17, %v3707_v18  ;;  %v3712_v31 = vsub.s32 4294967266, %v3707_v18 }
 0x641   : > { %vm7069_vm10 = vcmp.lt.s32.totalorder %v7048_v52, 3  ;;  %vm7070_vm14 = vcmp.lt.s32.totalorder %v7048_v52, 4  ;;  %v7071_v2 = vsel %vm7067_vm4, %v7051_v58, %v7054_v60  ;;  %v7075_v59 = vsel %vm7067_vm4, %v7054_v60, %v7057_v47 }
 0x642   : > { %v7079_v55 = vsel %vm7067_vm4, %v7057_v47, %v7060_v30  ;;  %v3710_v4 = vshrl.u32 %v3692_v3, %v3708_v37  ;;  %v3713_v34 = vadd.s32 127, %v3712_v31  ;;  %v7072_v51 = vsel %vm7070_vm14, %v7060_v30, 2102212464  ;;  %v17291_v31 = vld [vmem:[#allocation101_spill] sm:$0xff] }
 0x643   : > { %v7076_v28 = vsel %vm7070_vm14, %v7063_v50, 920167782  ;;  %v7073_v63 = vsel %vm7069_vm10, %v7057_v47, %v7072_v51  ;;  %v7080_v0 = vsel %vm7070_vm14, %v7066_v35, 1326507024  ;;  %vm17287_vm6 = vcmp.gt.s32.totalorder %v6942_v19, 0 }
 0x644   : > { %v7077_v42 = vsel %vm7069_vm10, %v7060_v30, %v7076_v28  ;;  %v6944_v36 = vsel %vm17287_vm6, %v6942_v19, 0  ;;  %v3827_v18 = vsel %vm15136_vm0, %v14878_v62, %v3824_v14  ;;  %v3711_v17 = vor.u32 %v3710_v4, %v3709_v24 }
 0x645   : > { %v3714_v54 = vshll.u32 %v3713_v34, 23  ;;  %v7078_v58 = vsel %vm7068_vm2, %v7075_v59, %v7077_v42  ;;  %vm16523_vm4 = vcmp.lt.s32.totalorder %v14898_v45, 0  ;;  %v7074_v3 = vsel %vm7068_vm2, %v7071_v2, %v7073_v63 }
 0x646   : > { %v7081_v60 = vsel %vm7069_vm10, %v7063_v50, %v7080_v0  ;;  %v15167_v47 = vmul.u32.u64.low %v15121_v16, %v7078_v58  ;;  %v15168_v30 = vmul.u32.u64.high %v15121_v16, %v7078_v58, %v15167_v47  ;;  %v17288_v35 = vand.u32 2147483647, %v14898_v45 }
 0x647   : > { %v17289_v19 = vmov 0  ;;  %v3715_v14 = vor.u32 4788187, %v3714_v54  ;;  %v7082_v37 = vsel %vm7068_vm2, %v7079_v55, %v7081_v60  ;;  %v15177_v24 = vshrl.u32 %v6944_v36, 5 }
 0x648   : > { %vm15172_vm14 = vcmp.le.f32.partialorder %v17288_v35, 0.7853982  ;;  %v1765_v59 = vsub.s32 4, %v17291_v31  ;;  %8540 = vcosq.f32 %v3827_v18  ;;  %v6946_v4 = vand.u32 31, %v6944_v36 }
 0x649   : > { %v17290_v19 = vsel %vm15172_vm14, 4294967295, %v17289_v19  ;;  %v15181_v50 = vmul.u32.u64.low %v15121_v16, %v7082_v37  ;;  %v15182_v2 = vmul.u32.u64.high %v15121_v16, %v7082_v37, %v15181_v50  ;;  %8542 = vsinq.f32 %v3827_v18 }
 0x64a   : > { %v3716_v34 = vand.u32 2147483647, %v3715_v14  ;;  %v3718_v51 = vcvt.s32.f32 %v3711_v17  ;;  %v7090_v28 = vmul.u32 %v15121_v16, %v7074_v3  ;;  %v7093_v63 = vadd.s32 1, %v15168_v30 }
 0x64b   : > { %v6947_v42 = vsub.s32 32, %v6946_v4  ;;  %v6949_v52 = vshll.u32 %v16574_v12, %v6946_v4  ;;  %vm6964_vm10 = vcmp.lt.s32.totalorder %v15177_v24, 1  ;;  %v6952_v0 = vshll.u32 %v16569_v13, %v6946_v4 }
 0x64c   : > { %v3719_v55 = vmul.f32 %v3718_v51, %v3716_v34  ;;  %v6955_v54 = vshll.u32 %v16570_v6, %v6946_v4  ;;  %v6958_v58 = vshll.u32 %v16571_v15, %v6946_v4  ;;  %vm7092_vm6 = vc.u32 %v15182_v2, %v15167_v47 }
 0x64d   : > { %v6948_v16 = vshrl.u32 %v16574_v12, %v6947_v42  ;;  %v6950_v36 = vshrl.u32 %v16569_v13, %v6947_v42  ;;  %v6961_v18 = vshll.u32 %v16572_v9, %v6946_v4  ;;  %v7094_v3 = vsel %vm7092_vm6, %v7093_v63, %v15168_v30 }
 0x64e   : > { %v3720_v17 = vxor.u32 2147483648, %v3719_v55  ;;  %v6953_v60 = vshrl.u32 %v16570_v6, %v6947_v42  ;;  %v6956_v35 = vshrl.u32 %v16571_v15, %v6947_v42  ;;  %v7095_v14 = vadd.s32 %v7094_v3, %v7090_v28 }
 0x64f   : > { %v6951_v37 = vor.u32 %v6950_v36, %v6949_v52  ;;  %v6959_v50 = vshrl.u32 %v16572_v9, %v6947_v42  ;;  %v6962_v34 = vshrl.u32 %v16573_v8, %v6947_v42  ;;  %vm6967_vm11 = vcmp.lt.s32.totalorder %v15177_v24, 4 }
 0x650   : > { %v3721_v12 = vsel %vm16523_vm4, %v3720_v17, %v3719_v55  ;;  %v6954_v51 = vor.u32 %v6953_v60, %v6952_v0  ;;  %v6957_v13 = vor.u32 %v6956_v35, %v6955_v54  ;;  %v7096_v6 = vadd.s32 536870912, %v7095_v14 }
 0x651   : > { %v3724_v30 = vsel %vm15172_vm14, %v14898_v45, %v3721_v12  ;;  %v6960_v4 = vor.u32 %v6959_v50, %v6958_v58  ;;  %v6963_v15 = vor.u32 %v6962_v34, %v6961_v18  ;;  %v15209_v9 = vadd.s32 %v15167_v47, %v15182_v2 }
 0x652   : > { %vm6966_vm2 = vcmp.lt.s32.totalorder %v15177_v24, 3  ;;  %v6969_v8 = vsel %vm6967_vm11, %v6957_v13, 2102212464  ;;  %v6972_v28 = vsel %vm6964_vm10, %v6951_v37, %v6954_v51  ;;  %v15217_v63 = vpop.eup %8540  ;;  %8544 = vcosq.f32 %v3724_v30 }
 0x653   : > { %v15219_v42 = vshrl.u32 %v7096_v6, 30  ;;  %v6968_v52 = vsel %vm6964_vm10, %v6948_v16, %v6951_v37  ;;  %v6973_v47 = vsel %vm6967_vm11, %v6960_v4, 920167782  ;;  %v15225_v2 = vpop.eup %8542  ;;  %8546 = vsinq.f32 %v3724_v30  ;;  %v17298_v30 = vld [vmem:[#allocation132_spill] sm:$0xff] }
 0x654   : > { %v6974_v55 = vsel %vm6966_vm2, %v6957_v13, %v6973_v47  ;;  %v6976_v0 = vsel %vm6964_vm10, %v6954_v51, %v6957_v13  ;;  %v6977_v54 = vsel %vm6967_vm11, %v6963_v15, 1326507024  ;;  %v6970_v16 = vsel %vm6966_vm2, %v6954_v51, %v6969_v8  ;;  %v17296_v13 = vld [vmem:[#allocation92_spill] sm:$0xff] }
 0x655   : > { %17292 = vst [vmem:[#allocation90_spill] sm:$0xff] %v15219_v42  ;;  %v7098_v58 = vshll.u32 %v15219_v42, 30  ;;  %vm17293_vm4 = vcmp.lt.s32.totalorder %v15177_v24, 2  ;;  %v6978_v18 = vsel %vm6966_vm2, %v6960_v4, %v6977_v54  ;;  %vm1671_vm11 = vcmp.eq.s32.totalorder %v15127_v33, 0 }
 0x656   : > { %v6975_v36 = vsel %vm17293_vm4, %v6972_v28, %v6974_v55  ;;  %vm17294_vm6 = vmmov %vm17293_vm4  ;;  %v17295_v34 = vxor.u32 2147483648, %v17282_v46  ;;  %v6971_v51 = vsel %vm17293_vm4, %v6968_v52, %v6970_v16  ;;  %vm1674_vm10 = vcmp.eq.s32.totalorder %v15127_v33, 2  ;;  %v17300_v28 = vld [vmem:[#allocation122_spill] sm:$0xff]  ;;  %v17302_v52 = vld [vmem:[#allocation129_spill] sm:$0xff] }
 0x657   : > { %v6979_v17 = vsel %vm17294_vm6, %v6976_v0, %v6978_v18  ;;  %v15243_v3 = vmul.u32.u64.low %v15123_v21, %v6975_v36  ;;  %v15244_v60 = vmul.u32.u64.high %v15123_v21, %v6975_v36, %v15243_v3  ;;  %v15247_v35 = vsub.s32 %v7095_v14, %v7098_v58 }
 0x658   : > { %v15250_v37 = vmul.u32.u64.low %v15123_v21, %v6979_v17  ;;  %v15251_v50 = vmul.u32.u64.high %v15123_v21, %v6979_v17, %v15250_v37  ;;  %v1673_v12 = vsel %vm1671_vm11, %v17283_v38, %v17295_v34  ;;  %vm17297_vm2 = vcmp.lt.s32.totalorder %v17296_v13, 0 }
 0x659   : > { %v1766_v14 = vsel %vm17297_vm2, %v1765_v59, %v17291_v31  ;;  %v1775_v6 = vxor.u32 2147483648, %v17298_v30  ;;  %v7101_v4 = vsub.s32 0, %v15247_v35  ;;  %v17299_v15 = vxor.u32 2147483648, %v17283_v38  ;;  %v17304_v31 = vld [vmem:[#allocation116_spill] sm:$0xff] }
 0x65a   : > { %vm17301_vm6 = vnez %v17300_v28  ;;  %v1778_v47 = vxor.u32 2147483648, %v17302_v52  ;;  %v6990_v55 = vadd.s32 1, %v15244_v60  ;;  %vm17303_vm11 = vcmp.lt.s32.totalorder %v15127_v33, 2 }
 0x65b   : > { %v1676_v8 = vsel %vm1674_vm10, %v17299_v15, %v17282_v46  ;;  %v1768_v24 = vsel %vm17301_vm6, 0, %v1766_v14  ;;  %v4958_v59 = vsub.s32 4, %v17304_v31  ;;  %v7869_v58 = vmin.u32 %v7101_v4, %v15247_v35 }
 0x65c   : > { %v1677_v0 = vsel %vm17303_vm11, %v1673_v12, %v1676_v8  ;;  %v1772_v54 = vand.u32 3, %v1768_v24  ;;  %v6987_v16 = vmul.u32 %v15123_v21, %v6971_v51  ;;  %vm6989_vm4 = vc.u32 %v15251_v50, %v15243_v3  ;;  %v15282_v36 = vpop.eup %8544  ;;  %v17308_v12 = vld [vmem:[#allocation149_spill] sm:$0xff] }
 0x65d   : > { %vm17305_vm10 = vweird.f32 %v17278_v53  ;;  %v6991_v38 = vsel %vm6989_vm4, %v6990_v55, %v15244_v60  ;;  %v7103_v33 = vclz %v7869_v58  ;;  %v15286_v34 = vpop.eup %8546  ;;  %vm1771_vm11 = vweird.f32 %v17296_v13  ;;  %v17306_v53 = vld [vmem:[#allocation103_spill] sm:$0xff]  ;;  %v17309_v8 = vld [vmem:[#allocation141_spill] sm:$0xff] }
 0x65e   : > { %v1678_v46 = vsel %vm17305_vm10, nan, %v1677_v0  ;;  %vm1773_vm2 = vcmp.lt.s32.totalorder %v1772_v54, 2  ;;  %vm1774_vm6 = vcmp.eq.s32.totalorder %v1772_v54, 0  ;;  %vm1777_vm0 = vcmp.eq.s32.totalorder %v1772_v54, 2 }
 0x65f   : > { %v6992_v18 = vadd.s32 %v6991_v38, %v6987_v16  ;;  %v1776_v17 = vsel %vm1774_vm6, %v17302_v52, %v1775_v6  ;;  %v1779_v37 = vsel %vm1777_vm0, %v1778_v47, %v17298_v30  ;;  %vm17307_vm10 = vcmp.lt.s32.totalorder %v17306_v53, 0  ;;  %v17311_v30 = vld [vmem:[#allocation148_spill] sm:$0xff] }
 0x660   : > { %v1780_v21 = vsel %vm1773_vm2, %v1776_v17, %v1779_v37  ;;  %v4959_v60 = vsel %vm17307_vm10, %v4958_v59, %v17304_v31  ;;  %v4968_v51 = vxor.u32 2147483648, %v17308_v12  ;;  %v7870_v14 = vadd.s32 4294967294, %v7103_v33  ;;  %v17312_v47 = vld [vmem:[#allocation112_spill] sm:$0xff]  ;;  %v17315_v33 = vld [vmem:[#allocation99_spill] sm:$0xff] }
 0x661   : > { %v6993_v4 = vadd.s32 536870912, %v6992_v18  ;;  %v1781_v15 = vsel %vm1771_vm11, nan, %v1780_v21  ;;  %vm17310_vm4 = vnez %v17309_v8  ;;  %v4971_v52 = vxor.u32 2147483648, %v17311_v30  ;;  %v17314_v31 = vld [vmem:[#allocation144_spill] sm:$0xff]  ;;  %v17320_v8 = vld [vmem:[#allocation130_spill] sm:$0xff] }
 0x662   : > { %v4961_v28 = vsel %vm17310_vm4, 0, %v4959_v60  ;;  %v7143_v6 = vpack.c.bf16 %v1781_v15, %v1678_v46  ;;  %v5061_v55 = vsub.s32 4, %v17312_v47  ;;  %vm7871_vm0 = vcmp.lt.s32.totalorder %v7870_v14, 0  ;;  %v17319_v15 = vld [vmem:[#allocation138_spill] sm:$0xff] }
 0x663   : > { %v4965_v24 = vand.u32 3, %v4961_v28  ;;  %v15298_v13 = vadd.s32 %v15243_v3, %v15251_v50  ;;  %v15300_v0 = vshrl.u32 %v6993_v4, 30  ;;  %vm4964_vm2 = vweird.f32 %v17306_v53  ;;  %v17323_v53 = vld [vmem:[#allocation158_spill] sm:$0xff] }
 0x664   : > { %v7106_v54 = vsel %vm7871_vm0, 0, %v7870_v14  ;;  %7945 = vmatmul.mubr.bf16.gmra.mrb[8].mxu0 %v7143_v6  ;;  %v5071_v59 = vxor.u32 2147483648, %v17314_v31  ;;  %vm17316_vm4 = vcmp.lt.s32.totalorder %v17315_v33, 0  ;;  %v1868_v28 = vsub.s32 4, %v17320_v8 }
 0x665   : > { %17313 = vst [vmem:[#allocation89_spill] sm:$0xff] %v15300_v0  ;;  %vm4966_vm6 = vcmp.lt.s32.totalorder %v4965_v24, 2  ;;  %vm4967_vm11 = vcmp.eq.s32.totalorder %v4965_v24, 0  ;;  %v7107_v58 = vsub.s32 32, %v7106_v54  ;;  %v7111_v16 = vsub.s32 4294967266, %v7106_v54 }
 0x666   : > { %v6995_v46 = vshll.u32 %v15300_v0, 30  ;;  %vm4970_vm10 = vcmp.eq.s32.totalorder %v4965_v24, 2  ;;  %v7108_v38 = vshll.u32 %v15247_v35, %v7106_v54  ;;  %v4969_v3 = vsel %vm4967_vm11, %v17311_v30, %v4968_v51  ;;  %v17317_v35 = vld [vmem:[#allocation135_spill] sm:$0xff] }
 0x667   : > { %v4972_v50 = vsel %vm4970_vm10, %v4971_v52, %v17308_v12  ;;  %v5062_v17 = vsel %vm17316_vm4, %v5061_v55, %v17312_v47  ;;  %v7109_v37 = vshrl.u32 %v15209_v9, %v7107_v58  ;;  %v7112_v21 = vadd.s32 127, %v7111_v16  ;;  %v17321_v9 = vld [vmem:[#allocation113_spill] sm:$0xff]  ;;  %v17325_v58 = vld [vmem:[#allocation124_spill] sm:$0xff] }
 0x668   : > { %v15313_v60 = vsub.s32 %v6992_v18, %v6995_v46  ;;  %v4973_v14 = vsel %vm4966_vm6, %v4969_v3, %v4972_v50  ;;  %vm17318_vm14 = vnez %v17317_v35  ;;  %v5074_v12 = vxor.u32 2147483648, %v17319_v15  ;;  %v17324_v55 = vld [vmem:[#allocation157_spill] sm:$0xff] }
 0x669   : > { %v4974_v4 = vsel %vm4964_vm2, nan, %v4973_v14  ;;  %v5064_v51 = vsel %vm17318_vm14, 0, %v5062_v17  ;;  %v7110_v6 = vor.u32 %v7109_v37, %v7108_v38  ;;  %v7113_v24 = vshll.u32 %v7112_v21, 23  ;;  %v17329_v37 = vld [vmem:[#allocation147_spill] sm:$0xff]  ;;  %v17331_v14 = vld [vmem:[#allocation110_spill] sm:$0xff] }
 0x66a   : > { %v6998_v30 = vsub.s32 0, %v15313_v60  ;;  %v5068_v52 = vand.u32 3, %v5064_v51  ;;  %vm17322_vm6 = vcmp.lt.s32.totalorder %v17321_v9, 0  ;;  %v1878_v47 = vxor.u32 2147483648, %v17323_v53 }
 0x66b   : > { %v1869_v18 = vsel %vm17322_vm6, %v1868_v28, %v17320_v8  ;;  %v1881_v54 = vxor.u32 2147483648, %v17324_v55  ;;  %v1971_v16 = vsub.s32 4, %v17325_v58  ;;  %v17326_v46 = vand.u32 2147483647, %v15077_v22 }
 0x66c   : > { %v17327_v38 = vmov 0  ;;  %v7114_v3 = vor.u32 4788187, %v7113_v24  ;;  %v7117_v50 = vcvt.s32.f32 %v7110_v6  ;;  %v7865_v17 = vmin.u32 %v6998_v30, %v15313_v60  ;;  %v17333_v30 = vld [vmem:[#allocation145_spill] sm:$0xff] }
 0x66d   : > { %vm15331_vm14 = vcmp.le.f32.partialorder %v17326_v46, 0.7853982  ;;  %vm5069_vm2 = vcmp.lt.s32.totalorder %v5068_v52, 2  ;;  %vm5070_vm10 = vcmp.eq.s32.totalorder %v5068_v52, 0  ;;  %vm5073_vm4 = vcmp.eq.s32.totalorder %v5068_v52, 2 }
 0x66e   : > { %v17328_v38 = vsel %vm15331_vm14, 4294967295, %v17327_v38  ;;  %vm17330_vm6 = vnez %v17329_v37  ;;  %vm17332_vm11 = vcmp.lt.s32.totalorder %v17331_v14, 0  ;;  %v7115_v51 = vand.u32 2147483647, %v7114_v3 }
 0x66f   : > { %v1871_v21 = vsel %vm17330_vm6, 0, %v1869_v18  ;;  %v1972_v35 = vsel %vm17332_vm11, %v1971_v16, %v17325_v58  ;;  %v7000_v8 = vclz %v7865_v17  ;;  %v5072_v28 = vsel %vm5070_vm10, %v17319_v15, %v5071_v59 }
 0x670   : > { %v5075_v46 = vsel %vm5073_vm4, %v5074_v12, %v17314_v31  ;;  %vm1874_vm0 = vweird.f32 %v17321_v9  ;;  %v1875_v6 = vand.u32 3, %v1871_v21  ;;  %vm17334_vm9 = vnez %v17333_v30  ;;  %v17340_v9 = vld [vmem:[#allocation123_spill] sm:$0xff] }
 0x671   : > { %v5076_v24 = vsel %vm5069_vm2, %v5072_v28, %v5075_v46  ;;  %v1974_v52 = vsel %vm17334_vm9, 0, %v1972_v35  ;;  %v7118_v42 = vmul.f32 %v7117_v50, %v7115_v51  ;;  %v7866_v37 = vadd.s32 4294967294, %v7000_v8  ;;  %v17338_v35 = vld [vmem:[#allocation150_spill] sm:$0xff]  ;;  %v17339_v8 = vld [vmem:[#allocation139_spill] sm:$0xff] }
 0x672   : > { %vm17335_vm6 = vweird.f32 %v17315_v33  ;;  %v1978_v0 = vand.u32 3, %v1974_v52  ;;  %vm1876_vm11 = vcmp.lt.s32.totalorder %v1875_v6, 2  ;;  %vm1877_vm7 = vcmp.eq.s32.totalorder %v1875_v6, 0  ;;  %v17342_v30 = vld [vmem:[#allocation163_spill] sm:$0xff] }
 0x673   : > { %v5077_v18 = vsel %vm17335_vm6, nan, %v5076_v24  ;;  %vm1880_vm1 = vcmp.eq.s32.totalorder %v1875_v6, 2  ;;  %v7119_v59 = vxor.u32 2147483648, %v7118_v42  ;;  %vm7867_vm10 = vcmp.lt.s32.totalorder %v7866_v37, 0 }
 0x674   : > { %v7159_v58 = vpack.c.bf16 %v5077_v18, %v4974_v4  ;;  %v1879_v31 = vsel %vm1877_vm7, %v17324_v55, %v1878_v47  ;;  %v1882_v15 = vsel %vm1880_vm1, %v1881_v54, %v17323_v53  ;;  %v7003_v12 = vsel %vm7867_vm10, 0, %v7866_v37  ;;  %v17337_v55 = vld [vmem:[#allocation152_spill] sm:$0xff]  ;;  %v17343_v37 = vld [vmem:[#allocation133_spill] sm:$0xff] }
 0x675   : > { %v1883_v16 = vsel %vm1876_vm11, %v1879_v31, %v1882_v15  ;;  %vm1977_vm9 = vweird.f32 %v17331_v14  ;;  %vm1979_vm2 = vcmp.lt.s32.totalorder %v1978_v0, 2  ;;  %vm17336_vm4 = vcmp.lt.s32.totalorder %v15077_v22, 0  ;;  %v17355_v14 = vld [vmem:[#allocation159_spill] sm:$0xff] }
 0x676   : > { %7977 = vmatmul.mubr.bf16.gmra.mrb[8].mxu1 %v7159_v58  ;;  %v7120_v33 = vsel %vm17336_vm4, %v7119_v59, %v7118_v42  ;;  %v7004_v3 = vsub.s32 32, %v7003_v12  ;;  %v7008_v4 = vsub.s32 4294967266, %v7003_v12  ;;  %vm1980_vm6 = vcmp.eq.s32.totalorder %v1978_v0, 0 }
 0x677   : > { %v7123_v50 = vsel %vm15331_vm14, %v15077_v22, %v7120_v33  ;;  %v7005_v47 = vshll.u32 %v15313_v60, %v7003_v12  ;;  %v1884_v53 = vsel %vm1874_vm0, nan, %v1883_v16  ;;  %v1981_v54 = vxor.u32 2147483648, %v17337_v55  ;;  %v17349_v16 = vld [vmem:[#allocation162_spill] sm:$0xff] }
 0x678   : > { %8548 = vcosq.f32 %v7123_v50  ;;  %v7006_v17 = vshrl.u32 %v15298_v13, %v7004_v3  ;;  %v7009_v21 = vadd.s32 127, %v7008_v4  ;;  %v1984_v42 = vxor.u32 2147483648, %v17338_v35 }
 0x679   : > { %8550 = vsinq.f32 %v7123_v50  ;;  %v1982_v51 = vsel %vm1980_vm6, %v17338_v35, %v1981_v54  ;;  %vm1983_vm1 = vcmp.eq.s32.totalorder %v1978_v0, 2  ;;  %v5164_v28 = vsub.s32 4, %v17339_v8  ;;  %v17347_v0 = vld [vmem:[#allocation156_spill] sm:$0xff] }
 0x67a   : > { %v7007_v46 = vor.u32 %v7006_v17, %v7005_v47  ;;  %v7010_v24 = vshll.u32 %v7009_v21, 23  ;;  %v1985_v60 = vsel %vm1983_vm1, %v1984_v42, %v17337_v55  ;;  %vm5170_vm7 = vweird.f32 %v17340_v9  ;;  %v17350_v47 = vld [vmem:[#allocation121_spill] sm:$0xff]  ;;  %v17352_v17 = vld [vmem:[#allocation154_spill] sm:$0xff]  ;;  %v17354_v35 = vld [vmem:[#allocation160_spill] sm:$0xff] }
 0x67b   : > { %vm16533_vm0 = vcmp.lt.s32.totalorder %v15085_v29, 0  ;;  %v1986_v6 = vsel %vm1979_vm2, %v1982_v51, %v1985_v60  ;;  %vm17341_vm11 = vcmp.lt.s32.totalorder %v17340_v9, 0  ;;  %v5174_v52 = vxor.u32 2147483648, %v17342_v30 }
 0x67c   : > { %v5165_v13 = vsel %vm17341_vm11, %v5164_v28, %v17339_v8  ;;  %v5267_v18 = vsub.s32 4, %v17343_v37  ;;  %v17344_v58 = vand.u32 2147483647, %v15085_v29  ;;  %v7011_v31 = vor.u32 4788187, %v7010_v24  ;;  %v17356_v24 = vld [vmem:[#allocation146_spill] sm:$0xff] }
 0x67d   : > { %v1987_v15 = vsel %vm1977_vm9, nan, %v1986_v6  ;;  %vm17348_vm2 = vnez %v17347_v0  ;;  %v5177_v33 = vxor.u32 2147483648, %v17349_v16  ;;  %v7014_v3 = vcvt.s32.f32 %v7007_v46 }
 0x67e   : > { %vm15375_vm10 = vcmp.le.f32.partialorder %v17344_v58, 0.7853982  ;;  %v5167_v12 = vsel %vm17348_vm2, 0, %v5165_v13  ;;  %v7144_v4 = vpack.c.bf16 %v1987_v15, %v1884_v53  ;;  %vm17351_vm4 = vcmp.lt.s32.totalorder %v17350_v47, 0 }
 0x67f   : > { %v5171_v50 = vand.u32 3, %v5167_v12  ;;  %v5268_v55 = vsel %vm17351_vm4, %v5267_v18, %v17343_v37  ;;  %v7012_v54 = vand.u32 2147483647, %v7011_v31  ;;  %vm17353_vm6 = vnez %v17352_v17  ;;  %v17359_v12 = vld [vmem:[#allocation178_spill] sm:$0xff] }
 0x680   : > { %v5270_v21 = vsel %vm17353_vm6, 0, %v5268_v55  ;;  %v5277_v42 = vxor.u32 2147483648, %v17354_v35  ;;  %v5280_v51 = vxor.u32 2147483648, %v17355_v14  ;;  %7948 = vmatprep.mubr.bf16.mxu0 %v7144_v4  ;;  %v2074_v60 = vsub.s32 4, %v17356_v24 }
 0x681   : > { %vm5172_vm9 = vcmp.lt.s32.totalorder %v5171_v50, 2  ;;  %vm5173_vm1 = vcmp.eq.s32.totalorder %v5171_v50, 0  ;;  %vm5176_vm11 = vcmp.eq.s32.totalorder %v5171_v50, 2  ;;  %v5274_v8 = vand.u32 3, %v5270_v21  ;;  %v17362_v50 = vld [vmem:[#allocation177_spill] sm:$0xff]  ;;  %v17363_v21 = vld [vmem:[#allocation142_spill] sm:$0xff] }
 0x682   : > { %v7015_v28 = vmul.f32 %v7014_v3, %v7012_v54  ;;  %v5175_v53 = vsel %vm5173_vm1, %v17349_v16, %v5174_v52  ;;  %v5178_v46 = vsel %vm5176_vm11, %v5177_v33, %v17342_v30  ;;  %v15394_v13 = vpop.eup %8548  ;;  %vm5273_vm1 = vweird.f32 %v17350_v47  ;;  %v17357_v52 = vld [vmem:[#allocation134_spill] sm:$0xff]  ;;  %v17360_v3 = vld [vmem:[#allocation169_spill] sm:$0xff] }
 0x683   : > { %v5179_v6 = vsel %vm5172_vm9, %v5175_v53, %v5178_v46  ;;  %vm5275_vm2 = vcmp.lt.s32.totalorder %v5274_v8, 2  ;;  %vm5276_vm4 = vcmp.eq.s32.totalorder %v5274_v8, 0  ;;  %vm5279_vm6 = vcmp.eq.s32.totalorder %v5274_v8, 2  ;;  %v15400_v15 = vpop.eup %8550  ;;  %v17367_v46 = vld [vmem:[#allocation161_spill] sm:$0xff] }
 0x684   : > { %v7016_v37 = vxor.u32 2147483648, %v7015_v28  ;;  %v5180_v18 = vsel %vm5170_vm7, nan, %v5179_v6  ;;  %v5278_v58 = vsel %vm5276_vm4, %v17355_v14, %v5277_v42  ;;  %v5281_v31 = vsel %vm5279_vm6, %v5280_v51, %v17354_v35  ;;  %v17364_v42 = vld [vmem:[#allocation131_spill] sm:$0xff]  ;;  %v17368_v6 = vld [vmem:[#allocation166_spill] sm:$0xff] }
 0x685   : > { %v5282_v30 = vsel %vm5275_vm2, %v5278_v58, %v5281_v31  ;;  %vm17358_vm9 = vcmp.lt.s32.totalorder %v17357_v52, 0  ;;  %v2084_v16 = vxor.u32 2147483648, %v17359_v12  ;;  %vm17361_vm7 = vnez %v17360_v3  ;;  %v17365_v14 = vld [vmem:[#allocation175_spill] sm:$0xff] }
 0x686   : > { %v2075_v0 = vsel %vm17358_vm9, %v2074_v60, %v17356_v24  ;;  %v7017_v33 = vsel %vm16533_vm0, %v7016_v37, %v7015_v28  ;;  %v5283_v9 = vsel %vm5273_vm1, nan, %v5282_v30  ;;  %v2087_v55 = vxor.u32 2147483648, %v17362_v50  ;;  %v17371_v31 = vld [vmem:[#allocation187_spill] sm:$0xff] }
 0x687   : > { %v2077_v4 = vsel %vm17361_vm7, 0, %v2075_v0  ;;  %v15415_v47 = vsel %vm15375_vm10, %v15085_v29, %v7017_v33  ;;  %v7160_v54 = vpack.c.bf16 %v5283_v9, %v5180_v18  ;;  %v2177_v35 = vsub.s32 4, %v17363_v21  ;;  %v17370_v18 = vld [vmem:[#allocation170_spill] sm:$0xff]  ;;  %v17374_v33 = vld [vmem:[#allocation185_spill] sm:$0xff]  ;;  %v17375_v3 = vld [vmem:[#allocation179_spill] sm:$0xff] }
 0x688   : > { %v2081_v17 = vand.u32 3, %v2077_v4  ;;  %8552 = vcosq.f32 %v15415_v47  ;;  %vm2080_vm11 = vweird.f32 %v17357_v52  ;;  %vm2183_vm2 = vweird.f32 %v17364_v42 }
 0x689   : > { %7980 = vmatprep.mubr.bf16.mxu1 %v7160_v54  ;;  %v2187_v51 = vxor.u32 2147483648, %v17365_v14  ;;  %vm17366_vm9 = vcmp.lt.s32.totalorder %v17364_v42, 0  ;;  %v5370_v24 = vsub.s32 4, %v17367_v46  ;;  %vm17369_vm7 = vnez %v17368_v6  ;;  %v17378_v54 = vld [vmem:[#allocation182_spill] sm:$0xff]  ;;  %v17384_v42 = vld [vmem:[#allocation167_spill] sm:$0xff] }
 0x68a   : > { %vm2082_vm4 = vcmp.lt.s32.totalorder %v2081_v17, 2  ;;  %vm2083_vm6 = vcmp.eq.s32.totalorder %v2081_v17, 0  ;;  %vm2086_vm1 = vcmp.eq.s32.totalorder %v2081_v17, 2  ;;  %v2178_v53 = vsel %vm17366_vm9, %v2177_v35, %v17363_v21  ;;  %v7938_v21 = vpop.f32.mrb[0].mxu0  ;;  %v7970_v35 = vpop.f32.mrb[0].mxu1 }
 0x68b   : > { %v2085_v8 = vsel %vm2083_vm6, %v17362_v50, %v2084_v16  ;;  %v2088_v28 = vsel %vm2086_vm1, %v2087_v55, %v17359_v12  ;;  %v2180_v37 = vsel %vm17369_vm7, 0, %v2178_v53  ;;  %v2190_v58 = vxor.u32 2147483648, %v17370_v18  ;;  %v17372_v16 = vld [vmem:[#allocation143_spill] sm:$0xff]  ;;  %7526 = vst [vmem:[%s15443_s9 + $0x10] sm:$0xff] %v7938_v21  ;;  %7558 = vst [vmem:[%s15443_s9 + $0x110] sm:$0xff] %v7970_v35  ;;  %v7396_v53 = vpop.f32.mrb[1].mxu1 }
 0x68c   : > { %v2089_v60 = vsel %vm2082_vm4, %v2085_v8, %v2088_v28  ;;  %v5380_v30 = vxor.u32 2147483648, %v17371_v31  ;;  %v2184_v0 = vand.u32 3, %v2180_v37  ;;  %vm17373_vm6 = vcmp.lt.s32.totalorder %v17372_v16, 0  ;;  %v17377_v50 = vld [vmem:[#allocation155_spill] sm:$0xff]  ;;  %v7268_v28 = vpop.f32.mrb[1].mxu0  ;;  %v17381_v37 = vld [vmem:[#allocation180_spill] sm:$0xff] }
 0x68d   : > { %v2090_v52 = vsel %vm2080_vm11, nan, %v2089_v60  ;;  %v5371_v12 = vsel %vm17373_vm6, %v5370_v24, %v17367_v46  ;;  %v5383_v9 = vxor.u32 2147483648, %v17374_v33  ;;  %vm17376_vm1 = vnez %v17375_v3  ;;  %v17379_v60 = vld [vmem:[#allocation140_spill] sm:$0xff]  ;;  %7524 = vst [vmem:[%s15443_s9] sm:$0xff] %v7268_v28  ;;  %v7939_v3 = vpop.f32.mrb[2].mxu0  ;;  %7556 = vst [vmem:[%s15443_s9 + $0x100] sm:$0xff] %v7396_v53 }
 0x68e   : > { %v5373_v4 = vsel %vm17376_vm1, 0, %v5371_v12  ;;  %v5473_v55 = vsub.s32 4, %v17377_v50  ;;  %v5483_v17 = vxor.u32 2147483648, %v17378_v54  ;;  %vm2185_vm9 = vcmp.lt.s32.totalorder %v2184_v0, 2  ;;  %7527 = vst [vmem:[%s15443_s9 + $0x18] sm:$0xff] %v7939_v3 }
 0x68f   : > { %vm2186_vm11 = vcmp.eq.s32.totalorder %v2184_v0, 0  ;;  %vm2189_vm7 = vcmp.eq.s32.totalorder %v2184_v0, 2  ;;  %v5377_v8 = vand.u32 3, %v5373_v4  ;;  %vm17380_vm6 = vcmp.lt.s32.totalorder %v17379_v60, 0  ;;  %v7971_v4 = vpop.f32.mrb[2].mxu1 }
 0x690   : > { %v2188_v46 = vsel %vm2186_vm11, %v17370_v18, %v2187_v51  ;;  %v2191_v24 = vsel %vm2189_vm7, %v2190_v58, %v17365_v14  ;;  %v5474_v6 = vsel %vm17380_vm6, %v5473_v55, %v17377_v50  ;;  %v5486_v12 = vxor.u32 2147483648, %v17381_v37  ;;  %v7271_v14 = vpop.f32.mrb[3].mxu0  ;;  %7559 = vst [vmem:[%s15443_s9 + $0x118] sm:$0xff] %v7971_v4  ;;  %v7399_v51 = vpop.f32.mrb[3].mxu1  ;;  %v17382_v55 = vld [vmem:[#allocation173_spill] sm:$0xff] }
 0x691   : > { %v2192_v21 = vsel %vm2185_vm9, %v2188_v46, %v2191_v24  ;;  %vm5378_vm1 = vcmp.lt.s32.totalorder %v5377_v8, 2  ;;  %vm5379_vm0 = vcmp.eq.s32.totalorder %v5377_v8, 0  ;;  %vm5382_vm4 = vcmp.eq.s32.totalorder %v5377_v8, 2  ;;  %7525 = vst [vmem:[%s15443_s9 + $0x8] sm:$0xff] %v7271_v14  ;;  %7557 = vst [vmem:[%s15443_s9 + $0x108] sm:$0xff] %v7399_v51  ;;  %v7942_v35 = vpop.f32.mrb[4].mxu0 }
 0x692   : > { %v2193_v18 = vsel %vm2183_vm2, nan, %v2192_v21  ;;  %v5381_v58 = vsel %vm5379_vm0, %v17374_v33, %v5380_v30  ;;  %v5384_v50 = vsel %vm5382_vm4, %v5383_v9, %v17371_v31  ;;  %vm17383_vm11 = vnez %v17382_v55  ;;  %v15466_v28 = vpop.eup %8552  ;;  %7530 = vst [vmem:[%s15443_s9 + $0x30] sm:$0xff] %v7942_v35  ;;  %v7284_v30 = vpop.f32.mrb[5].mxu0  ;;  %v17386_v9 = vld [vmem:[#allocation194_spill] sm:$0xff]  ;;  %v17387_v8 = vld [vmem:[#allocation153_spill] sm:$0xff] }
 0x693   : > { %v5476_v0 = vsel %vm17383_vm11, 0, %v5474_v6  ;;  %v7145_v53 = vpack.c.bf16 %v2193_v18, %v2090_v52  ;;  %v5385_v46 = vsel %vm5378_vm1, %v5381_v58, %v5384_v50  ;;  %v2280_v3 = vsub.s32 4, %v17384_v42  ;;  %7528 = vst [vmem:[%s15443_s9 + $0x20] sm:$0xff] %v7284_v30  ;;  %v7943_v52 = vpop.f32.mrb[6].mxu0  ;;  %v17389_v14 = vld [vmem:[#allocation189_spill] sm:$0xff]  ;;  %v17391_v18 = vld [vmem:[#allocation164_spill] sm:$0xff] }
 0x694   : > { %v5480_v24 = vand.u32 3, %v5476_v0  ;;  %8554 = vsinq.f32 %v15415_v47  ;;  %vm17385_vm0 = vweird.f32 %v17372_v16  ;;  %v2290_v33 = vxor.u32 2147483648, %v12772_v7  ;;  %7531 = vst [vmem:[%s15443_s9 + $0x38] sm:$0xff] %v7943_v52  ;;  %v7287_v47 = vpop.f32.mrb[7].mxu0  ;;  %v17392_v0 = vld [vmem:[#allocation193_spill] sm:$0xff]  ;;  %v17397_v30 = vld [vmem:[#allocation186_spill] sm:$0xff] }
 0x695   : > { %v5386_v31 = vsel %vm17385_vm0, nan, %v5385_v46  ;;  %v2293_v6 = vxor.u32 2147483648, %v17386_v9  ;;  %7949 = vmatmul.mubr.bf16.gmra.mrb[12].mxu0 %v7145_v53  ;;  %vm17388_vm7 = vcmp.lt.s32.totalorder %v17387_v8, 0  ;;  %vm17390_vm6 = vnez %v17389_v14  ;;  %7529 = vst [vmem:[%s15443_s9 + $0x28] sm:$0xff] %v7287_v47  ;;  %v17393_v46 = vld [vmem:[#allocation151_spill] sm:$0xff] }
 0x696   : > { %vm5481_vm2 = vcmp.lt.s32.totalorder %v5480_v24, 2  ;;  %vm5482_vm4 = vcmp.eq.s32.totalorder %v5480_v24, 0  ;;  %vm5485_vm9 = vcmp.eq.s32.totalorder %v5480_v24, 2  ;;  %v2281_v4 = vsel %vm17388_vm7, %v2280_v3, %v17384_v42 }
 0x697   : > { %v5484_v16 = vsel %vm5482_vm4, %v17381_v37, %v5483_v17  ;;  %v5487_v21 = vsel %vm5485_vm9, %v5486_v12, %v17378_v54  ;;  %v2283_v51 = vsel %vm17390_vm6, 0, %v2281_v4  ;;  %v2383_v58 = vsub.s32 4, %v17391_v18  ;;  %v17395_v17 = vld [vmem:[#allocation192_spill] sm:$0xff]  ;;  %v17399_v4 = vld [vmem:[#allocation165_spill] sm:$0xff] }
 0x698   : > { %vm5479_vm1 = vweird.f32 %v17379_v60  ;;  %v5488_v50 = vsel %vm5481_vm2, %v5484_v16, %v5487_v21  ;;  %v2287_v55 = vand.u32 3, %v2283_v51  ;;  %v2393_v35 = vxor.u32 2147483648, %v17392_v0  ;;  %v17396_v54 = vld [vmem:[#allocation176_spill] sm:$0xff] }
 0x699   : > { %v5489_v53 = vsel %vm5479_vm1, nan, %v5488_v50  ;;  %vm17394_vm11 = vcmp.lt.s32.totalorder %v17393_v46, 0  ;;  %v2396_v37 = vxor.u32 2147483648, %v17395_v17  ;;  %v5576_v12 = vsub.s32 4, %v17396_v54 }
 0x69a   : > { %v2384_v24 = vsel %vm17394_vm11, %v2383_v58, %v17391_v18  ;;  %v7161_v42 = vpack.c.bf16 %v5489_v53, %v5386_v31  ;;  %vm2288_vm0 = vcmp.lt.s32.totalorder %v2287_v55, 2  ;;  %vm2289_vm4 = vcmp.eq.s32.totalorder %v2287_v55, 0  ;;  %v17401_v31 = vld [vmem:[#allocation198_spill] sm:$0xff]  ;;  %v17405_v58 = vld [vmem:[#allocation171_spill] sm:$0xff] }
 0x69b   : > { %vm2292_vm9 = vcmp.eq.s32.totalorder %v2287_v55, 2  ;;  %v2291_v3 = vsel %vm2289_vm4, %v17386_v9, %v2290_v33  ;;  %vm17398_vm2 = vnez %v17397_v30  ;;  %vm17400_vm7 = vcmp.lt.s32.totalorder %v17399_v4, 0  ;;  %v17403_v9 = vld [vmem:[#allocation208_spill] sm:$0xff]  ;;  %v17408_v30 = vld [vmem:[#allocation195_spill] sm:$0xff] }
 0x69c   : > { %v2294_v60 = vsel %vm2292_vm9, %v2293_v6, %v12772_v7  ;;  %v2386_v52 = vsel %vm17398_vm2, 0, %v2384_v24  ;;  %v5577_v47 = vsel %vm17400_vm7, %v5576_v12, %v17396_v54  ;;  %7981 = vmatmul.mubr.bf16.gmra.mrb[12].mxu1 %v7161_v42  ;;  %vm2286_vm6 = vweird.f32 %v17387_v8  ;;  %v17404_v6 = vld [vmem:[#allocation203_spill] sm:$0xff]  ;;  %v17406_v12 = vld [vmem:[#allocation49_spill] sm:$0xff] }
 0x69d   : > { %v2295_v16 = vsel %vm2288_vm0, %v2291_v3, %v2294_v60  ;;  %v2390_v21 = vand.u32 3, %v2386_v52  ;;  %vm17402_vm1 = vnez %v17401_v31  ;;  %vm2389_vm11 = vweird.f32 %v17393_v46  ;;  %v17410_v52 = vld [vmem:[#allocation202_spill] sm:$0xff]  ;;  %v17412_v31 = vld [vmem:[#allocation188_spill] sm:$0xff] }
 0x69e   : > { %v5579_v14 = vsel %vm17402_vm1, 0, %v5577_v47  ;;  %v5586_v7 = vxor.u32 2147483648, %v17403_v9  ;;  %v5589_v51 = vxor.u32 2147483648, %v17404_v6  ;;  %v2296_v18 = vsel %vm2286_vm6, nan, %v2295_v16  ;;  %v15508_v55 = vpop.eup %8554  ;;  %v17411_v16 = vld [vmem:[#allocation201_spill] sm:$0xff] }
 0x69f   : > { %v5583_v33 = vand.u32 3, %v5579_v14  ;;  %vm2392_vm4 = vcmp.eq.s32.totalorder %v2390_v21, 0  ;;  %vm2395_vm9 = vcmp.eq.s32.totalorder %v2390_v21, 2  ;;  %v5679_v50 = vsub.s32 4, %v17405_v58 }
 0x6a0   : > { %vm2391_vm2 = vcmp.lt.s32.totalorder %v2390_v21, 2  ;;  %v2394_v8 = vsel %vm2392_vm4, %v17395_v17, %v2393_v35  ;;  %v2397_v53 = vsel %vm2395_vm9, %v2396_v37, %v17392_v0  ;;  %vm17407_vm1 = vcmp.lt.s32.totalorder %v17406_v12, 0 }
 0x6a1   : > { %vm5585_vm0 = vcmp.eq.s32.totalorder %v5583_v33, 0  ;;  %v2398_v24 = vsel %vm2391_vm2, %v2394_v8, %v2397_v53  ;;  %vm5588_vm7 = vcmp.eq.s32.totalorder %v5583_v33, 2  ;;  %v5680_v42 = vsel %vm17407_vm1, %v5679_v50, %v17405_v58  ;;  %v17417_v8 = vld [vmem:[#allocation215_spill] sm:$0xff] }
 0x6a2   : > { %v5587_v54 = vsel %vm5585_vm0, %v17404_v6, %v5586_v7  ;;  %v2399_v3 = vsel %vm2389_vm11, nan, %v2398_v24  ;;  %vm5584_vm6 = vcmp.lt.s32.totalorder %v5583_v33, 2  ;;  %v5590_v60 = vsel %vm5588_vm7, %v5589_v51, %v17403_v9  ;;  %v17413_v7 = vld [vmem:[#allocation172_spill] sm:$0xff]  ;;  %v17418_v24 = vld [vmem:[#allocation183_spill] sm:$0xff] }
 0x6a3   : > { %vm17409_vm14 = vnez %v17408_v30  ;;  %v7146_v17 = vpack.c.bf16 %v2399_v3, %v2296_v18  ;;  %v5591_v0 = vsel %vm5584_vm6, %v5587_v54, %v5590_v60  ;;  %v5689_v47 = vxor.u32 2147483648, %v17410_v52  ;;  %v17419_v60 = vld [vmem:[#allocation214_spill] sm:$0xff] }
 0x6a4   : > { %v5682_v35 = vsel %vm17409_vm14, 0, %v5680_v42  ;;  %vm5582_vm4 = vweird.f32 %v17399_v4  ;;  %vm5685_vm9 = vweird.f32 %v17406_v12  ;;  %v5692_v21 = vxor.u32 2147483648, %v17411_v16  ;;  %v17415_v4 = vld [vmem:[#allocation216_spill] sm:$0xff] }
 0x6a5   : > { %v5686_v37 = vand.u32 3, %v5682_v35  ;;  %v2486_v46 = vsub.s32 4, %v17412_v31  ;;  %7952 = vmatprep.mubr.bf16.mxu0 %v7146_v17  ;;  %v5592_v14 = vsel %vm5582_vm4, nan, %v5591_v0  ;;  %vm17414_vm14 = vcmp.lt.s32.totalorder %v17413_v7, 0  ;;  %v17420_v17 = vld [vmem:[#allocation168_spill] sm:$0xff] }
 0x6a6   : > { %v2496_v51 = vxor.u32 2147483648, %v17415_v4  ;;  %v2499_v53 = vxor.u32 2147483648, %v17417_v8  ;;  %v2589_v54 = vsub.s32 4, %v17418_v24  ;;  %vm2492_vm7 = vweird.f32 %v17413_v7 }
 0x6a7   : > { %vm5687_vm11 = vcmp.lt.s32.totalorder %v5686_v37, 2  ;;  %vm5688_vm2 = vcmp.eq.s32.totalorder %v5686_v37, 0  ;;  %vm5691_vm0 = vcmp.eq.s32.totalorder %v5686_v37, 2  ;;  %v2487_v6 = vsel %vm17414_vm14, %v2486_v46, %v17412_v31  ;;  %v17422_v37 = vld [vmem:[#allocation211_spill] sm:$0xff] }
 0x6a8   : > { %v5690_v33 = vsel %vm5688_vm2, %v17411_v16, %v5689_v47  ;;  %v5693_v9 = vsel %vm5691_vm0, %v5692_v21, %v17410_v52  ;;  %v2489_v50 = vsel %vm12942_vm12, 0, %v2487_v6  ;;  %v2599_v30 = vxor.u32 2147483648, %v17419_v60  ;;  %v17423_v47 = vld [vmem:[#allocation196_spill] sm:$0xff]  ;;  %v17424_v21 = vld [vmem:[#allocation205_spill] sm:$0xff] }
 0x6a9   : > { %v5694_v18 = vsel %vm5687_vm11, %v5690_v33, %v5693_v9  ;;  %v2493_v3 = vand.u32 3, %v2489_v50  ;;  %vm17421_vm1 = vcmp.lt.s32.totalorder %v17420_v17, 0  ;;  %v2602_v52 = vxor.u32 2147483648, %v17422_v37  ;;  %v17426_v33 = vld [vmem:[#allocation184_spill] sm:$0xff] }
 0x6aa   : > { %v5695_v42 = vsel %vm5685_vm9, nan, %v5694_v18  ;;  %v2590_v0 = vsel %vm17421_vm1, %v2589_v54, %v17418_v24  ;;  %v5782_v16 = vsub.s32 4, %v17423_v47  ;;  %vm17425_vm11 = vnez %v17424_v21  ;;  %v17428_v18 = vld [vmem:[#allocation212_spill] sm:$0xff]  ;;  %v17431_v54 = vld [vmem:[#allocation219_spill] sm:$0xff]  ;;  %v17433_v21 = vld [vmem:[#allocation10_spill] sm:$0xff] }
 0x6ab   : > { %v7162_v35 = vpack.c.bf16 %v5695_v42, %v5592_v14  ;;  %vm2494_vm12 = vcmp.lt.s32.totalorder %v2493_v3, 2  ;;  %vm2495_vm6 = vcmp.eq.s32.totalorder %v2493_v3, 0  ;;  %vm2498_vm4 = vcmp.eq.s32.totalorder %v2493_v3, 2  ;;  %v17430_v50 = vld [vmem:[#allocation220_spill] sm:$0xff]  ;;  %v7974_v3 = vpop.f32.mrb[4].mxu1 }
 0x6ac   : > { %v2592_v12 = vsel %vm17425_vm11, 0, %v2590_v0  ;;  %v2497_v31 = vsel %vm2495_vm6, %v17417_v8, %v2496_v51  ;;  %v2500_v46 = vsel %vm2498_vm4, %v2499_v53, %v17415_v4  ;;  %vm17427_vm9 = vcmp.lt.s32.totalorder %v17426_v33, 0  ;;  %7562 = vst [vmem:[%s15443_s9 + $0x130] sm:$0xff] %v7974_v3  ;;  %v7412_v4 = vpop.f32.mrb[5].mxu1  ;;  %v17432_v0 = vld [vmem:[#allocation191_spill] sm:$0xff]  ;;  %v17439_v3 = vld [vmem:[#allocation206_spill] sm:$0xff] }
 0x6ad   : > { %7984 = vmatprep.mubr.bf16.mxu1 %v7162_v35  ;;  %v2596_v14 = vand.u32 3, %v2592_v12  ;;  %v5783_v9 = vsel %vm17427_vm9, %v5782_v16, %v17423_v47  ;;  %v2501_v6 = vsel %vm2494_vm12, %v2497_v31, %v2500_v46  ;;  %vm17429_vm2 = vnez %v17428_v18  ;;  %7560 = vst [vmem:[%s15443_s9 + $0x120] sm:$0xff] %v7412_v4  ;;  %v7975_v16 = vpop.f32.mrb[6].mxu1  ;;  %v17438_v18 = vld [vmem:[#allocation217_spill] sm:$0xff] }
 0x6ae   : > { %v5785_v58 = vsel %vm17429_vm2, 0, %v5783_v9  ;;  %v5792_v24 = vxor.u32 2147483648, %v17430_v50  ;;  %v5795_v42 = vxor.u32 2147483648, %v17431_v54  ;;  %v2502_v51 = vsel %vm2492_vm7, nan, %v2501_v6  ;;  %7563 = vst [vmem:[%s15443_s9 + $0x138] sm:$0xff] %v7975_v16  ;;  %v7415_v31 = vpop.f32.mrb[7].mxu1 }
 0x6af   : > { %vm2597_vm0 = vcmp.lt.s32.totalorder %v2596_v14, 2  ;;  %vm2598_vm14 = vcmp.eq.s32.totalorder %v2596_v14, 0  ;;  %vm2601_vm1 = vcmp.eq.s32.totalorder %v2596_v14, 2  ;;  %v5789_v35 = vand.u32 3, %v5785_v58  ;;  %7561 = vst [vmem:[%s15443_s9 + $0x128] sm:$0xff] %v7415_v31  ;;  %v17436_v9 = vld [vmem:[#allocation210_spill] sm:$0xff] }
 0x6b0   : > { %v2600_v8 = vsel %vm2598_vm14, %v17422_v37, %v2599_v30  ;;  %v2603_v53 = vsel %vm2601_vm1, %v2602_v52, %v17419_v60  ;;  %v5885_v47 = vsub.s32 4, %v17432_v0  ;;  %vm2595_vm12 = vweird.f32 %v17420_v17  ;;  %v17434_v52 = vld [vmem:[#allocation181_spill] sm:$0xff] }
 0x6b1   : > { %v2604_v7 = vsel %vm2597_vm0, %v2600_v8, %v2603_v53  ;;  %vm5788_vm7 = vweird.f32 %v17426_v33  ;;  %v5895_v12 = vxor.u32 2147483648, %v17433_v21  ;;  %vm5790_vm6 = vcmp.lt.s32.totalorder %v5789_v35, 2  ;;  %v17442_v53 = vld [vmem:[#allocation200_spill] sm:$0xff]  ;;  %v17444_v33 = vld [vmem:[#allocation35_spill] sm:$0xff] }
 0x6b2   : > { %v2605_v46 = vsel %vm2595_vm12, nan, %v2604_v7  ;;  %vm5791_vm4 = vcmp.eq.s32.totalorder %v5789_v35, 0  ;;  %vm5794_vm11 = vcmp.eq.s32.totalorder %v5789_v35, 2  ;;  %vm17435_vm9 = vcmp.lt.s32.totalorder %v17434_v52, 0 }
 0x6b3   : > { %v7147_v60 = vpack.c.bf16 %v2605_v46, %v2502_v51  ;;  %v5793_v30 = vsel %vm5791_vm4, %v17431_v54, %v5792_v24  ;;  %v5796_v37 = vsel %vm5794_vm11, %v5795_v42, %v17430_v50  ;;  %v5886_v17 = vsel %vm17435_vm9, %v5885_v47, %v17432_v0  ;;  %v17440_v54 = vld [vmem:[#allocation197_spill] sm:$0xff]  ;;  %v17443_v0 = vld [vmem:[#allocation36_spill] sm:$0xff] }
 0x6b4   : > { %v5797_v14 = vsel %vm5790_vm6, %v5793_v30, %v5796_v37  ;;  %vm17437_vm2 = vnez %v17436_v9  ;;  %v5898_v58 = vxor.u32 2147483648, %v17438_v18  ;;  %v2692_v4 = vsub.s32 4, %v17439_v3  ;;  %v17450_v9 = vld [vmem:[#allocation19_spill] sm:$0xff] }
 0x6b5   : > { %v5888_v6 = vsel %vm17437_vm2, 0, %v5886_v17  ;;  %7953 = vmatmul.mubr.bf16.gmra.mrb[16].mxu0 %v7147_v60  ;;  %v5798_v51 = vsel %vm5788_vm7, nan, %v5797_v14  ;;  %vm5891_vm0 = vweird.f32 %v17434_v52  ;;  %v2702_v50 = vxor.u32 2147483648, %v13787_v41  ;;  %v17446_v60 = vld [vmem:[#allocation190_spill] sm:$0xff] }
 0x6b6   : > { %v5892_v24 = vand.u32 3, %v5888_v6  ;;  %vm17441_vm14 = vcmp.lt.s32.totalorder %v17440_v54, 0  ;;  %v2705_v8 = vxor.u32 2147483648, %v13781_v49  ;;  %v2795_v35 = vsub.s32 4, %v17442_v53  ;;  %v17448_v17 = vld [vmem:[#allocation218_spill] sm:$0xff] }
 0x6b7   : > { %v2693_v42 = vsel %vm17441_vm14, %v2692_v4, %v17439_v3  ;;  %v2805_v47 = vxor.u32 2147483648, %v17443_v0  ;;  %vm17445_vm7 = vnez %v17444_v33  ;;  %vm17447_vm4 = vcmp.lt.s32.totalorder %v17446_v60, 0  ;;  %v17451_v3 = vld [vmem:[#allocation213_spill] sm:$0xff] }
 0x6b8   : > { %vm5893_vm1 = vcmp.lt.s32.totalorder %v5892_v24, 2  ;;  %vm5894_vm12 = vcmp.eq.s32.totalorder %v5892_v24, 0  ;;  %vm5897_vm6 = vcmp.eq.s32.totalorder %v5892_v24, 2  ;;  %v2695_v16 = vsel %vm17445_vm7, 0, %v2693_v42 }
 0x6b9   : > { %v5896_v7 = vsel %vm5894_vm12, %v17438_v18, %v5895_v12  ;;  %v5899_v31 = vsel %vm5897_vm6, %v5898_v58, %v17433_v21  ;;  %v2699_v46 = vand.u32 3, %v2695_v16  ;;  %v2796_v30 = vsel %vm17447_vm4, %v2795_v35, %v17442_v53  ;;  %v17454_v16 = vld [vmem:[#allocation207_spill] sm:$0xff] }
 0x6ba   : > { %v5900_v37 = vsel %vm5893_vm1, %v5896_v7, %v5899_v31  ;;  %vm17449_vm11 = vnez %v17448_v17  ;;  %v2808_v6 = vxor.u32 2147483648, %v17450_v9  ;;  %v5988_v4 = vsub.s32 4, %v17451_v3 }
 0x6bb   : > { %v2798_v14 = vsel %vm17449_vm11, 0, %v2796_v30  ;;  %v5901_v24 = vsel %vm5891_vm0, nan, %v5900_v37  ;;  %vm2700_vm9 = vcmp.lt.s32.totalorder %v2699_v46, 2  ;;  %vm2701_vm2 = vcmp.eq.s32.totalorder %v2699_v46, 0  ;;  %v17456_v37 = vld [vmem:[#allocation21_spill] sm:$0xff] }
 0x6bc   : > { %vm2704_vm14 = vcmp.eq.s32.totalorder %v2699_v46, 2  ;;  %v7163_v21 = vpack.c.bf16 %v5901_v24, %v5798_v51  ;;  %v2703_v12 = vsel %vm2701_vm2, %v13781_v49, %v2702_v50  ;;  %v2802_v58 = vand.u32 3, %v2798_v14  ;;  %v17453_v50 = vld [vmem:[#allocation15_spill] sm:$0xff]  ;;  %v17455_v46 = vld [vmem:[#allocation16_spill] sm:$0xff] }
 0x6bd   : > { %v2706_v18 = vsel %vm2704_vm14, %v2705_v8, %v13787_v41  ;;  %vm2698_vm1 = vweird.f32 %v17440_v54  ;;  %vm17452_vm12 = vcmp.lt.s32.totalorder %v12819_v10, 0  ;;  %v5998_v35 = vxor.u32 2147483648, %v13830_v26  ;;  %v17461_v24 = vld [vmem:[#allocation20_spill] sm:$0xff] }
 0x6be   : > { %v2707_v42 = vsel %vm2700_vm9, %v2703_v12, %v2706_v18  ;;  %v5989_v53 = vsel %vm17452_vm12, %v5988_v4, %v17451_v3  ;;  %7985 = vmatmul.mubr.bf16.gmra.mrb[16].mxu1 %v7163_v21  ;;  %vm2803_vm0 = vcmp.lt.s32.totalorder %v2802_v58, 2  ;;  %vm2804_vm6 = vcmp.eq.s32.totalorder %v2802_v58, 0  ;;  %v17470_v3 = vld [vmem:[#allocation28_spill] sm:$0xff] }
 0x6bf   : > { %v2708_v52 = vsel %vm2698_vm1, nan, %v2707_v42  ;;  %vm2807_vm7 = vcmp.eq.s32.totalorder %v2802_v58, 2  ;;  %v2806_v51 = vsel %vm2804_vm6, %v17450_v9, %v2805_v47  ;;  %v5991_v41 = vsel %vm13725_vm3, 0, %v5989_v53  ;;  %v17462_v53 = vld [vmem:[#allocation136_spill] sm:$0xff] }
 0x6c0   : > { %v2809_v49 = vsel %vm2807_vm7, %v2808_v6, %v17443_v0  ;;  %v6001_v54 = vxor.u32 2147483648, %v17453_v50  ;;  %vm2801_vm4 = vweird.f32 %v17446_v60  ;;  %v5995_v33 = vand.u32 3, %v5991_v41  ;;  %v17457_v60 = vld [vmem:[#allocation199_spill] sm:$0xff] }
 0x6c1   : > { %v2810_v8 = vsel %vm2803_vm0, %v2806_v51, %v2809_v49  ;;  %v6091_v7 = vsub.s32 4, %v17454_v16  ;;  %vm5994_vm11 = vweird.f32 %v12819_v10  ;;  %v6101_v30 = vxor.u32 2147483648, %v17455_v46  ;;  %v17464_v49 = vld [vmem:[#allocation24_spill] sm:$0xff] }
 0x6c2   : > { %v2811_v31 = vsel %vm2801_vm4, nan, %v2810_v8  ;;  %v2898_v47 = vsub.s32 4, %v17456_v37  ;;  %vm5996_vm9 = vcmp.lt.s32.totalorder %v5995_v33, 2  ;;  %vm5997_vm2 = vcmp.eq.s32.totalorder %v5995_v33, 0 }
 0x6c3   : > { %v7148_v17 = vpack.c.bf16 %v2811_v31, %v2708_v52  ;;  %vm6000_vm14 = vcmp.eq.s32.totalorder %v5995_v33, 2  ;;  %v5999_v11 = vsel %vm5997_vm2, %v17453_v50, %v5998_v35  ;;  %vm17458_vm3 = vcmp.lt.s32.totalorder %v17457_v60, 0  ;;  %v17463_v52 = vld [vmem:[#allocation18_spill] sm:$0xff]  ;;  %v17465_v33 = vld [vmem:[#allocation204_spill] sm:$0xff] }
 0x6c4   : > { %v6002_v0 = vsel %vm6000_vm14, %v6001_v54, %v13830_v26  ;;  %v6092_v14 = vsel %vm17458_vm3, %v6091_v7, %v17454_v16  ;;  %vm17459_vm1 = vcmp.lt.s32.totalorder %v13021_v43, 0  ;;  %v6104_v21 = vxor.u32 2147483648, %v17461_v24 }
 0x6c5   : > { %v2899_v9 = vsel %vm17459_vm1, %v2898_v47, %v17456_v37  ;;  %7956 = vmatprep.mubr.bf16.mxu0 %v7148_v17  ;;  %v6003_v6 = vsel %vm5996_vm9, %v5999_v11, %v6002_v0  ;;  %v6094_v4 = vsel %vm13708_vm5, 0, %v6092_v14  ;;  %vm6097_vm12 = vweird.f32 %v17457_v60  ;;  %v17468_v47 = vld [vmem:[#allocation33_spill] sm:$0xff]  ;;  %v17469_v0 = vld [vmem:[#allocation46_spill] sm:$0xff] }
 0x6c6   : > { %v2901_v12 = vsel %vm13903_vm15, 0, %v2899_v9  ;;  %v6098_v26 = vand.u32 3, %v6094_v4  ;;  %v2908_v58 = vxor.u32 2147483648, %v14008_v23  ;;  %v6004_v42 = vsel %vm5994_vm11, nan, %v6003_v6  ;;  %v17471_v4 = vld [vmem:[#allocation13_spill] sm:$0xff] }
 0x6c7   : > { %v2905_v18 = vand.u32 3, %v2901_v12  ;;  %v2911_v35 = vxor.u32 2147483648, %v17462_v53  ;;  %v3001_v51 = vsub.s32 4, %v17463_v52  ;;  %v3011_v41 = vxor.u32 2147483648, %v17464_v49  ;;  %v17489_v12 = vld [vmem:[#allocation63_spill] sm:$0xff] }
 0x6c8   : > { %vm6099_vm5 = vcmp.lt.s32.totalorder %v6098_v26, 2  ;;  %vm6100_vm0 = vcmp.eq.s32.totalorder %v6098_v26, 0  ;;  %vm6103_vm6 = vcmp.eq.s32.totalorder %v6098_v26, 2  ;;  %vm17466_vm11 = vcmp.lt.s32.totalorder %v17465_v33, 0 }
 0x6c9   : > { %vm2906_vm7 = vcmp.lt.s32.totalorder %v2905_v18, 2  ;;  %v6102_v27 = vsel %vm6100_vm0, %v17461_v24, %v6101_v30  ;;  %v6105_v50 = vsel %vm6103_vm6, %v6104_v21, %v17455_v46  ;;  %vm2907_vm15 = vcmp.eq.s32.totalorder %v2905_v18, 0 }
 0x6ca   : > { %vm2910_vm4 = vcmp.eq.s32.totalorder %v2905_v18, 2  ;;  %v6106_v54 = vsel %vm6099_vm5, %v6102_v27, %v6105_v50  ;;  %v2909_v10 = vsel %vm2907_vm15, %v17462_v53, %v2908_v58  ;;  %v3002_v16 = vsel %vm17466_vm11, %v3001_v51, %v17463_v52  ;;  %v17474_v18 = vld [vmem:[#allocation25_spill] sm:$0xff] }
 0x6cb   : > { %v2912_v8 = vsel %vm2910_vm4, %v2911_v35, %v14008_v23  ;;  %v6107_v7 = vsel %vm6097_vm12, nan, %v6106_v54  ;;  %v3004_v30 = vsel %vm13764_vm13, 0, %v3002_v16  ;;  %v3014_v46 = vxor.u32 2147483648, %v17468_v47  ;;  %v17476_v35 = vld [vmem:[#allocation26_spill] sm:$0xff]  ;;  %v17478_v50 = vld [vmem:[#allocation17_spill] sm:$0xff] }
 0x6cc   : > { %v2913_v31 = vsel %vm2906_vm7, %v2909_v10, %v2912_v8  ;;  %v7164_v17 = vpack.c.bf16 %v6107_v7, %v6004_v42  ;;  %vm2904_vm9 = vweird.f32 %v13021_v43  ;;  %v3008_v11 = vand.u32 3, %v3004_v30  ;;  %v17479_v54 = vld [vmem:[#allocation62_spill] sm:$0xff] }
 0x6cd   : > { %v6194_v14 = vsub.s32 4, %v17469_v0  ;;  %v2914_v23 = vsel %vm2904_vm9, nan, %v2913_v31  ;;  %v6204_v9 = vxor.u32 2147483648, %v14195_v61  ;;  %v6207_v6 = vxor.u32 2147483648, %v14178_v39  ;;  %v17480_v31 = vld [vmem:[#allocation23_spill] sm:$0xff] }
 0x6ce   : > { %v6297_v60 = vsub.s32 4, %v17470_v3  ;;  %7988 = vmatprep.mubr.bf16.mxu1 %v7164_v17  ;;  %vm3009_vm2 = vcmp.lt.s32.totalorder %v3008_v11, 2  ;;  %vm3010_vm14 = vcmp.eq.s32.totalorder %v3008_v11, 0  ;;  %vm3013_vm3 = vcmp.eq.s32.totalorder %v3008_v11, 2  ;;  %v17481_v17 = vld [vmem:[#allocation48_spill] sm:$0xff] }
 0x6cf   : > { %vm17472_vm13 = vcmp.lt.s32.totalorder %v17471_v4, 0  ;;  %v3012_v43 = vsel %vm3010_vm14, %v17468_v47, %v3011_v41  ;;  %v3015_v21 = vsel %vm3013_vm3, %v3014_v46, %v17464_v49  ;;  %vm17475_vm1 = vcmp.lt.s32.totalorder %v17474_v18, 0 }
 0x6d0   : > { %v6195_v24 = vsel %vm17472_vm13, %v6194_v14, %v17469_v0  ;;  %v6298_v58 = vsel %vm17475_vm1, %v6297_v60, %v17470_v3  ;;  %vm3007_vm12 = vweird.f32 %v17465_v33  ;;  %v3016_v42 = vsel %vm3009_vm2, %v3012_v43, %v3015_v21  ;;  %v17484_v14 = vld [vmem:[#allocation7_spill] sm:$0xff]  ;;  %v17488_v43 = vld [vmem:[#allocation66_spill] sm:$0xff] }
 0x6d1   : > { %v6197_v26 = vsel %vm14115_vm8, 0, %v6195_v24  ;;  %vm17477_vm5 = vnez %v17476_v35  ;;  %v3017_v51 = vsel %vm3007_vm12, nan, %v3016_v42  ;;  %v6307_v41 = vxor.u32 2147483648, %v17478_v50  ;;  %v17492_v42 = vld [vmem:[#allocation8_spill] sm:$0xff] }
 0x6d2   : > { %v6201_v53 = vand.u32 3, %v6197_v26  ;;  %v6300_v52 = vsel %vm17477_vm5, 0, %v6298_v58  ;;  %v6310_v49 = vxor.u32 2147483648, %v17479_v54  ;;  %v7149_v10 = vpack.c.bf16 %v3017_v51, %v2914_v23  ;;  %v17493_v35 = vld [vmem:[#allocation80_spill] sm:$0xff] }
 0x6d3   : > { %v6304_v27 = vand.u32 3, %v6300_v52  ;;  %vm6200_vm8 = vweird.f32 %v17471_v4  ;;  %v3104_v37 = vsub.s32 4, %v17480_v31  ;;  %vm6303_vm11 = vweird.f32 %v17474_v18  ;;  %v17486_v4 = vld [vmem:[#allocation174_spill] sm:$0xff]  ;;  %v17491_v18 = vld [vmem:[#allocation44_spill] sm:$0xff] }
 0x6d4   : > { %vm6203_vm0 = vcmp.eq.s32.totalorder %v6201_v53, 0  ;;  %vm6206_vm6 = vcmp.eq.s32.totalorder %v6201_v53, 2  ;;  %vm6202_vm7 = vcmp.lt.s32.totalorder %v6201_v53, 2  ;;  %7957 = vmatmul.mubr.bf16.gmra.mrb[20].mxu0 %v7149_v10  ;;  %vm17482_vm2 = vcmp.lt.s32.totalorder %v17481_v17, 0 }
 0x6d5   : > { %v6205_v8 = vsel %vm6203_vm0, %v14178_v39, %v6204_v9  ;;  %v6208_v33 = vsel %vm6206_vm6, %v6207_v6, %v14195_v61  ;;  %vm6306_vm15 = vcmp.eq.s32.totalorder %v6304_v27, 0  ;;  %vm6309_vm4 = vcmp.eq.s32.totalorder %v6304_v27, 2  ;;  %v17483_v61 = vld [vmem:[#allocation30_spill] sm:$0xff] }
 0x6d6   : > { %v6209_v16 = vsel %vm6202_vm7, %v6205_v8, %v6208_v33  ;;  %v6308_v7 = vsel %vm6306_vm15, %v17479_v54, %v6307_v41  ;;  %vm6305_vm9 = vcmp.lt.s32.totalorder %v6304_v27, 2  ;;  %v6311_v47 = vsel %vm6309_vm4, %v6310_v49, %v17478_v50  ;;  %v17494_v41 = vld [vmem:[#allocation12_spill] sm:$0xff]  ;;  %v17496_v49 = vld [vmem:[#allocation39_spill] sm:$0xff] }
 0x6d7   : > { %v6210_v30 = vsel %vm6200_vm8, nan, %v6209_v16  ;;  %v6312_v46 = vsel %vm6305_vm9, %v6308_v7, %v6311_v47  ;;  %v3105_v39 = vsel %vm17482_vm2, %v3104_v37, %v17480_v31  ;;  %vm3110_vm14 = vweird.f32 %v17481_v17  ;;  %v17501_v17 = vld [vmem:[#allocation38_spill] sm:$0xff] }
 0x6d8   : > { %v3207_v11 = vsub.s32 4, %v17483_v61  ;;  %v6313_v0 = vsel %vm6303_vm11, nan, %v6312_v46  ;;  %vm17485_vm3 = vnez %v17484_v14  ;;  %v3114_v9 = vxor.u32 2147483648, %v14381_v32 }
 0x6d9   : > { %v3107_v23 = vsel %vm17485_vm3, 0, %v3105_v39  ;;  %v3117_v6 = vxor.u32 2147483648, %v14374_v48  ;;  %v7165_v3 = vpack.c.bf16 %v6313_v0, %v6210_v30  ;;  %vm17487_vm13 = vcmp.lt.s32.totalorder %v17486_v4, 0  ;;  %v17499_v30 = vld [vmem:[#allocation41_spill] sm:$0xff]  ;;  %v17500_v39 = vld [vmem:[#allocation67_spill] sm:$0xff] }
 0x6da   : > { %v3111_v60 = vand.u32 3, %v3107_v23  ;;  %v3208_v24 = vsel %vm17487_vm13, %v3207_v11, %v17483_v61  ;;  %v3217_v21 = vxor.u32 2147483648, %v17488_v43  ;;  %vm17490_vm1 = vnez %v17489_v12 }
 0x6db   : > { %v3210_v26 = vsel %vm17490_vm1, 0, %v3208_v24  ;;  %v3220_v58 = vxor.u32 2147483648, %v17491_v18  ;;  %v6400_v53 = vsub.s32 4, %v17492_v42  ;;  %v6410_v52 = vxor.u32 2147483648, %v17493_v35  ;;  %7989 = vmatmul.mubr.bf16.gmra.mrb[20].mxu1 %v7165_v3  ;;  %v17504_v3 = vld [vmem:[#allocation52_spill] sm:$0xff] }
 0x6dc   : > { %vm3112_vm12 = vcmp.lt.s32.totalorder %v3111_v60, 2  ;;  %vm3113_vm5 = vcmp.eq.s32.totalorder %v3111_v60, 0  ;;  %vm3116_vm8 = vcmp.eq.s32.totalorder %v3111_v60, 2  ;;  %v3214_v51 = vand.u32 3, %v3210_v26  ;;  %v17506_v24 = vld [vmem:[#allocation56_spill] sm:$0xff]  ;;  %v17509_v26 = vld [vmem:[#allocation43_spill] sm:$0xff] }
 0x6dd   : > { %v3115_v27 = vsel %vm3113_vm5, %v14374_v48, %v3114_v9  ;;  %v3118_v50 = vsel %vm3116_vm8, %v3117_v6, %v14381_v32  ;;  %vm17495_vm0 = vcmp.lt.s32.totalorder %v17494_v41, 0  ;;  %v6413_v10 = vxor.u32 2147483648, %v17496_v49  ;;  %v17497_v48 = vld [vmem:[#allocation34_spill] sm:$0xff]  ;;  %v17502_v9 = vld [vmem:[#allocation32_spill] sm:$0xff] }
 0x6de   : > { %v6401_v54 = vsel %vm17495_vm0, %v6400_v53, %v17492_v42  ;;  %v3119_v8 = vsel %vm3112_vm12, %v3115_v27, %v3118_v50  ;;  %vm3215_vm6 = vcmp.lt.s32.totalorder %v3214_v51, 2  ;;  %vm3216_vm7 = vcmp.eq.s32.totalorder %v3214_v51, 0  ;;  %v17511_v53 = vld [vmem:[#allocation88_spill] sm:$0xff] }
 0x6df   : > { %vm3219_vm15 = vcmp.eq.s32.totalorder %v3214_v51, 2  ;;  %v3120_v33 = vsel %vm3110_vm14, nan, %v3119_v8  ;;  %v3218_v16 = vsel %vm3216_vm7, %v17491_v18, %v3217_v21  ;;  %vm17498_vm4 = vnez %v17497_v48  ;;  %v17508_v21 = vld [vmem:[#allocation31_spill] sm:$0xff]  ;;  %v17513_v50 = vld [vmem:[#allocation60_spill] sm:$0xff]  ;;  %v17515_v48 = vld [vmem:[#allocation57_spill] sm:$0xff] }
 0x6e0   : > { %v3221_v7 = vsel %vm3219_vm15, %v3220_v58, %v17488_v43  ;;  %v6403_v32 = vsel %vm17498_vm4, 0, %v6401_v54  ;;  %vm3213_vm11 = vweird.f32 %v17486_v4  ;;  %v6503_v47 = vsub.s32 4, %v17499_v30  ;;  %v17512_v51 = vld [vmem:[#allocation71_spill] sm:$0xff] }
 0x6e1   : > { %v3222_v31 = vsel %vm3215_vm6, %v3218_v16, %v3221_v7  ;;  %v6407_v37 = vand.u32 3, %v6403_v32  ;;  %vm6406_vm9 = vweird.f32 %v17494_v41  ;;  %v6513_v61 = vxor.u32 2147483648, %v17500_v39 }
 0x6e2   : > { %v3223_v46 = vsel %vm3213_vm11, nan, %v3222_v31  ;;  %v3310_v11 = vsub.s32 4, %v17501_v17  ;;  %vm17503_vm13 = vcmp.lt.s32.totalorder %v17502_v9, 0  ;;  %vm17505_vm1 = vcmp.lt.s32.totalorder %v17504_v3, 0 }
 0x6e3   : > { %v7150_v0 = vpack.c.bf16 %v3223_v46, %v3120_v33  ;;  %vm6408_vm2 = vcmp.lt.s32.totalorder %v6407_v37, 2  ;;  %vm6409_vm14 = vcmp.eq.s32.totalorder %v6407_v37, 0  ;;  %vm6412_vm3 = vcmp.eq.s32.totalorder %v6407_v37, 2  ;;  %v17519_v46 = vld [vmem:[#allocation72_spill] sm:$0xff] }
 0x6e4   : > { %v6411_v14 = vsel %vm6409_vm14, %v17496_v49, %v6410_v52  ;;  %v6414_v23 = vsel %vm6412_vm3, %v6413_v10, %v17493_v35  ;;  %v6504_v6 = vsel %vm17503_vm13, %v6503_v47, %v17499_v30  ;;  %v3311_v60 = vsel %vm17505_vm1, %v3310_v11, %v17501_v17  ;;  %v17514_v49 = vld [vmem:[#allocation22_spill] sm:$0xff]  ;;  %v17517_v30 = vld [vmem:[#allocation11_spill] sm:$0xff]  ;;  %v17520_v11 = vld [vmem:[#allocation64_spill] sm:$0xff] }
 0x6e5   : > { %7960 = vmatprep.mubr.bf16.mxu0 %v7150_v0  ;;  %v6415_v4 = vsel %vm6408_vm2, %v6411_v14, %v6414_v23  ;;  %vm17507_vm12 = vnez %v17506_v24  ;;  %v6516_v12 = vxor.u32 2147483648, %v17508_v21  ;;  %vm17510_vm5 = vnez %v17509_v26  ;;  %v17521_v23 = vld [vmem:[#allocation83_spill] sm:$0xff]  ;;  %v17523_v24 = vld [vmem:[#allocation45_spill] sm:$0xff] }
 0x6e6   : > { %v6506_v43 = vsel %vm17507_vm12, 0, %v6504_v6  ;;  %v3313_v18 = vsel %vm17510_vm5, 0, %v3311_v60  ;;  %vm6509_vm8 = vweird.f32 %v17502_v9  ;;  %v3320_v35 = vxor.u32 2147483648, %v17511_v53  ;;  %v17522_v60 = vld [vmem:[#allocation37_spill] sm:$0xff]  ;;  %v17526_v26 = vld [vmem:[#allocation79_spill] sm:$0xff] }
 0x6e7   : > { %v6510_v58 = vand.u32 3, %v6506_v43  ;;  %v3317_v42 = vand.u32 3, %v3313_v18  ;;  %v6416_v52 = vsel %vm6406_vm9, nan, %v6415_v4  ;;  %v3323_v27 = vxor.u32 2147483648, %v17512_v51  ;;  %v17524_v43 = vld [vmem:[#allocation14_spill] sm:$0xff] }
 0x6e8   : > { %v3413_v54 = vsub.s32 4, %v17513_v50  ;;  %v3423_v10 = vxor.u32 2147483648, %v17514_v49  ;;  %vm17516_vm9 = vcmp.lt.s32.totalorder %v17515_v48, 0  ;;  %vm17518_vm2 = vnez %v17517_v30 }
 0x6e9   : > { %vm6511_vm0 = vcmp.lt.s32.totalorder %v6510_v58, 2  ;;  %vm6512_vm6 = vcmp.eq.s32.totalorder %v6510_v58, 0  ;;  %vm6515_vm7 = vcmp.eq.s32.totalorder %v6510_v58, 2  ;;  %vm3318_vm15 = vcmp.lt.s32.totalorder %v3317_v42, 2  ;;  %v17528_v58 = vld [vmem:[#allocation59_spill] sm:$0xff] }
 0x6ea   : > { %v6514_v8 = vsel %vm6512_vm6, %v17508_v21, %v6513_v61  ;;  %v6517_v33 = vsel %vm6515_vm7, %v6516_v12, %v17500_v39  ;;  %vm3319_vm4 = vcmp.eq.s32.totalorder %v3317_v42, 0  ;;  %vm3322_vm11 = vcmp.eq.s32.totalorder %v3317_v42, 2 }
 0x6eb   : > { %v6518_v16 = vsel %vm6511_vm0, %v6514_v8, %v6517_v33  ;;  %v3321_v41 = vsel %vm3319_vm4, %v17512_v51, %v3320_v35  ;;  %v3324_v7 = vsel %vm3322_vm11, %v3323_v27, %v17511_v53  ;;  %v3414_v32 = vsel %vm17516_vm9, %v3413_v54, %v17513_v50  ;;  %v17532_v54 = vld [vmem:[#allocation50_spill] sm:$0xff] }
 0x6ec   : > { %v6519_v31 = vsel %vm6509_vm8, nan, %v6518_v16  ;;  %v3325_v37 = vsel %vm3318_vm15, %v3321_v41, %v3324_v7  ;;  %v3416_v47 = vsel %vm17518_vm2, 0, %v3414_v32  ;;  %v3426_v39 = vxor.u32 2147483648, %v17519_v46  ;;  %v17533_v8 = vld [vmem:[#allocation86_spill] sm:$0xff] }
 0x6ed   : > { %v7166_v61 = vpack.c.bf16 %v6519_v31, %v6416_v52  ;;  %vm3316_vm14 = vweird.f32 %v17504_v3  ;;  %v3420_v17 = vand.u32 3, %v3416_v47  ;;  %v6606_v0 = vsub.s32 4, %v17520_v11  ;;  %v17530_v52 = vld [vmem:[#allocation69_spill] sm:$0xff]  ;;  %v17534_v32 = vld [vmem:[#allocation42_spill] sm:$0xff] }
 0x6ee   : > { %v3326_v14 = vsel %vm3316_vm14, nan, %v3325_v37  ;;  %v6616_v6 = vxor.u32 2147483648, %v17521_v23  ;;  %v6619_v4 = vxor.u32 2147483648, %v17522_v60  ;;  %v6709_v9 = vsub.s32 4, %v17523_v24 }
 0x6ef   : > { %7992 = vmatprep.mubr.bf16.mxu1 %v7166_v61  ;;  %vm3421_vm3 = vcmp.lt.s32.totalorder %v3420_v17, 2  ;;  %vm3422_vm13 = vcmp.eq.s32.totalorder %v3420_v17, 0  ;;  %vm3425_vm1 = vcmp.eq.s32.totalorder %v3420_v17, 2  ;;  %vm17525_vm12 = vcmp.lt.s32.totalorder %v17524_v43, 0  ;;  %v17537_v61 = vld [vmem:[#allocation58_spill] sm:$0xff] }
 0x6f0   : > { %v6607_v21 = vsel %vm17525_vm12, %v6606_v0, %v17520_v11  ;;  %v3424_v3 = vsel %vm3422_vm13, %v17519_v46, %v3423_v10  ;;  %v3427_v12 = vsel %vm3425_vm1, %v3426_v39, %v17514_v49  ;;  %vm17527_vm5 = vnez %v17526_v26  ;;  %v17535_v46 = vld [vmem:[#allocation65_spill] sm:$0xff] }
 0x6f1   : > { %v6609_v18 = vsel %vm17527_vm5, 0, %v6607_v21  ;;  %vm17529_vm8 = vcmp.lt.s32.totalorder %v17528_v58, 0  ;;  %vm3419_vm0 = vweird.f32 %v17515_v48  ;;  %v3428_v53 = vsel %vm3421_vm3, %v3424_v3, %v3427_v12  ;;  %v17538_v0 = vld [vmem:[#allocation73_spill] sm:$0xff]  ;;  %v17543_v3 = vld [vmem:[#allocation82_spill] sm:$0xff] }
 0x6f2   : > { %v6710_v42 = vsel %vm17529_vm8, %v6709_v9, %v17523_v24  ;;  %v6613_v35 = vand.u32 3, %v6609_v18  ;;  %vm17531_vm6 = vnez %v17530_v52  ;;  %v3429_v27 = vsel %vm3419_vm0, nan, %v3428_v53  ;;  %v17540_v24 = vld [vmem:[#allocation53_spill] sm:$0xff] }
 0x6f3   : > { %v6712_v51 = vsel %vm17531_vm6, 0, %v6710_v42  ;;  %v6719_v10 = vxor.u32 2147483648, %v17532_v54  ;;  %v6722_v49 = vxor.u32 2147483648, %v17533_v8  ;;  %v7151_v33 = vpack.c.bf16 %v3429_v27, %v3326_v14  ;;  %v17545_v26 = vld [vmem:[#allocation93_spill] sm:$0xff] }
 0x6f4   : > { %v6716_v50 = vand.u32 3, %v6712_v51  ;;  %vm6612_vm7 = vweird.f32 %v17524_v43  ;;  %vm6615_vm15 = vcmp.eq.s32.totalorder %v6613_v35, 0  ;;  %vm6618_vm4 = vcmp.eq.s32.totalorder %v6613_v35, 2  ;;  %v17542_v43 = vld [vmem:[#allocation96_spill] sm:$0xff] }
 0x6f5   : > { %vm6614_vm11 = vcmp.lt.s32.totalorder %v6613_v35, 2  ;;  %v6617_v16 = vsel %vm6615_vm15, %v17522_v60, %v6616_v6  ;;  %v6620_v41 = vsel %vm6618_vm4, %v6619_v4, %v17521_v23  ;;  %7961 = vmatmul.mubr.bf16.gmra.mrb[24].mxu0 %v7151_v33  ;;  %v3516_v31 = vsub.s32 4, %v17534_v32 }
 0x6f6   : > { %vm6718_vm9 = vcmp.eq.s32.totalorder %v6716_v50, 0  ;;  %v6621_v7 = vsel %vm6614_vm11, %v6617_v16, %v6620_v41  ;;  %vm6721_vm2 = vcmp.eq.s32.totalorder %v6716_v50, 2  ;;  %vm6715_vm14 = vweird.f32 %v17528_v58  ;;  %v17546_v58 = vld [vmem:[#allocation51_spill] sm:$0xff]  ;;  %v17549_v16 = vld [vmem:[#allocation76_spill] sm:$0xff] }
 0x6f7   : > { %v6720_v48 = vsel %vm6718_vm9, %v17533_v8, %v6719_v10  ;;  %v6622_v37 = vsel %vm6612_vm7, nan, %v6621_v7  ;;  %vm6717_vm3 = vcmp.lt.s32.totalorder %v6716_v50, 2  ;;  %v6723_v30 = vsel %vm6721_vm2, %v6722_v49, %v17532_v54 }
 0x6f8   : > { %v6724_v47 = vsel %vm6717_vm3, %v6720_v48, %v6723_v30  ;;  %vm17536_vm13 = vcmp.lt.s32.totalorder %v17535_v46, 0  ;;  %vm3522_vm1 = vweird.f32 %v17535_v46  ;;  %v3619_v17 = vsub.s32 4, %v17537_v61 }
 0x6f9   : > { %v3517_v39 = vsel %vm17536_vm13, %v3516_v31, %v17534_v32  ;;  %v6725_v11 = vsel %vm6715_vm14, nan, %v6724_v47  ;;  %vm17539_vm12 = vnez %v17538_v0  ;;  %v3526_v23 = vxor.u32 2147483648, %v15027_v20  ;;  %v17550_v32 = vld [vmem:[#allocation81_spill] sm:$0xff]  ;;  %v17551_v47 = vld [vmem:[#allocation55_spill] sm:$0xff] }
 0x6fa   : > { %v3519_v14 = vsel %vm17539_vm12, 0, %v3517_v39  ;;  %v3529_v6 = vxor.u32 2147483648, %v14969_v40  ;;  %v7167_v60 = vpack.c.bf16 %v6725_v11, %v6622_v37  ;;  %vm17541_vm5 = vcmp.lt.s32.totalorder %v17540_v24, 0  ;;  %v17556_v0 = vld [vmem:[#allocation47_spill] sm:$0xff] }
 0x6fb   : > { %v3523_v4 = vand.u32 3, %v3519_v14  ;;  %v3620_v9 = vsel %vm17541_vm5, %v3619_v17, %v17537_v61  ;;  %v3629_v21 = vxor.u32 2147483648, %v17542_v43  ;;  %vm17544_vm8 = vnez %v17543_v3  ;;  %v17554_v17 = vld [vmem:[#allocation97_spill] sm:$0xff] }
 0x6fc   : > { %v3622_v12 = vsel %vm17544_vm8, 0, %v3620_v9  ;;  %v3632_v18 = vxor.u32 2147483648, %v17545_v26  ;;  %v6812_v42 = vsub.s32 4, %v17546_v58  ;;  %v6822_v53 = vxor.u32 2147483648, %v15153_v44  ;;  %7993 = vmatmul.mubr.bf16.gmra.mrb[24].mxu1 %v7167_v60 }
 0x6fd   : > { %vm3524_vm0 = vcmp.lt.s32.totalorder %v3523_v4, 2  ;;  %vm3525_vm6 = vcmp.eq.s32.totalorder %v3523_v4, 0  ;;  %vm3528_vm7 = vcmp.eq.s32.totalorder %v3523_v4, 2  ;;  %v3626_v35 = vand.u32 3, %v3622_v12 }
 0x6fe   : > { %v3527_v52 = vsel %vm3525_vm6, %v14969_v40, %v3526_v23  ;;  %v3530_v51 = vsel %vm3528_vm7, %v3529_v6, %v15027_v20  ;;  %vm17547_vm15 = vcmp.lt.s32.totalorder %v14709_v25, 0  ;;  %v6825_v50 = vxor.u32 2147483648, %v15148_v1 }
 0x6ff   : > { %v6813_v27 = vsel %vm17547_vm15, %v6812_v42, %v17546_v58  ;;  %v3531_v54 = vsel %vm3524_vm0, %v3527_v52, %v3530_v51  ;;  %vm3627_vm4 = vcmp.lt.s32.totalorder %v3626_v35, 2  ;;  %vm3628_vm11 = vcmp.eq.s32.totalorder %v3626_v35, 0 }
 0x700   : > { %vm3631_vm9 = vcmp.eq.s32.totalorder %v3626_v35, 2  ;;  %v3532_v10 = vsel %vm3522_vm1, nan, %v3531_v54  ;;  %v3630_v8 = vsel %vm3628_vm11, %v17545_v26, %v3629_v21  ;;  %vm17548_vm2 = vnez %v17273_v5 }
 0x701   : > { %v3633_v49 = vsel %vm3631_vm9, %v3632_v18, %v17542_v43  ;;  %v6815_v40 = vsel %vm17548_vm2, 0, %v6813_v27  ;;  %vm3625_vm14 = vweird.f32 %v17540_v24  ;;  %v6915_v41 = vsub.s32 4, %v17549_v16  ;;  %v17558_v24 = vld [vmem:[#allocation61_spill] sm:$0xff] }
 0x702   : > { %v3634_v20 = vsel %vm3627_vm4, %v3630_v8, %v3633_v49  ;;  %v6819_v33 = vand.u32 3, %v6815_v40  ;;  %vm6818_vm3 = vweird.f32 %v14709_v25  ;;  %v6925_v48 = vxor.u32 2147483648, %v15132_v57 }
 0x703   : > { %v3635_v7 = vsel %vm3625_vm14, nan, %v3634_v20  ;;  %v3722_v31 = vsub.s32 4, %v17550_v32  ;;  %vm17552_vm5 = vcmp.lt.s32.totalorder %v17551_v47, 0  ;;  %vm17553_vm8 = vcmp.lt.s32.totalorder %v14898_v45, 0 }
 0x704   : > { %v7152_v37 = vpack.c.bf16 %v3635_v7, %v3532_v10  ;;  %vm6820_vm13 = vcmp.lt.s32.totalorder %v6819_v33, 2  ;;  %vm6821_vm1 = vcmp.eq.s32.totalorder %v6819_v33, 0  ;;  %vm6824_vm12 = vcmp.eq.s32.totalorder %v6819_v33, 2 }
 0x705   : > { %v6823_v5 = vsel %vm6821_vm1, %v15148_v1, %v6822_v53  ;;  %v6826_v30 = vsel %vm6824_vm12, %v6825_v50, %v15153_v44  ;;  %v6916_v46 = vsel %vm17552_vm5, %v6915_v41, %v17549_v16  ;;  %v3723_v39 = vsel %vm17553_vm8, %v3722_v31, %v17550_v32  ;;  %v17562_v50 = vld [vmem:[#allocation90_spill] sm:$0xff] }
 0x706   : > { %7964 = vmatprep.mubr.bf16.mxu0 %v7152_v37  ;;  %v6827_v61 = vsel %vm6820_vm13, %v6823_v5, %v6826_v30  ;;  %vm17555_vm0 = vnez %v17554_v17  ;;  %v6928_v14 = vxor.u32 2147483648, %v17556_v0  ;;  %vm17557_vm6 = vnez %v17290_v19 }
 0x707   : > { %v6918_v11 = vsel %vm17555_vm0, 0, %v6916_v46  ;;  %v3725_v1 = vsel %vm17557_vm6, 0, %v3723_v39  ;;  %vm6921_vm7 = vweird.f32 %v17551_v47  ;;  %v3732_v6 = vxor.u32 2147483648, %v15286_v34 }
 0x708   : > { %v6922_v44 = vand.u32 3, %v6918_v11  ;;  %v3729_v23 = vand.u32 3, %v3725_v1  ;;  %v6828_v60 = vsel %vm6818_vm3, nan, %v6827_v61  ;;  %v3735_v4 = vxor.u32 2147483648, %v15282_v36 }
 0x709   : > { %v3825_v9 = vsub.s32 4, %v17558_v24  ;;  %v3835_v43 = vxor.u32 2147483648, %v15225_v2  ;;  %vm17559_vm3 = vcmp.lt.s32.totalorder %v14878_v62, 0  ;;  %vm17560_vm13 = vnez %v17286_v56 }
 0x70a   : > { %vm6923_vm15 = vcmp.lt.s32.totalorder %v6922_v44, 2  ;;  %vm6924_vm4 = vcmp.eq.s32.totalorder %v6922_v44, 0  ;;  %vm6927_vm11 = vcmp.eq.s32.totalorder %v6922_v44, 2  ;;  %vm3730_vm9 = vcmp.lt.s32.totalorder %v3729_v23, 2 }
 0x70b   : > { %v6926_v19 = vsel %vm6924_vm4, %v17556_v0, %v6925_v48  ;;  %v6929_v21 = vsel %vm6927_vm11, %v6928_v14, %v15132_v57  ;;  %vm3731_vm2 = vcmp.eq.s32.totalorder %v3729_v23, 0  ;;  %vm3734_vm14 = vcmp.eq.s32.totalorder %v3729_v23, 2 }
 0x70c   : > { %v6930_v3 = vsel %vm6923_vm15, %v6926_v19, %v6929_v21  ;;  %v3733_v25 = vsel %vm3731_vm2, %v15282_v36, %v3732_v6  ;;  %v3736_v12 = vsel %vm3734_vm14, %v3735_v4, %v15286_v34  ;;  %v3826_v26 = vsel %vm17559_vm3, %v3825_v9, %v17558_v24  ;;  %v17561_v36 = vld [vmem:[#allocation89_spill] sm:$0xff] }
 0x70d   : > { %v6931_v18 = vsel %vm6921_vm7, nan, %v6930_v3  ;;  %v3737_v58 = vsel %vm3730_vm9, %v3733_v25, %v3736_v12  ;;  %v3828_v42 = vsel %vm17560_vm13, 0, %v3826_v26  ;;  %v3838_v57 = vxor.u32 2147483648, %v15217_v63 }
 0x70e   : > { %v7168_v53 = vpack.c.bf16 %v6931_v18, %v6828_v60  ;;  %vm3728_vm1 = vweird.f32 %v14898_v45  ;;  %v3832_v35 = vand.u32 3, %v3828_v42  ;;  %v7018_v52 = vsub.s32 4, %v17561_v36 }
 0x70f   : > { %v3738_v34 = vsel %vm3728_vm1, nan, %v3737_v58  ;;  %v7028_v51 = vxor.u32 2147483648, %v15508_v55  ;;  %v7031_v27 = vxor.u32 2147483648, %v15466_v28  ;;  %v7121_v54 = vsub.s32 4, %v17562_v50 }
 0x710   : > { %7996 = vmatprep.mubr.bf16.mxu1 %v7168_v53  ;;  %vm3833_vm12 = vcmp.lt.s32.totalorder %v3832_v35, 2  ;;  %vm3834_vm5 = vcmp.eq.s32.totalorder %v3832_v35, 0  ;;  %vm3837_vm8 = vcmp.eq.s32.totalorder %v3832_v35, 2  ;;  %vm17563_vm0 = vcmp.lt.s32.totalorder %v15085_v29, 0 }
 0x711   : > { %v7019_v56 = vsel %vm17563_vm0, %v7018_v52, %v17561_v36  ;;  %v3836_v45 = vsel %vm3834_vm5, %v15217_v63, %v3835_v43  ;;  %v3839_v10 = vsel %vm3837_vm8, %v3838_v57, %v15225_v2  ;;  %vm17564_vm6 = vcmp.lt.s32.totalorder %v15077_v22, 0 }
 0x712   : > { %v7021_v8 = vsel %vm15375_vm10, 0, %v7019_v56  ;;  %v7122_v49 = vsel %vm17564_vm6, %v7121_v54, %v17562_v50  ;;  %vm3831_vm7 = vweird.f32 %v14878_v62  ;;  %v3840_v40 = vsel %vm3833_vm12, %v3836_v45, %v3839_v10 }
 0x713   : > { %v7025_v20 = vand.u32 3, %v7021_v8  ;;  %vm17565_vm15 = vnez %v17328_v38  ;;  %v3841_v16 = vsel %vm3831_vm7, nan, %v3840_v40  ;;  %v7131_v63 = vxor.u32 2147483648, %v15400_v15 }
 0x714   : > { %v7124_v33 = vsel %vm17565_vm15, 0, %v7122_v49  ;;  %v7134_v2 = vxor.u32 2147483648, %v15394_v13  ;;  %v7153_v7 = vpack.c.bf16 %v3841_v16, %v3738_v34  ;;  %vm7024_vm2 = vweird.f32 %v15085_v29 }
 0x715   : > { %v7128_v41 = vand.u32 3, %v7124_v33  ;;  %vm7027_vm4 = vcmp.eq.s32.totalorder %v7025_v20, 0  ;;  %vm7030_vm10 = vcmp.eq.s32.totalorder %v7025_v20, 2  ;;  %vm7026_vm11 = vcmp.lt.s32.totalorder %v7025_v20, 2 }
 0x716   : > { %v7029_v59 = vsel %vm7027_vm4, %v15466_v28, %v7028_v51  ;;  %v7032_v48 = vsel %vm7030_vm10, %v7031_v27, %v15508_v55  ;;  %7965 = vmatmul.mubr.bf16.gmra.mrb[28].mxu0 %v7153_v7  ;;  %vm7127_vm13 = vweird.f32 %v15077_v22 }
 0x717   : > { %vm7130_vm9 = vcmp.eq.s32.totalorder %v7128_v41, 0  ;;  %v7033_v62 = vsel %vm7026_vm11, %v7029_v59, %v7032_v48  ;;  %vm7133_vm14 = vcmp.eq.s32.totalorder %v7128_v41, 2  ;;  %vm7129_vm3 = vcmp.lt.s32.totalorder %v7128_v41, 2 }
 0x718   : > { %v7132_v38 = vsel %vm7130_vm9, %v15394_v13, %v7131_v63  ;;  %v7034_v32 = vsel %vm7024_vm2, nan, %v7033_v62  ;;  %v7135_v31 = vsel %vm7133_vm14, %v7134_v2, %v15400_v15 }
 0x719   : > { %v7136_v28 = vsel %vm7129_vm3, %v7132_v38, %v7135_v31 }
 0x71a   : > { %v7137_v55 = vsel %vm7127_vm13, nan, %v7136_v28 }
 0x71b   : > { %v7169_v37 = vpack.c.bf16 %v7137_v55, %v7034_v32 }
 0x71d   : > { %7997 = vmatmul.mubr.bf16.gmra.mrb[28].mxu1 %v7169_v37 }
 0x737   : > { %v7946_v29 = vpop.f32.mrb[8].mxu0 }
 0x738   : > { %7534 = vst [vmem:[%s15443_s9 + $0x50] sm:$0xff] %v7946_v29  ;;  %v7300_v13 = vpop.f32.mrb[9].mxu0 }
 0x739   : > { %7532 = vst [vmem:[%s15443_s9 + $0x40] sm:$0xff] %v7300_v13  ;;  %v7947_v5 = vpop.f32.mrb[10].mxu0 }
 0x73a   : > { %7535 = vst [vmem:[%s15443_s9 + $0x58] sm:$0xff] %v7947_v5  ;;  %v7303_v30 = vpop.f32.mrb[11].mxu0 }
 0x73b   : > { %7533 = vst [vmem:[%s15443_s9 + $0x48] sm:$0xff] %v7303_v30 }
 0x749   : > { %v7978_v22 = vpop.f32.mrb[8].mxu1 }
 0x74a   : > { %7566 = vst [vmem:[%s15443_s9 + $0x150] sm:$0xff] %v7978_v22  ;;  %v7428_v15 = vpop.f32.mrb[9].mxu1 }
 0x74b   : > { %7564 = vst [vmem:[%s15443_s9 + $0x140] sm:$0xff] %v7428_v15  ;;  %v7979_v47 = vpop.f32.mrb[10].mxu1 }
 0x74c   : > { %7567 = vst [vmem:[%s15443_s9 + $0x158] sm:$0xff] %v7979_v47  ;;  %v7431_v46 = vpop.f32.mrb[11].mxu1 }
 0x74d   : > { %7565 = vst [vmem:[%s15443_s9 + $0x148] sm:$0xff] %v7431_v46 }
 0x768   : > { %v7950_v39 = vpop.f32.mrb[12].mxu0 }
 0x769   : > { %7538 = vst [vmem:[%s15443_s9 + $0x70] sm:$0xff] %v7950_v39  ;;  %v7316_v61 = vpop.f32.mrb[13].mxu0 }
 0x76a   : > { %7536 = vst [vmem:[%s15443_s9 + $0x60] sm:$0xff] %v7316_v61  ;;  %v7951_v17 = vpop.f32.mrb[14].mxu0 }
 0x76b   : > { %7539 = vst [vmem:[%s15443_s9 + $0x78] sm:$0xff] %v7951_v17  ;;  %v7319_v11 = vpop.f32.mrb[15].mxu0 }
 0x76c   : > { %7537 = vst [vmem:[%s15443_s9 + $0x68] sm:$0xff] %v7319_v11 }
 0x76f   : > { %v7982_v0 = vpop.f32.mrb[12].mxu1 }
 0x770   : > { %7570 = vst [vmem:[%s15443_s9 + $0x170] sm:$0xff] %v7982_v0  ;;  %v7444_v14 = vpop.f32.mrb[13].mxu1 }
 0x771   : > { %7568 = vst [vmem:[%s15443_s9 + $0x160] sm:$0xff] %v7444_v14  ;;  %v7983_v1 = vpop.f32.mrb[14].mxu1 }
 0x772   : > { %7571 = vst [vmem:[%s15443_s9 + $0x178] sm:$0xff] %v7983_v1  ;;  %v7447_v44 = vpop.f32.mrb[15].mxu1 }
 0x773   : > { %7569 = vst [vmem:[%s15443_s9 + $0x168] sm:$0xff] %v7447_v44 }
 0x788   : > { %v7954_v23 = vpop.f32.mrb[16].mxu0 }
 0x789   : > { %7542 = vst [vmem:[%s15443_s9 + $0x90] sm:$0xff] %v7954_v23  ;;  %v7332_v6 = vpop.f32.mrb[17].mxu0 }
 0x78a   : > { %7540 = vst [vmem:[%s15443_s9 + $0x80] sm:$0xff] %v7332_v6  ;;  %v7955_v60 = vpop.f32.mrb[18].mxu0 }
 0x78b   : > { %7543 = vst [vmem:[%s15443_s9 + $0x98] sm:$0xff] %v7955_v60  ;;  %v7335_v4 = vpop.f32.mrb[19].mxu0 }
 0x78c   : > { %7541 = vst [vmem:[%s15443_s9 + $0x88] sm:$0xff] %v7335_v4 }
 0x791   : > { %v7986_v24 = vpop.f32.mrb[16].mxu1 }
 0x792   : > { %7574 = vst [vmem:[%s15443_s9 + $0x190] sm:$0xff] %v7986_v24  ;;  %v7460_v9 = vpop.f32.mrb[17].mxu1 }
 0x793   : > { %7572 = vst [vmem:[%s15443_s9 + $0x180] sm:$0xff] %v7460_v9  ;;  %v7987_v43 = vpop.f32.mrb[18].mxu1 }
 0x794   : > { %7575 = vst [vmem:[%s15443_s9 + $0x198] sm:$0xff] %v7987_v43  ;;  %v7463_v19 = vpop.f32.mrb[19].mxu1 }
 0x795   : > { %7573 = vst [vmem:[%s15443_s9 + $0x188] sm:$0xff] %v7463_v19 }
 0x7a7   : > { %v7958_v21 = vpop.f32.mrb[20].mxu0 }
 0x7a8   : > { %7546 = vst [vmem:[%s15443_s9 + $0xb0] sm:$0xff] %v7958_v21  ;;  %v7348_v3 = vpop.f32.mrb[21].mxu0 }
 0x7a9   : > { %7544 = vst [vmem:[%s15443_s9 + $0xa0] sm:$0xff] %v7348_v3  ;;  %v7959_v25 = vpop.f32.mrb[22].mxu0 }
 0x7aa   : > { %7547 = vst [vmem:[%s15443_s9 + $0xb8] sm:$0xff] %v7959_v25  ;;  %v7351_v12 = vpop.f32.mrb[23].mxu0 }
 0x7ab   : > { %7545 = vst [vmem:[%s15443_s9 + $0xa8] sm:$0xff] %v7351_v12 }
 0x7ae   : > { %v7990_v26 = vpop.f32.mrb[20].mxu1 }
 0x7af   : > { %7578 = vst [vmem:[%s15443_s9 + $0x1b0] sm:$0xff] %v7990_v26  ;;  %v7476_v18 = vpop.f32.mrb[21].mxu1 }
 0x7b0   : > { %7576 = vst [vmem:[%s15443_s9 + $0x1a0] sm:$0xff] %v7476_v18  ;;  %v7991_v58 = vpop.f32.mrb[22].mxu1 }
 0x7b1   : > { %7579 = vst [vmem:[%s15443_s9 + $0x1b8] sm:$0xff] %v7991_v58  ;;  %v7479_v42 = vpop.f32.mrb[23].mxu1 }
 0x7b2   : > { %7577 = vst [vmem:[%s15443_s9 + $0x1a8] sm:$0xff] %v7479_v42 }
 0x7c8   : > { %v7962_v57 = vpop.f32.mrb[24].mxu0 }
 0x7c9   : > { %7550 = vst [vmem:[%s15443_s9 + $0xd0] sm:$0xff] %v7962_v57  ;;  %v7364_v53 = vpop.f32.mrb[25].mxu0 }
 0x7ca   : > { %7548 = vst [vmem:[%s15443_s9 + $0xc0] sm:$0xff] %v7364_v53  ;;  %v7963_v35 = vpop.f32.mrb[26].mxu0 }
 0x7cb   : > { %7551 = vst [vmem:[%s15443_s9 + $0xd8] sm:$0xff] %v7963_v35  ;;  %v7367_v36 = vpop.f32.mrb[27].mxu0 }
 0x7cc   : > { %7549 = vst [vmem:[%s15443_s9 + $0xc8] sm:$0xff] %v7367_v36 }
 0x7cf   : > { %v7994_v52 = vpop.f32.mrb[24].mxu1 }
 0x7d0   : > { %7582 = vst [vmem:[%s15443_s9 + $0x1d0] sm:$0xff] %v7994_v52  ;;  %v7492_v34 = vpop.f32.mrb[25].mxu1 }
 0x7d1   : > { %7580 = vst [vmem:[%s15443_s9 + $0x1c0] sm:$0xff] %v7492_v34  ;;  %v7995_v51 = vpop.f32.mrb[26].mxu1 }
 0x7d2   : > { %7583 = vst [vmem:[%s15443_s9 + $0x1d8] sm:$0xff] %v7995_v51  ;;  %v7495_v27 = vpop.f32.mrb[27].mxu1 }
 0x7d3   : > { %7581 = vst [vmem:[%s15443_s9 + $0x1c8] sm:$0xff] %v7495_v27 }
 0x7e9   : > { %v7966_v50 = vpop.f32.mrb[28].mxu0 }
 0x7ea   : > { %7554 = vst [vmem:[%s15443_s9 + $0xf0] sm:$0xff] %v7966_v50  ;;  %v7380_v54 = vpop.f32.mrb[29].mxu0 }
 0x7eb   : > { %7552 = vst [vmem:[%s15443_s9 + $0xe0] sm:$0xff] %v7380_v54  ;;  %v7967_v56 = vpop.f32.mrb[30].mxu0 }
 0x7ec   : > { %7555 = vst [vmem:[%s15443_s9 + $0xf8] sm:$0xff] %v7967_v56  ;;  %v7383_v45 = vpop.f32.mrb[31].mxu0 }
 0x7ed   : > { %7553 = vst [vmem:[%s15443_s9 + $0xe8] sm:$0xff] %v7383_v45 }
 0x7ee   :  { %22 = sbr.rel (!%p20_p0) target bundleno = 3 (0x3), region = 41 }
 0x7f0   : > { %v7998_v10 = vpop.f32.mrb[28].mxu1 }
 0x7f1   : > { %7586 = vst [vmem:[%s15443_s9 + $0x1f0] sm:$0xff] %v7998_v10  ;;  %v7508_v8 = vpop.f32.mrb[29].mxu1 }
 0x7f2   : > { %7584 = vst [vmem:[%s15443_s9 + $0x1e0] sm:$0xff] %v7508_v8  ;;  %v7999_v49 = vpop.f32.mrb[30].mxu1 }
 0x7f3   : > { %7587 = vst [vmem:[%s15443_s9 + $0x1f8] sm:$0xff] %v7999_v49  ;;  %v7511_v40 = vpop.f32.mrb[31].mxu1 }
 0x7f4   : > { %7585 = vst [vmem:[%s15443_s9 + $0x1e8] sm:$0xff] %v7511_v40 }
 0x7f5   :  { %8567 = shalt.err (!%p8564_p5)
}
 0x7f6   :  { %s8568_s15 = scalar_lea.hbm %s15929_s3, 16384 }
 0x7f7   :  { %p8569_p6 = scmp.ne.s32.totalorder %s15929_s3, %s8568_s15  ;;  %p8572_p7 = scmp.lt.u32.totalorder %s8568_s15, %s15929_s3 }
 0x7f9   :  { %p8574_p8 = pnand %p8572_p7, %p8569_p6 }
 0x7fb   :  { %8577 = shalt.err (!%p8574_p8)
}
 0x7fc   :  { %s8596_s0 = smov 128   ;;  %s8597_s2 = smov 8  }
 0x7fd   :  { %7599 = dma.vmem_to_hbm [thread:$0]  %s7594_s11, 16384, %s15929_s3, [#allocation3], %s8596_s0, %s8596_s0, %s8597_s2  }
 0x7fe   :  { %8582 = dma.done.wait [#allocation3], 16384  }
 0x7ff   :  { %8583 = vsyncadd [#allocation3], 4294950912 }
 0x800   :  { %7603 = vsyncpa [#allocation3], 1 }

</bundles_post_ra>
